<compile_context>
chip_gen: v6e
topology: v6e:2x2x1
jax: 0.10.0
libtpu: 0.0.40
codegen_flags: <defaults>
</compile_context>

<pallas_src>
import math
import jax
import jax.numpy as jnp
from jax import lax
from jax.experimental import pallas as pl
from jax.experimental.pallas import tpu as pltpu

INPUT_DIM = 24
INPUT_PAD = 32            # feature dim padded on the VMEM tile (zero wp rows keep results exact)
EMBED_DIM = 128
NUM_LAYERS = 3
NUM_HEADS = 8
FF_HIDDEN = 256
LN_EPS = 1e-5


def _layernorm(x, gamma, beta):
    # x: (M, E) float32; statistics kept strictly in f32 (biased variance, as in torch)
    mu = jnp.mean(x, axis=-1, keepdims=True)
    xc = x - mu
    var = jnp.mean(xc * xc, axis=-1, keepdims=True)
    inv = lax.rsqrt(var + LN_EPS)
    return xc * inv * gamma + beta


def market_encoder_kernel(x_ref, pe_ref, wp_ref,
                          wqkv_ref, bqkv_ref, wo_ref, bo_ref,
                          g1_ref, be1_ref, w1_ref, bf1_ref,
                          w2_ref, bf2_ref, g2_ref, be2_ref,
                          out_ref):
    E = EMBED_DIM
    H = NUM_HEADS
    hd = E // H
    scale = 1.0 / math.sqrt(hd)
    bf = jnp.bfloat16

    TB, S, F = x_ref.shape
    M = TB * S
    BH = TB * H
    F_pad = wp_ref.shape[0]

    # ---- linear projection + positional encoding (dropout = identity) ----
    x = x_ref[...].reshape(M, F).astype(bf)
    if F < F_pad:  # pad the ragged 24-lane feature dim on the VMEM tile (no extra HBM pass)
        x = jnp.concatenate([x, jnp.zeros((M, F_pad - F), bf)], axis=-1)
    proj = jnp.dot(x, wp_ref[...], preferred_element_type=jnp.float32)        # (M, E)
    # projection bias is pre-folded into pe_ref by prepare_params
    h = (proj.reshape(TB, S, E) + pe_ref[...]).reshape(M, E)                  # f32

    for l in range(NUM_LAYERS):
        # ---------- multi-head self-attention, batched over TB*H ----------
        qkv = jnp.dot(h.astype(bf), wqkv_ref[l],
                      preferred_element_type=jnp.float32) + bqkv_ref[l]       # (M, 3E) f32
        qkv = qkv.astype(bf).reshape(TB, S, 3 * E)

        def split_heads(off):
            # (TB, S, E) lane block -> (H*TB, S, hd): heads folded into the batch dim
            # via cheap 16-lane slices + a leading-axis concat (no 4-D transpose).
            parts = [qkv[:, :, off + hh * hd: off + (hh + 1) * hd] for hh in range(H)]
            return jnp.concatenate(parts, axis=0)

        qh = split_heads(0 * E)                                               # (BH, S, hd)
        kh = split_heads(1 * E)
        vh = split_heads(2 * E)

        s = jnp.einsum('bqd,bkd->bqk', qh, kh,
                       preferred_element_type=jnp.float32) * scale           # (BH, S, S)
        s = s - jnp.max(s, axis=-1, keepdims=True)
        p = jnp.exp(s)
        # EUP approx reciprocal: denominator >= 1 after max-subtraction; ~1e-3 rel err
        p = p * pl.reciprocal(jnp.sum(p, axis=-1, keepdims=True), approx=True)
        ctx = jnp.einsum('bqk,bkd->bqd', p.astype(bf), vh,
                         preferred_element_type=jnp.float32)                  # (BH, S, hd)
        ctx = ctx.reshape(H, TB, S, hd)
        attn = jnp.concatenate([ctx[hh] for hh in range(H)], axis=-1)         # (TB, S, E)
        attn = jnp.dot(attn.reshape(M, E).astype(bf), wo_ref[l],
                       preferred_element_type=jnp.float32) + bo_ref[l]
        h = _layernorm(h + attn, g1_ref[l], be1_ref[l])

        # ---------- position-wise FFN ----------
        ff = jnp.dot(h.astype(bf), w1_ref[l],
                     preferred_element_type=jnp.float32) + bf1_ref[l]
        ff = jnp.maximum(ff, 0.0)
        ff = jnp.dot(ff.astype(bf), w2_ref[l],
                     preferred_element_type=jnp.float32) + bf2_ref[l]
        h = _layernorm(h + ff, g2_ref[l], be2_ref[l])

    out_ref[...] = h.reshape(TB, S, E)


def _choose_tb(B, S, target_rows=256, max_rows=2048):
    """Pick the batch tile: smallest tile reaching the MXU-native M = TB*S (256 rows),
    capped at ~2K rows for v7x's 64 MiB VMEM, preferring an even, >=2-step grid so
    both v7x TensorCores stay busy (never the degenerate tb=1 / M=8 case)."""
    divs = [t for t in range(1, B + 1) if B % t == 0 and t * S <= max_rows] or [1]

    def pick(pool, smallest):
        even = [t for t in pool if (B // t) >= 2 and (B // t) % 2 == 0]
        pool = even or pool
        return min(pool) if smallest else max(pool)

    full = [t for t in divs if t * S >= target_rows]
    if full:
        return pick(full, smallest=True)
    multi = [t for t in divs if B // t >= 2]
    if multi and 2 * max(multi) >= max(divs):   # don't shrink M by >2x just to multi-step
        return pick(multi, smallest=False)
    return pick(divs, smallest=False)


def prepare_params(params):
    """One-time conversion of the f32 parameter pytree into kernel-ready operands:
    bf16 MXU weights, projection bias folded into the PE table, wp padded to INPUT_PAD.
    Call once and reuse; per-call HBM traffic is then just x and the output.
    NOTE: when importing real nn.MultiheadAttention weights, in_proj_weight is (3E, E)
    and must be transposed to the (E, 3E) [Wq;Wk;Wv] packing used here."""
    pe, wp, bp, wqkv, bqkv, wo, bo, g1, be1, w1, b1, w2, b2, g2, be2 = params
    bf = jnp.bfloat16
    f32 = jnp.float32
    pe_bp = (pe + bp).astype(f32)                                             # (S, E)
    wp_p = jnp.pad(wp, ((0, INPUT_PAD - wp.shape[0]), (0, 0))).astype(bf)     # (32, E)
    return (pe_bp, wp_p,
            wqkv.astype(bf), bqkv.astype(f32),
            wo.astype(bf), bo.astype(f32),
            g1.astype(f32), be1.astype(f32),
            w1.astype(bf), b1.astype(f32),
            w2.astype(bf), b2.astype(f32),
            g2.astype(f32), be2.astype(f32))


@jax.jit
def market_encoder(x, prepared):
    B, S, F = x.shape
    tb = _choose_tb(B, S)
    assert B % tb == 0

    def const_spec(shape):
        # block index never changes -> single-buffered (saves ~1 MB VMEM vs default 2)
        n = len(shape)
        return pl.BlockSpec(shape, lambda b, _n=n: (0,) * _n,
                            pipeline_mode=pl.Buffered(1))

    in_specs = [
        pl.BlockSpec((tb, S, F), lambda b: (b, 0, 0)),                        # x (F=24)
        const_spec((S, EMBED_DIM)),                                           # pe + bp
        const_spec((INPUT_PAD, EMBED_DIM)),                                   # wp (padded)
        const_spec((NUM_LAYERS, EMBED_DIM, 3 * EMBED_DIM)),                   # wqkv
        const_spec((NUM_LAYERS, 1, 3 * EMBED_DIM)),                           # bqkv
        const_spec((NUM_LAYERS, EMBED_DIM, EMBED_DIM)),                       # wo
        const_spec((NUM_LAYERS, 1, EMBED_DIM)),                               # bo
        const_spec((NUM_LAYERS, 1, EMBED_DIM)),                               # ln1 gamma
        const_spec((NUM_LAYERS, 1, EMBED_DIM)),                               # ln1 beta
        const_spec((NUM_LAYERS, EMBED_DIM, FF_HIDDEN)),                       # w1
        const_spec((NUM_LAYERS, 1, FF_HIDDEN)),                               # b1
        const_spec((NUM_LAYERS, FF_HIDDEN, EMBED_DIM)),                       # w2
        const_spec((NUM_LAYERS, 1, EMBED_DIM)),                               # b2
        const_spec((NUM_LAYERS, 1, EMBED_DIM)),                               # ln2 gamma
        const_spec((NUM_LAYERS, 1, EMBED_DIM)),                               # ln2 beta
    ]
    out_spec = pl.BlockSpec((tb, S, EMBED_DIM), lambda b: (b, 0, 0))

    return pl.pallas_call(
        market_encoder_kernel,
        out_shape=jax.ShapeDtypeStruct((B, S, EMBED_DIM), jnp.float32),
        grid_spec=pltpu.PrefetchScalarGridSpec(
            num_scalar_prefetch=0,
            grid=(B // tb,),
            in_specs=in_specs,
            out_specs=out_spec,
        ),
        compiler_params=pltpu.CompilerParams(
            dimension_semantics=("parallel",),
            vmem_limit_bytes=48 * 1024 * 1024,
        ),
    )(x, *prepared)


def positional_encoding_table(S, E):
    pos = jnp.arange(S, dtype=jnp.float32)[:, None]                           # (S, 1)
    div = jnp.exp(jnp.arange(0, E, 2, dtype=jnp.float32) * (-math.log(10000.0) / E))
    ang = pos * div                                                           # (S, E/2)
    # interleave: even cols = sin, odd cols = cos (matches pe[:,0::2]/pe[:,1::2])
    return jnp.stack([jnp.sin(ang), jnp.cos(ang)], axis=-1).reshape(S, E)


def init_params(key, S):
    ks = jax.random.split(key, 8)

    def w(k, shape, fan_in):
        return (jax.random.normal(k, shape, jnp.float32) / math.sqrt(fan_in)).astype(jnp.float32)

    pe = positional_encoding_table(S, EMBED_DIM)
    wp = w(ks[0], (INPUT_DIM, EMBED_DIM), INPUT_DIM)
    bp = jnp.zeros((1, EMBED_DIM), jnp.float32)

    wqkv = w(ks[1], (NUM_LAYERS, EMBED_DIM, 3 * EMBED_DIM), EMBED_DIM)
    bqkv = jnp.zeros((NUM_LAYERS, 1, 3 * EMBED_DIM), jnp.float32)
    wo = w(ks[2], (NUM_LAYERS, EMBED_DIM, EMBED_DIM), EMBED_DIM)
    bo = jnp.zeros((NUM_LAYERS, 1, EMBED_DIM), jnp.float32)

    g1 = jnp.ones((NUM_LAYERS, 1, EMBED_DIM), jnp.float32)
    be1 = jnp.zeros((NUM_LAYERS, 1, EMBED_DIM), jnp.float32)

    w1 = w(ks[3], (NUM_LAYERS, EMBED_DIM, FF_HIDDEN), EMBED_DIM)
    b1 = jnp.zeros((NUM_LAYERS, 1, FF_HIDDEN), jnp.float32)
    w2 = w(ks[4], (NUM_LAYERS, FF_HIDDEN, EMBED_DIM), FF_HIDDEN)
    b2 = jnp.zeros((NUM_LAYERS, 1, EMBED_DIM), jnp.float32)

    g2 = jnp.ones((NUM_LAYERS, 1, EMBED_DIM), jnp.float32)
    be2 = jnp.zeros((NUM_LAYERS, 1, EMBED_DIM), jnp.float32)

    return (pe, wp, bp, wqkv, bqkv, wo, bo, g1, be1, w1, b1, w2, b2, g2, be2)


if __name__ == "__main__":
    key = jax.random.PRNGKey(0)
    kx, kp = jax.random.split(key)
    B, S = 8, 8                      # small demo shapes; _choose_tb -> tb=4, grid of 2 steps
    x = jax.random.normal(kx, (B, S, INPUT_DIM), dtype=jnp.float32)
    params = init_params(kp, S)
    prepared = prepare_params(params)    # one-time: bf16 weights, folded PE+bias, padded wp

    out = market_encoder(x, prepared)
    jax.block_until_ready(out)
    assert out.shape == (B, S, EMBED_DIM)
    assert bool(jnp.all(jnp.isfinite(out)))
    # TODO(synk): dropout is omitted (inference semantics); training-mode dropout would need pltpu.prng_*.
    print("KERNEL_OK")
</pallas_src>

<mosaic_0001>
module attributes {stable_mosaic.version = 11 : i64} {
  func.func @market_encoder_kernel(%arg0: i32, %arg1: memref<4x8x24xf32, #tpu.memory_space<vmem>>, %arg2: memref<8x128xf32, #tpu.memory_space<vmem>>, %arg3: memref<32x128xbf16, #tpu.memory_space<vmem>>, %arg4: memref<3x128x384xbf16, #tpu.memory_space<vmem>>, %arg5: memref<3x1x384xf32, #tpu.memory_space<vmem>>, %arg6: memref<3x128x128xbf16, #tpu.memory_space<vmem>>, %arg7: memref<3x1x128xf32, #tpu.memory_space<vmem>>, %arg8: memref<3x1x128xf32, #tpu.memory_space<vmem>>, %arg9: memref<3x1x128xf32, #tpu.memory_space<vmem>>, %arg10: memref<3x128x256xbf16, #tpu.memory_space<vmem>>, %arg11: memref<3x1x256xf32, #tpu.memory_space<vmem>>, %arg12: memref<3x256x128xbf16, #tpu.memory_space<vmem>>, %arg13: memref<3x1x128xf32, #tpu.memory_space<vmem>>, %arg14: memref<3x1x128xf32, #tpu.memory_space<vmem>>, %arg15: memref<3x1x128xf32, #tpu.memory_space<vmem>>, %arg16: memref<4x8x128xf32, #tpu.memory_space<vmem>>) attributes {dimension_semantics = [#tpu.dimension_semantics<parallel>], iteration_bounds = array<i64: 2>, scalar_prefetch = 0 : i64, scratch_operands = 0 : i64, tpu.core_type = #tpu.core_type<tc>, window_params = [{transform_indices = @transform_0, window_bounds = array<i64: 4, 8, 24>}, {pipeline_mode = #tpu.pipeline_mode<synchronous>, transform_indices = @transform_1, window_bounds = array<i64: 8, 128>}, {pipeline_mode = #tpu.pipeline_mode<synchronous>, transform_indices = @transform_2, window_bounds = array<i64: 32, 128>}, {pipeline_mode = #tpu.pipeline_mode<synchronous>, transform_indices = @transform_3, window_bounds = array<i64: 3, 128, 384>}, {pipeline_mode = #tpu.pipeline_mode<synchronous>, transform_indices = @transform_4, window_bounds = array<i64: 3, 1, 384>}, {pipeline_mode = #tpu.pipeline_mode<synchronous>, transform_indices = @transform_5, window_bounds = array<i64: 3, 128, 128>}, {pipeline_mode = #tpu.pipeline_mode<synchronous>, transform_indices = @transform_6, window_bounds = array<i64: 3, 1, 128>}, {pipeline_mode = #tpu.pipeline_mode<synchronous>, transform_indices = @transform_7, window_bounds = array<i64: 3, 1, 128>}, {pipeline_mode = #tpu.pipeline_mode<synchronous>, transform_indices = @transform_8, window_bounds = array<i64: 3, 1, 128>}, {pipeline_mode = #tpu.pipeline_mode<synchronous>, transform_indices = @transform_9, window_bounds = array<i64: 3, 128, 256>}, {pipeline_mode = #tpu.pipeline_mode<synchronous>, transform_indices = @transform_10, window_bounds = array<i64: 3, 1, 256>}, {pipeline_mode = #tpu.pipeline_mode<synchronous>, transform_indices = @transform_11, window_bounds = array<i64: 3, 256, 128>}, {pipeline_mode = #tpu.pipeline_mode<synchronous>, transform_indices = @transform_12, window_bounds = array<i64: 3, 1, 128>}, {pipeline_mode = #tpu.pipeline_mode<synchronous>, transform_indices = @transform_13, window_bounds = array<i64: 3, 1, 128>}, {pipeline_mode = #tpu.pipeline_mode<synchronous>, transform_indices = @transform_14, window_bounds = array<i64: 3, 1, 128>}, {transform_indices = @transform_15, window_bounds = array<i64: 4, 8, 128>}]} {
    %c0 = arith.constant 0 : index
    %c0_0 = arith.constant 0 : index
    %c0_1 = arith.constant 0 : index
    %0 = vector.load %arg1[%c0, %c0_0, %c0_1] : memref<4x8x24xf32, #tpu.memory_space<vmem>>, vector<4x8x24xf32>
    %1 = vector.shape_cast %0 : vector<4x8x24xf32> to vector<32x24xf32>
    %2 = arith.truncf %1 : vector<32x24xf32> to vector<32x24xbf16>
    %cst = arith.constant 0.000000e+00 : bf16
    %3 = vector.broadcast %cst : bf16 to vector<32x8xbf16>
    %4 = tpu.concatenate %2, %3 in 1 : vector<32x24xbf16>, vector<32x8xbf16> -> vector<32x32xbf16>
    %c0_2 = arith.constant 0 : index
    %c0_3 = arith.constant 0 : index
    %5 = vector.load %arg3[%c0_2, %c0_3] : memref<32x128xbf16, #tpu.memory_space<vmem>>, vector<32x128xbf16>
    %cst_4 = arith.constant dense<0.000000e+00> : vector<32x128xf32>
    %6 = tpu.matmul %4, %5, %cst_4 {dimension_numbers = #tpu.dot_dimension_numbers<[1], [0], [0], [1], [0, 0, 1, 1], [], []>} : vector<32x32xbf16>, vector<32x128xbf16>, vector<32x128xf32> -> vector<32x128xf32>
    %7 = vector.shape_cast %6 : vector<32x128xf32> to vector<4x8x128xf32>
    %c0_5 = arith.constant 0 : index
    %c0_6 = arith.constant 0 : index
    %8 = vector.load %arg2[%c0_5, %c0_6] : memref<8x128xf32, #tpu.memory_space<vmem>>, vector<8x128xf32>
    %9 = vector.shape_cast %8 : vector<8x128xf32> to vector<1x8x128xf32>
    %10 = vector.broadcast %9 : vector<1x8x128xf32> to vector<4x8x128xf32>
    %11 = arith.addf %7, %10 : vector<4x8x128xf32>
    %12 = vector.shape_cast %11 : vector<4x8x128xf32> to vector<32x128xf32>
    %13 = arith.truncf %12 : vector<32x128xf32> to vector<32x128xbf16>
    %c0_7 = arith.constant 0 : index
    %c0_8 = arith.constant 0 : index
    %c0_9 = arith.constant 0 : index
    %14 = vector.load %arg4[%c0_7, %c0_8, %c0_9] : memref<3x128x384xbf16, #tpu.memory_space<vmem>>, vector<1x128x384xbf16>
    %15 = vector.shape_cast %14 : vector<1x128x384xbf16> to vector<128x384xbf16>
    %cst_10 = arith.constant dense<0.000000e+00> : vector<32x384xf32>
    %16 = tpu.matmul %13, %15, %cst_10 {dimension_numbers = #tpu.dot_dimension_numbers<[1], [0], [0], [1], [0, 0, 1, 1], [], []>} : vector<32x128xbf16>, vector<128x384xbf16>, vector<32x384xf32> -> vector<32x384xf32>
    %c0_11 = arith.constant 0 : index
    %c0_12 = arith.constant 0 : index
    %c0_13 = arith.constant 0 : index
    %17 = vector.load %arg5[%c0_11, %c0_12, %c0_13] : memref<3x1x384xf32, #tpu.memory_space<vmem>>, vector<1x1x384xf32>
    %18 = vector.shape_cast %17 : vector<1x1x384xf32> to vector<1x384xf32>
    %19 = vector.broadcast %18 : vector<1x384xf32> to vector<32x384xf32>
    %20 = arith.addf %16, %19 : vector<32x384xf32>
    %21 = arith.truncf %20 : vector<32x384xf32> to vector<32x384xbf16>
    %22 = vector.shape_cast %21 : vector<32x384xbf16> to vector<4x8x384xbf16>
    %23 = vector.extract_strided_slice %22 {offsets = [0, 0, 0], sizes = [4, 8, 16], strides = [1, 1, 1]} : vector<4x8x384xbf16> to vector<4x8x16xbf16>
    %24 = vector.extract_strided_slice %22 {offsets = [0, 0, 16], sizes = [4, 8, 16], strides = [1, 1, 1]} : vector<4x8x384xbf16> to vector<4x8x16xbf16>
    %25 = vector.extract_strided_slice %22 {offsets = [0, 0, 32], sizes = [4, 8, 16], strides = [1, 1, 1]} : vector<4x8x384xbf16> to vector<4x8x16xbf16>
    %26 = vector.extract_strided_slice %22 {offsets = [0, 0, 48], sizes = [4, 8, 16], strides = [1, 1, 1]} : vector<4x8x384xbf16> to vector<4x8x16xbf16>
    %27 = vector.extract_strided_slice %22 {offsets = [0, 0, 64], sizes = [4, 8, 16], strides = [1, 1, 1]} : vector<4x8x384xbf16> to vector<4x8x16xbf16>
    %28 = vector.extract_strided_slice %22 {offsets = [0, 0, 80], sizes = [4, 8, 16], strides = [1, 1, 1]} : vector<4x8x384xbf16> to vector<4x8x16xbf16>
    %29 = vector.extract_strided_slice %22 {offsets = [0, 0, 96], sizes = [4, 8, 16], strides = [1, 1, 1]} : vector<4x8x384xbf16> to vector<4x8x16xbf16>
    %30 = vector.extract_strided_slice %22 {offsets = [0, 0, 112], sizes = [4, 8, 16], strides = [1, 1, 1]} : vector<4x8x384xbf16> to vector<4x8x16xbf16>
    %31 = tpu.concatenate %23, %24, %25, %26, %27, %28, %29, %30 in 0 : vector<4x8x16xbf16>, vector<4x8x16xbf16>, vector<4x8x16xbf16>, vector<4x8x16xbf16>, vector<4x8x16xbf16>, vector<4x8x16xbf16>, vector<4x8x16xbf16>, vector<4x8x16xbf16> -> vector<32x8x16xbf16>
    %32 = vector.extract_strided_slice %22 {offsets = [0, 0, 128], sizes = [4, 8, 16], strides = [1, 1, 1]} : vector<4x8x384xbf16> to vector<4x8x16xbf16>
    %33 = vector.extract_strided_slice %22 {offsets = [0, 0, 144], sizes = [4, 8, 16], strides = [1, 1, 1]} : vector<4x8x384xbf16> to vector<4x8x16xbf16>
    %34 = vector.extract_strided_slice %22 {offsets = [0, 0, 160], sizes = [4, 8, 16], strides = [1, 1, 1]} : vector<4x8x384xbf16> to vector<4x8x16xbf16>
    %35 = vector.extract_strided_slice %22 {offsets = [0, 0, 176], sizes = [4, 8, 16], strides = [1, 1, 1]} : vector<4x8x384xbf16> to vector<4x8x16xbf16>
    %36 = vector.extract_strided_slice %22 {offsets = [0, 0, 192], sizes = [4, 8, 16], strides = [1, 1, 1]} : vector<4x8x384xbf16> to vector<4x8x16xbf16>
    %37 = vector.extract_strided_slice %22 {offsets = [0, 0, 208], sizes = [4, 8, 16], strides = [1, 1, 1]} : vector<4x8x384xbf16> to vector<4x8x16xbf16>
    %38 = vector.extract_strided_slice %22 {offsets = [0, 0, 224], sizes = [4, 8, 16], strides = [1, 1, 1]} : vector<4x8x384xbf16> to vector<4x8x16xbf16>
    %39 = vector.extract_strided_slice %22 {offsets = [0, 0, 240], sizes = [4, 8, 16], strides = [1, 1, 1]} : vector<4x8x384xbf16> to vector<4x8x16xbf16>
    %40 = tpu.concatenate %32, %33, %34, %35, %36, %37, %38, %39 in 0 : vector<4x8x16xbf16>, vector<4x8x16xbf16>, vector<4x8x16xbf16>, vector<4x8x16xbf16>, vector<4x8x16xbf16>, vector<4x8x16xbf16>, vector<4x8x16xbf16>, vector<4x8x16xbf16> -> vector<32x8x16xbf16>
    %41 = vector.extract_strided_slice %22 {offsets = [0, 0, 256], sizes = [4, 8, 16], strides = [1, 1, 1]} : vector<4x8x384xbf16> to vector<4x8x16xbf16>
    %42 = vector.extract_strided_slice %22 {offsets = [0, 0, 272], sizes = [4, 8, 16], strides = [1, 1, 1]} : vector<4x8x384xbf16> to vector<4x8x16xbf16>
    %43 = vector.extract_strided_slice %22 {offsets = [0, 0, 288], sizes = [4, 8, 16], strides = [1, 1, 1]} : vector<4x8x384xbf16> to vector<4x8x16xbf16>
    %44 = vector.extract_strided_slice %22 {offsets = [0, 0, 304], sizes = [4, 8, 16], strides = [1, 1, 1]} : vector<4x8x384xbf16> to vector<4x8x16xbf16>
    %45 = vector.extract_strided_slice %22 {offsets = [0, 0, 320], sizes = [4, 8, 16], strides = [1, 1, 1]} : vector<4x8x384xbf16> to vector<4x8x16xbf16>
    %46 = vector.extract_strided_slice %22 {offsets = [0, 0, 336], sizes = [4, 8, 16], strides = [1, 1, 1]} : vector<4x8x384xbf16> to vector<4x8x16xbf16>
    %47 = vector.extract_strided_slice %22 {offsets = [0, 0, 352], sizes = [4, 8, 16], strides = [1, 1, 1]} : vector<4x8x384xbf16> to vector<4x8x16xbf16>
    %48 = vector.extract_strided_slice %22 {offsets = [0, 0, 368], sizes = [4, 8, 16], strides = [1, 1, 1]} : vector<4x8x384xbf16> to vector<4x8x16xbf16>
    %49 = tpu.concatenate %41, %42, %43, %44, %45, %46, %47, %48 in 0 : vector<4x8x16xbf16>, vector<4x8x16xbf16>, vector<4x8x16xbf16>, vector<4x8x16xbf16>, vector<4x8x16xbf16>, vector<4x8x16xbf16>, vector<4x8x16xbf16>, vector<4x8x16xbf16> -> vector<32x8x16xbf16>
    "tpu.trace_start"() <{level = 10 : i32, message = "bqd,bkd->bqk"}> : () -> ()
    %cst_14 = arith.constant dense<0.000000e+00> : vector<32x8x8xf32>
    %50 = tpu.matmul %31, %40, %cst_14 {dimension_numbers = #tpu.dot_dimension_numbers<[2], [2], [1], [1], [0, 0, 0, 1, 1, 1], [0], [0]>} : vector<32x8x16xbf16>, vector<32x8x16xbf16>, vector<32x8x8xf32> -> vector<32x8x8xf32>
    "tpu.trace_stop"() : () -> ()
    %cst_15 = arith.constant 2.500000e-01 : f32
    %51 = vector.broadcast %cst_15 : f32 to vector<32x8x8xf32>
    %52 = arith.mulf %50, %51 : vector<32x8x8xf32>
    %cst_16 = arith.constant dense<0xFF800000> : vector<32x8xf32>
    %53 = vector.multi_reduction <maximumf>, %52, %cst_16 [2] : vector<32x8x8xf32> to vector<32x8xf32>
    %54 = vector.shape_cast %53 : vector<32x8xf32> to vector<32x8x1xf32>
    %55 = vector.broadcast %54 : vector<32x8x1xf32> to vector<32x8x8xf32>
    %56 = arith.subf %52, %55 : vector<32x8x8xf32>
    %57 = math.exp %56 : vector<32x8x8xf32>
    %cst_17 = arith.constant dense<0.000000e+00> : vector<32x8xf32>
    %58 = vector.multi_reduction <add>, %57, %cst_17 [2] : vector<32x8x8xf32> to vector<32x8xf32>
    %59 = vector.shape_cast %58 : vector<32x8xf32> to vector<32x8x1xf32>
    %60 = tpu.reciprocal %59 {approx = true} : vector<32x8x1xf32> -> vector<32x8x1xf32>
    %61 = vector.broadcast %60 : vector<32x8x1xf32> to vector<32x8x8xf32>
    %62 = arith.mulf %57, %61 : vector<32x8x8xf32>
    %63 = arith.truncf %62 : vector<32x8x8xf32> to vector<32x8x8xbf16>
    "tpu.trace_start"() <{level = 10 : i32, message = "bqk,bkd->bqd"}> : () -> ()
    %cst_18 = arith.constant dense<0.000000e+00> : vector<32x8x16xf32>
    %64 = tpu.matmul %63, %49, %cst_18 {dimension_numbers = #tpu.dot_dimension_numbers<[2], [1], [1], [2], [0, 0, 0, 1, 1, 2], [0], [0]>} : vector<32x8x8xbf16>, vector<32x8x16xbf16>, vector<32x8x16xf32> -> vector<32x8x16xf32>
    "tpu.trace_stop"() : () -> ()
    %65 = vector.shape_cast %64 : vector<32x8x16xf32> to vector<8x4x8x16xf32>
    %66 = vector.extract_strided_slice %65 {offsets = [0, 0, 0, 0], sizes = [1, 4, 8, 16], strides = [1, 1, 1, 1]} : vector<8x4x8x16xf32> to vector<1x4x8x16xf32>
    %67 = vector.shape_cast %66 : vector<1x4x8x16xf32> to vector<4x8x16xf32>
    %68 = vector.extract_strided_slice %65 {offsets = [1, 0, 0, 0], sizes = [1, 4, 8, 16], strides = [1, 1, 1, 1]} : vector<8x4x8x16xf32> to vector<1x4x8x16xf32>
    %69 = vector.shape_cast %68 : vector<1x4x8x16xf32> to vector<4x8x16xf32>
    %70 = vector.extract_strided_slice %65 {offsets = [2, 0, 0, 0], sizes = [1, 4, 8, 16], strides = [1, 1, 1, 1]} : vector<8x4x8x16xf32> to vector<1x4x8x16xf32>
    %71 = vector.shape_cast %70 : vector<1x4x8x16xf32> to vector<4x8x16xf32>
    %72 = vector.extract_strided_slice %65 {offsets = [3, 0, 0, 0], sizes = [1, 4, 8, 16], strides = [1, 1, 1, 1]} : vector<8x4x8x16xf32> to vector<1x4x8x16xf32>
    %73 = vector.shape_cast %72 : vector<1x4x8x16xf32> to vector<4x8x16xf32>
    %74 = vector.extract_strided_slice %65 {offsets = [4, 0, 0, 0], sizes = [1, 4, 8, 16], strides = [1, 1, 1, 1]} : vector<8x4x8x16xf32> to vector<1x4x8x16xf32>
    %75 = vector.shape_cast %74 : vector<1x4x8x16xf32> to vector<4x8x16xf32>
    %76 = vector.extract_strided_slice %65 {offsets = [5, 0, 0, 0], sizes = [1, 4, 8, 16], strides = [1, 1, 1, 1]} : vector<8x4x8x16xf32> to vector<1x4x8x16xf32>
    %77 = vector.shape_cast %76 : vector<1x4x8x16xf32> to vector<4x8x16xf32>
    %78 = vector.extract_strided_slice %65 {offsets = [6, 0, 0, 0], sizes = [1, 4, 8, 16], strides = [1, 1, 1, 1]} : vector<8x4x8x16xf32> to vector<1x4x8x16xf32>
    %79 = vector.shape_cast %78 : vector<1x4x8x16xf32> to vector<4x8x16xf32>
    %80 = vector.extract_strided_slice %65 {offsets = [7, 0, 0, 0], sizes = [1, 4, 8, 16], strides = [1, 1, 1, 1]} : vector<8x4x8x16xf32> to vector<1x4x8x16xf32>
    %81 = vector.shape_cast %80 : vector<1x4x8x16xf32> to vector<4x8x16xf32>
    %82 = tpu.concatenate %67, %69, %71, %73, %75, %77, %79, %81 in 2 : vector<4x8x16xf32>, vector<4x8x16xf32>, vector<4x8x16xf32>, vector<4x8x16xf32>, vector<4x8x16xf32>, vector<4x8x16xf32>, vector<4x8x16xf32>, vector<4x8x16xf32> -> vector<4x8x128xf32>
    %83 = vector.shape_cast %82 : vector<4x8x128xf32> to vector<32x128xf32>
    %84 = arith.truncf %83 : vector<32x128xf32> to vector<32x128xbf16>
    %c0_19 = arith.constant 0 : index
    %c0_20 = arith.constant 0 : index
    %c0_21 = arith.constant 0 : index
    %85 = vector.load %arg6[%c0_19, %c0_20, %c0_21] : memref<3x128x128xbf16, #tpu.memory_space<vmem>>, vector<1x128x128xbf16>
    %86 = vector.shape_cast %85 : vector<1x128x128xbf16> to vector<128x128xbf16>
    %cst_22 = arith.constant dense<0.000000e+00> : vector<32x128xf32>
    %87 = tpu.matmul %84, %86, %cst_22 {dimension_numbers = #tpu.dot_dimension_numbers<[1], [0], [0], [1], [0, 0, 1, 1], [], []>} : vector<32x128xbf16>, vector<128x128xbf16>, vector<32x128xf32> -> vector<32x128xf32>
    %c0_23 = arith.constant 0 : index
    %c0_24 = arith.constant 0 : index
    %c0_25 = arith.constant 0 : index
    %88 = vector.load %arg7[%c0_23, %c0_24, %c0_25] : memref<3x1x128xf32, #tpu.memory_space<vmem>>, vector<1x1x128xf32>
    %89 = vector.shape_cast %88 : vector<1x1x128xf32> to vector<1x128xf32>
    %90 = vector.broadcast %89 : vector<1x128xf32> to vector<32x128xf32>
    %91 = arith.addf %87, %90 : vector<32x128xf32>
    %92 = arith.addf %12, %91 : vector<32x128xf32>
    %c0_26 = arith.constant 0 : index
    %c0_27 = arith.constant 0 : index
    %c0_28 = arith.constant 0 : index
    %93 = vector.load %arg8[%c0_26, %c0_27, %c0_28] : memref<3x1x128xf32, #tpu.memory_space<vmem>>, vector<1x1x128xf32>
    %94 = vector.shape_cast %93 : vector<1x1x128xf32> to vector<1x128xf32>
    %c0_29 = arith.constant 0 : index
    %c0_30 = arith.constant 0 : index
    %c0_31 = arith.constant 0 : index
    %95 = vector.load %arg9[%c0_29, %c0_30, %c0_31] : memref<3x1x128xf32, #tpu.memory_space<vmem>>, vector<1x1x128xf32>
    %96 = vector.shape_cast %95 : vector<1x1x128xf32> to vector<1x128xf32>
    %cst_32 = arith.constant dense<0.000000e+00> : vector<32xf32>
    %97 = vector.multi_reduction <add>, %92, %cst_32 [1] : vector<32x128xf32> to vector<32xf32>
    %98 = vector.shape_cast %97 : vector<32xf32> to vector<32x1xf32>
    %cst_33 = arith.constant 1.280000e+02 : f32
    %99 = vector.broadcast %cst_33 : f32 to vector<32x1xf32>
    %100 = arith.divf %98, %99 : vector<32x1xf32>
    %101 = vector.broadcast %100 : vector<32x1xf32> to vector<32x128xf32>
    %102 = arith.subf %92, %101 : vector<32x128xf32>
    %103 = arith.mulf %102, %102 : vector<32x128xf32>
    %cst_34 = arith.constant dense<0.000000e+00> : vector<32xf32>
    %104 = vector.multi_reduction <add>, %103, %cst_34 [1] : vector<32x128xf32> to vector<32xf32>
    %105 = vector.shape_cast %104 : vector<32xf32> to vector<32x1xf32>
    %cst_35 = arith.constant 1.280000e+02 : f32
    %106 = vector.broadcast %cst_35 : f32 to vector<32x1xf32>
    %107 = arith.divf %105, %106 : vector<32x1xf32>
    %cst_36 = arith.constant 9.99999974E-6 : f32
    %108 = vector.broadcast %cst_36 : f32 to vector<32x1xf32>
    %109 = arith.addf %107, %108 : vector<32x1xf32>
    %110 = math.rsqrt %109 : vector<32x1xf32>
    %111 = vector.broadcast %110 : vector<32x1xf32> to vector<32x128xf32>
    %112 = arith.mulf %102, %111 : vector<32x128xf32>
    %113 = vector.broadcast %94 : vector<1x128xf32> to vector<32x128xf32>
    %114 = arith.mulf %112, %113 : vector<32x128xf32>
    %115 = vector.broadcast %96 : vector<1x128xf32> to vector<32x128xf32>
    %116 = arith.addf %114, %115 : vector<32x128xf32>
    %117 = arith.truncf %116 : vector<32x128xf32> to vector<32x128xbf16>
    %c0_37 = arith.constant 0 : index
    %c0_38 = arith.constant 0 : index
    %c0_39 = arith.constant 0 : index
    %118 = vector.load %arg10[%c0_37, %c0_38, %c0_39] : memref<3x128x256xbf16, #tpu.memory_space<vmem>>, vector<1x128x256xbf16>
    %119 = vector.shape_cast %118 : vector<1x128x256xbf16> to vector<128x256xbf16>
    %cst_40 = arith.constant dense<0.000000e+00> : vector<32x256xf32>
    %120 = tpu.matmul %117, %119, %cst_40 {dimension_numbers = #tpu.dot_dimension_numbers<[1], [0], [0], [1], [0, 0, 1, 1], [], []>} : vector<32x128xbf16>, vector<128x256xbf16>, vector<32x256xf32> -> vector<32x256xf32>
    %c0_41 = arith.constant 0 : index
    %c0_42 = arith.constant 0 : index
    %c0_43 = arith.constant 0 : index
    %121 = vector.load %arg11[%c0_41, %c0_42, %c0_43] : memref<3x1x256xf32, #tpu.memory_space<vmem>>, vector<1x1x256xf32>
    %122 = vector.shape_cast %121 : vector<1x1x256xf32> to vector<1x256xf32>
    %123 = vector.broadcast %122 : vector<1x256xf32> to vector<32x256xf32>
    %124 = arith.addf %120, %123 : vector<32x256xf32>
    %cst_44 = arith.constant 0.000000e+00 : f32
    %125 = vector.broadcast %cst_44 : f32 to vector<32x256xf32>
    %126 = arith.maximumf %124, %125 : vector<32x256xf32>
    %127 = arith.truncf %126 : vector<32x256xf32> to vector<32x256xbf16>
    %c0_45 = arith.constant 0 : index
    %c0_46 = arith.constant 0 : index
    %c0_47 = arith.constant 0 : index
    %128 = vector.load %arg12[%c0_45, %c0_46, %c0_47] : memref<3x256x128xbf16, #tpu.memory_space<vmem>>, vector<1x256x128xbf16>
    %129 = vector.shape_cast %128 : vector<1x256x128xbf16> to vector<256x128xbf16>
    %cst_48 = arith.constant dense<0.000000e+00> : vector<32x128xf32>
    %130 = tpu.matmul %127, %129, %cst_48 {dimension_numbers = #tpu.dot_dimension_numbers<[1], [0], [0], [1], [0, 0, 1, 1], [], []>} : vector<32x256xbf16>, vector<256x128xbf16>, vector<32x128xf32> -> vector<32x128xf32>
    %c0_49 = arith.constant 0 : index
    %c0_50 = arith.constant 0 : index
    %c0_51 = arith.constant 0 : index
    %131 = vector.load %arg13[%c0_49, %c0_50, %c0_51] : memref<3x1x128xf32, #tpu.memory_space<vmem>>, vector<1x1x128xf32>
    %132 = vector.shape_cast %131 : vector<1x1x128xf32> to vector<1x128xf32>
    %133 = vector.broadcast %132 : vector<1x128xf32> to vector<32x128xf32>
    %134 = arith.addf %130, %133 : vector<32x128xf32>
    %135 = arith.addf %116, %134 : vector<32x128xf32>
    %c0_52 = arith.constant 0 : index
    %c0_53 = arith.constant 0 : index
    %c0_54 = arith.constant 0 : index
    %136 = vector.load %arg14[%c0_52, %c0_53, %c0_54] : memref<3x1x128xf32, #tpu.memory_space<vmem>>, vector<1x1x128xf32>
    %137 = vector.shape_cast %136 : vector<1x1x128xf32> to vector<1x128xf32>
    %c0_55 = arith.constant 0 : index
    %c0_56 = arith.constant 0 : index
    %c0_57 = arith.constant 0 : index
    %138 = vector.load %arg15[%c0_55, %c0_56, %c0_57] : memref<3x1x128xf32, #tpu.memory_space<vmem>>, vector<1x1x128xf32>
    %139 = vector.shape_cast %138 : vector<1x1x128xf32> to vector<1x128xf32>
    %cst_58 = arith.constant dense<0.000000e+00> : vector<32xf32>
    %140 = vector.multi_reduction <add>, %135, %cst_58 [1] : vector<32x128xf32> to vector<32xf32>
    %141 = vector.shape_cast %140 : vector<32xf32> to vector<32x1xf32>
    %cst_59 = arith.constant 1.280000e+02 : f32
    %142 = vector.broadcast %cst_59 : f32 to vector<32x1xf32>
    %143 = arith.divf %141, %142 : vector<32x1xf32>
    %144 = vector.broadcast %143 : vector<32x1xf32> to vector<32x128xf32>
    %145 = arith.subf %135, %144 : vector<32x128xf32>
    %146 = arith.mulf %145, %145 : vector<32x128xf32>
    %cst_60 = arith.constant dense<0.000000e+00> : vector<32xf32>
    %147 = vector.multi_reduction <add>, %146, %cst_60 [1] : vector<32x128xf32> to vector<32xf32>
    %148 = vector.shape_cast %147 : vector<32xf32> to vector<32x1xf32>
    %cst_61 = arith.constant 1.280000e+02 : f32
    %149 = vector.broadcast %cst_61 : f32 to vector<32x1xf32>
    %150 = arith.divf %148, %149 : vector<32x1xf32>
    %cst_62 = arith.constant 9.99999974E-6 : f32
    %151 = vector.broadcast %cst_62 : f32 to vector<32x1xf32>
    %152 = arith.addf %150, %151 : vector<32x1xf32>
    %153 = math.rsqrt %152 : vector<32x1xf32>
    %154 = vector.broadcast %153 : vector<32x1xf32> to vector<32x128xf32>
    %155 = arith.mulf %145, %154 : vector<32x128xf32>
    %156 = vector.broadcast %137 : vector<1x128xf32> to vector<32x128xf32>
    %157 = arith.mulf %155, %156 : vector<32x128xf32>
    %158 = vector.broadcast %139 : vector<1x128xf32> to vector<32x128xf32>
    %159 = arith.addf %157, %158 : vector<32x128xf32>
    %160 = arith.truncf %159 : vector<32x128xf32> to vector<32x128xbf16>
    %c1 = arith.constant 1 : index
    %c0_63 = arith.constant 0 : index
    %c0_64 = arith.constant 0 : index
    %161 = vector.load %arg4[%c1, %c0_63, %c0_64] : memref<3x128x384xbf16, #tpu.memory_space<vmem>>, vector<1x128x384xbf16>
    %162 = vector.shape_cast %161 : vector<1x128x384xbf16> to vector<128x384xbf16>
    %cst_65 = arith.constant dense<0.000000e+00> : vector<32x384xf32>
    %163 = tpu.matmul %160, %162, %cst_65 {dimension_numbers = #tpu.dot_dimension_numbers<[1], [0], [0], [1], [0, 0, 1, 1], [], []>} : vector<32x128xbf16>, vector<128x384xbf16>, vector<32x384xf32> -> vector<32x384xf32>
    %c1_66 = arith.constant 1 : index
    %c0_67 = arith.constant 0 : index
    %c0_68 = arith.constant 0 : index
    %164 = vector.load %arg5[%c1_66, %c0_67, %c0_68] : memref<3x1x384xf32, #tpu.memory_space<vmem>>, vector<1x1x384xf32>
    %165 = vector.shape_cast %164 : vector<1x1x384xf32> to vector<1x384xf32>
    %166 = vector.broadcast %165 : vector<1x384xf32> to vector<32x384xf32>
    %167 = arith.addf %163, %166 : vector<32x384xf32>
    %168 = arith.truncf %167 : vector<32x384xf32> to vector<32x384xbf16>
    %169 = vector.shape_cast %168 : vector<32x384xbf16> to vector<4x8x384xbf16>
    %170 = vector.extract_strided_slice %169 {offsets = [0, 0, 0], sizes = [4, 8, 16], strides = [1, 1, 1]} : vector<4x8x384xbf16> to vector<4x8x16xbf16>
    %171 = vector.extract_strided_slice %169 {offsets = [0, 0, 16], sizes = [4, 8, 16], strides = [1, 1, 1]} : vector<4x8x384xbf16> to vector<4x8x16xbf16>
    %172 = vector.extract_strided_slice %169 {offsets = [0, 0, 32], sizes = [4, 8, 16], strides = [1, 1, 1]} : vector<4x8x384xbf16> to vector<4x8x16xbf16>
    %173 = vector.extract_strided_slice %169 {offsets = [0, 0, 48], sizes = [4, 8, 16], strides = [1, 1, 1]} : vector<4x8x384xbf16> to vector<4x8x16xbf16>
    %174 = vector.extract_strided_slice %169 {offsets = [0, 0, 64], sizes = [4, 8, 16], strides = [1, 1, 1]} : vector<4x8x384xbf16> to vector<4x8x16xbf16>
    %175 = vector.extract_strided_slice %169 {offsets = [0, 0, 80], sizes = [4, 8, 16], strides = [1, 1, 1]} : vector<4x8x384xbf16> to vector<4x8x16xbf16>
    %176 = vector.extract_strided_slice %169 {offsets = [0, 0, 96], sizes = [4, 8, 16], strides = [1, 1, 1]} : vector<4x8x384xbf16> to vector<4x8x16xbf16>
    %177 = vector.extract_strided_slice %169 {offsets = [0, 0, 112], sizes = [4, 8, 16], strides = [1, 1, 1]} : vector<4x8x384xbf16> to vector<4x8x16xbf16>
    %178 = tpu.concatenate %170, %171, %172, %173, %174, %175, %176, %177 in 0 : vector<4x8x16xbf16>, vector<4x8x16xbf16>, vector<4x8x16xbf16>, vector<4x8x16xbf16>, vector<4x8x16xbf16>, vector<4x8x16xbf16>, vector<4x8x16xbf16>, vector<4x8x16xbf16> -> vector<32x8x16xbf16>
    %179 = vector.extract_strided_slice %169 {offsets = [0, 0, 128], sizes = [4, 8, 16], strides = [1, 1, 1]} : vector<4x8x384xbf16> to vector<4x8x16xbf16>
    %180 = vector.extract_strided_slice %169 {offsets = [0, 0, 144], sizes = [4, 8, 16], strides = [1, 1, 1]} : vector<4x8x384xbf16> to vector<4x8x16xbf16>
    %181 = vector.extract_strided_slice %169 {offsets = [0, 0, 160], sizes = [4, 8, 16], strides = [1, 1, 1]} : vector<4x8x384xbf16> to vector<4x8x16xbf16>
    %182 = vector.extract_strided_slice %169 {offsets = [0, 0, 176], sizes = [4, 8, 16], strides = [1, 1, 1]} : vector<4x8x384xbf16> to vector<4x8x16xbf16>
    %183 = vector.extract_strided_slice %169 {offsets = [0, 0, 192], sizes = [4, 8, 16], strides = [1, 1, 1]} : vector<4x8x384xbf16> to vector<4x8x16xbf16>
    %184 = vector.extract_strided_slice %169 {offsets = [0, 0, 208], sizes = [4, 8, 16], strides = [1, 1, 1]} : vector<4x8x384xbf16> to vector<4x8x16xbf16>
    %185 = vector.extract_strided_slice %169 {offsets = [0, 0, 224], sizes = [4, 8, 16], strides = [1, 1, 1]} : vector<4x8x384xbf16> to vector<4x8x16xbf16>
    %186 = vector.extract_strided_slice %169 {offsets = [0, 0, 240], sizes = [4, 8, 16], strides = [1, 1, 1]} : vector<4x8x384xbf16> to vector<4x8x16xbf16>
    %187 = tpu.concatenate %179, %180, %181, %182, %183, %184, %185, %186 in 0 : vector<4x8x16xbf16>, vector<4x8x16xbf16>, vector<4x8x16xbf16>, vector<4x8x16xbf16>, vector<4x8x16xbf16>, vector<4x8x16xbf16>, vector<4x8x16xbf16>, vector<4x8x16xbf16> -> vector<32x8x16xbf16>
    %188 = vector.extract_strided_slice %169 {offsets = [0, 0, 256], sizes = [4, 8, 16], strides = [1, 1, 1]} : vector<4x8x384xbf16> to vector<4x8x16xbf16>
    %189 = vector.extract_strided_slice %169 {offsets = [0, 0, 272], sizes = [4, 8, 16], strides = [1, 1, 1]} : vector<4x8x384xbf16> to vector<4x8x16xbf16>
    %190 = vector.extract_strided_slice %169 {offsets = [0, 0, 288], sizes = [4, 8, 16], strides = [1, 1, 1]} : vector<4x8x384xbf16> to vector<4x8x16xbf16>
    %191 = vector.extract_strided_slice %169 {offsets = [0, 0, 304], sizes = [4, 8, 16], strides = [1, 1, 1]} : vector<4x8x384xbf16> to vector<4x8x16xbf16>
    %192 = vector.extract_strided_slice %169 {offsets = [0, 0, 320], sizes = [4, 8, 16], strides = [1, 1, 1]} : vector<4x8x384xbf16> to vector<4x8x16xbf16>
    %193 = vector.extract_strided_slice %169 {offsets = [0, 0, 336], sizes = [4, 8, 16], strides = [1, 1, 1]} : vector<4x8x384xbf16> to vector<4x8x16xbf16>
    %194 = vector.extract_strided_slice %169 {offsets = [0, 0, 352], sizes = [4, 8, 16], strides = [1, 1, 1]} : vector<4x8x384xbf16> to vector<4x8x16xbf16>
    %195 = vector.extract_strided_slice %169 {offsets = [0, 0, 368], sizes = [4, 8, 16], strides = [1, 1, 1]} : vector<4x8x384xbf16> to vector<4x8x16xbf16>
    %196 = tpu.concatenate %188, %189, %190, %191, %192, %193, %194, %195 in 0 : vector<4x8x16xbf16>, vector<4x8x16xbf16>, vector<4x8x16xbf16>, vector<4x8x16xbf16>, vector<4x8x16xbf16>, vector<4x8x16xbf16>, vector<4x8x16xbf16>, vector<4x8x16xbf16> -> vector<32x8x16xbf16>
    "tpu.trace_start"() <{level = 10 : i32, message = "bqd,bkd->bqk"}> : () -> ()
    %cst_69 = arith.constant dense<0.000000e+00> : vector<32x8x8xf32>
    %197 = tpu.matmul %178, %187, %cst_69 {dimension_numbers = #tpu.dot_dimension_numbers<[2], [2], [1], [1], [0, 0, 0, 1, 1, 1], [0], [0]>} : vector<32x8x16xbf16>, vector<32x8x16xbf16>, vector<32x8x8xf32> -> vector<32x8x8xf32>
    "tpu.trace_stop"() : () -> ()
    %cst_70 = arith.constant 2.500000e-01 : f32
    %198 = vector.broadcast %cst_70 : f32 to vector<32x8x8xf32>
    %199 = arith.mulf %197, %198 : vector<32x8x8xf32>
    %cst_71 = arith.constant dense<0xFF800000> : vector<32x8xf32>
    %200 = vector.multi_reduction <maximumf>, %199, %cst_71 [2] : vector<32x8x8xf32> to vector<32x8xf32>
    %201 = vector.shape_cast %200 : vector<32x8xf32> to vector<32x8x1xf32>
    %202 = vector.broadcast %201 : vector<32x8x1xf32> to vector<32x8x8xf32>
    %203 = arith.subf %199, %202 : vector<32x8x8xf32>
    %204 = math.exp %203 : vector<32x8x8xf32>
    %cst_72 = arith.constant dense<0.000000e+00> : vector<32x8xf32>
    %205 = vector.multi_reduction <add>, %204, %cst_72 [2] : vector<32x8x8xf32> to vector<32x8xf32>
    %206 = vector.shape_cast %205 : vector<32x8xf32> to vector<32x8x1xf32>
    %207 = tpu.reciprocal %206 {approx = true} : vector<32x8x1xf32> -> vector<32x8x1xf32>
    %208 = vector.broadcast %207 : vector<32x8x1xf32> to vector<32x8x8xf32>
    %209 = arith.mulf %204, %208 : vector<32x8x8xf32>
    %210 = arith.truncf %209 : vector<32x8x8xf32> to vector<32x8x8xbf16>
    "tpu.trace_start"() <{level = 10 : i32, message = "bqk,bkd->bqd"}> : () -> ()
    %cst_73 = arith.constant dense<0.000000e+00> : vector<32x8x16xf32>
    %211 = tpu.matmul %210, %196, %cst_73 {dimension_numbers = #tpu.dot_dimension_numbers<[2], [1], [1], [2], [0, 0, 0, 1, 1, 2], [0], [0]>} : vector<32x8x8xbf16>, vector<32x8x16xbf16>, vector<32x8x16xf32> -> vector<32x8x16xf32>
    "tpu.trace_stop"() : () -> ()
    %212 = vector.shape_cast %211 : vector<32x8x16xf32> to vector<8x4x8x16xf32>
    %213 = vector.extract_strided_slice %212 {offsets = [0, 0, 0, 0], sizes = [1, 4, 8, 16], strides = [1, 1, 1, 1]} : vector<8x4x8x16xf32> to vector<1x4x8x16xf32>
    %214 = vector.shape_cast %213 : vector<1x4x8x16xf32> to vector<4x8x16xf32>
    %215 = vector.extract_strided_slice %212 {offsets = [1, 0, 0, 0], sizes = [1, 4, 8, 16], strides = [1, 1, 1, 1]} : vector<8x4x8x16xf32> to vector<1x4x8x16xf32>
    %216 = vector.shape_cast %215 : vector<1x4x8x16xf32> to vector<4x8x16xf32>
    %217 = vector.extract_strided_slice %212 {offsets = [2, 0, 0, 0], sizes = [1, 4, 8, 16], strides = [1, 1, 1, 1]} : vector<8x4x8x16xf32> to vector<1x4x8x16xf32>
    %218 = vector.shape_cast %217 : vector<1x4x8x16xf32> to vector<4x8x16xf32>
    %219 = vector.extract_strided_slice %212 {offsets = [3, 0, 0, 0], sizes = [1, 4, 8, 16], strides = [1, 1, 1, 1]} : vector<8x4x8x16xf32> to vector<1x4x8x16xf32>
    %220 = vector.shape_cast %219 : vector<1x4x8x16xf32> to vector<4x8x16xf32>
    %221 = vector.extract_strided_slice %212 {offsets = [4, 0, 0, 0], sizes = [1, 4, 8, 16], strides = [1, 1, 1, 1]} : vector<8x4x8x16xf32> to vector<1x4x8x16xf32>
    %222 = vector.shape_cast %221 : vector<1x4x8x16xf32> to vector<4x8x16xf32>
    %223 = vector.extract_strided_slice %212 {offsets = [5, 0, 0, 0], sizes = [1, 4, 8, 16], strides = [1, 1, 1, 1]} : vector<8x4x8x16xf32> to vector<1x4x8x16xf32>
    %224 = vector.shape_cast %223 : vector<1x4x8x16xf32> to vector<4x8x16xf32>
    %225 = vector.extract_strided_slice %212 {offsets = [6, 0, 0, 0], sizes = [1, 4, 8, 16], strides = [1, 1, 1, 1]} : vector<8x4x8x16xf32> to vector<1x4x8x16xf32>
    %226 = vector.shape_cast %225 : vector<1x4x8x16xf32> to vector<4x8x16xf32>
    %227 = vector.extract_strided_slice %212 {offsets = [7, 0, 0, 0], sizes = [1, 4, 8, 16], strides = [1, 1, 1, 1]} : vector<8x4x8x16xf32> to vector<1x4x8x16xf32>
    %228 = vector.shape_cast %227 : vector<1x4x8x16xf32> to vector<4x8x16xf32>
    %229 = tpu.concatenate %214, %216, %218, %220, %222, %224, %226, %228 in 2 : vector<4x8x16xf32>, vector<4x8x16xf32>, vector<4x8x16xf32>, vector<4x8x16xf32>, vector<4x8x16xf32>, vector<4x8x16xf32>, vector<4x8x16xf32>, vector<4x8x16xf32> -> vector<4x8x128xf32>
    %230 = vector.shape_cast %229 : vector<4x8x128xf32> to vector<32x128xf32>
    %231 = arith.truncf %230 : vector<32x128xf32> to vector<32x128xbf16>
    %c1_74 = arith.constant 1 : index
    %c0_75 = arith.constant 0 : index
    %c0_76 = arith.constant 0 : index
    %232 = vector.load %arg6[%c1_74, %c0_75, %c0_76] : memref<3x128x128xbf16, #tpu.memory_space<vmem>>, vector<1x128x128xbf16>
    %233 = vector.shape_cast %232 : vector<1x128x128xbf16> to vector<128x128xbf16>
    %cst_77 = arith.constant dense<0.000000e+00> : vector<32x128xf32>
    %234 = tpu.matmul %231, %233, %cst_77 {dimension_numbers = #tpu.dot_dimension_numbers<[1], [0], [0], [1], [0, 0, 1, 1], [], []>} : vector<32x128xbf16>, vector<128x128xbf16>, vector<32x128xf32> -> vector<32x128xf32>
    %c1_78 = arith.constant 1 : index
    %c0_79 = arith.constant 0 : index
    %c0_80 = arith.constant 0 : index
    %235 = vector.load %arg7[%c1_78, %c0_79, %c0_80] : memref<3x1x128xf32, #tpu.memory_space<vmem>>, vector<1x1x128xf32>
    %236 = vector.shape_cast %235 : vector<1x1x128xf32> to vector<1x128xf32>
    %237 = vector.broadcast %236 : vector<1x128xf32> to vector<32x128xf32>
    %238 = arith.addf %234, %237 : vector<32x128xf32>
    %239 = arith.addf %159, %238 : vector<32x128xf32>
    %c1_81 = arith.constant 1 : index
    %c0_82 = arith.constant 0 : index
    %c0_83 = arith.constant 0 : index
    %240 = vector.load %arg8[%c1_81, %c0_82, %c0_83] : memref<3x1x128xf32, #tpu.memory_space<vmem>>, vector<1x1x128xf32>
    %241 = vector.shape_cast %240 : vector<1x1x128xf32> to vector<1x128xf32>
    %c1_84 = arith.constant 1 : index
    %c0_85 = arith.constant 0 : index
    %c0_86 = arith.constant 0 : index
    %242 = vector.load %arg9[%c1_84, %c0_85, %c0_86] : memref<3x1x128xf32, #tpu.memory_space<vmem>>, vector<1x1x128xf32>
    %243 = vector.shape_cast %242 : vector<1x1x128xf32> to vector<1x128xf32>
    %cst_87 = arith.constant dense<0.000000e+00> : vector<32xf32>
    %244 = vector.multi_reduction <add>, %239, %cst_87 [1] : vector<32x128xf32> to vector<32xf32>
    %245 = vector.shape_cast %244 : vector<32xf32> to vector<32x1xf32>
    %cst_88 = arith.constant 1.280000e+02 : f32
    %246 = vector.broadcast %cst_88 : f32 to vector<32x1xf32>
    %247 = arith.divf %245, %246 : vector<32x1xf32>
    %248 = vector.broadcast %247 : vector<32x1xf32> to vector<32x128xf32>
    %249 = arith.subf %239, %248 : vector<32x128xf32>
    %250 = arith.mulf %249, %249 : vector<32x128xf32>
    %cst_89 = arith.constant dense<0.000000e+00> : vector<32xf32>
    %251 = vector.multi_reduction <add>, %250, %cst_89 [1] : vector<32x128xf32> to vector<32xf32>
    %252 = vector.shape_cast %251 : vector<32xf32> to vector<32x1xf32>
    %cst_90 = arith.constant 1.280000e+02 : f32
    %253 = vector.broadcast %cst_90 : f32 to vector<32x1xf32>
    %254 = arith.divf %252, %253 : vector<32x1xf32>
    %cst_91 = arith.constant 9.99999974E-6 : f32
    %255 = vector.broadcast %cst_91 : f32 to vector<32x1xf32>
    %256 = arith.addf %254, %255 : vector<32x1xf32>
    %257 = math.rsqrt %256 : vector<32x1xf32>
    %258 = vector.broadcast %257 : vector<32x1xf32> to vector<32x128xf32>
    %259 = arith.mulf %249, %258 : vector<32x128xf32>
    %260 = vector.broadcast %241 : vector<1x128xf32> to vector<32x128xf32>
    %261 = arith.mulf %259, %260 : vector<32x128xf32>
    %262 = vector.broadcast %243 : vector<1x128xf32> to vector<32x128xf32>
    %263 = arith.addf %261, %262 : vector<32x128xf32>
    %264 = arith.truncf %263 : vector<32x128xf32> to vector<32x128xbf16>
    %c1_92 = arith.constant 1 : index
    %c0_93 = arith.constant 0 : index
    %c0_94 = arith.constant 0 : index
    %265 = vector.load %arg10[%c1_92, %c0_93, %c0_94] : memref<3x128x256xbf16, #tpu.memory_space<vmem>>, vector<1x128x256xbf16>
    %266 = vector.shape_cast %265 : vector<1x128x256xbf16> to vector<128x256xbf16>
    %cst_95 = arith.constant dense<0.000000e+00> : vector<32x256xf32>
    %267 = tpu.matmul %264, %266, %cst_95 {dimension_numbers = #tpu.dot_dimension_numbers<[1], [0], [0], [1], [0, 0, 1, 1], [], []>} : vector<32x128xbf16>, vector<128x256xbf16>, vector<32x256xf32> -> vector<32x256xf32>
    %c1_96 = arith.constant 1 : index
    %c0_97 = arith.constant 0 : index
    %c0_98 = arith.constant 0 : index
    %268 = vector.load %arg11[%c1_96, %c0_97, %c0_98] : memref<3x1x256xf32, #tpu.memory_space<vmem>>, vector<1x1x256xf32>
    %269 = vector.shape_cast %268 : vector<1x1x256xf32> to vector<1x256xf32>
    %270 = vector.broadcast %269 : vector<1x256xf32> to vector<32x256xf32>
    %271 = arith.addf %267, %270 : vector<32x256xf32>
    %cst_99 = arith.constant 0.000000e+00 : f32
    %272 = vector.broadcast %cst_99 : f32 to vector<32x256xf32>
    %273 = arith.maximumf %271, %272 : vector<32x256xf32>
    %274 = arith.truncf %273 : vector<32x256xf32> to vector<32x256xbf16>
    %c1_100 = arith.constant 1 : index
    %c0_101 = arith.constant 0 : index
    %c0_102 = arith.constant 0 : index
    %275 = vector.load %arg12[%c1_100, %c0_101, %c0_102] : memref<3x256x128xbf16, #tpu.memory_space<vmem>>, vector<1x256x128xbf16>
    %276 = vector.shape_cast %275 : vector<1x256x128xbf16> to vector<256x128xbf16>
    %cst_103 = arith.constant dense<0.000000e+00> : vector<32x128xf32>
    %277 = tpu.matmul %274, %276, %cst_103 {dimension_numbers = #tpu.dot_dimension_numbers<[1], [0], [0], [1], [0, 0, 1, 1], [], []>} : vector<32x256xbf16>, vector<256x128xbf16>, vector<32x128xf32> -> vector<32x128xf32>
    %c1_104 = arith.constant 1 : index
    %c0_105 = arith.constant 0 : index
    %c0_106 = arith.constant 0 : index
    %278 = vector.load %arg13[%c1_104, %c0_105, %c0_106] : memref<3x1x128xf32, #tpu.memory_space<vmem>>, vector<1x1x128xf32>
    %279 = vector.shape_cast %278 : vector<1x1x128xf32> to vector<1x128xf32>
    %280 = vector.broadcast %279 : vector<1x128xf32> to vector<32x128xf32>
    %281 = arith.addf %277, %280 : vector<32x128xf32>
    %282 = arith.addf %263, %281 : vector<32x128xf32>
    %c1_107 = arith.constant 1 : index
    %c0_108 = arith.constant 0 : index
    %c0_109 = arith.constant 0 : index
    %283 = vector.load %arg14[%c1_107, %c0_108, %c0_109] : memref<3x1x128xf32, #tpu.memory_space<vmem>>, vector<1x1x128xf32>
    %284 = vector.shape_cast %283 : vector<1x1x128xf32> to vector<1x128xf32>
    %c1_110 = arith.constant 1 : index
    %c0_111 = arith.constant 0 : index
    %c0_112 = arith.constant 0 : index
    %285 = vector.load %arg15[%c1_110, %c0_111, %c0_112] : memref<3x1x128xf32, #tpu.memory_space<vmem>>, vector<1x1x128xf32>
    %286 = vector.shape_cast %285 : vector<1x1x128xf32> to vector<1x128xf32>
    %cst_113 = arith.constant dense<0.000000e+00> : vector<32xf32>
    %287 = vector.multi_reduction <add>, %282, %cst_113 [1] : vector<32x128xf32> to vector<32xf32>
    %288 = vector.shape_cast %287 : vector<32xf32> to vector<32x1xf32>
    %cst_114 = arith.constant 1.280000e+02 : f32
    %289 = vector.broadcast %cst_114 : f32 to vector<32x1xf32>
    %290 = arith.divf %288, %289 : vector<32x1xf32>
    %291 = vector.broadcast %290 : vector<32x1xf32> to vector<32x128xf32>
    %292 = arith.subf %282, %291 : vector<32x128xf32>
    %293 = arith.mulf %292, %292 : vector<32x128xf32>
    %cst_115 = arith.constant dense<0.000000e+00> : vector<32xf32>
    %294 = vector.multi_reduction <add>, %293, %cst_115 [1] : vector<32x128xf32> to vector<32xf32>
    %295 = vector.shape_cast %294 : vector<32xf32> to vector<32x1xf32>
    %cst_116 = arith.constant 1.280000e+02 : f32
    %296 = vector.broadcast %cst_116 : f32 to vector<32x1xf32>
    %297 = arith.divf %295, %296 : vector<32x1xf32>
    %cst_117 = arith.constant 9.99999974E-6 : f32
    %298 = vector.broadcast %cst_117 : f32 to vector<32x1xf32>
    %299 = arith.addf %297, %298 : vector<32x1xf32>
    %300 = math.rsqrt %299 : vector<32x1xf32>
    %301 = vector.broadcast %300 : vector<32x1xf32> to vector<32x128xf32>
    %302 = arith.mulf %292, %301 : vector<32x128xf32>
    %303 = vector.broadcast %284 : vector<1x128xf32> to vector<32x128xf32>
    %304 = arith.mulf %302, %303 : vector<32x128xf32>
    %305 = vector.broadcast %286 : vector<1x128xf32> to vector<32x128xf32>
    %306 = arith.addf %304, %305 : vector<32x128xf32>
    %307 = arith.truncf %306 : vector<32x128xf32> to vector<32x128xbf16>
    %c2 = arith.constant 2 : index
    %c0_118 = arith.constant 0 : index
    %c0_119 = arith.constant 0 : index
    %308 = vector.load %arg4[%c2, %c0_118, %c0_119] : memref<3x128x384xbf16, #tpu.memory_space<vmem>>, vector<1x128x384xbf16>
    %309 = vector.shape_cast %308 : vector<1x128x384xbf16> to vector<128x384xbf16>
    %cst_120 = arith.constant dense<0.000000e+00> : vector<32x384xf32>
    %310 = tpu.matmul %307, %309, %cst_120 {dimension_numbers = #tpu.dot_dimension_numbers<[1], [0], [0], [1], [0, 0, 1, 1], [], []>} : vector<32x128xbf16>, vector<128x384xbf16>, vector<32x384xf32> -> vector<32x384xf32>
    %c2_121 = arith.constant 2 : index
    %c0_122 = arith.constant 0 : index
    %c0_123 = arith.constant 0 : index
    %311 = vector.load %arg5[%c2_121, %c0_122, %c0_123] : memref<3x1x384xf32, #tpu.memory_space<vmem>>, vector<1x1x384xf32>
    %312 = vector.shape_cast %311 : vector<1x1x384xf32> to vector<1x384xf32>
    %313 = vector.broadcast %312 : vector<1x384xf32> to vector<32x384xf32>
    %314 = arith.addf %310, %313 : vector<32x384xf32>
    %315 = arith.truncf %314 : vector<32x384xf32> to vector<32x384xbf16>
    %316 = vector.shape_cast %315 : vector<32x384xbf16> to vector<4x8x384xbf16>
    %317 = vector.extract_strided_slice %316 {offsets = [0, 0, 0], sizes = [4, 8, 16], strides = [1, 1, 1]} : vector<4x8x384xbf16> to vector<4x8x16xbf16>
    %318 = vector.extract_strided_slice %316 {offsets = [0, 0, 16], sizes = [4, 8, 16], strides = [1, 1, 1]} : vector<4x8x384xbf16> to vector<4x8x16xbf16>
    %319 = vector.extract_strided_slice %316 {offsets = [0, 0, 32], sizes = [4, 8, 16], strides = [1, 1, 1]} : vector<4x8x384xbf16> to vector<4x8x16xbf16>
    %320 = vector.extract_strided_slice %316 {offsets = [0, 0, 48], sizes = [4, 8, 16], strides = [1, 1, 1]} : vector<4x8x384xbf16> to vector<4x8x16xbf16>
    %321 = vector.extract_strided_slice %316 {offsets = [0, 0, 64], sizes = [4, 8, 16], strides = [1, 1, 1]} : vector<4x8x384xbf16> to vector<4x8x16xbf16>
    %322 = vector.extract_strided_slice %316 {offsets = [0, 0, 80], sizes = [4, 8, 16], strides = [1, 1, 1]} : vector<4x8x384xbf16> to vector<4x8x16xbf16>
    %323 = vector.extract_strided_slice %316 {offsets = [0, 0, 96], sizes = [4, 8, 16], strides = [1, 1, 1]} : vector<4x8x384xbf16> to vector<4x8x16xbf16>
    %324 = vector.extract_strided_slice %316 {offsets = [0, 0, 112], sizes = [4, 8, 16], strides = [1, 1, 1]} : vector<4x8x384xbf16> to vector<4x8x16xbf16>
    %325 = tpu.concatenate %317, %318, %319, %320, %321, %322, %323, %324 in 0 : vector<4x8x16xbf16>, vector<4x8x16xbf16>, vector<4x8x16xbf16>, vector<4x8x16xbf16>, vector<4x8x16xbf16>, vector<4x8x16xbf16>, vector<4x8x16xbf16>, vector<4x8x16xbf16> -> vector<32x8x16xbf16>
    %326 = vector.extract_strided_slice %316 {offsets = [0, 0, 128], sizes = [4, 8, 16], strides = [1, 1, 1]} : vector<4x8x384xbf16> to vector<4x8x16xbf16>
    %327 = vector.extract_strided_slice %316 {offsets = [0, 0, 144], sizes = [4, 8, 16], strides = [1, 1, 1]} : vector<4x8x384xbf16> to vector<4x8x16xbf16>
    %328 = vector.extract_strided_slice %316 {offsets = [0, 0, 160], sizes = [4, 8, 16], strides = [1, 1, 1]} : vector<4x8x384xbf16> to vector<4x8x16xbf16>
    %329 = vector.extract_strided_slice %316 {offsets = [0, 0, 176], sizes = [4, 8, 16], strides = [1, 1, 1]} : vector<4x8x384xbf16> to vector<4x8x16xbf16>
    %330 = vector.extract_strided_slice %316 {offsets = [0, 0, 192], sizes = [4, 8, 16], strides = [1, 1, 1]} : vector<4x8x384xbf16> to vector<4x8x16xbf16>
    %331 = vector.extract_strided_slice %316 {offsets = [0, 0, 208], sizes = [4, 8, 16], strides = [1, 1, 1]} : vector<4x8x384xbf16> to vector<4x8x16xbf16>
    %332 = vector.extract_strided_slice %316 {offsets = [0, 0, 224], sizes = [4, 8, 16], strides = [1, 1, 1]} : vector<4x8x384xbf16> to vector<4x8x16xbf16>
    %333 = vector.extract_strided_slice %316 {offsets = [0, 0, 240], sizes = [4, 8, 16], strides = [1, 1, 1]} : vector<4x8x384xbf16> to vector<4x8x16xbf16>
    %334 = tpu.concatenate %326, %327, %328, %329, %330, %331, %332, %333 in 0 : vector<4x8x16xbf16>, vector<4x8x16xbf16>, vector<4x8x16xbf16>, vector<4x8x16xbf16>, vector<4x8x16xbf16>, vector<4x8x16xbf16>, vector<4x8x16xbf16>, vector<4x8x16xbf16> -> vector<32x8x16xbf16>
    %335 = vector.extract_strided_slice %316 {offsets = [0, 0, 256], sizes = [4, 8, 16], strides = [1, 1, 1]} : vector<4x8x384xbf16> to vector<4x8x16xbf16>
    %336 = vector.extract_strided_slice %316 {offsets = [0, 0, 272], sizes = [4, 8, 16], strides = [1, 1, 1]} : vector<4x8x384xbf16> to vector<4x8x16xbf16>
    %337 = vector.extract_strided_slice %316 {offsets = [0, 0, 288], sizes = [4, 8, 16], strides = [1, 1, 1]} : vector<4x8x384xbf16> to vector<4x8x16xbf16>
    %338 = vector.extract_strided_slice %316 {offsets = [0, 0, 304], sizes = [4, 8, 16], strides = [1, 1, 1]} : vector<4x8x384xbf16> to vector<4x8x16xbf16>
    %339 = vector.extract_strided_slice %316 {offsets = [0, 0, 320], sizes = [4, 8, 16], strides = [1, 1, 1]} : vector<4x8x384xbf16> to vector<4x8x16xbf16>
    %340 = vector.extract_strided_slice %316 {offsets = [0, 0, 336], sizes = [4, 8, 16], strides = [1, 1, 1]} : vector<4x8x384xbf16> to vector<4x8x16xbf16>
    %341 = vector.extract_strided_slice %316 {offsets = [0, 0, 352], sizes = [4, 8, 16], strides = [1, 1, 1]} : vector<4x8x384xbf16> to vector<4x8x16xbf16>
    %342 = vector.extract_strided_slice %316 {offsets = [0, 0, 368], sizes = [4, 8, 16], strides = [1, 1, 1]} : vector<4x8x384xbf16> to vector<4x8x16xbf16>
    %343 = tpu.concatenate %335, %336, %337, %338, %339, %340, %341, %342 in 0 : vector<4x8x16xbf16>, vector<4x8x16xbf16>, vector<4x8x16xbf16>, vector<4x8x16xbf16>, vector<4x8x16xbf16>, vector<4x8x16xbf16>, vector<4x8x16xbf16>, vector<4x8x16xbf16> -> vector<32x8x16xbf16>
    "tpu.trace_start"() <{level = 10 : i32, message = "bqd,bkd->bqk"}> : () -> ()
    %cst_124 = arith.constant dense<0.000000e+00> : vector<32x8x8xf32>
    %344 = tpu.matmul %325, %334, %cst_124 {dimension_numbers = #tpu.dot_dimension_numbers<[2], [2], [1], [1], [0, 0, 0, 1, 1, 1], [0], [0]>} : vector<32x8x16xbf16>, vector<32x8x16xbf16>, vector<32x8x8xf32> -> vector<32x8x8xf32>
    "tpu.trace_stop"() : () -> ()
    %cst_125 = arith.constant 2.500000e-01 : f32
    %345 = vector.broadcast %cst_125 : f32 to vector<32x8x8xf32>
    %346 = arith.mulf %344, %345 : vector<32x8x8xf32>
    %cst_126 = arith.constant dense<0xFF800000> : vector<32x8xf32>
    %347 = vector.multi_reduction <maximumf>, %346, %cst_126 [2] : vector<32x8x8xf32> to vector<32x8xf32>
    %348 = vector.shape_cast %347 : vector<32x8xf32> to vector<32x8x1xf32>
    %349 = vector.broadcast %348 : vector<32x8x1xf32> to vector<32x8x8xf32>
    %350 = arith.subf %346, %349 : vector<32x8x8xf32>
    %351 = math.exp %350 : vector<32x8x8xf32>
    %cst_127 = arith.constant dense<0.000000e+00> : vector<32x8xf32>
    %352 = vector.multi_reduction <add>, %351, %cst_127 [2] : vector<32x8x8xf32> to vector<32x8xf32>
    %353 = vector.shape_cast %352 : vector<32x8xf32> to vector<32x8x1xf32>
    %354 = tpu.reciprocal %353 {approx = true} : vector<32x8x1xf32> -> vector<32x8x1xf32>
    %355 = vector.broadcast %354 : vector<32x8x1xf32> to vector<32x8x8xf32>
    %356 = arith.mulf %351, %355 : vector<32x8x8xf32>
    %357 = arith.truncf %356 : vector<32x8x8xf32> to vector<32x8x8xbf16>
    "tpu.trace_start"() <{level = 10 : i32, message = "bqk,bkd->bqd"}> : () -> ()
    %cst_128 = arith.constant dense<0.000000e+00> : vector<32x8x16xf32>
    %358 = tpu.matmul %357, %343, %cst_128 {dimension_numbers = #tpu.dot_dimension_numbers<[2], [1], [1], [2], [0, 0, 0, 1, 1, 2], [0], [0]>} : vector<32x8x8xbf16>, vector<32x8x16xbf16>, vector<32x8x16xf32> -> vector<32x8x16xf32>
    "tpu.trace_stop"() : () -> ()
    %359 = vector.shape_cast %358 : vector<32x8x16xf32> to vector<8x4x8x16xf32>
    %360 = vector.extract_strided_slice %359 {offsets = [0, 0, 0, 0], sizes = [1, 4, 8, 16], strides = [1, 1, 1, 1]} : vector<8x4x8x16xf32> to vector<1x4x8x16xf32>
    %361 = vector.shape_cast %360 : vector<1x4x8x16xf32> to vector<4x8x16xf32>
    %362 = vector.extract_strided_slice %359 {offsets = [1, 0, 0, 0], sizes = [1, 4, 8, 16], strides = [1, 1, 1, 1]} : vector<8x4x8x16xf32> to vector<1x4x8x16xf32>
    %363 = vector.shape_cast %362 : vector<1x4x8x16xf32> to vector<4x8x16xf32>
    %364 = vector.extract_strided_slice %359 {offsets = [2, 0, 0, 0], sizes = [1, 4, 8, 16], strides = [1, 1, 1, 1]} : vector<8x4x8x16xf32> to vector<1x4x8x16xf32>
    %365 = vector.shape_cast %364 : vector<1x4x8x16xf32> to vector<4x8x16xf32>
    %366 = vector.extract_strided_slice %359 {offsets = [3, 0, 0, 0], sizes = [1, 4, 8, 16], strides = [1, 1, 1, 1]} : vector<8x4x8x16xf32> to vector<1x4x8x16xf32>
    %367 = vector.shape_cast %366 : vector<1x4x8x16xf32> to vector<4x8x16xf32>
    %368 = vector.extract_strided_slice %359 {offsets = [4, 0, 0, 0], sizes = [1, 4, 8, 16], strides = [1, 1, 1, 1]} : vector<8x4x8x16xf32> to vector<1x4x8x16xf32>
    %369 = vector.shape_cast %368 : vector<1x4x8x16xf32> to vector<4x8x16xf32>
    %370 = vector.extract_strided_slice %359 {offsets = [5, 0, 0, 0], sizes = [1, 4, 8, 16], strides = [1, 1, 1, 1]} : vector<8x4x8x16xf32> to vector<1x4x8x16xf32>
    %371 = vector.shape_cast %370 : vector<1x4x8x16xf32> to vector<4x8x16xf32>
    %372 = vector.extract_strided_slice %359 {offsets = [6, 0, 0, 0], sizes = [1, 4, 8, 16], strides = [1, 1, 1, 1]} : vector<8x4x8x16xf32> to vector<1x4x8x16xf32>
    %373 = vector.shape_cast %372 : vector<1x4x8x16xf32> to vector<4x8x16xf32>
    %374 = vector.extract_strided_slice %359 {offsets = [7, 0, 0, 0], sizes = [1, 4, 8, 16], strides = [1, 1, 1, 1]} : vector<8x4x8x16xf32> to vector<1x4x8x16xf32>
    %375 = vector.shape_cast %374 : vector<1x4x8x16xf32> to vector<4x8x16xf32>
    %376 = tpu.concatenate %361, %363, %365, %367, %369, %371, %373, %375 in 2 : vector<4x8x16xf32>, vector<4x8x16xf32>, vector<4x8x16xf32>, vector<4x8x16xf32>, vector<4x8x16xf32>, vector<4x8x16xf32>, vector<4x8x16xf32>, vector<4x8x16xf32> -> vector<4x8x128xf32>
    %377 = vector.shape_cast %376 : vector<4x8x128xf32> to vector<32x128xf32>
    %378 = arith.truncf %377 : vector<32x128xf32> to vector<32x128xbf16>
    %c2_129 = arith.constant 2 : index
    %c0_130 = arith.constant 0 : index
    %c0_131 = arith.constant 0 : index
    %379 = vector.load %arg6[%c2_129, %c0_130, %c0_131] : memref<3x128x128xbf16, #tpu.memory_space<vmem>>, vector<1x128x128xbf16>
    %380 = vector.shape_cast %379 : vector<1x128x128xbf16> to vector<128x128xbf16>
    %cst_132 = arith.constant dense<0.000000e+00> : vector<32x128xf32>
    %381 = tpu.matmul %378, %380, %cst_132 {dimension_numbers = #tpu.dot_dimension_numbers<[1], [0], [0], [1], [0, 0, 1, 1], [], []>} : vector<32x128xbf16>, vector<128x128xbf16>, vector<32x128xf32> -> vector<32x128xf32>
    %c2_133 = arith.constant 2 : index
    %c0_134 = arith.constant 0 : index
    %c0_135 = arith.constant 0 : index
    %382 = vector.load %arg7[%c2_133, %c0_134, %c0_135] : memref<3x1x128xf32, #tpu.memory_space<vmem>>, vector<1x1x128xf32>
    %383 = vector.shape_cast %382 : vector<1x1x128xf32> to vector<1x128xf32>
    %384 = vector.broadcast %383 : vector<1x128xf32> to vector<32x128xf32>
    %385 = arith.addf %381, %384 : vector<32x128xf32>
    %386 = arith.addf %306, %385 : vector<32x128xf32>
    %c2_136 = arith.constant 2 : index
    %c0_137 = arith.constant 0 : index
    %c0_138 = arith.constant 0 : index
    %387 = vector.load %arg8[%c2_136, %c0_137, %c0_138] : memref<3x1x128xf32, #tpu.memory_space<vmem>>, vector<1x1x128xf32>
    %388 = vector.shape_cast %387 : vector<1x1x128xf32> to vector<1x128xf32>
    %c2_139 = arith.constant 2 : index
    %c0_140 = arith.constant 0 : index
    %c0_141 = arith.constant 0 : index
    %389 = vector.load %arg9[%c2_139, %c0_140, %c0_141] : memref<3x1x128xf32, #tpu.memory_space<vmem>>, vector<1x1x128xf32>
    %390 = vector.shape_cast %389 : vector<1x1x128xf32> to vector<1x128xf32>
    %cst_142 = arith.constant dense<0.000000e+00> : vector<32xf32>
    %391 = vector.multi_reduction <add>, %386, %cst_142 [1] : vector<32x128xf32> to vector<32xf32>
    %392 = vector.shape_cast %391 : vector<32xf32> to vector<32x1xf32>
    %cst_143 = arith.constant 1.280000e+02 : f32
    %393 = vector.broadcast %cst_143 : f32 to vector<32x1xf32>
    %394 = arith.divf %392, %393 : vector<32x1xf32>
    %395 = vector.broadcast %394 : vector<32x1xf32> to vector<32x128xf32>
    %396 = arith.subf %386, %395 : vector<32x128xf32>
    %397 = arith.mulf %396, %396 : vector<32x128xf32>
    %cst_144 = arith.constant dense<0.000000e+00> : vector<32xf32>
    %398 = vector.multi_reduction <add>, %397, %cst_144 [1] : vector<32x128xf32> to vector<32xf32>
    %399 = vector.shape_cast %398 : vector<32xf32> to vector<32x1xf32>
    %cst_145 = arith.constant 1.280000e+02 : f32
    %400 = vector.broadcast %cst_145 : f32 to vector<32x1xf32>
    %401 = arith.divf %399, %400 : vector<32x1xf32>
    %cst_146 = arith.constant 9.99999974E-6 : f32
    %402 = vector.broadcast %cst_146 : f32 to vector<32x1xf32>
    %403 = arith.addf %401, %402 : vector<32x1xf32>
    %404 = math.rsqrt %403 : vector<32x1xf32>
    %405 = vector.broadcast %404 : vector<32x1xf32> to vector<32x128xf32>
    %406 = arith.mulf %396, %405 : vector<32x128xf32>
    %407 = vector.broadcast %388 : vector<1x128xf32> to vector<32x128xf32>
    %408 = arith.mulf %406, %407 : vector<32x128xf32>
    %409 = vector.broadcast %390 : vector<1x128xf32> to vector<32x128xf32>
    %410 = arith.addf %408, %409 : vector<32x128xf32>
    %411 = arith.truncf %410 : vector<32x128xf32> to vector<32x128xbf16>
    %c2_147 = arith.constant 2 : index
    %c0_148 = arith.constant 0 : index
    %c0_149 = arith.constant 0 : index
    %412 = vector.load %arg10[%c2_147, %c0_148, %c0_149] : memref<3x128x256xbf16, #tpu.memory_space<vmem>>, vector<1x128x256xbf16>
    %413 = vector.shape_cast %412 : vector<1x128x256xbf16> to vector<128x256xbf16>
    %cst_150 = arith.constant dense<0.000000e+00> : vector<32x256xf32>
    %414 = tpu.matmul %411, %413, %cst_150 {dimension_numbers = #tpu.dot_dimension_numbers<[1], [0], [0], [1], [0, 0, 1, 1], [], []>} : vector<32x128xbf16>, vector<128x256xbf16>, vector<32x256xf32> -> vector<32x256xf32>
    %c2_151 = arith.constant 2 : index
    %c0_152 = arith.constant 0 : index
    %c0_153 = arith.constant 0 : index
    %415 = vector.load %arg11[%c2_151, %c0_152, %c0_153] : memref<3x1x256xf32, #tpu.memory_space<vmem>>, vector<1x1x256xf32>
    %416 = vector.shape_cast %415 : vector<1x1x256xf32> to vector<1x256xf32>
    %417 = vector.broadcast %416 : vector<1x256xf32> to vector<32x256xf32>
    %418 = arith.addf %414, %417 : vector<32x256xf32>
    %cst_154 = arith.constant 0.000000e+00 : f32
    %419 = vector.broadcast %cst_154 : f32 to vector<32x256xf32>
    %420 = arith.maximumf %418, %419 : vector<32x256xf32>
    %421 = arith.truncf %420 : vector<32x256xf32> to vector<32x256xbf16>
    %c2_155 = arith.constant 2 : index
    %c0_156 = arith.constant 0 : index
    %c0_157 = arith.constant 0 : index
    %422 = vector.load %arg12[%c2_155, %c0_156, %c0_157] : memref<3x256x128xbf16, #tpu.memory_space<vmem>>, vector<1x256x128xbf16>
    %423 = vector.shape_cast %422 : vector<1x256x128xbf16> to vector<256x128xbf16>
    %cst_158 = arith.constant dense<0.000000e+00> : vector<32x128xf32>
    %424 = tpu.matmul %421, %423, %cst_158 {dimension_numbers = #tpu.dot_dimension_numbers<[1], [0], [0], [1], [0, 0, 1, 1], [], []>} : vector<32x256xbf16>, vector<256x128xbf16>, vector<32x128xf32> -> vector<32x128xf32>
    %c2_159 = arith.constant 2 : index
    %c0_160 = arith.constant 0 : index
    %c0_161 = arith.constant 0 : index
    %425 = vector.load %arg13[%c2_159, %c0_160, %c0_161] : memref<3x1x128xf32, #tpu.memory_space<vmem>>, vector<1x1x128xf32>
    %426 = vector.shape_cast %425 : vector<1x1x128xf32> to vector<1x128xf32>
    %427 = vector.broadcast %426 : vector<1x128xf32> to vector<32x128xf32>
    %428 = arith.addf %424, %427 : vector<32x128xf32>
    %429 = arith.addf %410, %428 : vector<32x128xf32>
    %c2_162 = arith.constant 2 : index
    %c0_163 = arith.constant 0 : index
    %c0_164 = arith.constant 0 : index
    %430 = vector.load %arg14[%c2_162, %c0_163, %c0_164] : memref<3x1x128xf32, #tpu.memory_space<vmem>>, vector<1x1x128xf32>
    %431 = vector.shape_cast %430 : vector<1x1x128xf32> to vector<1x128xf32>
    %c2_165 = arith.constant 2 : index
    %c0_166 = arith.constant 0 : index
    %c0_167 = arith.constant 0 : index
    %432 = vector.load %arg15[%c2_165, %c0_166, %c0_167] : memref<3x1x128xf32, #tpu.memory_space<vmem>>, vector<1x1x128xf32>
    %433 = vector.shape_cast %432 : vector<1x1x128xf32> to vector<1x128xf32>
    %cst_168 = arith.constant dense<0.000000e+00> : vector<32xf32>
    %434 = vector.multi_reduction <add>, %429, %cst_168 [1] : vector<32x128xf32> to vector<32xf32>
    %435 = vector.shape_cast %434 : vector<32xf32> to vector<32x1xf32>
    %cst_169 = arith.constant 1.280000e+02 : f32
    %436 = vector.broadcast %cst_169 : f32 to vector<32x1xf32>
    %437 = arith.divf %435, %436 : vector<32x1xf32>
    %438 = vector.broadcast %437 : vector<32x1xf32> to vector<32x128xf32>
    %439 = arith.subf %429, %438 : vector<32x128xf32>
    %440 = arith.mulf %439, %439 : vector<32x128xf32>
    %cst_170 = arith.constant dense<0.000000e+00> : vector<32xf32>
    %441 = vector.multi_reduction <add>, %440, %cst_170 [1] : vector<32x128xf32> to vector<32xf32>
    %442 = vector.shape_cast %441 : vector<32xf32> to vector<32x1xf32>
    %cst_171 = arith.constant 1.280000e+02 : f32
    %443 = vector.broadcast %cst_171 : f32 to vector<32x1xf32>
    %444 = arith.divf %442, %443 : vector<32x1xf32>
    %cst_172 = arith.constant 9.99999974E-6 : f32
    %445 = vector.broadcast %cst_172 : f32 to vector<32x1xf32>
    %446 = arith.addf %444, %445 : vector<32x1xf32>
    %447 = math.rsqrt %446 : vector<32x1xf32>
    %448 = vector.broadcast %447 : vector<32x1xf32> to vector<32x128xf32>
    %449 = arith.mulf %439, %448 : vector<32x128xf32>
    %450 = vector.broadcast %431 : vector<1x128xf32> to vector<32x128xf32>
    %451 = arith.mulf %449, %450 : vector<32x128xf32>
    %452 = vector.broadcast %433 : vector<1x128xf32> to vector<32x128xf32>
    %453 = arith.addf %451, %452 : vector<32x128xf32>
    %454 = vector.shape_cast %453 : vector<32x128xf32> to vector<4x8x128xf32>
    %c0_173 = arith.constant 0 : index
    %c0_174 = arith.constant 0 : index
    %c0_175 = arith.constant 0 : index
    %455 = vector.load %arg16[%c0_173, %c0_174, %c0_175] : memref<4x8x128xf32, #tpu.memory_space<vmem>>, vector<4x8x128xf32>
    tpu.vector_store %arg16[%c0_173, %c0_174, %c0_175], %454 {strides = array<i32>} : memref<4x8x128xf32, #tpu.memory_space<vmem>>, vector<4x8x128xf32>,
    return
  }
  func.func @transform_0(%arg0: i32) -> (i32, i32, i32) {
    %c0_i32 = arith.constant 0 : i32
    %c0_i32_0 = arith.constant 0 : i32
    %c0_i32_1 = arith.constant 0 : i32
    return %arg0, %c0_i32, %c0_i32_0 : i32, i32, i32
  }
  func.func @transform_1(%arg0: i32) -> (i32, i32) {
    %c0_i32 = arith.constant 0 : i32
    %c0_i32_0 = arith.constant 0 : i32
    %c0_i32_1 = arith.constant 0 : i32
    return %c0_i32, %c0_i32_0 : i32, i32
  }
  func.func @transform_2(%arg0: i32) -> (i32, i32) {
    %c0_i32 = arith.constant 0 : i32
    %c0_i32_0 = arith.constant 0 : i32
    %c0_i32_1 = arith.constant 0 : i32
    return %c0_i32, %c0_i32_0 : i32, i32
  }
  func.func @transform_3(%arg0: i32) -> (i32, i32, i32) {
    %c0_i32 = arith.constant 0 : i32
    %c0_i32_0 = arith.constant 0 : i32
    %c0_i32_1 = arith.constant 0 : i32
    %c0_i32_2 = arith.constant 0 : i32
    return %c0_i32, %c0_i32_0, %c0_i32_1 : i32, i32, i32
  }
  func.func @transform_4(%arg0: i32) -> (i32, i32, i32) {
    %c0_i32 = arith.constant 0 : i32
    %c0_i32_0 = arith.constant 0 : i32
    %c0_i32_1 = arith.constant 0 : i32
    %c0_i32_2 = arith.constant 0 : i32
    return %c0_i32, %c0_i32_0, %c0_i32_1 : i32, i32, i32
  }
  func.func @transform_5(%arg0: i32) -> (i32, i32, i32) {
    %c0_i32 = arith.constant 0 : i32
    %c0_i32_0 = arith.constant 0 : i32
    %c0_i32_1 = arith.constant 0 : i32
    %c0_i32_2 = arith.constant 0 : i32
    return %c0_i32, %c0_i32_0, %c0_i32_1 : i32, i32, i32
  }
  func.func @transform_6(%arg0: i32) -> (i32, i32, i32) {
    %c0_i32 = arith.constant 0 : i32
    %c0_i32_0 = arith.constant 0 : i32
    %c0_i32_1 = arith.constant 0 : i32
    %c0_i32_2 = arith.constant 0 : i32
    return %c0_i32, %c0_i32_0, %c0_i32_1 : i32, i32, i32
  }
  func.func @transform_7(%arg0: i32) -> (i32, i32, i32) {
    %c0_i32 = arith.constant 0 : i32
    %c0_i32_0 = arith.constant 0 : i32
    %c0_i32_1 = arith.constant 0 : i32
    %c0_i32_2 = arith.constant 0 : i32
    return %c0_i32, %c0_i32_0, %c0_i32_1 : i32, i32, i32
  }
  func.func @transform_8(%arg0: i32) -> (i32, i32, i32) {
    %c0_i32 = arith.constant 0 : i32
    %c0_i32_0 = arith.constant 0 : i32
    %c0_i32_1 = arith.constant 0 : i32
    %c0_i32_2 = arith.constant 0 : i32
    return %c0_i32, %c0_i32_0, %c0_i32_1 : i32, i32, i32
  }
  func.func @transform_9(%arg0: i32) -> (i32, i32, i32) {
    %c0_i32 = arith.constant 0 : i32
    %c0_i32_0 = arith.constant 0 : i32
    %c0_i32_1 = arith.constant 0 : i32
    %c0_i32_2 = arith.constant 0 : i32
    return %c0_i32, %c0_i32_0, %c0_i32_1 : i32, i32, i32
  }
  func.func @transform_10(%arg0: i32) -> (i32, i32, i32) {
    %c0_i32 = arith.constant 0 : i32
    %c0_i32_0 = arith.constant 0 : i32
    %c0_i32_1 = arith.constant 0 : i32
    %c0_i32_2 = arith.constant 0 : i32
    return %c0_i32, %c0_i32_0, %c0_i32_1 : i32, i32, i32
  }
  func.func @transform_11(%arg0: i32) -> (i32, i32, i32) {
    %c0_i32 = arith.constant 0 : i32
    %c0_i32_0 = arith.constant 0 : i32
    %c0_i32_1 = arith.constant 0 : i32
    %c0_i32_2 = arith.constant 0 : i32
    return %c0_i32, %c0_i32_0, %c0_i32_1 : i32, i32, i32
  }
  func.func @transform_12(%arg0: i32) -> (i32, i32, i32) {
    %c0_i32 = arith.constant 0 : i32
    %c0_i32_0 = arith.constant 0 : i32
    %c0_i32_1 = arith.constant 0 : i32
    %c0_i32_2 = arith.constant 0 : i32
    return %c0_i32, %c0_i32_0, %c0_i32_1 : i32, i32, i32
  }
  func.func @transform_13(%arg0: i32) -> (i32, i32, i32) {
    %c0_i32 = arith.constant 0 : i32
    %c0_i32_0 = arith.constant 0 : i32
    %c0_i32_1 = arith.constant 0 : i32
    %c0_i32_2 = arith.constant 0 : i32
    return %c0_i32, %c0_i32_0, %c0_i32_1 : i32, i32, i32
  }
  func.func @transform_14(%arg0: i32) -> (i32, i32, i32) {
    %c0_i32 = arith.constant 0 : i32
    %c0_i32_0 = arith.constant 0 : i32
    %c0_i32_1 = arith.constant 0 : i32
    %c0_i32_2 = arith.constant 0 : i32
    return %c0_i32, %c0_i32_0, %c0_i32_1 : i32, i32, i32
  }
  func.func @transform_15(%arg0: i32) -> (i32, i32, i32) {
    %c0_i32 = arith.constant 0 : i32
    %c0_i32_0 = arith.constant 0 : i32
    %c0_i32_1 = arith.constant 0 : i32
    return %arg0, %c0_i32, %c0_i32_0 : i32, i32, i32
  }
}

</mosaic_0001>

<bundles_post_ra>
// kernel: market_encoder.1
= control target key start
LH: loop header
LB: loop body
LE: loop exit
PB: predicated region body
PF: predicated region fallthrough
CT: control target
= control target key end

     0   :  { %s21655_s0 = inlined_call_operand.hbm [shape: f32[8,8,24], index: 0, kind: input, shape index: {}]   ;;  %s21656_s1 = inlined_call_operand.hbm [shape: f32[8,128], index: 1, kind: input, shape index: {}]   ;;  %s21657_s2 = inlined_call_operand.hbm [shape: bf16[32,128], index: 2, kind: input, shape index: {}]   ;;  %s21658_s3 = inlined_call_operand.hbm [shape: bf16[3,128,384], index: 3, kind: input, shape index: {}]   ;;  %s21659_s4 = inlined_call_operand.hbm [shape: f32[3,1,384], index: 4, kind: input, shape index: {}]   ;;  %s21660_s5 = inlined_call_operand.hbm [shape: bf16[3,128,128], index: 5, kind: input, shape index: {}]   ;;  %s21661_s6 = inlined_call_operand.vmem [shape: f32[3,1,128], index: 6, kind: input, shape index: {}]   ;;  %s21662_s7 = inlined_call_operand.vmem [shape: f32[3,1,128], index: 7, kind: input, shape index: {}]   ;;  %s21663_s8 = inlined_call_operand.hbm [shape: f32[3,1,128], index: 8, kind: input, shape index: {}]   ;;  %s21664_s9 = inlined_call_operand.hbm [shape: bf16[3,128,256], index: 9, kind: input, shape index: {}]   ;;  %s21665_s10 = inlined_call_operand.vmem [shape: f32[3,1,256], index: 10, kind: input, shape index: {}]   ;;  %s21666_s11 = inlined_call_operand.hbm [shape: bf16[3,256,128], index: 11, kind: input, shape index: {}]   ;;  %s21667_s12 = inlined_call_operand.vmem [shape: f32[3,1,128], index: 12, kind: input, shape index: {}]   ;;  %s21668_s13 = inlined_call_operand.vmem [shape: f32[3,1,128], index: 13, kind: input, shape index: {}]   ;;  %s21669_s14 = inlined_call_operand.vmem [shape: f32[3,1,128], index: 14, kind: input, shape index: {}]   ;;  %s21670_s15 = inlined_call_operand.hbm [shape: f32[8,8,128], index: 15, kind: output, shape index: {}]  }
   0x1   :  { %21710 = sst [smem:[#allocation41_spill]] %s21656_s1 }
   0x2   :  { %21711 = sst [smem:[#allocation42_spill]] %s21657_s2 }
   0x3   :  { %21712 = sst [smem:[#allocation43_spill]] %s21658_s3 }
   0x4   :  { %21713 = sst [smem:[#allocation44_spill]] %s21659_s4 }
   0x5   :  { %21714 = sst [smem:[#allocation45_spill]] %s21660_s5 }
   0x6   :  { %21715 = sst [smem:[#allocation46_spill]] %s21663_s8 }
   0x7   :  { %21716 = sst [smem:[#allocation47_spill]] %s21664_s9 }
   0x8   :  { %21717 = sst [smem:[#allocation48_spill]] %s21666_s11 }
   0x9   :  { %21718 = sst [smem:[#allocation49_spill]] %s21670_s15 }
   0xa   :  { %20 = vsyncpa [#allocation3], 0 }
   0xb   :  { %22 = vsyncpa [#allocation3 + $0x1], 0 }
   0xc   :  { %23 = vsyncpa [#allocation6], 0 }
   0xd   :  { %24 = vsyncpa [#allocation9], 0 }
   0xe   :  { %25 = vsyncpa [#allocation12], 0 }
   0xf   :  { %26 = vsyncpa [#allocation15], 0 }
  0x10   :  { %27 = vsyncpa [#allocation4], 0 }
  0x11   :  { %29 = vsyncpa [#allocation4 + $0x1], 0  ;;  %s18424_s18 = smov 0   ;;  %s18426_s19 = smov 0  }
  0x12   :  { %s18428_s20 = smov 0   ;;  %s18430_s21 = smov 0  }
  0x13 LB: > { %s18312_s22 = smov [#allocation5]   ;;  %s18445_s24 = sadd.s32 4294967295, %s18310_s21   ;;  %s18310_s21 = sphi %s18430_s21, %s21851_s21   ;;  %s18306_s20 = sphi %s18428_s20, %s21850_s20   ;;  %s18302_s19 = sphi %s18426_s19, %s21849_s19   ;;  %s18298_s18 = sphi %s18424_s18, %s21848_s18  }
  0x14   : > { %s399_s23 = sshll.u32 %s18312_s22, 4  ;;  %p14652_p0 = scmp.ge.s32.totalorder %s18310_s21, 1  ;;  %s400_s23 = int_to_ptr.vmem [resolvable:$true] %s399_s23 }
  0x15   : > { %p21678_p1 = scmp.eq.s32.totalorder %s18445_s24, 0  ;;  %p386_p2 = scmp.lt.s32.totalorder %s18310_s21, 3 }
  0x16   : > { %s18313_s26 = smov [#allocation8]   ;;  %s18314_s29 = smov [#allocation11]  }
  0x17   : > { %p18450_p3 = pnand %p14652_p0, %p386_p2  ;;  %s422_s27 = sshll.u32 %s18313_s26, 4  ;;  %s18457_s27 = int_to_ptr.vmem [resolvable:$true] %s422_s27 }
  0x18   : > { %s448_s30 = sshll.u32 %s18314_s29, 4  ;;  %s18005_s17 = scalar_lea.vmem %s400_s23, 128  ;;  %s449_s30 = int_to_ptr.vmem [resolvable:$true] %s448_s30 }
  0x19   : > { %s21719_s25 = scalar_select %p18450_p3, 1, 0 }
  0x1a   : > { %p16997_p5 = pneg %p18450_p3  ;;  %p18006_p8 = scmp.ne.s32.totalorder %s400_s23, %s18005_s17 }
  0x1b   : > { %p18013_p11 = scmp.lt.s32.totalorder %s400_s23, %s400_s23  ;;  %p18014_p12 = scmp.lt.s32.totalorder %s18005_s17, %s18005_s17 }
  0x1c   : > { %p18461_p6 = pnand %p16997_p5, %p21678_p1 }
  0x1d   : > { %p18015_p13 = por %p18014_p12, %p18013_p11 }
  0x1e   : > { %p18467_p7 = pneg %p18461_p6 }
  0x20   : > { %p18008_p9 = pnand %p18006_p8, %p18467_p7 }
  0x22   : > { %p18009_p10 = pneg %p18008_p9 }
  0x24   : > { %p18016_p0 = pnand %p18015_p13, %p18009_p10 }
  0x26   : > { %18019 = shalt.err (!%p18016_p0)
}
  0x27   : > { %s21722_s1 = sld [smem:[#allocation41_spill]]  ;;  %s18031_s29 = scalar_lea.vmem %s18457_s27, 9216 }
  0x28   : > { %p18032_p2 = scmp.ne.s32.totalorder %s18457_s27, %s18031_s29  ;;  %p18039_p9 = scmp.lt.s32.totalorder %s18457_s27, %s18457_s27 }
  0x29   : > { %p18040_p11 = scmp.lt.s32.totalorder %s18031_s29, %s18031_s29 }
  0x2a   : > { %p18034_p5 = pnand %p18032_p2, %p18467_p7 }
  0x2b   : > { %p18041_p10 = por %p18040_p11, %p18039_p9 }
  0x2c   : > { %p18035_p8 = pneg %p18034_p5 }
  0x2d   : > { %17000 = dma.hbm_to_vmem [thread:$0]  (!%p18461_p6), %s21722_s1, 128, %s400_s23, [#allocation6]  }
  0x2e   : > { %p18042_p12 = pnand %p18041_p10, %p18035_p8 }
  0x30   : > { %18045 = shalt.err (!%p18042_p12)
}
  0x31   : > { %s18315_s17 = smov 192   ;;  %s18316_s22 = smov 12  }
  0x32   : > { %s21723_s3 = sld [smem:[#allocation43_spill]]  ;;  %s18057_s23 = scalar_lea.vmem %s449_s30, 3072 }
  0x33   : > { %p18058_p13 = scmp.ne.s32.totalorder %s449_s30, %s18057_s23  ;;  %p18065_p5 = scmp.lt.s32.totalorder %s449_s30, %s449_s30 }
  0x34   : > { %p18066_p9 = scmp.lt.s32.totalorder %s18057_s23, %s18057_s23 }
  0x35   : > { %p18060_p0 = pnand %p18058_p13, %p18467_p7 }
  0x36   : > { %p18067_p8 = por %p18066_p9, %p18065_p5 }
  0x37   : > { %p18061_p2 = pneg %p18060_p0 }
  0x38   : > { %17006 = dma.hbm_to_vmem [thread:$0]  (!%p18461_p6), %s21723_s3, 9216, %s18457_s27, [#allocation9], %s18315_s17, %s18315_s17, %s18316_s22  }
  0x39   : > { %p18068_p11 = pnand %p18067_p8, %p18061_p2 }
  0x3b   : > { %18071 = shalt.err (!%p18068_p11)
}
  0x3c   : > { %s21672_s29 = smov 64   ;;  %s21674_s1 = smov 4  }
  0x3d   : > { %s21724_s5 = sld [smem:[#allocation45_spill]]  ;;  %s18319_s17 = smov [#allocation14]  }
  0x3e   : > { %s480_s22 = sshll.u32 %s18319_s17, 4  ;;  %s481_s22 = int_to_ptr.vmem [resolvable:$true] %s480_s22 }
  0x3f   : > { %s18083_s26 = scalar_lea.vmem %s481_s22, 6144  ;;  %p18091_p0 = scmp.lt.s32.totalorder %s481_s22, %s481_s22 }
  0x40   : > { %p18084_p10 = scmp.ne.s32.totalorder %s481_s22, %s18083_s26  ;;  %p18092_p2 = scmp.lt.s32.totalorder %s18083_s26, %s18083_s26 }
  0x42   : > { %p18086_p12 = pnand %p18084_p10, %p18467_p7  ;;  %p18093_p5 = por %p18092_p2, %p18091_p0 }
  0x43   : > { %17012 = dma.hbm_to_vmem [thread:$0]  (!%p18461_p6), %s21724_s5, 3072, %s449_s30, [#allocation12], %s21672_s29, %s21672_s29, %s21674_s1  }
  0x44   : > { %p18087_p13 = pneg %p18086_p12 }
  0x46   : > { %p18094_p9 = pnand %p18093_p5, %p18087_p13 }
  0x48   : > { %18097 = shalt.err (!%p18094_p9)
}
  0x49   : > { %s21676_s23 = smov 128   ;;  %s21677_s3 = smov 8  }
  0x4a   : > { %s21725_s9 = sld [smem:[#allocation47_spill]]  ;;  %s18322_s27 = smov [#allocation7]  }
  0x4b   : > { %s409_s17 = sshll.u32 %s18322_s27, 4  ;;  %s18323_s29 = smov [#allocation10]   ;;  %s410_s17 = int_to_ptr.vmem [resolvable:$true] %s409_s17 }
  0x4c   : > { %s435_s1 = sshll.u32 %s18323_s29, 4  ;;  %s18109_s26 = scalar_lea.vmem %s410_s17, 256  ;;  %s436_s1 = int_to_ptr.vmem [resolvable:$true] %s435_s1 }
  0x4d   : > { %p18110_p8 = scmp.ne.s32.totalorder %s410_s17, %s18109_s26  ;;  %p18117_p12 = scmp.lt.s32.totalorder %s410_s17, %s410_s17 }
  0x4e   : > { %p18118_p13 = scmp.lt.s32.totalorder %s18109_s26, %s18109_s26 }
  0x4f   : > { %p18112_p11 = pnand %p18110_p8, %p18467_p7 }
  0x50   : > { %17018 = dma.hbm_to_vmem [thread:$0]  (!%p18461_p6), %s21725_s9, 6144, %s481_s22, [#allocation15], %s21676_s23, %s21676_s23, %s21677_s3  }
  0x51   : > { %p18113_p10 = pneg %p18112_p11  ;;  %p18119_p0 = por %p18118_p13, %p18117_p12 }
  0x53   : > { %p18120_p2 = pnand %p18119_p0, %p18113_p10 }
  0x55   : > { %18123 = shalt.err (!%p18120_p2)
}
  0x56   : > { %s21726_s30 = smov 4   ;;  %s21727_s22 = smov 64  }
  0x57   : > { %s21728_s2 = sld [smem:[#allocation42_spill]]  ;;  %s18135_s29 = scalar_lea.vmem %s436_s1, 144 }
  0x58   : > { %p18136_p5 = scmp.ne.s32.totalorder %s436_s1, %s18135_s29  ;;  %s18142_s23 = scalar_lea.vmem %s436_s1, 160 }
  0x59   : > { %p18143_p11 = scmp.lt.s32.totalorder %s436_s1, %s436_s1  ;;  %p18144_p12 = scmp.lt.s32.totalorder %s18142_s23, %s18135_s29 }
  0x5a   : > { %p18138_p9 = pnand %p18136_p5, %p18467_p7 }
  0x5b   : > { %p18145_p10 = por %p18144_p12, %p18143_p11 }
  0x5c   : > { %p18139_p8 = pneg %p18138_p9 }
  0x5d   : > { %17003 = dma.hbm_to_vmem [thread:$0]  (!%p18461_p6), %s21728_s2, 256, %s410_s17, [#allocation6], %s21727_s22, %s21727_s22, %s21726_s30  }
  0x5e   : > { %p18146_p13 = pnand %p18145_p10, %p18139_p8 }
  0x60   : > { %18149 = shalt.err (!%p18146_p13)
}
  0x61   : > { %s18324_s26 = smov 48   ;;  %s18325_s3 = smov 3  }
  0x62   : > { %s21729_s4 = sld [smem:[#allocation44_spill]]  ;;  %s18326_s17 = smov [#allocation13]  }
  0x63   : > { %s467_s27 = sshll.u32 %s18326_s17, 4  ;;  %s468_s27 = int_to_ptr.vmem [resolvable:$true] %s467_s27 }
  0x64   : > { %s18161_s2 = scalar_lea.vmem %s468_s27, 48  ;;  %s18168_s23 = scalar_lea.vmem %s468_s27, 64 }
  0x65   : > { %p18162_p0 = scmp.ne.s32.totalorder %s468_s27, %s18161_s2  ;;  %p18169_p9 = scmp.lt.s32.totalorder %s468_s27, %s468_s27 }
  0x66   : > { %p18170_p8 = scmp.lt.s32.totalorder %s18168_s23, %s18161_s2 }
  0x67   : > { %p18164_p2 = pnand %p18162_p0, %p18467_p7 }
  0x68   : > { %17009 = dma.hbm_to_vmem [thread:$0]  (!%p18461_p6), %s21729_s4, 144, %s436_s1, [#allocation9], %s18324_s26, %s18324_s26, %s18325_s3  }
  0x69   : > { %p18165_p5 = pneg %p18164_p2  ;;  %p18171_p11 = por %p18170_p8, %p18169_p9 }
  0x6b   : > { %p18172_p12 = pnand %p18171_p11, %p18165_p5 }
  0x6d   : > { %18175 = shalt.err (!%p18172_p12)
}
  0x6e   : > { %s18327_s29 = smov 16   ;;  %s18328_s9 = smov 1  }
  0x6f   : > { %s21730_s8 = sld [smem:[#allocation46_spill]]  ;;  %s18329_s5 = smov [#allocation16]  }
  0x70   : > { %s496_s26 = sshll.u32 %s18329_s5, 4  ;;  %s497_s26 = int_to_ptr.vmem [resolvable:$true] %s496_s26 }
  0x71   : > { %s18187_s15 = scalar_lea.vmem %s497_s26, 6144  ;;  %p18195_p2 = scmp.lt.s32.totalorder %s497_s26, %s497_s26 }
  0x72   : > { %p18188_p10 = scmp.ne.s32.totalorder %s497_s26, %s18187_s15  ;;  %p18196_p5 = scmp.lt.s32.totalorder %s18187_s15, %s18187_s15 }
  0x74   : > { %p18190_p13 = pnand %p18188_p10, %p18467_p7  ;;  %p18197_p9 = por %p18196_p5, %p18195_p2 }
  0x75   : > { %17015 = dma.hbm_to_vmem [thread:$0]  (!%p18461_p6), %s21730_s8, 48, %s468_s27, [#allocation12], %s18327_s29, %s18327_s29, %s18328_s9  }
  0x76   : > { %p18191_p0 = pneg %p18190_p13 }
  0x78   : > { %p18198_p8 = pnand %p18197_p9, %p18191_p0 }
  0x7a   : > { %18201 = shalt.err (!%p18198_p8)
}
  0x7b   : > { %s21731_s11 = sld [smem:[#allocation48_spill]]  ;;  %s14651_s28 = sadd.s32 4294967294, %s18310_s21  }
  0x7c   : > { %s18546_s16 = sadd.s32 1, %s18310_s21   ;;  %s42_s27 = sadd.s32 1, %s18306_s20 }
  0x7d   : > { %s39_s17 = ssub.s32 %s18310_s21, %s18546_s16  ;;  %p49_p11 = scmp.ne.s32.totalorder %s18306_s20, %s18302_s19 }
  0x7e   : > { %p40_p7 = scmp.eq.s32.totalorder %s39_s17, 0  ;;  %p50_p12 = scmp.eq.s32.totalorder %s18310_s21, 0 }
  0x7f   : > { %p55_p10 = scmp.ne.s32.totalorder %s18302_s19, %s18298_s18  ;;  %p373_p0 = scmp.eq.s32.totalorder %s18445_s24, 1 }
  0x80   : > { %s18557_s23 = scalar_select %p40_p7, %s18306_s20, %s42_s27  }
  0x81   : > { %17021 = dma.hbm_to_vmem [thread:$0]  (!%p18461_p6), %s21731_s11, 6144, %s497_s26, [#allocation15], %s21727_s22, %s21727_s22, %s21726_s30  }
  0x82   : > { %p18559_p13 = por %p50_p12, %p49_p11  ;;  %p18565_p6 = por %p21678_p1, %p55_p10 }
  0x83   : > { %p379_p2 = scmp.eq.s32.totalorder %s14651_s28, 1  ;;  %p17038_p5 = scmp.lt.s32.totalorder %s18310_s21, 2 }
  0x84   : > { %s21733_s30 = scalar_select %p18565_p6, 1, 0 }
  0x85   : > { %s519_s22 = sand.u32 1, %s18306_s20   ;;  %p18572_p9 = por %p373_p0, %p49_p11 }
  0x86   : > { %p18576_p8 = por %p379_p2, %p55_p10  ;;  %s14662_s5 = sshll.u32 %s519_s22, 5 }
  0x87   : > { %s21734_s1 = scalar_select %p18572_p9, 1, 0 }
  0x88   : > { %s21735_s3 = scalar_select %p18576_p8, 1, 0 }
  0x89   : > { %s15123_s26 = sshll.u32 %s18310_s21, 9  ;;  %s523_s28 = scalar_lea.vmem [#allocation2], %s14662_s5 }
  0x8a   : > { %s18584_s9 = scalar_lea.hbm %s21655_s0, %s15123_s26  ;;  %s530_s17 = sshll.u32 %s523_s28, 4  ;;  %s18586_s17 = int_to_ptr.vmem [resolvable:$true] %s530_s17 }
  0x8b   : > { %p18590_p7 = pnand %p17038_p5, %p18559_p13  ;;  %s18594_s4 = scalar_lea.sflag [#allocation3], %s519_s22 }
  0x8c   : > { %s18202_s8 = scalar_lea.hbm %s18584_s9, 512  ;;  %s18207_s5 = scalar_lea.hbm %s21655_s0, 1024 }
  0x8d   : > { %p18203_p11 = scmp.ne.s32.totalorder %s18584_s9, %s18202_s8  ;;  %p18204_p12 = pneg %p18590_p7 }
  0x8e   : > { %p18208_p13 = scmp.lt.s32.totalorder %s18584_s9, %s21655_s0  ;;  %p18209_p2 = scmp.lt.s32.totalorder %s18207_s5, %s18202_s8 }
  0x8f   : > { %p18205_p10 = pnand %p18204_p12, %p18203_p11 }
  0x90   : > { %p18210_p5 = por %p18209_p2, %p18208_p13 }
  0x91   : > { %p18206_p0 = pneg %p18205_p10 }
  0x93   : > { %p18211_p4 = pnand %p18210_p5, %p18206_p0 }
  0x95   : > { %18214 = shalt.err (!%p18211_p4)
}
  0x96   : > { %s18215_s29 = scalar_lea.vmem %s18586_s17, 512  ;;  %s18330_s22 = smov [#allocation2]  }
  0x97   : > { %p18216_p1 = scmp.ne.s32.totalorder %s18586_s17, %s18215_s29  ;;  %s18220_s11 = sshll.u32 %s18330_s22, 4  ;;  %s18221_s11 = int_to_ptr.vmem [resolvable:$false] %s18220_s11 }
  0x98   : > { %s18222_s26 = scalar_lea.vmem %s18221_s11, 1024  ;;  %p18223_p10 = scmp.lt.s32.totalorder %s18586_s17, %s18221_s11 }
  0x99   : > { %p18218_p8 = pnand %p18216_p1, %p18204_p12  ;;  %p18224_p9 = scmp.lt.s32.totalorder %s18222_s26, %s18215_s29 }
  0x9b   : > { %p18219_p11 = pneg %p18218_p8  ;;  %p18225_p6 = por %p18224_p9, %p18223_p10 }
  0x9d   : > { %p18226_p3 = pnand %p18225_p6, %p18219_p11 }
  0x9f   : > { %18229 = shalt.err (!%p18226_p3)
}
  0xa0   : > { %s21737_s8 = smov 8   ;;  %s21738_s15 = smov 128  }
  0xa1   : > { %17025 = dma.hbm_to_vmem [thread:$0]  (!%p18590_p7), %s18584_s9, 512, %s18586_s17, %s18594_s4, %s21738_s15, %s21738_s15, %s21737_s8  }
  0xa2   : > { %p21739_p1 = scmp.ne.s32.totalorder %s21719_s25, 0 }
  0xa4   : > { %542 = sbr.rel (%p21739_p1) target bundleno = 8122 (0x1fba), region = 80 }
  0xa9   : > { %s18621_s5 = sand.u32 1, %s18302_s19   ;;  %p21740_p3 = scmp.ne.s32.totalorder %s21733_s30, 0 }
  0xaa   : > { %s14666_s11 = sshll.u32 %s18621_s5, 5  ;;  %s545_s2 = scalar_lea.sflag [#allocation3], %s18621_s5 }
  0xab   : > { %s548_s27 = scalar_lea.vmem [#allocation2], %s14666_s11 }
  0xac   : > { %18273 = dma.done.wait (%p21740_p3), %s545_s2, 512  }
  0xad   : > { %18275 = vsyncadd (%p21740_p3), %s545_s2, 4294966784  ;;  %p21741_p4 = scmp.eq.s32.totalorder %s18445_s24, 0 }
  0xaf   : > { %18277 = dma.done.wait (%p21741_p4), [#allocation6], 384   ;;  %p21742_p6 = pmov %p21741_p4 }
  0xb0   : > { %p21743_p9 = pmov %p21741_p4 }
  0xb1   : > { %18279 = vsyncadd (%p21742_p6), [#allocation6], 4294966912 }
  0xb2   : > { %18281 = dma.done.wait (%p21743_p9), [#allocation9], 9360   ;;  %p21744_p8 = pmov %p21741_p4 }
  0xb3   : > { %p21745_p7 = pmov %p21741_p4 }
  0xb4   : > { %18283 = vsyncadd (%p21744_p8), [#allocation9], 4294957936 }
  0xb5   : > { %18285 = dma.done.wait (%p21745_p7), [#allocation12], 3120   ;;  %p21746_p12 = pmov %p21741_p4 }
  0xb6   : > { %p21747_p0 = pmov %p21741_p4 }
  0xb7   : > { %18287 = vsyncadd (%p21746_p12), [#allocation12], 4294964176 }
  0xb8   : > { %18289 = dma.done.wait (%p21747_p0), [#allocation15], 12288   ;;  %p21748_p13 = pmov %p21747_p0 }
  0xb9   : > { %v17320_v0 = vld [vmem:[#allocation7 + $0x8] sm:$0xff]   ;;  %v17321_v1 = vld [vmem:[#allocation7] sm:$0xff]   ;;  %v630_v2 = vld [vmem:[%s548_s27] sm:$0xff]  ;;  %vm636_vm0 = vcmask 195584   ;;  %vm658_vm1 = vcmask 261120   ;;  %v21682_v34 = vmov 0   ;;  %v753_v47 = vlaneseq }
  0xba   : > { %18291 = vsyncadd (%p21748_p13), [#allocation15], 4294955008  ;;  %15681 = vmatprep.subr.bf16.mxu1 %v17320_v0  ;;  %v631_v3 = vld [vmem:[%s548_s27 + $0x8] sm:$0xff]  ;;  %v632_v4 = vld [vmem:[%s548_s27 + $0x10] sm:$0xff]  ;;  %v21684_v46 = vmov 0.0   ;;  %vm18333_vm2 = vmmov 0  }
  0xbb   : > { %15682 = vmatpush3.bf16.msra.mxu1 %v17320_v0  ;;  %v633_v5 = vld [vmem:[%s548_s27 + $0x18] sm:$0xff]  ;;  %v634_v6 = vpack.c.bf16 %v631_v3, %v630_v2  ;;  %v17324_v8 = vld [vmem:[#allocation8 + $0xac] ss:$12 sps:$4 sm:$0xff]   ;;  %v17325_v10 = vld [vmem:[#allocation8 + $0xb0] ss:$12 sps:$4 sm:$0xff]   ;;  %v18669_v48 = vshrl.u32 %v753_v47, 7 }
  0xbc   : > { %15683 = vmatprep.subr.bf16.mxu1 %v17321_v1  ;;  %v635_v7 = vpack.c.bf16 %v633_v5, %v632_v4  ;;  %v17322_v12 = vld [vmem:[#allocation8 + $0xa8] ss:$12 sps:$4 sm:$0xff]   ;;  %15689 = vmatprep.subr.bf16.mxu0 %v17325_v10  ;;  %v17329_v13 = vld [vmem:[#allocation8 + $0x98] ss:$12 sps:$4 sm:$0xff]   ;;  %v17333_v15 = vld [vmem:[#allocation8 + $0x80] ss:$12 sps:$4 sm:$0xff]  }
  0xbd   : > { %v639_v9 = vsel %vm636_vm0, %v634_v6, 0  ;;  %15690 = vmatpush3.bf16.msra.mxu0 %v17325_v10  ;;  %v17328_v14 = vld [vmem:[#allocation8 + $0x94] ss:$12 sps:$4 sm:$0xff]   ;;  %v17326_v16 = vld [vmem:[#allocation8 + $0x90] ss:$12 sps:$4 sm:$0xff]   ;;  %v712_v38 = vld [vmem:[#allocation5] sm:$0xff] }
  0xbe   : > { %v641_v11 = vsel %vm636_vm0, %v635_v7, 0  ;;  %15685 = vmatprep.mubr.msk.bf16.mxu1 %vm658_vm1, %v639_v9  ;;  %15691 = vmatprep.subr.bf16.mxu0 %v17329_v13  ;;  %v17332_v17 = vld [vmem:[#allocation8 + $0x7c] ss:$12 sps:$4 sm:$0xff]   ;;  %v17330_v19 = vld [vmem:[#allocation8 + $0x78] ss:$12 sps:$4 sm:$0xff]   ;;  %v18672_v49 = vsub.s32 0, %v18669_v48 }
  0xbf   : > { %15684 = vmatpush3.bf16.msra.mxu1 %v17321_v1  ;;  %v17337_v18 = vld [vmem:[#allocation8 + $0x68] ss:$12 sps:$4 sm:$0xff]   ;;  %v17336_v20 = vld [vmem:[#allocation8 + $0x64] ss:$12 sps:$4 sm:$0xff]   ;;  %v17334_v22 = vld [vmem:[#allocation8 + $0x60] ss:$12 sps:$4 sm:$0xff]  }
  0xc0   : > { %896 = vmatprep.subr.bf16.mxu1 %v17324_v8  ;;  %v17341_v21 = vld [vmem:[#allocation8 + $0x50] ss:$12 sps:$4 sm:$0xff]   ;;  %v17340_v23 = vld [vmem:[#allocation8 + $0x4c] ss:$12 sps:$4 sm:$0xff]   ;;  %v17338_v24 = vld [vmem:[#allocation8 + $0x48] ss:$12 sps:$4 sm:$0xff]  }
  0xc1   : > { %15692 = vmatpush3.bf16.msra.mxu0 %v17329_v13  ;;  %v17344_v25 = vld [vmem:[#allocation8 + $0x34] ss:$12 sps:$4 sm:$0xff]   ;;  %v17342_v26 = vld [vmem:[#allocation8 + $0x30] ss:$12 sps:$4 sm:$0xff]   ;;  %v17345_v27 = vld [vmem:[#allocation8 + $0x38] ss:$12 sps:$4 sm:$0xff]  }
  0xc2   : > { %15686 = vmatmul.mubr.msk.bf16.vlgmr.msra.gmra.mxu1 %vm658_vm1, %v641_v11  ;;  %15693 = vmatprep.subr.bf16.mxu0 %v17333_v15  ;;  %v17348_v28 = vld [vmem:[#allocation8 + $0x1c] ss:$12 sps:$4 sm:$0xff]   ;;  %v17346_v29 = vld [vmem:[#allocation8 + $0x18] ss:$12 sps:$4 sm:$0xff]   ;;  %v17349_v30 = vld [vmem:[#allocation8 + $0x20] ss:$12 sps:$4 sm:$0xff]  }
  0xc3   : > { %897 = vmatpush1.bf16.msra.mxu1 %v17322_v12  ;;  %v17352_v31 = vld [vmem:[#allocation8 + $0x4] ss:$12 sps:$4 sm:$0xff]   ;;  %v17350_v32 = vld [vmem:[#allocation8] ss:$12 sps:$4 sm:$0xff]   ;;  %v17353_v33 = vld [vmem:[#allocation8 + $0x8] ss:$12 sps:$4 sm:$0xff]   ;;  %928 = vmatprep.mubr.bf16.mxu1 %v21682_v34 }
  0xc4   : > { %898 = vmatprep.subr.bf16.mxu1 %v17328_v14  ;;  %21753 = vst [vmem:[#allocation28_spill] sm:$0xff] %v18672_v49  ;;  %v18675_v50 = vsub.s32 1, %v18669_v48  ;;  %v18677_v51 = vld [vmem:[#allocation10] sm:$0x7]  ;;  %vm1174_vm3 = vcmask 130048   ;;  %s18334_s4 = smov 112  }
  0xc5   : > { %15694 = vmatpush3.bf16.msra.mxu0 %v17333_v15  ;;  %v756_v52 = vrot.slane %v18677_v51, %v18672_v49  ;;  %s18335_s25 = smov 96   ;;  %s18336_s30 = smov 80   ;;  %vm2679_vm4 = vcmask 64512   ;;  %vm3067_vm5 = vcmask 1043456   ;;  %vm4657_vm6 = vcmask 392192  }
  0xc6   : > { %15695 = vmatprep.subr.bf16.mxu0 %v17337_v18  ;;  %21754 = vst [vmem:[#allocation29_spill] sm:$0xff] %v18675_v50  ;;  %v760_v53 = vrot.slane %v18677_v51, %v18675_v50  ;;  %s18337_s9 = smov 64   ;;  %s18338_s17 = smov 48   ;;  %vm4662_vm7 = vcmask 523264   ;;  %vm4667_vm8 = vcmask 654336   ;;  %vm4672_vm9 = vcmask 785408  }
  0xc7   : > { %899 = vmatpush1.bf16.msra.mxu1 %v17326_v16  ;;  %s18339_s28 = smov 32   ;;  %s18340_s29 = smov 16   ;;  %vm4677_vm10 = vcmask 916480  }
  0xc8   : > { %900 = vmatprep.subr.bf16.mxu1 %v17332_v17  ;;  %s626_s27 = scalar_lea.vmem [#allocation17], %s14666_s11  ;;  %p21845_p5 = scmp.ne.s32.totalorder %s21734_s1, 0 }
  0xc9   : > { %15696 = vmatpush3.bf16.msra.mxu0 %v17337_v18 }
  0xca   : > { %15697 = vmatprep.subr.bf16.mxu0 %v17341_v21 }
  0xcb   : > { %901 = vmatpush1.bf16.msra.mxu1 %v17330_v19 }
  0xcc   : > { %902 = vmatprep.subr.bf16.mxu1 %v17336_v20 }
  0xcd   : > { %15698 = vmatpush3.bf16.msra.mxu0 %v17341_v21  ;;  %v18743_v21 = vsub.s32 2, %v18669_v48 }
  0xce   : > { %15699 = vmatprep.subr.bf16.mxu0 %v17345_v27 }
  0xcf   : > { %903 = vmatpush1.bf16.msra.mxu1 %v17334_v22  ;;  %21755 = vst [vmem:[#allocation30_spill] sm:$0xff] %v18743_v21 }
  0xd0   : > { %904 = vmatprep.subr.bf16.mxu1 %v17340_v23  ;;  %v764_v23 = vrot.slane %v18677_v51, %v18743_v21 }
  0xd1   : > { %15700 = vmatpush3.bf16.msra.mxu0 %v17345_v27 }
  0xd2   : > { %15701 = vmatprep.subr.bf16.mxu0 %v17349_v30 }
  0xd3   : > { %905 = vmatpush1.bf16.msra.mxu1 %v17338_v24 }
  0xd4   : > { %906 = vmatprep.subr.bf16.mxu1 %v17344_v25 }
  0xd5   : > { %15702 = vmatpush3.bf16.msra.mxu0 %v17349_v30 }
  0xd6   : > { %15703 = vmatprep.subr.bf16.mxu0 %v17353_v33 }
  0xd7   : > { %907 = vmatpush1.bf16.msra.mxu1 %v17342_v26 }
  0xd8   : > { %908 = vmatprep.subr.bf16.mxu1 %v17348_v28 }
  0xd9   : > { %15704 = vmatpush3.bf16.msra.mxu0 %v17353_v33 }
  0xda   : > { %15721 = vmatprep.subr.bf16.mxu0 %v21684_v46 }
  0xdb   : > { %909 = vmatpush1.bf16.msra.mxu1 %v17346_v29 }
  0xdc   : > { %910 = vmatprep.subr.bf16.mxu1 %v17352_v31 }
  0xdf   : > { %911 = vmatpush1.bf16.msra.mxu1 %v17350_v32 }
  0xe0   : > { %15709 = vmatprep.subr.bf16.mxu1 %v21684_v46 }
 0x182   : > { %v15687_v35 = vpop.f32.mrf.mxu1 }
 0x183   : > { %v18656_v43 = vadd.f32 %v15687_v35, %v712_v38 }
 0x184   : > { %v697_v36 = vpop.f32.mrf.mxu1 }
 0x185   : > { %v18652_v41 = vadd.f32 %v712_v38, %v697_v36  ;;  %21752 = vst [vmem:[#allocation27_spill] sm:$0xff] %v18656_v43 }
 0x186   : > { %v15688_v37 = vpop.f32.mrf.mxu1 }
 0x187   : > { %v18650_v39 = vadd.f32 %v15688_v37, %v712_v38  ;;  %21750 = vst [vmem:[#allocation25_spill] sm:$0xff] %v18652_v41 }
 0x188   : > { %v700_v40 = vpop.f32.mrf.mxu1 }
 0x189   : > { %21749 = vst [vmem:[#allocation24_spill] sm:$0xff] %v18650_v39  ;;  %v18654_v42 = vadd.f32 %v712_v38, %v700_v40  ;;  %v718_v45 = vpack.c.bf16 %v18650_v39, %v18656_v43 }
 0x18b   : > { %21751 = vst [vmem:[#allocation26_spill] sm:$0xff] %v18654_v42  ;;  %v717_v44 = vpack.c.bf16 %v18654_v42, %v18652_v41 }
 0x18d   : > { %929 = vmatmul.mubr.bf16.vlgmr.msra.gmra.mxu1 %v717_v44  ;;  %15705 = vmatprep.mubr.bf16.mxu0 %v717_v44 }
 0x18e   : > { %15706 = vmatmul.mubr.bf16.vlgmr.msra.gmra.mxu0 %v718_v45  ;;  %938 = vmatprep.mubr.bf16.mxu1 %v21682_v34 }
 0x18f   : > { %15723 = vmatprep.mubr.msk.bf16.mxu0 %vm18333_vm2, %v21684_v46 }
 0x195   : > { %939 = vmatmul.mubr.bf16.gmra.mxu1 %v718_v45 }
 0x196   : > { %15711 = vmatprep.mubr.msk.bf16.mxu1 %vm18333_vm2, %v21684_v46 }
 0x24d   : > { %v930_v54 = vpop.f32.mrf.mxu1 }
 0x24e   : > { %v931_v56 = vadd.f32 %v930_v54, %v756_v52  ;;  %v15707_v18 = vpop.f32.mrf.mxu0 }
 0x24f   : > { %v932_v55 = vpop.f32.mrf.mxu1  ;;  %v992_v29 = vadd.f32 %v15707_v18, %v764_v23 }
 0x250   : > { %v933_v57 = vadd.f32 %v932_v55, %v760_v53  ;;  %v983_v19 = vpop.f32.mrf.mxu0 }
 0x251   : > { %v934_v58 = vpop.f32.mrf.mxu1  ;;  %v984_v27 = vadd.f32 %v983_v19, %v764_v23  ;;  %v18772_v31 = vpack.c.bf16 %v992_v29, %v992_v29 }
 0x252   : > { %v18683_v59 = vpack.c.bf16 %v933_v57, %v931_v56  ;;  %v935_v61 = vadd.f32 %v934_v58, %v756_v52  ;;  %v15708_v20 = vpop.f32.mrf.mxu0 }
 0x253   : > { %v936_v60 = vpop.f32.mrf.mxu1  ;;  %v995_v25 = vadd.f32 %v15708_v20, %v764_v23  ;;  %v18766_v30 = vpack.c.bf16 %v984_v27, %v984_v27 }
 0x254   : > { %v937_v62 = vadd.f32 %v936_v60, %v760_v53  ;;  %1030 = vrot.lane.b32.xlu0 %v18683_v59, %s18334_s4  ;;  %v1086_v63 = vrot.slane %v18683_v59, 4  ;;  %v986_v22 = vpop.f32.mrf.mxu0 }
 0x255   : > { %v940_v0 = vpop.f32.mrf.mxu1  ;;  %v987_v24 = vadd.f32 %v986_v22, %v764_v23  ;;  %v18761_v28 = vpack.c.bf16 %v995_v25, %v995_v25 }
 0x256   : > { %v18688_v1 = vpack.c.bf16 %v937_v62, %v935_v61  ;;  %v1179_v2 = vsel %vm1174_vm3, %v1086_v63, 0  ;;  %v941_v4 = vadd.f32 %v940_v0, %v756_v52 }
 0x257   : > { %v942_v3 = vpop.f32.mrf.mxu1  ;;  %15710 = vmatpush3.bf16.xpose.msra.mxu1 %v1179_v2  ;;  %v18755_v26 = vpack.c.bf16 %v987_v24, %v987_v24 }
 0x258   : > { %v943_v5 = vadd.f32 %v942_v3, %v760_v53  ;;  %1032 = vrot.lane.b32.xlu0 %v18688_v1, %s18334_s4  ;;  %15715 = vmatprep.subr.bf16.mxu1 %v21684_v46  ;;  %v1087_v8 = vrot.slane %v18688_v1, 4 }
 0x259   : > { %v944_v6 = vpop.f32.mrf.mxu1 }
 0x25a   : > { %v15128_v7 = vpack.c.bf16 %v943_v5, %v941_v4  ;;  %v945_v10 = vadd.f32 %v944_v6, %v756_v52  ;;  %v1225_v14 = vsel %vm1174_vm3, %v1087_v8, 0 }
 0x25b   : > { %v946_v9 = vpop.f32.mrf.mxu1 }
 0x25c   : > { %v947_v11 = vadd.f32 %v946_v9, %v760_v53  ;;  %1034 = vrot.lane.b32.xlu1 %v15128_v7, %s18334_s4  ;;  %1038 = vrot.lane.b32.xlu0 %v18683_v59, %s18335_s25  ;;  %v1088_v12 = vrot.slane %v15128_v7, 4 }
 0x25e   : > { %v15130_v13 = vpack.c.bf16 %v947_v11, %v945_v10  ;;  %15712 = vmatmul.mubr.msk.bf16.vlgmr.msra.gmra.mxu1 %vm1174_vm3, %v18683_v59  ;;  %v1271_v15 = vsel %vm1174_vm3, %v1088_v12, 0 }
 0x25f   : > { %15716 = vmatpush3.bf16.xpose.msra.mxu1 %v1225_v14  ;;  %15722 = vmatpush3.bf16.xpose.msra.mxu0 %v1271_v15 }
 0x260   : > { %1036 = vrot.lane.b32.xlu1 %v15130_v13, %s18334_s4  ;;  %1042 = vrot.lane.b32.xlu0 %v15128_v7, %s18335_s25  ;;  %v1089_v16 = vrot.slane %v15130_v13, 4 }
 0x261   : > { %15717 = vmatprep.mubr.msk.bf16.mxu1 %vm18333_vm2, %v21684_v46  ;;  %15727 = vmatprep.subr.bf16.mxu1 %v21684_v46 }
 0x262   : > { %15733 = vmatprep.subr.bf16.mxu0 %v21684_v46  ;;  %v1317_v17 = vsel %vm1174_vm3, %v1089_v16, 0 }
 0x264   : > { %1040 = vrot.lane.b32.xlu1 %v18688_v1, %s18335_s25  ;;  %1046 = vrot.lane.b32.xlu0 %v18683_v59, %s18336_s30 }
 0x266   : > { %15718 = vmatmul.mubr.msk.bf16.vlgmr.msra.gmra.mxu1 %vm1174_vm3, %v18688_v1  ;;  %15724 = vmatmul.mubr.msk.bf16.vlgmr.msra.gmra.mxu0 %vm1174_vm3, %v15128_v7 }
 0x267   : > { %15728 = vmatpush3.bf16.xpose.msra.mxu1 %v1317_v17  ;;  %15729 = vmatprep.mubr.msk.bf16.mxu1 %vm18333_vm2, %v21684_v46 }
 0x268   : > { %1044 = vrot.lane.b32.xlu1 %v15130_v13, %s18335_s25  ;;  %1050 = vrot.lane.b32.xlu0 %v15128_v7, %s18336_s30 }
 0x269   : > { %15739 = vmatprep.subr.bf16.mxu1 %v21684_v46  ;;  %15735 = vmatprep.mubr.msk.bf16.mxu0 %vm18333_vm2, %v21684_v46 }
 0x26c   : > { %1048 = vrot.lane.b32.xlu1 %v18688_v1, %s18336_s30  ;;  %1054 = vrot.lane.b32.xlu0 %v18683_v59, %s18337_s9 }
 0x26e   : > { %15730 = vmatmul.mubr.msk.bf16.vlgmr.msra.gmra.mxu1 %vm1174_vm3, %v15130_v13 }
 0x26f   : > { %15741 = vmatprep.mubr.msk.bf16.mxu1 %vm18333_vm2, %v21684_v46 }
 0x270   : > { %1052 = vrot.lane.b32.xlu1 %v15130_v13, %s18336_s30  ;;  %1058 = vrot.lane.b32.xlu0 %v15128_v7, %s18337_s9 }
 0x274   : > { %1056 = vrot.lane.b32.xlu1 %v18688_v1, %s18337_s9  ;;  %1062 = vrot.lane.b32.xlu0 %v18683_v59, %s18338_s17 }
 0x278   : > { %1060 = vrot.lane.b32.xlu1 %v15130_v13, %s18337_s9  ;;  %1066 = vrot.lane.b32.xlu0 %v15128_v7, %s18338_s17 }
 0x27c   : > { %1064 = vrot.lane.b32.xlu1 %v18688_v1, %s18338_s17  ;;  %1070 = vrot.lane.b32.xlu0 %v18683_v59, %s18339_s28 }
 0x280   : > { %1068 = vrot.lane.b32.xlu1 %v15130_v13, %s18338_s17  ;;  %1074 = vrot.lane.b32.xlu0 %v15128_v7, %s18339_s28 }
 0x284   : > { %1072 = vrot.lane.b32.xlu1 %v18688_v1, %s18339_s28  ;;  %1078 = vrot.lane.b32.xlu0 %v18683_v59, %s18340_s29 }
 0x288   : > { %1076 = vrot.lane.b32.xlu1 %v15130_v13, %s18339_s28  ;;  %1082 = vrot.lane.b32.xlu0 %v15128_v7, %s18340_s29 }
 0x28c   : > { %1080 = vrot.lane.b32.xlu1 %v18688_v1, %s18340_s29  ;;  %1120 = vrot.lane.b32.xlu0 %v18755_v26, %s18334_s4 }
 0x290   : > { %1084 = vrot.lane.b32.xlu1 %v15130_v13, %s18340_s29  ;;  %1124 = vrot.lane.b32.xlu0 %v18761_v28, %s18334_s4 }
 0x294   : > { %1118 = vrot.lane.b32.xlu1 %v18766_v30, %s18334_s4  ;;  %1128 = vrot.lane.b32.xlu0 %v18755_v26, %s18335_s25 }
 0x298   : > { %1122 = vrot.lane.b32.xlu1 %v18772_v31, %s18334_s4  ;;  %1132 = vrot.lane.b32.xlu0 %v18761_v28, %s18335_s25 }
 0x29c   : > { %1126 = vrot.lane.b32.xlu1 %v18766_v30, %s18335_s25  ;;  %1136 = vrot.lane.b32.xlu0 %v18755_v26, %s18336_s30 }
 0x2a0   : > { %1130 = vrot.lane.b32.xlu1 %v18772_v31, %s18335_s25  ;;  %1140 = vrot.lane.b32.xlu0 %v18761_v28, %s18336_s30 }
 0x2a4   : > { %1134 = vrot.lane.b32.xlu1 %v18766_v30, %s18336_s30  ;;  %1144 = vrot.lane.b32.xlu0 %v18755_v26, %s18337_s9 }
 0x2a8   : > { %1138 = vrot.lane.b32.xlu1 %v18772_v31, %s18336_s30  ;;  %1148 = vrot.lane.b32.xlu0 %v18761_v28, %s18337_s9 }
 0x2ac   : > { %1142 = vrot.lane.b32.xlu1 %v18766_v30, %s18337_s9  ;;  %1152 = vrot.lane.b32.xlu0 %v18755_v26, %s18338_s17 }
 0x2b0   : > { %1146 = vrot.lane.b32.xlu1 %v18772_v31, %s18337_s9  ;;  %1156 = vrot.lane.b32.xlu0 %v18761_v28, %s18338_s17 }
 0x2b4   : > { %1150 = vrot.lane.b32.xlu1 %v18766_v30, %s18338_s17 }
 0x2b8   : > { %1154 = vrot.lane.b32.xlu1 %v18772_v31, %s18338_s17 }
 0x2bc   : > { %1158 = vrot.lane.b32.xlu1 %v18766_v30, %s18339_s28 }
 0x2c6   : > { %v1031_v32 = vpop.permute.xlu0 %1030 }
 0x2c7   : > { %v1090_v33 = vrot.slane %v1031_v32, 4 }
 0x2c9   : > { %v1363_v35 = vsel %vm1174_vm3, %v1090_v33, 0 }
 0x2ca   : > { %15734 = vmatpush3.bf16.xpose.msra.mxu0 %v1363_v35  ;;  %v1033_v36 = vpop.permute.xlu0 %1032 }
 0x2cb   : > { %v1091_v37 = vrot.slane %v1033_v36, 4  ;;  %15745 = vmatprep.subr.bf16.mxu0 %v21684_v46 }
 0x2cd   : > { %v1409_v38 = vsel %vm1174_vm3, %v1091_v37, 0 }
 0x2ce   : > { %v1035_v40 = vpop.permute.xlu1 %1034  ;;  %15740 = vmatpush3.bf16.xpose.msra.mxu1 %v1409_v38  ;;  %v1039_v47 = vpop.permute.xlu0 %1038 }
 0x2cf   : > { %v1092_v44 = vrot.slane %v1035_v40, 4  ;;  %15751 = vmatprep.subr.bf16.mxu1 %v21684_v46  ;;  %v1094_v52 = vrot.slane %v1039_v47, 4 }
 0x2d1   : > { %15736 = vmatmul.mubr.msk.bf16.vlgmr.msra.gmra.mxu0 %vm1174_vm3, %v1031_v32  ;;  %v1455_v45 = vsel %vm1174_vm3, %v1092_v44, 0  ;;  %v1547_v56 = vsel %vm1174_vm3, %v1094_v52, 0 }
 0x2d2   : > { %v1037_v48 = vpop.permute.xlu1 %1036  ;;  %15746 = vmatpush3.bf16.xpose.msra.mxu0 %v1455_v45  ;;  %15747 = vmatprep.mubr.msk.bf16.mxu0 %vm18333_vm2, %v21684_v46  ;;  %v1043_v57 = vpop.permute.xlu0 %1042 }
 0x2d3   : > { %v1093_v51 = vrot.slane %v1037_v48, 4  ;;  %15757 = vmatprep.subr.bf16.mxu0 %v21684_v46  ;;  %v1096_v58 = vrot.slane %v1043_v57, 4 }
 0x2d5   : > { %15742 = vmatmul.mubr.msk.bf16.vlgmr.msra.gmra.mxu1 %vm1174_vm3, %v1033_v36  ;;  %v1501_v53 = vsel %vm1174_vm3, %v1093_v51, 0  ;;  %v1639_v62 = vsel %vm1174_vm3, %v1096_v58, 0 }
 0x2d6   : > { %v1041_v54 = vpop.permute.xlu1 %1040  ;;  %15752 = vmatpush3.bf16.xpose.msra.mxu1 %v1501_v53  ;;  %15753 = vmatprep.mubr.msk.bf16.mxu1 %vm18333_vm2, %v21684_v46  ;;  %v1047_v63 = vpop.permute.xlu0 %1046 }
 0x2d7   : > { %15763 = vmatprep.subr.bf16.mxu1 %v21684_v46  ;;  %v1095_v55 = vrot.slane %v1041_v54, 4  ;;  %v1098_v0 = vrot.slane %v1047_v63, 4 }
 0x2d9   : > { %15748 = vmatmul.mubr.msk.bf16.vlgmr.msra.gmra.mxu0 %vm1174_vm3, %v1035_v40  ;;  %v1593_v59 = vsel %vm1174_vm3, %v1095_v55, 0  ;;  %v1731_v4 = vsel %vm1174_vm3, %v1098_v0, 0 }
 0x2da   : > { %15758 = vmatpush3.bf16.xpose.msra.mxu0 %v1547_v56  ;;  %15759 = vmatprep.mubr.msk.bf16.mxu0 %vm18333_vm2, %v21684_v46  ;;  %v1045_v60 = vpop.permute.xlu1 %1044  ;;  %v1051_v5 = vpop.permute.xlu0 %1050 }
 0x2db   : > { %15769 = vmatprep.subr.bf16.mxu0 %v21684_v46  ;;  %v1097_v61 = vrot.slane %v1045_v60, 4  ;;  %v1100_v6 = vrot.slane %v1051_v5, 4 }
 0x2dd   : > { %15754 = vmatmul.mubr.msk.bf16.vlgmr.msra.gmra.mxu1 %vm1174_vm3, %v1037_v48  ;;  %v1685_v1 = vsel %vm1174_vm3, %v1097_v61, 0  ;;  %v1823_v10 = vsel %vm1174_vm3, %v1100_v6, 0 }
 0x2de   : > { %15764 = vmatpush3.bf16.xpose.msra.mxu1 %v1593_v59  ;;  %15765 = vmatprep.mubr.msk.bf16.mxu1 %vm18333_vm2, %v21684_v46  ;;  %v1049_v2 = vpop.permute.xlu1 %1048  ;;  %v1055_v11 = vpop.permute.xlu0 %1054 }
 0x2df   : > { %15775 = vmatprep.subr.bf16.mxu1 %v21684_v46  ;;  %v1099_v3 = vrot.slane %v1049_v2, 4  ;;  %v1102_v12 = vrot.slane %v1055_v11, 4 }
 0x2e1   : > { %15760 = vmatmul.mubr.msk.bf16.vlgmr.msra.gmra.mxu0 %vm1174_vm3, %v1039_v47  ;;  %v1777_v7 = vsel %vm1174_vm3, %v1099_v3, 0  ;;  %v1915_v16 = vsel %vm1174_vm3, %v1102_v12, 0 }
 0x2e2   : > { %15770 = vmatpush3.bf16.xpose.msra.mxu0 %v1639_v62  ;;  %15771 = vmatprep.mubr.msk.bf16.mxu0 %vm18333_vm2, %v21684_v46  ;;  %v1053_v8 = vpop.permute.xlu1 %1052  ;;  %v1059_v17 = vpop.permute.xlu0 %1058 }
 0x2e3   : > { %15781 = vmatprep.subr.bf16.mxu0 %v21684_v46  ;;  %v1101_v9 = vrot.slane %v1053_v8, 4  ;;  %v1104_v18 = vrot.slane %v1059_v17, 4 }
 0x2e5   : > { %15766 = vmatmul.mubr.msk.bf16.vlgmr.msra.gmra.mxu1 %vm1174_vm3, %v1041_v54  ;;  %v1869_v13 = vsel %vm1174_vm3, %v1101_v9, 0  ;;  %v2007_v23 = vsel %vm1174_vm3, %v1104_v18, 0 }
 0x2e6   : > { %15776 = vmatpush3.bf16.xpose.msra.mxu1 %v1685_v1  ;;  %15777 = vmatprep.mubr.msk.bf16.mxu1 %vm18333_vm2, %v21684_v46  ;;  %v1057_v14 = vpop.permute.xlu1 %1056  ;;  %v1063_v24 = vpop.permute.xlu0 %1062 }
 0x2e7   : > { %15787 = vmatprep.subr.bf16.mxu1 %v21684_v46  ;;  %v1103_v15 = vrot.slane %v1057_v14, 4  ;;  %v1106_v25 = vrot.slane %v1063_v24, 4 }
 0x2e9   : > { %15772 = vmatmul.mubr.msk.bf16.vlgmr.msra.gmra.mxu0 %vm1174_vm3, %v1043_v57  ;;  %v1961_v19 = vsel %vm1174_vm3, %v1103_v15, 0  ;;  %v2099_v33 = vsel %vm1174_vm3, %v1106_v25, 0 }
 0x2ea   : > { %15782 = vmatpush3.bf16.xpose.msra.mxu0 %v1731_v4  ;;  %15783 = vmatprep.mubr.msk.bf16.mxu0 %vm18333_vm2, %v21684_v46  ;;  %v1061_v20 = vpop.permute.xlu1 %1060  ;;  %v1067_v35 = vpop.permute.xlu0 %1066 }
 0x2eb   : > { %15793 = vmatprep.subr.bf16.mxu0 %v21684_v46  ;;  %v1105_v22 = vrot.slane %v1061_v20, 4  ;;  %v1108_v36 = vrot.slane %v1067_v35, 4 }
 0x2ed   : > { %15778 = vmatmul.mubr.msk.bf16.vlgmr.msra.gmra.mxu1 %vm1174_vm3, %v1045_v60  ;;  %v2053_v27 = vsel %vm1174_vm3, %v1105_v22, 0  ;;  %v2191_v44 = vsel %vm1174_vm3, %v1108_v36, 0 }
 0x2ee   : > { %15788 = vmatpush3.bf16.xpose.msra.mxu1 %v1777_v7  ;;  %15789 = vmatprep.mubr.msk.bf16.mxu1 %vm18333_vm2, %v21684_v46  ;;  %v1065_v29 = vpop.permute.xlu1 %1064  ;;  %v1071_v45 = vpop.permute.xlu0 %1070 }
 0x2ef   : > { %15799 = vmatprep.subr.bf16.mxu1 %v21684_v46  ;;  %v1107_v32 = vrot.slane %v1065_v29, 4  ;;  %v1110_v47 = vrot.slane %v1071_v45, 4 }
 0x2f1   : > { %15784 = vmatmul.mubr.msk.bf16.vlgmr.msra.gmra.mxu0 %vm1174_vm3, %v1047_v63  ;;  %v2145_v37 = vsel %vm1174_vm3, %v1107_v32, 0  ;;  %v2283_v53 = vsel %vm1174_vm3, %v1110_v47, 0 }
 0x2f2   : > { %15794 = vmatpush3.bf16.xpose.msra.mxu0 %v1823_v10  ;;  %15795 = vmatprep.mubr.msk.bf16.mxu0 %vm18333_vm2, %v21684_v46  ;;  %v1069_v38 = vpop.permute.xlu1 %1068  ;;  %v1075_v54 = vpop.permute.xlu0 %1074 }
 0x2f3   : > { %15805 = vmatprep.subr.bf16.mxu0 %v21684_v46  ;;  %v1109_v40 = vrot.slane %v1069_v38, 4  ;;  %v1112_v55 = vrot.slane %v1075_v54, 4 }
 0x2f5   : > { %15790 = vmatmul.mubr.msk.bf16.vlgmr.msra.gmra.mxu1 %vm1174_vm3, %v1049_v2  ;;  %v2237_v48 = vsel %vm1174_vm3, %v1109_v40, 0  ;;  %v2375_v62 = vsel %vm1174_vm3, %v1112_v55, 0  ;;  %v3069_v40 = vsel %vm3067_vm5, %v18766_v30, 0 }
 0x2f6   : > { %15800 = vmatpush3.bf16.xpose.msra.mxu1 %v1869_v13  ;;  %15801 = vmatprep.mubr.msk.bf16.mxu1 %vm18333_vm2, %v21684_v46  ;;  %v1073_v51 = vpop.permute.xlu1 %1072  ;;  %v1079_v63 = vpop.permute.xlu0 %1078 }
 0x2f7   : > { %15811 = vmatprep.subr.bf16.mxu1 %v21684_v46  ;;  %v1111_v52 = vrot.slane %v1073_v51, 4  ;;  %v1114_v2 = vrot.slane %v1079_v63, 4 }
 0x2f9   : > { %15796 = vmatmul.mubr.msk.bf16.vlgmr.msra.gmra.mxu0 %vm1174_vm3, %v1051_v5  ;;  %v2329_v56 = vsel %vm1174_vm3, %v1111_v52, 0  ;;  %v2467_v13 = vsel %vm1174_vm3, %v1114_v2, 0 }
 0x2fa   : > { %15806 = vmatpush3.bf16.xpose.msra.mxu0 %v1915_v16  ;;  %15807 = vmatprep.mubr.msk.bf16.mxu0 %vm18333_vm2, %v21684_v46  ;;  %v1077_v57 = vpop.permute.xlu1 %1076  ;;  %v1083_v15 = vpop.permute.xlu0 %1082 }
 0x2fb   : > { %15817 = vmatprep.subr.bf16.mxu0 %v21684_v46  ;;  %v1113_v60 = vrot.slane %v1077_v57, 4 }
 0x2fd   : > { %15802 = vmatmul.mubr.msk.bf16.vlgmr.msra.gmra.mxu1 %vm1174_vm3, %v1053_v8  ;;  %v2421_v4 = vsel %vm1174_vm3, %v1113_v60, 0 }
 0x2fe   : > { %15812 = vmatpush3.bf16.xpose.msra.mxu1 %v1961_v19  ;;  %15813 = vmatprep.mubr.msk.bf16.mxu1 %vm18333_vm2, %v21684_v46  ;;  %v1081_v5 = vpop.permute.xlu1 %1080 }
 0x2ff   : > { %15823 = vmatprep.subr.bf16.mxu1 %v21684_v46 }
 0x301   : > { %15808 = vmatmul.mubr.msk.bf16.vlgmr.msra.gmra.mxu0 %vm1174_vm3, %v1055_v11  ;;  %v1115_v11 = vrot.slane %v1081_v5, 4 }
 0x302   : > { %15818 = vmatpush3.bf16.xpose.msra.mxu0 %v2007_v23  ;;  %15819 = vmatprep.mubr.msk.bf16.mxu0 %vm18333_vm2, %v21684_v46 }
 0x303   : > { %15829 = vmatprep.subr.bf16.mxu0 %v21684_v46  ;;  %v2513_v23 = vsel %vm1174_vm3, %v1115_v11, 0 }
 0x305   : > { %15814 = vmatmul.mubr.msk.bf16.vlgmr.msra.gmra.mxu1 %vm1174_vm3, %v1057_v14 }
 0x306   : > { %15824 = vmatpush3.bf16.xpose.msra.mxu1 %v2053_v27  ;;  %15825 = vmatprep.mubr.msk.bf16.mxu1 %vm18333_vm2, %v21684_v46 }
 0x307   : > { %15835 = vmatprep.subr.bf16.mxu1 %v21684_v46 }
 0x309   : > { %15820 = vmatmul.mubr.msk.bf16.vlgmr.msra.gmra.mxu0 %vm1174_vm3, %v1059_v17 }
 0x30a   : > { %15830 = vmatpush3.bf16.xpose.msra.mxu0 %v2099_v33  ;;  %15831 = vmatprep.mubr.msk.bf16.mxu0 %vm18333_vm2, %v21684_v46 }
 0x30b   : > { %15841 = vmatprep.subr.bf16.mxu0 %v21684_v46 }
 0x30d   : > { %15826 = vmatmul.mubr.msk.bf16.vlgmr.msra.gmra.mxu1 %vm1174_vm3, %v1061_v20  ;;  %v1116_v20 = vrot.slane %v1083_v15, 4 }
 0x30e   : > { %15836 = vmatpush3.bf16.xpose.msra.mxu1 %v2145_v37  ;;  %15837 = vmatprep.mubr.msk.bf16.mxu1 %vm18333_vm2, %v21684_v46 }
 0x30f   : > { %15847 = vmatprep.subr.bf16.mxu1 %v21684_v46  ;;  %v2559_v33 = vsel %vm1174_vm3, %v1116_v20, 0 }
 0x311   : > { %15832 = vmatmul.mubr.msk.bf16.vlgmr.msra.gmra.mxu0 %vm1174_vm3, %v1063_v24  ;;  %v1085_v24 = vpop.permute.xlu1 %1084 }
 0x312   : > { %15842 = vmatpush3.bf16.xpose.msra.mxu0 %v2191_v44  ;;  %15843 = vmatprep.mubr.msk.bf16.mxu0 %vm18333_vm2, %v21684_v46  ;;  %v3115_v44 = vsel %vm3067_vm5, %v18755_v26, 0 }
 0x313   : > { %15853 = vmatprep.subr.bf16.mxu0 %v21684_v46 }
 0x315   : > { %15838 = vmatmul.mubr.msk.bf16.vlgmr.msra.gmra.mxu1 %vm1174_vm3, %v1065_v29  ;;  %v1117_v29 = vrot.slane %v1085_v24, 4  ;;  %v18972_v47 = vpop.permute.xlu1 %1118 }
 0x316   : > { %15848 = vmatpush3.bf16.xpose.msra.mxu1 %v2237_v48  ;;  %15849 = vmatprep.mubr.msk.bf16.mxu1 %vm18333_vm2, %v21684_v46 }
 0x317   : > { %15859 = vmatprep.subr.bf16.mxu1 %v21684_v46 }
 0x319   : > { %15844 = vmatmul.mubr.msk.bf16.vlgmr.msra.gmra.mxu0 %vm1174_vm3, %v1067_v35 }
 0x31a   : > { %15854 = vmatpush3.bf16.xpose.msra.mxu0 %v2283_v53  ;;  %15855 = vmatprep.mubr.msk.bf16.mxu0 %vm18333_vm2, %v21684_v46 }
 0x31b   : > { %15865 = vmatprep.subr.bf16.mxu0 %v21684_v46 }
 0x31d   : > { %15850 = vmatmul.mubr.msk.bf16.vlgmr.msra.gmra.mxu1 %vm1174_vm3, %v1069_v38  ;;  %v2605_v38 = vsel %vm1174_vm3, %v1117_v29, 0 }
 0x31e   : > { %15860 = vmatpush3.bf16.xpose.msra.mxu1 %v2329_v56  ;;  %15861 = vmatprep.mubr.msk.bf16.mxu1 %vm18333_vm2, %v21684_v46  ;;  %v1215_v58 = vpop.f32.mrf.mxu1 }
 0x31f   : > { %15871 = vmatprep.subr.bf16.mxu1 %v21684_v46  ;;  %v18912_v59 = vmul.f32 0.25, %v1215_v58 }
 0x320   : > { %v15713_v61 = vpop.f32.mrf.mxu1 }
 0x321   : > { %15856 = vmatmul.mubr.msk.bf16.vlgmr.msra.gmra.mxu0 %vm1174_vm3, %v1071_v45  ;;  %v2680_v0 = vsel %vm2679_vm4, %v18912_v59, -inf  ;;  %v18970_v45 = vpop.permute.xlu0 %1120 }
 0x322   : > { %15866 = vmatpush3.bf16.xpose.msra.mxu0 %v2375_v62  ;;  %15867 = vmatprep.mubr.msk.bf16.mxu0 %vm18333_vm2, %v21684_v46  ;;  %v1218_v1 = vpop.f32.mrf.mxu1 }
 0x323   : > { %2681 = vmax.xlane.f32.xlu0 %v2680_v0  ;;  %15877 = vmatprep.subr.bf16.mxu0 %v21684_v46 }
 0x324   : > { %v15714_v3 = vpop.f32.mrf.mxu1 }
 0x325   : > { %15862 = vmatmul.mubr.msk.bf16.vlgmr.msra.gmra.mxu1 %vm1174_vm3, %v1073_v51  ;;  %v18974_v48 = vpop.permute.xlu0 %1124  ;;  %v18976_v51 = vpop.permute.xlu1 %1122 }
 0x326   : > { %v1307_v6 = vpop.f32.mrf.mxu0  ;;  %15872 = vmatpush3.bf16.xpose.msra.mxu1 %v2421_v4  ;;  %15873 = vmatprep.mubr.msk.bf16.mxu1 %vm18333_vm2, %v21684_v46  ;;  %v1261_v8 = vpop.f32.mrf.mxu1 }
 0x327   : > { %v18925_v7 = vmul.f32 0.25, %v1307_v6  ;;  %15883 = vmatprep.subr.bf16.mxu1 %v21684_v46  ;;  %v18928_v9 = vmul.f32 0.25, %v1261_v8 }
 0x328   : > { %v15725_v10 = vpop.f32.mrf.mxu0  ;;  %v15719_v12 = vpop.f32.mrf.mxu1 }
 0x329   : > { %15868 = vmatmul.mubr.msk.bf16.vlgmr.msra.gmra.mxu0 %vm1174_vm3, %v1075_v54  ;;  %v2686_v14 = vsel %vm2679_vm4, %v18925_v7, -inf  ;;  %v2683_v17 = vsel %vm2679_vm4, %v18928_v9, -inf  ;;  %v18978_v52 = vpop.permute.xlu0 %1128  ;;  %v18980_v53 = vpop.permute.xlu1 %1126 }
 0x32a   : > { %v1310_v16 = vpop.f32.mrf.mxu0  ;;  %15878 = vmatpush3.bf16.xpose.msra.mxu0 %v2467_v13  ;;  %2687 = vmax.xlane.f32.xlu0 %v2686_v14  ;;  %v1264_v18 = vpop.f32.mrf.mxu1 }
 0x32b   : > { %2684 = vmax.xlane.f32.xlu1 %v2683_v17  ;;  %15879 = vmatprep.mubr.msk.bf16.mxu0 %vm18333_vm2, %v21684_v46 }
 0x32c   : > { %v15726_v19 = vpop.f32.mrf.mxu0  ;;  %15889 = vmatprep.subr.bf16.mxu0 %v21684_v46  ;;  %v15720_v22 = vpop.f32.mrf.mxu1 }
 0x32d   : > { %15874 = vmatmul.mubr.msk.bf16.vlgmr.msra.gmra.mxu1 %vm1174_vm3, %v1077_v57  ;;  %v18982_v54 = vpop.permute.xlu0 %1132  ;;  %v18984_v55 = vpop.permute.xlu1 %1130 }
 0x32e   : > { %15884 = vmatpush3.bf16.xpose.msra.mxu1 %v2513_v23  ;;  %15885 = vmatprep.mubr.msk.bf16.mxu1 %vm18333_vm2, %v21684_v46  ;;  %v1353_v25 = vpop.f32.mrf.mxu1 }
 0x32f   : > { %15895 = vmatprep.subr.bf16.mxu1 %v21684_v46  ;;  %v18944_v27 = vmul.f32 0.25, %v1353_v25 }
 0x330   : > { %v15731_v32 = vpop.f32.mrf.mxu1 }
 0x331   : > { %15880 = vmatmul.mubr.msk.bf16.vlgmr.msra.gmra.mxu0 %vm1174_vm3, %v1079_v63  ;;  %v2689_v35 = vsel %vm2679_vm4, %v18944_v27, -inf  ;;  %v18986_v56 = vpop.permute.xlu0 %1136  ;;  %v18988_v57 = vpop.permute.xlu1 %1134 }
 0x332   : > { %15890 = vmatpush3.bf16.xpose.msra.mxu0 %v2559_v33  ;;  %15891 = vmatprep.mubr.msk.bf16.mxu0 %vm18333_vm2, %v21684_v46  ;;  %v1356_v36 = vpop.f32.mrf.mxu1 }
 0x333   : > { %2690 = vmax.xlane.f32.xlu0 %v2689_v35  ;;  %15901 = vmatprep.subr.bf16.mxu0 %v21684_v46 }
 0x334   : > { %v15732_v37 = vpop.f32.mrf.mxu1 }
 0x335   : > { %15886 = vmatmul.mubr.msk.bf16.vlgmr.msra.gmra.mxu1 %vm1174_vm3, %v1081_v5  ;;  %v18990_v58 = vpop.permute.xlu0 %1140  ;;  %v18992_v61 = vpop.permute.xlu1 %1138 }
 0x336   : > { %15896 = vmatpush3.bf16.xpose.msra.mxu1 %v2605_v38  ;;  %15897 = vmatprep.mubr.msk.bf16.mxu1 %vm18333_vm2, %v21684_v46 }
 0x337   : > { %15907 = vmatprep.subr.bf16.mxu1 %v21684_v46 }
 0x339   : > { %15892 = vmatmul.mubr.msk.bf16.vlgmr.msra.gmra.mxu0 %vm1174_vm3, %v1083_v15  ;;  %v18998_v3 = vpop.permute.xlu0 %1144  ;;  %v19002_v8 = vpop.permute.xlu1 %1142 }
 0x33a   : > { %15902 = vmatpush3.bf16.msra.mxu0 %v3069_v40  ;;  %15903 = vmatprep.mubr.msk.bf16.mxu0 %vm18333_vm2, %v21684_v46  ;;  %21756 = vst [vmem:[#allocation31_spill] sm:$0xff] %v18998_v3 }
 0x33b   : > { %15913 = vmatprep.subr.bf16.mxu0 %v21684_v46 }
 0x33d   : > { %15898 = vmatmul.mubr.msk.bf16.vlgmr.msra.gmra.mxu1 %vm1174_vm3, %v1085_v24  ;;  %v19008_v16 = vpop.permute.xlu0 %1148  ;;  %v19012_v20 = vpop.permute.xlu1 %1146 }
 0x33e   : > { %15908 = vmatpush3.bf16.msra.mxu1 %v3115_v44  ;;  %15909 = vmatprep.mubr.msk.bf16.mxu1 %vm18333_vm2, %v21684_v46  ;;  %21757 = vst [vmem:[#allocation32_spill] sm:$0xff] %v19008_v16  ;;  %21758 = vst [vmem:[#allocation33_spill] sm:$0xff] %v19012_v20 }
 0x33f   : > { %15919 = vmatprep.subr.bf16.mxu1 %v21684_v46 }
 0x341   : > { %v19018_v33 = vpop.permute.xlu0 %1152  ;;  %v19022_v38 = vpop.permute.xlu1 %1150 }
 0x342   : > { %21759 = vst [vmem:[#allocation34_spill] sm:$0xff] %v19018_v33  ;;  %21760 = vst [vmem:[#allocation35_spill] sm:$0xff] %v19022_v38 }
 0x391   : > { %v1399_v60 = vpop.f32.mrf.mxu0 }
 0x392   : > { %v18994_v62 = vmul.f32 0.25, %v1399_v60 }
 0x393   : > { %v15737_v63 = vpop.f32.mrf.mxu0 }
 0x394   : > { %v2692_v0 = vsel %vm2679_vm4, %v18994_v62, -inf }
 0x395   : > { %v1402_v1 = vpop.f32.mrf.mxu0  ;;  %2693 = vmax.xlane.f32.xlu1 %v2692_v0  ;;  %v1445_v2 = vpop.f32.mrf.mxu1 }
 0x396   : > { %v19000_v4 = vmul.f32 0.25, %v1445_v2  ;;  %v19028_v2 = vpop.permute.xlu0 %1156 }
 0x397   : > { %v15738_v5 = vpop.f32.mrf.mxu0  ;;  %v15743_v6 = vpop.f32.mrf.mxu1  ;;  %21761 = vst [vmem:[#allocation36_spill] sm:$0xff] %v19028_v2 }
 0x398   : > { %v2695_v10 = vsel %vm2679_vm4, %v19000_v4, -inf }
 0x399   : > { %v1491_v11 = vpop.f32.mrf.mxu0  ;;  %2696 = vmax.xlane.f32.xlu0 %v2695_v10  ;;  %v1448_v12 = vpop.f32.mrf.mxu1 }
 0x39a   : > { %v19006_v13 = vmul.f32 0.25, %v1491_v11  ;;  %v19032_v11 = vpop.permute.xlu1 %1154 }
 0x39b   : > { %v15744_v14 = vpop.f32.mrf.mxu1  ;;  %v15749_v15 = vpop.f32.mrf.mxu0  ;;  %21762 = vst [vmem:[#allocation37_spill] sm:$0xff] %v19032_v11 }
 0x39c   : > { %v2698_v17 = vsel %vm2679_vm4, %v19006_v13, -inf }
 0x39d   : > { %v1494_v18 = vpop.f32.mrf.mxu0  ;;  %2699 = vmax.xlane.f32.xlu1 %v2698_v17  ;;  %v1537_v19 = vpop.f32.mrf.mxu1 }
 0x39e   : > { %v19014_v22 = vmul.f32 0.25, %v1537_v19 }
 0x39f   : > { %v15750_v23 = vpop.f32.mrf.mxu0  ;;  %v15755_v24 = vpop.f32.mrf.mxu1 }
 0x3a0   : > { %v2701_v25 = vsel %vm2679_vm4, %v19014_v22, -inf }
 0x3a1   : > { %v1583_v29 = vpop.f32.mrf.mxu0  ;;  %2702 = vmax.xlane.f32.xlu0 %v2701_v25  ;;  %v1540_v32 = vpop.f32.mrf.mxu1 }
 0x3a2   : > { %v19020_v35 = vmul.f32 0.25, %v1583_v29 }
 0x3a3   : > { %v15756_v36 = vpop.f32.mrf.mxu1  ;;  %v15761_v37 = vpop.f32.mrf.mxu0 }
 0x3a4   : > { %v2704_v40 = vsel %vm2679_vm4, %v19020_v35, -inf  ;;  %v19041_v37 = vpop.permute.xlu1 %1158 }
 0x3a5   : > { %v1586_v44 = vpop.f32.mrf.mxu0  ;;  %2705 = vmax.xlane.f32.xlu1 %v2704_v40  ;;  %v1629_v60 = vpop.f32.mrf.mxu1  ;;  %21763 = vst [vmem:[#allocation38_spill] sm:$0xff] %v19041_v37 }
 0x3a6   : > { %v19026_v63 = vmul.f32 0.25, %v1629_v60 }
 0x3a7   : > { %v15762_v0 = vpop.f32.mrf.mxu0  ;;  %v15767_v1 = vpop.f32.mrf.mxu1 }
 0x3a8   : > { %v2707_v5 = vsel %vm2679_vm4, %v19026_v63, -inf }
 0x3a9   : > { %v1675_v6 = vpop.f32.mrf.mxu0  ;;  %2708 = vmax.xlane.f32.xlu0 %v2707_v5  ;;  %v1632_v10 = vpop.f32.mrf.mxu1 }
 0x3aa   : > { %v19034_v12 = vmul.f32 0.25, %v1675_v6 }
 0x3ab   : > { %v15773_v14 = vpop.f32.mrf.mxu0  ;;  %v15768_v15 = vpop.f32.mrf.mxu1 }
 0x3ac   : > { %v2682_v17 = vpop.xlane.xlu0 %2681  ;;  %v2710_v18 = vsel %vm2679_vm4, %v19034_v12, -inf }
 0x3ad   : > { %v2776_v19 = vsub.f32 %v18912_v59, %v2682_v17  ;;  %v1678_v23 = vpop.f32.mrf.mxu0  ;;  %2711 = vmax.xlane.f32.xlu1 %v2710_v18  ;;  %v1721_v24 = vpop.f32.mrf.mxu1 }
 0x3ae   : > { %v19039_v25 = vmul.f32 0.25, %v1721_v24 }
 0x3af   : > { %v2808_v29 = vmul.f32 1.442695, %v2776_v19  ;;  %v15774_v32 = vpop.f32.mrf.mxu0  ;;  %v15779_v36 = vpop.f32.mrf.mxu1 }
 0x3b0   : > { %v2713_v40 = vsel %vm2679_vm4, %v19039_v25, -inf }
 0x3b1   : > { %17562 = vpow2.f32 %v2808_v29  ;;  %v1767_v44 = vpop.f32.mrf.mxu0  ;;  %2714 = vmax.xlane.f32.xlu0 %v2713_v40  ;;  %v1724_v60 = vpop.f32.mrf.mxu1 }
 0x3b2   : > { %v19045_v0 = vmul.f32 0.25, %v1767_v44 }
 0x3b3   : > { %v15785_v59 = vpop.f32.mrf.mxu0  ;;  %v2688_v1 = vpop.xlane.xlu0 %2687 }
 0x3b4   : > { %v2778_v5 = vsub.f32 %v18925_v7, %v2688_v1  ;;  %v2685_v6 = vpop.xlane.xlu1 %2684  ;;  %v15780_v10 = vpop.f32.mrf.mxu1  ;;  %v2716_v14 = vsel %vm2679_vm4, %v19045_v0, -inf }
 0x3b5   : > { %v2777_v15 = vsub.f32 %v18928_v9, %v2685_v6  ;;  %v1770_v17 = vpop.f32.mrf.mxu0  ;;  %2717 = vmax.xlane.f32.xlu1 %v2716_v14 }
 0x3b6   : > { %v2812_v18 = vmul.f32 1.442695, %v2778_v5  ;;  %v1813_v19 = vpop.f32.mrf.mxu1 }
 0x3b7   : > { %v2810_v23 = vmul.f32 1.442695, %v2777_v15  ;;  %v19051_v24 = vmul.f32 0.25, %v1813_v19  ;;  %v15786_v29 = vpop.f32.mrf.mxu0 }
 0x3b8   : > { %17564 = vpow2.f32 %v2812_v18  ;;  %v15791_v32 = vpop.f32.mrf.mxu1 }
 0x3b9   : > { %17566 = vpow2.f32 %v2810_v23  ;;  %v1859_v36 = vpop.f32.mrf.mxu0  ;;  %v2719_v7 = vsel %vm2679_vm4, %v19051_v24, -inf }
 0x3ba   : > { %v19055_v40 = vmul.f32 0.25, %v1859_v36  ;;  %2720 = vmax.xlane.f32.xlu0 %v2719_v7  ;;  %v1816_v44 = vpop.f32.mrf.mxu1 }
 0x3bb   : > { %v15797_v9 = vpop.f32.mrf.mxu0 }
 0x3bc   : > { %v2691_v60 = vpop.xlane.xlu0 %2690  ;;  %v15792_v59 = vpop.f32.mrf.mxu1  ;;  %v2722_v1 = vsel %vm2679_vm4, %v19055_v40, -inf }
 0x3bd   : > { %v2779_v5 = vsub.f32 %v18944_v27, %v2691_v60  ;;  %v1862_v6 = vpop.f32.mrf.mxu0  ;;  %2723 = vmax.xlane.f32.xlu1 %v2722_v1 }
 0x3be   : > { %v19060_v10 = vpop.eup %17562  ;;  %v1905_v14 = vpop.f32.mrf.mxu1 }
 0x3bf   : > { %v2814_v15 = vmul.f32 1.442695, %v2779_v5  ;;  %v19062_v17 = vmul.f32 0.25, %v1905_v14  ;;  %v15798_v18 = vpop.f32.mrf.mxu0  ;;  %v2872_v23 = vsel %vm2679_vm4, %v19060_v10, 0.0 }
 0x3c0   : > { %v15803_v19 = vpop.f32.mrf.mxu1 }
 0x3c1   : > { %17568 = vpow2.f32 %v2814_v15  ;;  %v1951_v29 = vpop.f32.mrf.mxu0  ;;  %2873 = vadd.xlane.f32.xlu1 %v2872_v23  ;;  %v2725_v32 = vsel %vm2679_vm4, %v19062_v17, -inf }
 0x3c2   : > { %v19068_v27 = vmul.f32 0.25, %v1951_v29  ;;  %2726 = vmax.xlane.f32.xlu0 %v2725_v32  ;;  %v1908_v36 = vpop.f32.mrf.mxu1 }
 0x3c3   : > { %v15809_v7 = vpop.f32.mrf.mxu0 }
 0x3c4   : > { %v15804_v44 = vpop.f32.mrf.mxu1  ;;  %v2728_v9 = vsel %vm2679_vm4, %v19068_v27, -inf }
 0x3c5   : > { %v19072_v60 = vpop.eup %17564  ;;  %v1954_v59 = vpop.f32.mrf.mxu0  ;;  %2729 = vmax.xlane.f32.xlu1 %v2728_v9 }
 0x3c6   : > { %v19074_v1 = vpop.eup %17566  ;;  %v1997_v5 = vpop.f32.mrf.mxu1  ;;  %v2878_v19 = vsel %vm2679_vm4, %v19072_v60, 0.0 }
 0x3c7   : > { %v19076_v6 = vmul.f32 0.25, %v1997_v5  ;;  %v15810_v14 = vpop.f32.mrf.mxu0  ;;  %v2875_v15 = vsel %vm2679_vm4, %v19074_v1, 0.0 }
 0x3c8   : > { %2876 = vadd.xlane.f32.xlu0 %v2875_v15  ;;  %v15815_v18 = vpop.f32.mrf.mxu1 }
 0x3c9   : > { %v2043_v23 = vpop.f32.mrf.mxu0  ;;  %2879 = vadd.xlane.f32.xlu1 %v2878_v19  ;;  %v2731_v7 = vsel %vm2679_vm4, %v19076_v6, -inf }
 0x3ca   : > { %v19082_v29 = vmul.f32 0.25, %v2043_v23  ;;  %v2000_v32 = vpop.f32.mrf.mxu1 }
 0x3cb   : > { %v15821_v36 = vpop.f32.mrf.mxu0 }
 0x3cc   : > { %2732 = vmax.xlane.f32.xlu0 %v2731_v7  ;;  %v15816_v44 = vpop.f32.mrf.mxu1  ;;  %v2734_v9 = vsel %vm2679_vm4, %v19082_v29, -inf }
 0x3cd   : > { %v2046_v59 = vpop.f32.mrf.mxu0  ;;  %2735 = vmax.xlane.f32.xlu1 %v2734_v9 }
 0x3ce   : > { %v19088_v5 = vpop.eup %17568  ;;  %v2089_v14 = vpop.f32.mrf.mxu1 }
 0x3cf   : > { %v19090_v15 = vmul.f32 0.25, %v2089_v14  ;;  %v15822_v18 = vpop.f32.mrf.mxu0  ;;  %v2881_v19 = vsel %vm2679_vm4, %v19088_v5, 0.0 }
 0x3d0   : > { %2882 = vadd.xlane.f32.xlu0 %v2881_v19  ;;  %v15827_v23 = vpop.f32.mrf.mxu1 }
 0x3d1   : > { %v2135_v32 = vpop.f32.mrf.mxu0  ;;  %v2737_v44 = vsel %vm2679_vm4, %v19090_v15, -inf }
 0x3d2   : > { %v2092_v36 = vpop.f32.mrf.mxu1 }
 0x3d3   : > { %v15833_v7 = vpop.f32.mrf.mxu0 }
 0x3d4   : > { %2738 = vmax.xlane.f32.xlu0 %v2737_v44  ;;  %v15828_v59 = vpop.f32.mrf.mxu1 }
 0x3d5   : > { %v2138_v9 = vpop.f32.mrf.mxu0 }
 0x3d6   : > { %v2181_v34 = vpop.f32.mrf.mxu1 }
 0x3d7   : > { %v15834_v46 = vpop.f32.mrf.mxu0 }
 0x3d8   : > { %v15839_v21 = vpop.f32.mrf.mxu1 }
 0x3d9   : > { %v2227_v14 = vpop.f32.mrf.mxu0 }
 0x3da   : > { %v2184_v49 = vpop.f32.mrf.mxu1 }
 0x3db   : > { %v15845_v18 = vpop.f32.mrf.mxu0 }
 0x3dc   : > { %v15840_v50 = vpop.f32.mrf.mxu1 }
 0x3dd   : > { %v2230_v39 = vpop.f32.mrf.mxu0 }
 0x3de   : > { %v2273_v42 = vpop.f32.mrf.mxu1  ;;  %1162 = vrot.lane.b32.xlu1 %v18772_v31, %s18339_s28 }
 0x3df   : > { %v15846_v19 = vpop.f32.mrf.mxu0 }
 0x3e0   : > { %v15851_v23 = vpop.f32.mrf.mxu1 }
 0x3e1   : > { %v2319_v36 = vpop.f32.mrf.mxu0 }
 0x3e2   : > { %v2276_v7 = vpop.f32.mrf.mxu1  ;;  %1164 = vrot.lane.b32.xlu1 %v18761_v28, %s18339_s28 }
 0x3e3   : > { %v15857_v44 = vpop.f32.mrf.mxu0 }
 0x3e4   : > { %v15852_v59 = vpop.f32.mrf.mxu1 }
 0x3e5   : > { %v2322_v46 = vpop.f32.mrf.mxu0 }
 0x3e6   : > { %v2365_v21 = vpop.f32.mrf.mxu1 }
 0x3e7   : > { %v15858_v9 = vpop.f32.mrf.mxu0 }
 0x3e8   : > { %v15863_v49 = vpop.f32.mrf.mxu1 }
 0x3e9   : > { %v2411_v18 = vpop.f32.mrf.mxu0 }
 0x3ea   : > { %1160 = vrot.lane.b32.xlu0 %v18755_v26, %s18339_s28  ;;  %v2368_v39 = vpop.f32.mrf.mxu1 }
 0x3eb   : > { %v15869_v50 = vpop.f32.mrf.mxu0 }
 0x3ec   : > { %v15864_v43 = vpop.f32.mrf.mxu1 }
 0x3ed   : > { %v2414_v19 = vpop.f32.mrf.mxu0 }
 0x3ee   : > { %v2457_v23 = vpop.f32.mrf.mxu1  ;;  %v19102_v19 = vmul.f32 0.25, %v2135_v32  ;;  %v19122_v32 = vmul.f32 0.25, %v2411_v18 }
 0x3ef   : > { %v15870_v41 = vpop.f32.mrf.mxu0 }
 0x3f0   : > { %v15875_v7 = vpop.f32.mrf.mxu1 }
 0x3f1   : > { %v2503_v37 = vpop.f32.mrf.mxu0  ;;  %v19104_v7 = vmul.f32 0.25, %v2181_v34  ;;  %v19118_v34 = vmul.f32 0.25, %v2365_v21  ;;  %v2758_v21 = vsel %vm2679_vm4, %v19122_v32, -inf }
 0x3f2   : > { %v2460_v2 = vpop.f32.mrf.mxu1 }
 0x3f3   : > { %v15881_v11 = vpop.f32.mrf.mxu0 }
 0x3f4   : > { %v15876_v44 = vpop.f32.mrf.mxu1  ;;  %v19106_v11 = vmul.f32 0.25, %v2227_v14  ;;  %v19126_v14 = vmul.f32 0.25, %v2457_v23 }
 0x3f5   : > { %v2506_v59 = vpop.f32.mrf.mxu0  ;;  %v19110_v44 = vmul.f32 0.25, %v2273_v42 }
 0x3f6   : > { %v2549_v46 = vpop.f32.mrf.mxu1  ;;  %v19130_v59 = vmul.f32 0.25, %v2503_v37  ;;  %v2761_v18 = vsel %vm2679_vm4, %v19126_v14, -inf }
 0x3f7   : > { %v15882_v33 = vpop.f32.mrf.mxu0 }
 0x3f8   : > { %v15887_v9 = vpop.f32.mrf.mxu1  ;;  %v2740_v33 = vsel %vm2679_vm4, %v19102_v19, -inf  ;;  %v2764_v23 = vsel %vm2679_vm4, %v19130_v59, -inf }
 0x3f9   : > { %v2595_v49 = vpop.f32.mrf.mxu0  ;;  %v19134_v9 = vmul.f32 0.25, %v2549_v46 }
 0x3fa   : > { %v2552_v38 = vpop.f32.mrf.mxu1 }
 0x3fb   : > { %v15893_v16 = vpop.f32.mrf.mxu0  ;;  %v2749_v38 = vsel %vm2679_vm4, %v19110_v44, -inf  ;;  %v2767_v37 = vsel %vm2679_vm4, %v19134_v9, -inf }
 0x3fc   : > { %v15888_v20 = vpop.f32.mrf.mxu1  ;;  %v19114_v16 = vmul.f32 0.25, %v2319_v36  ;;  %v2755_v36 = vsel %vm2679_vm4, %v19118_v34, -inf }
 0x3fd   : > { %v2598_v3 = vpop.f32.mrf.mxu0  ;;  %v2746_v20 = vsel %vm2679_vm4, %v19106_v11, -inf }
 0x3fe   : > { %v2641_v39 = vpop.f32.mrf.mxu1  ;;  %v2743_v3 = vsel %vm2679_vm4, %v19104_v7, -inf  ;;  %v2752_v42 = vsel %vm2679_vm4, %v19114_v16, -inf }
 0x3ff   : > { %v15894_v50 = vpop.f32.mrf.mxu0 }
 0x400   : > { %v15899_v43 = vpop.f32.mrf.mxu1  ;;  %v19138_v50 = vmul.f32 0.25, %v2595_v49 }
 0x401   : > { %v19142_v43 = vmul.f32 0.25, %v2641_v39 }
 0x402   : > { %v2644_v41 = vpop.f32.mrf.mxu1  ;;  %v2770_v46 = vsel %vm2679_vm4, %v19138_v50, -inf }
 0x403   : > { %v2773_v41 = vsel %vm2679_vm4, %v19142_v43, -inf }
 0x404   : > { %v15900_v2 = vpop.f32.mrf.mxu1 }
 0x406   : > { %2741 = vmax.xlane.f32.xlu1 %v2740_v33 }
 0x409   : > { %2744 = vmax.xlane.f32.xlu0 %v2743_v3 }
 0x40a   : > { %2747 = vmax.xlane.f32.xlu1 %v2746_v20 }
 0x40d   : > { %2750 = vmax.xlane.f32.xlu0 %v2749_v38 }
 0x40e   : > { %2753 = vmax.xlane.f32.xlu1 %v2752_v42 }
 0x411   : > { %2756 = vmax.xlane.f32.xlu0 %v2755_v36 }
 0x412   : > { %2759 = vmax.xlane.f32.xlu1 %v2758_v21 }
 0x415   : > { %2762 = vmax.xlane.f32.xlu0 %v2761_v18 }
 0x416   : > { %2765 = vmax.xlane.f32.xlu1 %v2764_v23 }
 0x419   : > { %2768 = vmax.xlane.f32.xlu0 %v2767_v37 }
 0x41a   : > { %2771 = vmax.xlane.f32.xlu1 %v2770_v46 }
 0x41d   : > { %2774 = vmax.xlane.f32.xlu0 %v2773_v41 }
 0x41e   : > { %v2694_v49 = vpop.xlane.xlu1 %2693 }
 0x41f   : > { %v2780_v2 = vsub.f32 %v18994_v62, %v2694_v49 }
 0x421   : > { %v2816_v33 = vmul.f32 1.442695, %v2780_v2 }
 0x422   : > { %v2697_v3 = vpop.xlane.xlu0 %2696 }
 0x423   : > { %17570 = vpow2.f32 %v2816_v33  ;;  %v2781_v39 = vsub.f32 %v19000_v4, %v2697_v3 }
 0x425   : > { %v2818_v20 = vmul.f32 1.442695, %v2781_v39 }
 0x426   : > { %v2700_v38 = vpop.xlane.xlu1 %2699 }
 0x427   : > { %17572 = vpow2.f32 %v2818_v20  ;;  %v2782_v42 = vsub.f32 %v19006_v13, %v2700_v38 }
 0x429   : > { %v2820_v36 = vmul.f32 1.442695, %v2782_v42 }
 0x42a   : > { %v2703_v21 = vpop.xlane.xlu0 %2702 }
 0x42b   : > { %17574 = vpow2.f32 %v2820_v36  ;;  %v2783_v18 = vsub.f32 %v19014_v22, %v2703_v21 }
 0x42d   : > { %v2822_v23 = vmul.f32 1.442695, %v2783_v18 }
 0x42e   : > { %v2706_v37 = vpop.xlane.xlu1 %2705 }
 0x42f   : > { %17576 = vpow2.f32 %v2822_v23  ;;  %v2784_v62 = vsub.f32 %v19020_v35, %v2706_v37 }
 0x430   : > { %v19155_v46 = vpop.eup %17570 }
 0x431   : > { %v2824_v41 = vmul.f32 1.442695, %v2784_v62  ;;  %v2884_v4 = vsel %vm2679_vm4, %v19155_v46, 0.0 }
 0x432   : > { %2885 = vadd.xlane.f32.xlu1 %v2884_v4  ;;  %v2709_v49 = vpop.xlane.xlu0 %2708 }
 0x433   : > { %17578 = vpow2.f32 %v2824_v41  ;;  %v2785_v13 = vsub.f32 %v19026_v63, %v2709_v49 }
 0x434   : > { %v19160_v2 = vpop.eup %17572 }
 0x435   : > { %v2826_v33 = vmul.f32 1.442695, %v2785_v13  ;;  %v2887_v22 = vsel %vm2679_vm4, %v19160_v2, 0.0 }
 0x436   : > { %v2712_v3 = vpop.xlane.xlu1 %2711  ;;  %2888 = vadd.xlane.f32.xlu0 %v2887_v22 }
 0x437   : > { %17580 = vpow2.f32 %v2826_v33  ;;  %v2786_v35 = vsub.f32 %v19034_v12, %v2712_v3 }
 0x438   : > { %v19165_v39 = vpop.eup %17574 }
 0x439   : > { %v2828_v20 = vmul.f32 1.442695, %v2786_v35  ;;  %v2890_v38 = vsel %vm2679_vm4, %v19165_v39, 0.0 }
 0x43a   : > { %2891 = vadd.xlane.f32.xlu1 %v2890_v38  ;;  %v2715_v42 = vpop.xlane.xlu0 %2714 }
 0x43b   : > { %17582 = vpow2.f32 %v2828_v20  ;;  %v2787_v63 = vsub.f32 %v19039_v25, %v2715_v42 }
 0x43c   : > { %v19170_v36 = vpop.eup %17576 }
 0x43d   : > { %v2830_v21 = vmul.f32 1.442695, %v2787_v63  ;;  %v2893_v18 = vsel %vm2679_vm4, %v19170_v36, 0.0 }
 0x43e   : > { %v2718_v23 = vpop.xlane.xlu1 %2717  ;;  %2894 = vadd.xlane.f32.xlu0 %v2893_v18 }
 0x43f   : > { %17584 = vpow2.f32 %v2830_v21  ;;  %v2788_v12 = vsub.f32 %v19045_v0, %v2718_v23 }
 0x440   : > { %v19175_v37 = vpop.eup %17578 }
 0x441   : > { %v2832_v62 = vmul.f32 1.442695, %v2788_v12  ;;  %v2896_v41 = vsel %vm2679_vm4, %v19175_v37, 0.0 }
 0x442   : > { %2897 = vadd.xlane.f32.xlu1 %v2896_v41 }
 0x443   : > { %17586 = vpow2.f32 %v2832_v62  ;;  %v2721_v25 = vpop.xlane.xlu0 %2720 }
 0x444   : > { %v19179_v4 = vpop.eup %17580  ;;  %v2789_v49 = vsub.f32 %v19051_v24, %v2721_v25 }
 0x445   : > { %v2899_v13 = vsel %vm2679_vm4, %v19179_v4, 0.0 }
 0x446   : > { %v2834_v33 = vmul.f32 1.442695, %v2789_v49  ;;  %v2724_v22 = vpop.xlane.xlu1 %2723  ;;  %2900 = vadd.xlane.f32.xlu0 %v2899_v13 }
 0x447   : > { %v2790_v0 = vsub.f32 %v19055_v40, %v2724_v22 }
 0x448   : > { %v19185_v3 = vpop.eup %17582  ;;  %17588 = vpow2.f32 %v2834_v33 }
 0x449   : > { %v2836_v35 = vmul.f32 1.442695, %v2790_v0  ;;  %v2902_v20 = vsel %vm2679_vm4, %v19185_v3, 0.0 }
 0x44a   : > { %2903 = vadd.xlane.f32.xlu1 %v2902_v20  ;;  %v2874_v38 = vpop.xlane.xlu1 %2873 }
 0x44b   : > { %17590 = vpow2.f32 %v2836_v35  ;;  %v2727_v42 = vpop.xlane.xlu0 %2726 }
 0x44c   : > { %v19189_v24 = vpop.eup %17584  ;;  %17592 = vrcp.f32 %v2874_v38  ;;  %v2791_v63 = vsub.f32 %v19062_v17, %v2727_v42 }
 0x44d   : > { %v2905_v21 = vsel %vm2679_vm4, %v19189_v24, 0.0 }
 0x44e   : > { %v2838_v40 = vmul.f32 1.442695, %v2791_v63  ;;  %v2730_v18 = vpop.xlane.xlu1 %2729  ;;  %2906 = vadd.xlane.f32.xlu0 %v2905_v21 }
 0x44f   : > { %v2792_v23 = vsub.f32 %v19068_v27, %v2730_v18 }
 0x450   : > { %v19195_v12 = vpop.eup %17586  ;;  %17594 = vpow2.f32 %v2838_v40 }
 0x451   : > { %v2840_v62 = vmul.f32 1.442695, %v2792_v23  ;;  %v2877_v41 = vpop.xlane.xlu0 %2876  ;;  %v2908_v25 = vsel %vm2679_vm4, %v19195_v12, 0.0 }
 0x452   : > { %17596 = vrcp.f32 %v2877_v41  ;;  %2909 = vadd.xlane.f32.xlu1 %v2908_v25  ;;  %v2880_v49 = vpop.xlane.xlu1 %2879 }
 0x453   : > { %17598 = vpow2.f32 %v2840_v62  ;;  %v3161_v62 = vsel %vm3067_vm5, %v18772_v31, 0 }
 0x454   : > { %17600 = vrcp.f32 %v2880_v49 }
 0x455   : > { %v19199_v17 = vpop.eup %17588  ;;  %v2733_v13 = vpop.xlane.xlu0 %2732 }
 0x456   : > { %v2793_v33 = vsub.f32 %v19076_v6, %v2733_v13  ;;  %v2736_v22 = vpop.xlane.xlu1 %2735  ;;  %v2911_v27 = vsel %vm2679_vm4, %v19199_v17, 0.0 }
 0x457   : > { %v2794_v0 = vsub.f32 %v19082_v29, %v2736_v22  ;;  %2912 = vadd.xlane.f32.xlu0 %v2911_v27 }
 0x458   : > { %v19205_v35 = vpop.eup %17590  ;;  %v2842_v20 = vmul.f32 1.442695, %v2793_v33  ;;  %v21764_v33 = vmov 0.0  }
 0x459   : > { %v17593_v38 = vpop.eup %17592  ;;  %v2844_v42 = vmul.f32 1.442695, %v2794_v0  ;;  %v2883_v63 = vpop.xlane.xlu0 %2882  ;;  %v2914_v21 = vsel %vm2679_vm4, %v19205_v35, 0.0 }
 0x45a   : > { %17602 = vpow2.f32 %v2842_v20  ;;  %2915 = vadd.xlane.f32.xlu1 %v2914_v21  ;;  %v3000_v6 = vmul.f32 %v17593_v38, %v19060_v10  ;;  %v3207_v20 = vsel %vm3067_vm5, %v18761_v28, 0  ;;  %v3253_v38 = vsel %vm3067_vm5, %v18972_v47, 0 }
 0x45b   : > { %17604 = vpow2.f32 %v2844_v42 }
 0x45c   : > { %17606 = vrcp.f32 %v2883_v63  ;;  %v3032_v40 = vpack.c.bf16 %v3000_v6, %v3000_v6 }
 0x45d   : > { %v19210_v18 = vpop.eup %17594  ;;  %v2739_v29 = vpop.xlane.xlu0 %2738 }
 0x45e   : > { %v2795_v23 = vsub.f32 %v19090_v15, %v2739_v29  ;;  %15904 = vmatmul.mubr.msk.bf16.vlgmr.msra.gmra.mxu0 %vm2679_vm4, %v3032_v40  ;;  %v2917_v41 = vsel %vm2679_vm4, %v19210_v18, 0.0  ;;  %v3299_v29 = vsel %vm3067_vm5, %v18970_v45, 0 }
 0x45f   : > { %v17597_v25 = vpop.eup %17596  ;;  %15914 = vmatpush3.bf16.msra.mxu0 %v3161_v62  ;;  %2918 = vadd.xlane.f32.xlu0 %v2917_v41  ;;  %v19258_v41 = vpop.permute.xlu1 %1162 }
 0x460   : > { %v19218_v10 = vpop.eup %17598  ;;  %v2846_v49 = vmul.f32 1.442695, %v2795_v23  ;;  %v3001_v13 = vmul.f32 %v17597_v25, %v19074_v1  ;;  %15915 = vmatprep.mubr.msk.bf16.mxu0 %vm18333_vm2, %v21764_v33  ;;  %15925 = vmatprep.subr.bf16.mxu0 %v21764_v33 }
 0x461   : > { %v17601_v15 = vpop.eup %17600  ;;  %v2920_v22 = vsel %vm2679_vm4, %v19218_v10, 0.0  ;;  %v19262_v25 = vpop.permute.xlu0 %1160 }
 0x462   : > { %17608 = vpow2.f32 %v2846_v49  ;;  %2921 = vadd.xlane.f32.xlu1 %v2920_v22  ;;  %v3033_v27 = vpack.c.bf16 %v3001_v13, %v3001_v13  ;;  %v3002_v0 = vmul.f32 %v17601_v15, %v19072_v60 }
 0x464   : > { %15910 = vmatmul.mubr.msk.bf16.vlgmr.msra.gmra.mxu1 %vm2679_vm4, %v3033_v27  ;;  %v3034_v1 = vpack.c.bf16 %v3002_v0, %v3002_v0 }
 0x465   : > { %15920 = vmatpush3.bf16.msra.mxu1 %v3207_v20  ;;  %15921 = vmatprep.mubr.msk.bf16.mxu1 %vm18333_vm2, %v21764_v33 }
 0x466   : > { %15916 = vmatmul.mubr.msk.bf16.vlgmr.msra.gmra.mxu0 %vm2679_vm4, %v3034_v1  ;;  %15931 = vmatprep.subr.bf16.mxu1 %v21764_v33 }
 0x467   : > { %v19236_v42 = vpop.eup %17602  ;;  %15926 = vmatpush3.bf16.msra.mxu0 %v3253_v38  ;;  %15927 = vmatprep.mubr.msk.bf16.mxu0 %vm18333_vm2, %v21764_v33 }
 0x468   : > { %v19240_v60 = vpop.eup %17604  ;;  %v2923_v63 = vsel %vm2679_vm4, %v19236_v42, 0.0  ;;  %15937 = vmatprep.subr.bf16.mxu0 %v21764_v33 }
 0x469   : > { %v17607_v21 = vpop.eup %17606  ;;  %2924 = vadd.xlane.f32.xlu0 %v2923_v63  ;;  %v2926_v47 = vsel %vm2679_vm4, %v19240_v60, 0.0 }
 0x46a   : > { %2927 = vadd.xlane.f32.xlu1 %v2926_v47  ;;  %v3003_v6 = vmul.f32 %v17607_v21, %v19088_v5  ;;  %v19260_v5 = vpop.permute.xlu1 %1164 }
 0x46c   : > { %v3035_v40 = vpack.c.bf16 %v3003_v6, %v3003_v6 }
 0x46e   : > { %15922 = vmatmul.mubr.msk.bf16.vlgmr.msra.gmra.mxu1 %vm2679_vm4, %v3035_v40 }
 0x46f   : > { %v19251_v23 = vpop.eup %17608  ;;  %15932 = vmatpush3.bf16.msra.mxu1 %v3299_v29  ;;  %15933 = vmatprep.mubr.msk.bf16.mxu1 %vm18333_vm2, %v21764_v33 }
 0x470   : > { %v2929_v62 = vsel %vm2679_vm4, %v19251_v23, 0.0  ;;  %15943 = vmatprep.subr.bf16.mxu1 %v21764_v33 }
 0x471   : > { %2930 = vadd.xlane.f32.xlu0 %v2929_v62 }
 0x48f   : > { %v2742_v45 = vpop.xlane.xlu1 %2741 }
 0x490   : > { %v2796_v49 = vsub.f32 %v19102_v19, %v2742_v45 }
 0x492   : > { %v2848_v13 = vmul.f32 1.442695, %v2796_v49  ;;  %v2745_v15 = vpop.xlane.xlu0 %2744 }
 0x493   : > { %v2797_v22 = vsub.f32 %v19104_v7, %v2745_v15  ;;  %v2748_v27 = vpop.xlane.xlu1 %2747 }
 0x494   : > { %17610 = vpow2.f32 %v2848_v13  ;;  %v2798_v0 = vsub.f32 %v19106_v11, %v2748_v27 }
 0x495   : > { %v2850_v20 = vmul.f32 1.442695, %v2797_v22 }
 0x496   : > { %v2852_v1 = vmul.f32 1.442695, %v2798_v0  ;;  %v2751_v38 = vpop.xlane.xlu0 %2750 }
 0x497   : > { %17612 = vpow2.f32 %v2850_v20  ;;  %v2799_v63 = vsub.f32 %v19110_v44, %v2751_v38  ;;  %v2754_v21 = vpop.xlane.xlu1 %2753 }
 0x498   : > { %17614 = vpow2.f32 %v2852_v1  ;;  %v2800_v47 = vsub.f32 %v19114_v16, %v2754_v21 }
 0x499   : > { %v2854_v6 = vmul.f32 1.442695, %v2799_v63 }
 0x49a   : > { %v2856_v19 = vmul.f32 1.442695, %v2800_v47  ;;  %v2757_v40 = vpop.xlane.xlu0 %2756 }
 0x49b   : > { %17616 = vpow2.f32 %v2854_v6  ;;  %v2801_v7 = vsub.f32 %v19118_v34, %v2757_v40  ;;  %v2760_v29 = vpop.xlane.xlu1 %2759 }
 0x49c   : > { %17618 = vpow2.f32 %v2856_v19  ;;  %v2802_v11 = vsub.f32 %v19122_v32, %v2760_v29 }
 0x49d   : > { %v2858_v62 = vmul.f32 1.442695, %v2801_v7 }
 0x49e   : > { %v2860_v45 = vmul.f32 1.442695, %v2802_v11  ;;  %v2763_v49 = vpop.xlane.xlu0 %2762 }
 0x49f   : > { %17620 = vpow2.f32 %v2858_v62  ;;  %v2803_v44 = vsub.f32 %v19126_v14, %v2763_v49  ;;  %v2766_v19 = vpop.xlane.xlu1 %2765 }
 0x4a0   : > { %17622 = vpow2.f32 %v2860_v45 }
 0x4a1   : > { %v19272_v13 = vpop.eup %17610  ;;  %v2862_v16 = vmul.f32 1.442695, %v2803_v44 }
 0x4a2   : > { %v2932_v15 = vsel %vm2679_vm4, %v19272_v13, 0.0  ;;  %v2769_v7 = vpop.xlane.xlu0 %2768 }
 0x4a3   : > { %17624 = vpow2.f32 %v2862_v16  ;;  %2933 = vadd.xlane.f32.xlu1 %v2932_v15  ;;  %v2772_v29 = vpop.xlane.xlu1 %2771 }
 0x4a4   : > { %v19276_v34 = vpop.eup %17612 }
 0x4a5   : > { %v19278_v22 = vpop.eup %17614  ;;  %v2935_v32 = vsel %vm2679_vm4, %v19276_v34, 0.0 }
 0x4a6   : > { %2936 = vadd.xlane.f32.xlu0 %v2935_v32  ;;  %v2938_v14 = vsel %vm2679_vm4, %v19278_v22, 0.0  ;;  %v2775_v11 = vpop.xlane.xlu0 %2774  ;;  %v2804_v32 = vsub.f32 %v19130_v59, %v2766_v19 }
 0x4a7   : > { %2939 = vadd.xlane.f32.xlu1 %v2938_v14 }
 0x4a8   : > { %v19284_v27 = vpop.eup %17616 }
 0x4a9   : > { %v19286_v0 = vpop.eup %17618  ;;  %v2941_v20 = vsel %vm2679_vm4, %v19284_v27, 0.0 }
 0x4aa   : > { %2942 = vadd.xlane.f32.xlu0 %v2941_v20  ;;  %v2944_v1 = vsel %vm2679_vm4, %v19286_v0, 0.0 }
 0x4ab   : > { %2945 = vadd.xlane.f32.xlu1 %v2944_v1 }
 0x4ac   : > { %v19292_v38 = vpop.eup %17620 }
 0x4ad   : > { %v19294_v63 = vpop.eup %17622  ;;  %v2947_v21 = vsel %vm2679_vm4, %v19292_v38, 0.0 }
 0x4ae   : > { %2948 = vadd.xlane.f32.xlu0 %v2947_v21  ;;  %v2950_v47 = vsel %vm2679_vm4, %v19294_v63, 0.0  ;;  %v3345_v21 = vsel %vm3067_vm5, %v18976_v51, 0  ;;  %v3391_v51 = vsel %vm3067_vm5, %v18974_v48, 0  ;;  %v3437_v48 = vsel %vm3067_vm5, %v18980_v53, 0 }
 0x4af   : > { %2951 = vadd.xlane.f32.xlu1 %v2950_v47  ;;  %v3483_v53 = vsel %vm3067_vm5, %v18978_v52, 0 }
 0x4b0   : > { %v19300_v6 = vpop.eup %17624 }
 0x4b1   : > { %v2953_v40 = vsel %vm2679_vm4, %v19300_v6, 0.0 }
 0x4b2   : > { %2954 = vadd.xlane.f32.xlu0 %v2953_v40  ;;  %v2806_v40 = vsub.f32 %v19138_v50, %v2772_v29 }
 0x4bb   : > { %v2886_v62 = vpop.xlane.xlu1 %2885 }
 0x4bc   : > { %17626 = vrcp.f32 %v2886_v62 }
 0x4bf   : > { %v2889_v45 = vpop.xlane.xlu0 %2888 }
 0x4c0   : > { %17628 = vrcp.f32 %v2889_v45  ;;  %1168 = vrot.lane.b32.xlu1 %v18755_v26, %s18340_s29  ;;  %v2805_v26 = vsub.f32 %v19134_v9, %v2769_v7  ;;  %v2807_v7 = vsub.f32 %v19142_v43, %v2775_v11 }
 0x4c2   : > { %v2866_v9 = vmul.f32 1.442695, %v2805_v26  ;;  %v2870_v43 = vmul.f32 1.442695, %v2807_v7  ;;  %v3575_v26 = vsel %vm3067_vm5, %v18982_v54, 0 }
 0x4c3   : > { %v2892_v49 = vpop.xlane.xlu1 %2891 }
 0x4c4   : > { %17630 = vrcp.f32 %v2892_v49 }
 0x4c7   : > { %v2895_v44 = vpop.xlane.xlu0 %2894 }
 0x4c8   : > { %1166 = vrot.lane.b32.xlu0 %v18766_v30, %s18340_s29  ;;  %17632 = vrcp.f32 %v2895_v44  ;;  %v2864_v30 = vmul.f32 1.442695, %v2804_v32 }
 0x4c9   : > { %v17627_v16 = vpop.eup %17626 }
 0x4ca   : > { %v3004_v15 = vmul.f32 %v17627_v16, %v19155_v46 }
 0x4cb   : > { %v2898_v14 = vpop.xlane.xlu1 %2897 }
 0x4cc   : > { %17634 = vrcp.f32 %v2898_v14  ;;  %v3036_v20 = vpack.c.bf16 %v3004_v15, %v3004_v15  ;;  %v3529_v14 = vsel %vm3067_vm5, %v18984_v55, 0 }
 0x4cd   : > { %v17629_v1 = vpop.eup %17628 }
 0x4ce   : > { %15928 = vmatmul.mubr.msk.bf16.vlgmr.msra.gmra.mxu0 %vm2679_vm4, %v3036_v20  ;;  %v3005_v47 = vmul.f32 %v17629_v1, %v19160_v2  ;;  %v2868_v2 = vmul.f32 1.442695, %v2806_v40 }
 0x4cf   : > { %15938 = vmatpush3.bf16.msra.mxu0 %v3345_v21  ;;  %v2901_v46 = vpop.xlane.xlu0 %2900  ;;  %15939 = vmatprep.mubr.msk.bf16.mxu0 %vm18333_vm2, %v21764_v33 }
 0x4d0   : > { %17636 = vrcp.f32 %v2901_v46  ;;  %v3037_v59 = vpack.c.bf16 %v3005_v47, %v3005_v47  ;;  %15949 = vmatprep.subr.bf16.mxu0 %v21764_v33 }
 0x4d1   : > { %v17631_v19 = vpop.eup %17630  ;;  %17638 = vpow2.f32 %v2864_v30 }
 0x4d2   : > { %15934 = vmatmul.mubr.msk.bf16.vlgmr.msra.gmra.mxu1 %vm2679_vm4, %v3037_v59  ;;  %v3006_v50 = vmul.f32 %v17631_v19, %v19165_v39 }
 0x4d3   : > { %15944 = vmatpush3.bf16.msra.mxu1 %v3391_v51  ;;  %v2904_v29 = vpop.xlane.xlu1 %2903  ;;  %15945 = vmatprep.mubr.msk.bf16.mxu1 %vm18333_vm2, %v21764_v33 }
 0x4d4   : > { %17640 = vrcp.f32 %v2904_v29  ;;  %v3038_v62 = vpack.c.bf16 %v3006_v50, %v3006_v50  ;;  %15955 = vmatprep.subr.bf16.mxu1 %v21764_v33 }
 0x4d5   : > { %v17633_v45 = vpop.eup %17632  ;;  %17642 = vpow2.f32 %v2866_v9 }
 0x4d6   : > { %15940 = vmatmul.mubr.msk.bf16.vlgmr.msra.gmra.mxu0 %vm2679_vm4, %v3038_v62  ;;  %v3007_v39 = vmul.f32 %v17633_v45, %v19170_v36  ;;  %17644 = vpow2.f32 %v2868_v2 }
 0x4d7   : > { %15950 = vmatpush3.bf16.msra.mxu0 %v3437_v48  ;;  %v2907_v11 = vpop.xlane.xlu0 %2906  ;;  %15951 = vmatprep.mubr.msk.bf16.mxu0 %vm18333_vm2, %v21764_v33 }
 0x4d8   : > { %17646 = vrcp.f32 %v2907_v11  ;;  %v3039_v49 = vpack.c.bf16 %v3007_v39, %v3007_v39  ;;  %15961 = vmatprep.subr.bf16.mxu0 %v21764_v33 }
 0x4d9   : > { %v17635_v44 = vpop.eup %17634  ;;  %17648 = vpow2.f32 %v2870_v43 }
 0x4da   : > { %15946 = vmatmul.mubr.msk.bf16.vlgmr.msra.gmra.mxu1 %vm2679_vm4, %v3039_v49  ;;  %v3008_v16 = vmul.f32 %v17635_v44, %v19175_v37  ;;  %v3759_v44 = vsel %vm3067_vm5, %v18990_v58, 0 }
 0x4db   : > { %15956 = vmatpush3.bf16.msra.mxu1 %v3483_v53  ;;  %v2910_v36 = vpop.xlane.xlu1 %2909  ;;  %15957 = vmatprep.mubr.msk.bf16.mxu1 %vm18333_vm2, %v21764_v33 }
 0x4dc   : > { %17650 = vrcp.f32 %v2910_v36  ;;  %v3040_v15 = vpack.c.bf16 %v3008_v16, %v3008_v16  ;;  %15967 = vmatprep.subr.bf16.mxu1 %v21764_v33  ;;  %v3805_v16 = vsel %vm3067_vm5, %v19002_v8, 0 }
 0x4dd   : > { %v17637_v32 = vpop.eup %17636 }
 0x4de   : > { %15952 = vmatmul.mubr.msk.bf16.vlgmr.msra.gmra.mxu0 %vm2679_vm4, %v3040_v15  ;;  %v3009_v52 = vmul.f32 %v17637_v32, %v19179_v4  ;;  %v19347_v37 = vpop.eup %17638 }
 0x4df   : > { %15962 = vmatpush3.bf16.msra.mxu0 %v3529_v14  ;;  %15963 = vmatprep.mubr.msk.bf16.mxu0 %vm18333_vm2, %v21764_v33  ;;  %v2956_v30 = vsel %vm2679_vm4, %v19347_v37, 0.0  ;;  %v21765_v14 = vld [vmem:[#allocation31_spill] sm:$0xff] }
 0x4e0   : > { %v2913_v20 = vpop.xlane.xlu0 %2912  ;;  %v3041_v1 = vpack.c.bf16 %v3009_v52, %v3009_v52  ;;  %15973 = vmatprep.subr.bf16.mxu0 %v21764_v33  ;;  %v3851_v8 = vsel %vm3067_vm5, %v21765_v14, 0  ;;  %v21766_v52 = vld [vmem:[#allocation33_spill] sm:$0xff] }
 0x4e1   : > { %v17641_v21 = vpop.eup %17640  ;;  %17652 = vrcp.f32 %v2913_v20 }
 0x4e2   : > { %15958 = vmatmul.mubr.msk.bf16.vlgmr.msra.gmra.mxu1 %vm2679_vm4, %v3041_v1  ;;  %v3010_v55 = vmul.f32 %v17641_v21, %v19185_v3  ;;  %v19354_v4 = vpop.eup %17642  ;;  %v3621_v3 = vsel %vm3067_vm5, %v18988_v57, 0 }
 0x4e3   : > { %15968 = vmatpush3.bf16.msra.mxu1 %v3575_v26  ;;  %v2916_v47 = vpop.xlane.xlu1 %2915  ;;  %15969 = vmatprep.mubr.msk.bf16.mxu1 %vm18333_vm2, %v21764_v33  ;;  %v19360_v40 = vpop.eup %17644  ;;  %v2959_v59 = vsel %vm2679_vm4, %v19354_v4, 0.0 }
 0x4e4   : > { %17654 = vrcp.f32 %v2916_v47  ;;  %2957 = vadd.xlane.f32.xlu1 %v2956_v30  ;;  %v3042_v46 = vpack.c.bf16 %v3010_v55, %v3010_v55  ;;  %15979 = vmatprep.subr.bf16.mxu1 %v21764_v33  ;;  %v2962_v9 = vsel %vm2679_vm4, %v19360_v40, 0.0  ;;  %v21767_v47 = vld [vmem:[#allocation32_spill] sm:$0xff] }
 0x4e5   : > { %v17647_v54 = vpop.eup %17646  ;;  %v3943_v30 = vsel %vm3067_vm5, %v21767_v47, 0 }
 0x4e6   : > { %15964 = vmatmul.mubr.msk.bf16.vlgmr.msra.gmra.mxu0 %vm2679_vm4, %v3042_v46  ;;  %v3011_v19 = vmul.f32 %v17647_v54, %v19189_v24  ;;  %v19369_v51 = vpop.eup %17648  ;;  %v3667_v24 = vsel %vm3067_vm5, %v18986_v56, 0  ;;  %v3713_v56 = vsel %vm3067_vm5, %v18992_v61, 0  ;;  %v21768_v46 = vld [vmem:[#allocation35_spill] sm:$0xff] }
 0x4e7   : > { %15974 = vmatpush3.bf16.msra.mxu0 %v3621_v3  ;;  %2960 = vadd.xlane.f32.xlu0 %v2959_v59  ;;  %v2965_v2 = vsel %vm2679_vm4, %v19369_v51, 0.0  ;;  %v3989_v54 = vsel %vm3067_vm5, %v21768_v46, 0  ;;  %v21769_v3 = vld [vmem:[#allocation34_spill] sm:$0xff] }
 0x4e8   : > { %v2919_v7 = vpop.xlane.xlu0 %2918  ;;  %2963 = vadd.xlane.f32.xlu1 %v2962_v9  ;;  %v3043_v50 = vpack.c.bf16 %v3011_v19, %v3011_v19  ;;  %15975 = vmatprep.mubr.msk.bf16.mxu0 %vm18333_vm2, %v21764_v33  ;;  %v4035_v59 = vsel %vm3067_vm5, %v21769_v3, 0 }
 0x4e9   : > { %v17651_v57 = vpop.eup %17650  ;;  %17656 = vrcp.f32 %v2919_v7  ;;  %15985 = vmatprep.subr.bf16.mxu0 %v21764_v33 }
 0x4ea   : > { %15970 = vmatmul.mubr.msk.bf16.vlgmr.msra.gmra.mxu1 %vm2679_vm4, %v3043_v50  ;;  %v3012_v29 = vmul.f32 %v17651_v57, %v19195_v12 }
 0x4eb   : > { %2966 = vadd.xlane.f32.xlu0 %v2965_v2  ;;  %15980 = vmatpush3.bf16.msra.mxu1 %v3667_v24  ;;  %v2922_v62 = vpop.xlane.xlu1 %2921 }
 0x4ec   : > { %17658 = vrcp.f32 %v2922_v62  ;;  %v3044_v45 = vpack.c.bf16 %v3012_v29, %v3012_v29  ;;  %15981 = vmatprep.mubr.msk.bf16.mxu1 %vm18333_vm2, %v21764_v33  ;;  %15991 = vmatprep.subr.bf16.mxu1 %v21764_v33 }
 0x4ee   : > { %v17653_v48 = vpop.eup %17652  ;;  %15976 = vmatmul.mubr.msk.bf16.vlgmr.msra.gmra.mxu0 %vm2679_vm4, %v3044_v45 }
 0x4ef   : > { %15986 = vmatpush3.bf16.msra.mxu0 %v3713_v56  ;;  %v3013_v43 = vmul.f32 %v17653_v48, %v19199_v17  ;;  %15987 = vmatprep.mubr.msk.bf16.mxu0 %vm18333_vm2, %v21764_v33 }
 0x4f0   : > { %15997 = vmatprep.subr.bf16.mxu0 %v21764_v33 }
 0x4f1   : > { %v17655_v12 = vpop.eup %17654  ;;  %v3045_v39 = vpack.c.bf16 %v3013_v43, %v3013_v43 }
 0x4f2   : > { %v2925_v11 = vpop.xlane.xlu0 %2924  ;;  %v3014_v49 = vmul.f32 %v17655_v12, %v19205_v35 }
 0x4f3   : > { %17660 = vrcp.f32 %v2925_v11  ;;  %15982 = vmatmul.mubr.msk.bf16.vlgmr.msra.gmra.mxu1 %vm2679_vm4, %v3045_v39  ;;  %v2928_v61 = vpop.xlane.xlu1 %2927 }
 0x4f4   : > { %15992 = vmatpush3.bf16.msra.mxu1 %v3759_v44  ;;  %17662 = vrcp.f32 %v2928_v61  ;;  %v3046_v17 = vpack.c.bf16 %v3014_v49, %v3014_v49  ;;  %15993 = vmatprep.mubr.msk.bf16.mxu1 %vm18333_vm2, %v21764_v33 }
 0x4f5   : > { %16003 = vmatprep.subr.bf16.mxu1 %v21764_v33 }
 0x4f6   : > { %v17657_v53 = vpop.eup %17656  ;;  %15988 = vmatmul.mubr.msk.bf16.vlgmr.msra.gmra.mxu0 %vm2679_vm4, %v3046_v17 }
 0x4f7   : > { %15998 = vmatpush3.bf16.msra.mxu0 %v3805_v16  ;;  %v3015_v58 = vmul.f32 %v17657_v53, %v19210_v18  ;;  %15999 = vmatprep.mubr.msk.bf16.mxu0 %vm18333_vm2, %v21764_v33 }
 0x4f8   : > { %16009 = vmatprep.subr.bf16.mxu0 %v21764_v33 }
 0x4f9   : > { %v17659_v35 = vpop.eup %17658  ;;  %1172 = vrot.lane.b32.xlu1 %v18761_v28, %s18340_s29  ;;  %v3047_v36 = vpack.c.bf16 %v3015_v58, %v3015_v58  ;;  %v3897_v28 = vsel %vm3067_vm5, %v21766_v52, 0 }
 0x4fa   : > { %v2931_v15 = vpop.xlane.xlu0 %2930  ;;  %v3016_v32 = vmul.f32 %v17659_v35, %v19218_v10 }
 0x4fb   : > { %17664 = vrcp.f32 %v2931_v15  ;;  %15994 = vmatmul.mubr.msk.bf16.vlgmr.msra.gmra.mxu1 %vm2679_vm4, %v3047_v36 }
 0x4fc   : > { %16004 = vmatpush3.bf16.msra.mxu1 %v3851_v8  ;;  %v3048_v18 = vpack.c.bf16 %v3016_v32, %v3016_v32  ;;  %16005 = vmatprep.mubr.msk.bf16.mxu1 %vm18333_vm2, %v21764_v33  ;;  %v21770_v8 = vld [vmem:[#allocation37_spill] sm:$0xff] }
 0x4fd   : > { %16015 = vmatprep.subr.bf16.mxu1 %v21764_v33 }
 0x4fe   : > { %16000 = vmatmul.mubr.msk.bf16.vlgmr.msra.gmra.mxu0 %vm2679_vm4, %v3048_v18  ;;  %v4081_v18 = vsel %vm3067_vm5, %v21770_v8, 0 }
 0x4ff   : > { %16010 = vmatpush3.bf16.msra.mxu0 %v3897_v28  ;;  %16011 = vmatprep.mubr.msk.bf16.mxu0 %vm18333_vm2, %v21764_v33 }
 0x500   : > { %v17661_v10 = vpop.eup %17660  ;;  %16021 = vmatprep.subr.bf16.mxu0 %v21764_v33 }
 0x501   : > { %v17663_v20 = vpop.eup %17662  ;;  %v3017_v1 = vmul.f32 %v17661_v10, %v19236_v42  ;;  %1170 = vrot.lane.b32.xlu0 %v18772_v31, %s18340_s29 }
 0x502   : > { %v3018_v21 = vmul.f32 %v17663_v20, %v19240_v60  ;;  %v21771_v20 = vld [vmem:[#allocation36_spill] sm:$0xff] }
 0x503   : > { %v3049_v26 = vpack.c.bf16 %v3017_v1, %v3017_v1 }
 0x504   : > { %v3050_v55 = vpack.c.bf16 %v3018_v21, %v3018_v21 }
 0x505   : > { %16006 = vmatmul.mubr.msk.bf16.vlgmr.msra.gmra.mxu1 %vm2679_vm4, %v3049_v26 }
 0x506   : > { %16016 = vmatpush3.bf16.msra.mxu1 %v3943_v30  ;;  %16012 = vmatmul.mubr.msk.bf16.vlgmr.msra.gmra.mxu0 %vm2679_vm4, %v3050_v55  ;;  %v21772_v55 = vld [vmem:[#allocation38_spill] sm:$0xff] }
 0x507   : > { %16022 = vmatpush3.bf16.msra.mxu0 %v3989_v54  ;;  %16017 = vmatprep.mubr.msk.bf16.mxu1 %vm18333_vm2, %v21764_v33  ;;  %v4173_v47 = vsel %vm3067_vm5, %v21772_v55, 0 }
 0x508   : > { %v17665_v31 = vpop.eup %17664  ;;  %16027 = vmatprep.subr.bf16.mxu1 %v21764_v33  ;;  %16023 = vmatprep.mubr.msk.bf16.mxu0 %vm18333_vm2, %v21764_v33 }
 0x509   : > { %v3019_v42 = vmul.f32 %v17665_v31, %v19251_v23  ;;  %16033 = vmatprep.subr.bf16.mxu0 %v21764_v33 }
 0x50b   : > { %v3051_v60 = vpack.c.bf16 %v3019_v42, %v3019_v42 }
 0x50d   : > { %16018 = vmatmul.mubr.msk.bf16.vlgmr.msra.gmra.mxu1 %vm2679_vm4, %v3051_v60 }
 0x50e   : > { %16028 = vmatpush3.bf16.msra.mxu1 %v4035_v59  ;;  %16029 = vmatprep.mubr.msk.bf16.mxu1 %vm18333_vm2, %v21764_v33 }
 0x50f   : > { %16039 = vmatprep.subr.bf16.mxu1 %v21764_v33 }
 0x51e   : > { %v19444_v19 = vpop.f32.mrf.mxu0 }
 0x520   : > { %v15905_v9 = vpop.f32.mrf.mxu0 }
 0x522   : > { %v3108_v7 = vpop.f32.mrf.mxu0 }
 0x524   : > { %v15906_v50 = vpop.f32.mrf.mxu0  ;;  %v19446_v23 = vpop.f32.mrf.mxu1 }
 0x526   : > { %v15911_v57 = vpop.f32.mrf.mxu1  ;;  %v19448_v24 = vpop.f32.mrf.mxu0 }
 0x528   : > { %v3154_v2 = vpop.f32.mrf.mxu1  ;;  %v15917_v29 = vpop.f32.mrf.mxu0 }
 0x52a   : > { %v15912_v62 = vpop.f32.mrf.mxu1  ;;  %v3200_v45 = vpop.f32.mrf.mxu0 }
 0x52c   : > { %v15918_v48 = vpop.f32.mrf.mxu0  ;;  %v2934_v56 = vpop.xlane.xlu1 %2933 }
 0x52d   : > { %17666 = vrcp.f32 %v2934_v56 }
 0x52e   : > { %v19450_v43 = vpop.f32.mrf.mxu1 }
 0x52f   : > { %v2937_v12 = vpop.xlane.xlu0 %2936 }
 0x530   : > { %v15923_v39 = vpop.f32.mrf.mxu1  ;;  %17668 = vrcp.f32 %v2937_v12  ;;  %v2940_v11 = vpop.xlane.xlu1 %2939 }
 0x531   : > { %17670 = vrcp.f32 %v2940_v11 }
 0x532   : > { %v3246_v49 = vpop.f32.mrf.mxu1 }
 0x533   : > { %v2943_v44 = vpop.xlane.xlu0 %2942 }
 0x534   : > { %v15924_v61 = vpop.f32.mrf.mxu1  ;;  %17672 = vrcp.f32 %v2943_v44  ;;  %v2946_v17 = vpop.xlane.xlu1 %2945 }
 0x535   : > { %17674 = vrcp.f32 %v2946_v17 }
 0x537   : > { %v2949_v53 = vpop.xlane.xlu0 %2948 }
 0x538   : > { %17676 = vrcp.f32 %v2949_v53  ;;  %v2952_v14 = vpop.xlane.xlu1 %2951 }
 0x539   : > { %17678 = vrcp.f32 %v2952_v14 }
 0x53a   : > { %v17667_v16 = vpop.eup %17666 }
 0x53b   : > { %v3020_v58 = vmul.f32 %v17667_v16, %v19272_v13  ;;  %v2955_v13 = vpop.xlane.xlu0 %2954 }
 0x53c   : > { %17680 = vrcp.f32 %v2955_v13  ;;  %v1169_v7 = vpop.permute.xlu1 %1168 }
 0x53d   : > { %v17669_v35 = vpop.eup %17668  ;;  %v3052_v36 = vpack.c.bf16 %v3020_v58, %v3020_v58 }
 0x53e   : > { %v17671_v15 = vpop.eup %17670  ;;  %v3021_v32 = vmul.f32 %v17669_v35, %v19276_v34  ;;  %v4127_v34 = vsel %vm3067_vm5, %v21771_v20, 0  ;;  %v21773_v35 = vmov 0  }
 0x53f   : > { %16024 = vmatmul.mubr.msk.bf16.vlgmr.msra.gmra.mxu0 %vm2679_vm4, %v3052_v36  ;;  %v3022_v10 = vmul.f32 %v17671_v15, %v19278_v22  ;;  %v1167_v59 = vpop.permute.xlu0 %1166 }
 0x540   : > { %v3053_v52 = vpack.c.bf16 %v3021_v32, %v3021_v32  ;;  %16034 = vmatpush3.bf16.msra.mxu0 %v4081_v18  ;;  %16035 = vmatprep.mubr.msk.bf16.mxu0 %vm18333_vm2, %v21764_v33 }
 0x541   : > { %v17673_v28 = vpop.eup %17672  ;;  %16045 = vmatprep.subr.bf16.mxu0 %v21764_v33  ;;  %v3054_v21 = vpack.c.bf16 %v3022_v10, %v3022_v10 }
 0x542   : > { %16030 = vmatmul.mubr.msk.bf16.vlgmr.msra.gmra.mxu1 %vm2679_vm4, %v3053_v52  ;;  %v3023_v1 = vmul.f32 %v17673_v28, %v19284_v27  ;;  %v17675_v26 = vpop.eup %17674  ;;  %v4219_v27 = vsel %vm3067_vm5, %v19262_v25, 0 }
 0x543   : > { %16040 = vmatpush3.bf16.msra.mxu1 %v4127_v34  ;;  %16041 = vmatprep.mubr.msk.bf16.mxu1 %vm18333_vm2, %v21764_v33  ;;  %v3024_v46 = vmul.f32 %v17675_v26, %v19286_v0  ;;  %v4265_v0 = vsel %vm3067_vm5, %v19258_v41, 0 }
 0x544   : > { %16051 = vmatprep.subr.bf16.mxu1 %v21764_v33  ;;  %v3055_v22 = vpack.c.bf16 %v3023_v1, %v3023_v1 }
 0x545   : > { %v17677_v30 = vpop.eup %17676  ;;  %v3056_v31 = vpack.c.bf16 %v3024_v46, %v3024_v46 }
 0x546   : > { %v3025_v54 = vmul.f32 %v17677_v30, %v19292_v38  ;;  %v17679_v42 = vpop.eup %17678  ;;  %v4311_v38 = vsel %vm3067_vm5, %v19260_v5, 0  ;;  %v4403_v5 = vsel %vm3067_vm5, %v1169_v7, 0 }
 0x547   : > { %16036 = vmatmul.mubr.msk.bf16.vlgmr.msra.gmra.mxu0 %vm2679_vm4, %v3054_v21  ;;  %v3026_v3 = vmul.f32 %v17679_v42, %v19294_v63  ;;  %v4357_v63 = vsel %vm3067_vm5, %v1167_v59, 0 }
 0x548   : > { %16046 = vmatpush3.bf16.msra.mxu0 %v4173_v47  ;;  %16047 = vmatprep.mubr.msk.bf16.mxu0 %vm18333_vm2, %v21764_v33  ;;  %v3057_v60 = vpack.c.bf16 %v3025_v54, %v3025_v54 }
 0x549   : > { %16057 = vmatprep.subr.bf16.mxu0 %v21764_v33  ;;  %v17681_v25 = vpop.eup %17680  ;;  %v3058_v9 = vpack.c.bf16 %v3026_v3, %v3026_v3 }
 0x54a   : > { %16042 = vmatmul.mubr.msk.bf16.vlgmr.msra.gmra.mxu1 %vm2679_vm4, %v3055_v22  ;;  %v3027_v41 = vmul.f32 %v17681_v25, %v19300_v6 }
 0x54b   : > { %16052 = vmatpush3.bf16.msra.mxu1 %v4219_v27  ;;  %16053 = vmatprep.mubr.msk.bf16.mxu1 %vm18333_vm2, %v21764_v33 }
 0x54c   : > { %16063 = vmatprep.subr.bf16.mxu1 %v21764_v33  ;;  %v3059_v50 = vpack.c.bf16 %v3027_v41, %v3027_v41 }
 0x54f   : > { %16048 = vmatmul.mubr.msk.bf16.vlgmr.msra.gmra.mxu0 %vm2679_vm4, %v3056_v31 }
 0x550   : > { %16058 = vmatpush3.bf16.msra.mxu0 %v4265_v0  ;;  %16059 = vmatprep.mubr.msk.bf16.mxu0 %vm18333_vm2, %v21764_v33 }
 0x551   : > { %16069 = vmatprep.subr.bf16.mxu0 %v21764_v33 }
 0x552   : > { %16054 = vmatmul.mubr.msk.bf16.vlgmr.msra.gmra.mxu1 %vm2679_vm4, %v3057_v60 }
 0x553   : > { %16064 = vmatpush3.bf16.msra.mxu1 %v4311_v38  ;;  %16065 = vmatprep.mubr.msk.bf16.mxu1 %vm18333_vm2, %v21764_v33 }
 0x554   : > { %16075 = vmatprep.subr.bf16.mxu1 %v21764_v33 }
 0x557   : > { %16060 = vmatmul.mubr.msk.bf16.vlgmr.msra.gmra.mxu0 %vm2679_vm4, %v3058_v9 }
 0x558   : > { %16070 = vmatpush3.bf16.msra.mxu0 %v4357_v63  ;;  %16071 = vmatprep.mubr.msk.bf16.mxu0 %vm18333_vm2, %v21764_v33 }
 0x559   : > { %16081 = vmatprep.subr.bf16.mxu0 %v21764_v33 }
 0x55a   : > { %16066 = vmatmul.mubr.msk.bf16.vlgmr.msra.gmra.mxu1 %vm2679_vm4, %v3059_v50 }
 0x55b   : > { %16076 = vmatpush3.bf16.msra.mxu1 %v4403_v5  ;;  %16077 = vmatprep.mubr.msk.bf16.mxu1 %vm18333_vm2, %v21764_v33 }
 0x55c   : > { %16087 = vmatprep.subr.bf16.mxu1 %v21764_v33 }
 0x56d   : > { %v2958_v6 = vpop.xlane.xlu1 %2957 }
 0x56e   : > { %17682 = vrcp.f32 %v2958_v6 }
 0x570   : > { %v2961_v57 = vpop.xlane.xlu0 %2960 }
 0x571   : > { %17684 = vrcp.f32 %v2961_v57  ;;  %v2964_v2 = vpop.xlane.xlu1 %2963 }
 0x572   : > { %17686 = vrcp.f32 %v2964_v2 }
 0x574   : > { %v2967_v29 = vpop.xlane.xlu0 %2966 }
 0x575   : > { %17688 = vrcp.f32 %v2967_v29  ;;  %v1173_v49 = vpop.permute.xlu1 %1172 }
 0x578   : > { %v1171_v48 = vpop.permute.xlu0 %1170 }
 0x579   : > { %v4449_v44 = vsel %vm3067_vm5, %v1171_v48, 0 }
 0x57b   : > { %v17683_v62 = vpop.eup %17682 }
 0x57c   : > { %v3028_v45 = vmul.f32 %v17683_v62, %v19347_v37  ;;  %v4495_v37 = vsel %vm3067_vm5, %v1173_v49, 0 }
 0x57e   : > { %v17685_v56 = vpop.eup %17684  ;;  %v3060_v12 = vpack.c.bf16 %v3028_v45, %v3028_v45 }
 0x57f   : > { %v17687_v39 = vpop.eup %17686  ;;  %v3029_v11 = vmul.f32 %v17685_v56, %v19354_v4 }
 0x580   : > { %16072 = vmatmul.mubr.msk.bf16.vlgmr.msra.gmra.mxu0 %vm2679_vm4, %v3060_v12  ;;  %v3030_v53 = vmul.f32 %v17687_v39, %v19360_v40 }
 0x581   : > { %v3061_v61 = vpack.c.bf16 %v3029_v11, %v3029_v11  ;;  %16082 = vmatpush3.bf16.msra.mxu0 %v4449_v44  ;;  %16083 = vmatprep.mubr.msk.bf16.mxu0 %vm18333_vm2, %v21764_v33 }
 0x582   : > { %v17689_v17 = vpop.eup %17688  ;;  %v3062_v16 = vpack.c.bf16 %v3030_v53, %v3030_v53 }
 0x583   : > { %16078 = vmatmul.mubr.msk.bf16.vlgmr.msra.gmra.mxu1 %vm2679_vm4, %v3061_v61  ;;  %v3031_v4 = vmul.f32 %v17689_v17, %v19369_v51 }
 0x584   : > { %16088 = vmatpush3.bf16.msra.mxu1 %v4495_v37  ;;  %16089 = vmatprep.mubr.msk.bf16.mxu1 %vm18333_vm2, %v21764_v33 }
 0x585   : > { %v3063_v58 = vpack.c.bf16 %v3031_v4, %v3031_v4 }
 0x588   : > { %16084 = vmatmul.mubr.msk.bf16.vlgmr.msra.gmra.mxu0 %vm2679_vm4, %v3062_v16 }
 0x58b   : > { %16090 = vmatmul.mubr.msk.bf16.vlgmr.msra.gmra.mxu1 %vm2679_vm4, %v3063_v58 }
 0x58c   : > { %5017 = vmatprep.mubr.bf16.mxu1 %v21773_v35 }
 0x58e   : > { %v3289_v36 = vpop.f32.mrf.mxu0 }
 0x590   : > { %v15929_v40 = vpop.f32.mrf.mxu0 }
 0x592   : > { %v3292_v15 = vpop.f32.mrf.mxu0  ;;  %v3335_v32 = vpop.f32.mrf.mxu1 }
 0x593   : > { %v17110_v14 = vpack.i.bf16 %v3335_v32, %v3289_v36 }
 0x594   : > { %v15930_v8 = vpop.f32.mrf.mxu0  ;;  %v15935_v18 = vpop.f32.mrf.mxu1 }
 0x595   : > { %17111 = vrot.lane.b32.xlu0 %v17110_v14, %s18340_s29 }
 0x596   : > { %v3338_v52 = vpop.f32.mrf.mxu1  ;;  %v3381_v28 = vpop.f32.mrf.mxu0 }
 0x598   : > { %v15936_v51 = vpop.f32.mrf.mxu1  ;;  %v15941_v13 = vpop.f32.mrf.mxu0 }
 0x59a   : > { %v3384_v10 = vpop.f32.mrf.mxu0  ;;  %v3427_v20 = vpop.f32.mrf.mxu1 }
 0x59b   : > { %v17115_v34 = vpack.i.bf16 %v3427_v20, %v3381_v28 }
 0x59c   : > { %v15942_v1 = vpop.f32.mrf.mxu0  ;;  %v15947_v21 = vpop.f32.mrf.mxu1 }
 0x59d   : > { %17116 = vrot.lane.b32.xlu1 %v17115_v34, %s18340_s29 }
 0x59e   : > { %v3430_v26 = vpop.f32.mrf.mxu1  ;;  %v3473_v55 = vpop.f32.mrf.mxu0 }
 0x5a0   : > { %v15948_v47 = vpop.f32.mrf.mxu1  ;;  %v15953_v22 = vpop.f32.mrf.mxu0 }
 0x5a2   : > { %v3476_v30 = vpop.f32.mrf.mxu0  ;;  %v3519_v46 = vpop.f32.mrf.mxu1 }
 0x5a3   : > { %v17120_v27 = vpack.i.bf16 %v3519_v46, %v3473_v55 }
 0x5a4   : > { %v15954_v54 = vpop.f32.mrf.mxu0  ;;  %v15959_v31 = vpop.f32.mrf.mxu1 }
 0x5a5   : > { %17121 = vrot.lane.b32.xlu0 %v17120_v27, %s18339_s28 }
 0x5a6   : > { %v3522_v42 = vpop.f32.mrf.mxu1  ;;  %v3565_v0 = vpop.f32.mrf.mxu0 }
 0x5a8   : > { %v15960_v60 = vpop.f32.mrf.mxu1  ;;  %v15965_v25 = vpop.f32.mrf.mxu0 }
 0x5aa   : > { %v3568_v3 = vpop.f32.mrf.mxu0  ;;  %v3611_v38 = vpop.f32.mrf.mxu1 }
 0x5ab   : > { %v17125_v41 = vpack.i.bf16 %v3611_v38, %v3565_v0 }
 0x5ac   : > { %v15966_v59 = vpop.f32.mrf.mxu0  ;;  %v15971_v9 = vpop.f32.mrf.mxu1 }
 0x5ad   : > { %17126 = vrot.lane.b32.xlu1 %v17125_v41, %s18339_s28 }
 0x5ae   : > { %v3614_v7 = vpop.f32.mrf.mxu1  ;;  %v3657_v63 = vpop.f32.mrf.mxu0 }
 0x5b0   : > { %v15972_v50 = vpop.f32.mrf.mxu1  ;;  %v15977_v5 = vpop.f32.mrf.mxu0 }
 0x5b1   : > { %v17355_v50 = vld [vmem:[#allocation11 + $0x30] sm:$0xff]  }
 0x5b2   : > { %v3660_v6 = vpop.f32.mrf.mxu0 }
 0x5b3   : > { %v3703_v57 = vpop.f32.mrf.mxu1 }
 0x5b4   : > { %v17130_v2 = vpack.i.bf16 %v3703_v57, %v3657_v63  ;;  %v15978_v29 = vpop.f32.mrf.mxu0  ;;  %v17354_v63 = vld [vmem:[#allocation11 + $0x38] sm:$0xff]  }
 0x5b5   : > { %v15983_v62 = vpop.f32.mrf.mxu1  ;;  %16093 = vmatprep.subr.bf16.mxu0 %v17354_v63 }
 0x5b6   : > { %17131 = vrot.lane.b32.xlu0 %v17130_v2, %s18338_s17  ;;  %v3749_v45 = vpop.f32.mrf.mxu0  ;;  %16094 = vmatpush3.bf16.msra.mxu0 %v17354_v63  ;;  %v17356_v62 = vld [vmem:[#allocation11 + $0x28] sm:$0xff]  }
 0x5b7   : > { %v3706_v48 = vpop.f32.mrf.mxu1  ;;  %16095 = vmatprep.subr.bf16.mxu0 %v17355_v50 }
 0x5b8   : > { %v15989_v56 = vpop.f32.mrf.mxu0 }
 0x5b9   : > { %v15984_v12 = vpop.f32.mrf.mxu1 }
 0x5ba   : > { %v3752_v39 = vpop.f32.mrf.mxu0  ;;  %16096 = vmatpush3.bf16.msra.mxu0 %v17355_v50 }
 0x5bb   : > { %v3795_v11 = vpop.f32.mrf.mxu1  ;;  %16097 = vmatprep.subr.bf16.mxu0 %v17356_v62  ;;  %v17357_v39 = vld [vmem:[#allocation11 + $0x20] sm:$0xff]  }
 0x5bc   : > { %v17135_v49 = vpack.i.bf16 %v3795_v11, %v3749_v45  ;;  %v15990_v44 = vpop.f32.mrf.mxu0 }
 0x5bd   : > { %v15995_v61 = vpop.f32.mrf.mxu1 }
 0x5be   : > { %17136 = vrot.lane.b32.xlu1 %v17135_v49, %s18338_s17  ;;  %v3841_v17 = vpop.f32.mrf.mxu0  ;;  %16098 = vmatpush3.bf16.msra.mxu0 %v17356_v62 }
 0x5bf   : > { %v3798_v53 = vpop.f32.mrf.mxu1  ;;  %16099 = vmatprep.subr.bf16.mxu0 %v17357_v39 }
 0x5c0   : > { %v16001_v37 = vpop.f32.mrf.mxu0  ;;  %v17358_v53 = vld [vmem:[#allocation11 + $0x18] sm:$0xff]  }
 0x5c1   : > { %v15996_v4 = vpop.f32.mrf.mxu1 }
 0x5c2   : > { %v3844_v16 = vpop.f32.mrf.mxu0  ;;  %16100 = vmatpush3.bf16.msra.mxu0 %v17357_v39  ;;  %v17359_v4 = vld [vmem:[#allocation11 + $0x10] sm:$0xff]  }
 0x5c3   : > { %16101 = vmatprep.subr.bf16.mxu0 %v17358_v53  ;;  %v17360_v16 = vld [vmem:[#allocation11 + $0x8] sm:$0xff]  }
 0x5c4   : > { %v16002_v58 = vpop.f32.mrf.mxu0 }
 0x5c5   : > { %v3887_v36 = vpop.f32.mrf.mxu1 }
 0x5c6   : > { %v17140_v40 = vpack.i.bf16 %v3887_v36, %v3841_v17  ;;  %v3933_v15 = vpop.f32.mrf.mxu0  ;;  %16102 = vmatpush3.bf16.msra.mxu0 %v17358_v53 }
 0x5c7   : > { %v16007_v32 = vpop.f32.mrf.mxu1  ;;  %16103 = vmatprep.subr.bf16.mxu0 %v17359_v4 }
 0x5c8   : > { %17141 = vrot.lane.b32.xlu0 %v17140_v40, %s18337_s9  ;;  %v16013_v14 = vpop.f32.mrf.mxu0 }
 0x5c9   : > { %v3890_v8 = vpop.f32.mrf.mxu1 }
 0x5ca   : > { %v3936_v18 = vpop.f32.mrf.mxu0  ;;  %16104 = vmatpush3.bf16.msra.mxu0 %v17359_v4 }
 0x5cb   : > { %v16008_v52 = vpop.f32.mrf.mxu1  ;;  %16105 = vmatprep.subr.bf16.mxu0 %v17360_v16 }
 0x5cc   : > { %v16014_v28 = vpop.f32.mrf.mxu0 }
 0x5cd   : > { %v3979_v51 = vpop.f32.mrf.mxu1 }
 0x5ce   : > { %v17145_v13 = vpack.i.bf16 %v3979_v51, %v3933_v15  ;;  %16106 = vmatpush3.bf16.msra.mxu0 %v17360_v16  ;;  %v17361_v15 = vld [vmem:[#allocation11] sm:$0xff]  }
 0x5cf   : > { %v16019_v10 = vpop.f32.mrf.mxu1  ;;  %16107 = vmatprep.subr.bf16.mxu0 %v17361_v15 }
 0x5d0   : > { %17146 = vrot.lane.b32.xlu1 %v17145_v13, %s18337_s9 }
 0x5d1   : > { %v3982_v20 = vpop.f32.mrf.mxu1 }
 0x5d2   : > { %16108 = vmatpush3.bf16.msra.mxu0 %v17361_v15 }
 0x5d3   : > { %v16020_v34 = vpop.f32.mrf.mxu1 }
 0x5ff   : > { %v4025_v1 = vpop.f32.mrf.mxu0 }
 0x601   : > { %v16025_v21 = vpop.f32.mrf.mxu0 }
 0x602   : > { %v4071_v26 = vpop.f32.mrf.mxu1 }
 0x603   : > { %v17150_v55 = vpack.i.bf16 %v4071_v26, %v4025_v1  ;;  %v4028_v47 = vpop.f32.mrf.mxu0 }
 0x604   : > { %v16031_v22 = vpop.f32.mrf.mxu1 }
 0x605   : > { %17151 = vrot.lane.b32.xlu0 %v17150_v55, %s18336_s30  ;;  %v16026_v30 = vpop.f32.mrf.mxu0 }
 0x606   : > { %v4074_v46 = vpop.f32.mrf.mxu1 }
 0x607   : > { %v4117_v27 = vpop.f32.mrf.mxu0  ;;  %v17112_v47 = vpop.permute.xlu0 %17111 }
 0x608   : > { %v16032_v54 = vpop.f32.mrf.mxu1 }
 0x609   : > { %v16037_v31 = vpop.f32.mrf.mxu0 }
 0x60a   : > { %v4163_v42 = vpop.f32.mrf.mxu1 }
 0x60b   : > { %v17155_v0 = vpack.i.bf16 %v4163_v42, %v4117_v27  ;;  %v4120_v60 = vpop.f32.mrf.mxu0 }
 0x60c   : > { %v16043_v25 = vpop.f32.mrf.mxu1  ;;  %v17113_v60 = vunpack.i.l.bf16 %v17112_v47 }
 0x60d   : > { %17156 = vrot.lane.b32.xlu1 %v17155_v0, %s18336_s30  ;;  %v16038_v3 = vpop.f32.mrf.mxu0  ;;  %v17114_v0 = vunpack.i.h.bf16 %v17112_v47 }
 0x60e   : > { %v4166_v38 = vpop.f32.mrf.mxu1 }
 0x60f   : > { %v4209_v41 = vpop.f32.mrf.mxu0  ;;  %v17117_v30 = vpop.permute.xlu1 %17116  ;;  %v4650_v50 = vsel %vm1174_vm3, %v19446_v23, %v17114_v0 }
 0x610   : > { %v16044_v59 = vpop.f32.mrf.mxu1 }
 0x611   : > { %v16049_v9 = vpop.f32.mrf.mxu0 }
 0x612   : > { %v4255_v7 = vpop.f32.mrf.mxu1 }
 0x613   : > { %v17160_v5 = vpack.i.bf16 %v4255_v7, %v4209_v41  ;;  %v4212_v6 = vpop.f32.mrf.mxu0 }
 0x614   : > { %v16055_v57 = vpop.f32.mrf.mxu1 }
 0x615   : > { %17161 = vrot.lane.b32.xlu0 %v17160_v5, %s18335_s25  ;;  %v16050_v2 = vpop.f32.mrf.mxu0  ;;  %v4649_v5 = vsel %vm1174_vm3, %v19444_v19, %v17113_v60 }
 0x616   : > { %v4258_v29 = vpop.f32.mrf.mxu1 }
 0x617   : > { %v4301_v45 = vpop.f32.mrf.mxu0  ;;  %v17122_v22 = vpop.permute.xlu0 %17121 }
 0x618   : > { %v16056_v48 = vpop.f32.mrf.mxu1  ;;  %v17124_v25 = vunpack.i.h.bf16 %v17122_v22  ;;  %v17123_v3 = vunpack.i.l.bf16 %v17122_v22 }
 0x619   : > { %v16061_v56 = vpop.f32.mrf.mxu0  ;;  %v17119_v48 = vunpack.i.h.bf16 %v17117_v30 }
 0x61a   : > { %v4347_v12 = vpop.f32.mrf.mxu1  ;;  %v4654_v2 = vsel %vm658_vm1, %v4650_v50, %v17124_v25  ;;  %v4653_v29 = vsel %vm658_vm1, %v4649_v5, %v17123_v3  ;;  %v14776_v3 = vld [vmem:[%s21661_s6] ss:$0 sm:$0xff] }
 0x61b   : > { %v17165_v11 = vpack.i.bf16 %v4347_v12, %v4301_v45  ;;  %v4304_v49 = vpop.f32.mrf.mxu0 }
 0x61c   : > { %v16067_v44 = vpop.f32.mrf.mxu1 }
 0x61d   : > { %17166 = vrot.lane.b32.xlu1 %v17165_v11, %s18335_s25  ;;  %v16062_v61 = vpop.f32.mrf.mxu0  ;;  %v17118_v11 = vunpack.i.l.bf16 %v17117_v30 }
 0x61e   : > { %v4350_v17 = vpop.f32.mrf.mxu1 }
 0x61f   : > { %v17127_v27 = vpop.permute.xlu1 %17126 }
 0x620   : > { %v16068_v37 = vpop.f32.mrf.mxu1  ;;  %v17128_v4 = vunpack.i.l.bf16 %v17127_v27 }
 0x621   : > { %v17129_v37 = vunpack.i.h.bf16 %v17127_v27 }
 0x628   : > { %v17132_v46 = vpop.permute.xlu0 %17131 }
 0x629   : > { %v17134_v38 = vunpack.i.h.bf16 %v17132_v46  ;;  %v17133_v41 = vunpack.i.l.bf16 %v17132_v46 }
 0x62b   : > { %v4659_v56 = vsel %vm4657_vm6, %v4654_v2, %v17134_v38  ;;  %v4658_v12 = vsel %vm4657_vm6, %v4653_v29, %v17133_v41  ;;  %v21776_v29 = vld [vmem:[#allocation26_spill] sm:$0xff] }
 0x630   : > { %v17137_v31 = vpop.permute.xlu1 %17136 }
 0x63a   : > { %v17142_v54 = vpop.permute.xlu0 %17141 }
 0x63b   : > { %v17144_v7 = vunpack.i.h.bf16 %v17142_v54  ;;  %v17143_v63 = vunpack.i.l.bf16 %v17142_v54 }
 0x63d   : > { %v4664_v23 = vsel %vm4662_vm7, %v4659_v56, %v17144_v7  ;;  %v4663_v19 = vsel %vm4662_vm7, %v4658_v12, %v17143_v63  ;;  %v21774_v7 = vld [vmem:[#allocation25_spill] sm:$0xff]  ;;  %v17362_v56 = vld [vmem:[#allocation14 + $0x70] ss:$8 sps:$4 sm:$0xff]   ;;  %v17364_v12 = vld [vmem:[#allocation14 + $0x74] ss:$8 sps:$4 sm:$0xff]  }
 0x63e   : > { %4985 = vmatprep.subr.bf16.mxu1 %v17364_v12 }
 0x63f   : > { %4986 = vmatpush1.bf16.msra.mxu1 %v17362_v56 }
 0x640   : > { %v4393_v58 = vpop.f32.mrf.mxu0 }
 0x642   : > { %v16073_v36 = vpop.f32.mrf.mxu0  ;;  %v17147_v59 = vpop.permute.xlu1 %17146 }
 0x643   : > { %v4439_v40 = vpop.f32.mrf.mxu1  ;;  %v17139_v36 = vunpack.i.h.bf16 %v17137_v31 }
 0x644   : > { %v17170_v32 = vpack.i.bf16 %v4439_v40, %v4393_v58  ;;  %v4396_v14 = vpop.f32.mrf.mxu0  ;;  %v17138_v40 = vunpack.i.l.bf16 %v17137_v31 }
 0x645   : > { %v16079_v8 = vpop.f32.mrf.mxu1 }
 0x646   : > { %17171 = vrot.lane.b32.xlu0 %v17170_v32, %s18334_s4  ;;  %v16074_v18 = vpop.f32.mrf.mxu0  ;;  %v17149_v8 = vunpack.i.h.bf16 %v17147_v59 }
 0x647   : > { %v4442_v52 = vpop.f32.mrf.mxu1  ;;  %v17148_v18 = vunpack.i.l.bf16 %v17147_v59 }
 0x648   : > { %v4485_v28 = vpop.f32.mrf.mxu0 }
 0x649   : > { %v16080_v51 = vpop.f32.mrf.mxu1 }
 0x64a   : > { %v16085_v13 = vpop.f32.mrf.mxu0  ;;  %v4651_v51 = vsel %vm1174_vm3, %v19448_v24, %v17118_v11 }
 0x64b   : > { %v4531_v10 = vpop.f32.mrf.mxu1 }
 0x64c   : > { %v17175_v20 = vpack.i.bf16 %v4531_v10, %v4485_v28  ;;  %v4488_v34 = vpop.f32.mrf.mxu0  ;;  %v4652_v28 = vsel %vm1174_vm3, %v19450_v43, %v17119_v48 }
 0x64d   : > { %v16091_v1 = vpop.f32.mrf.mxu1  ;;  %v4655_v34 = vsel %vm658_vm1, %v4651_v51, %v17128_v4  ;;  %v17376_v51 = vld [vmem:[#allocation14 + $0x34] ss:$8 sps:$4 sm:$0xff]  }
 0x64e   : > { %17176 = vrot.lane.b32.xlu1 %v17175_v20, %s18334_s4  ;;  %v16086_v21 = vpop.f32.mrf.mxu0  ;;  %v4656_v20 = vsel %vm658_vm1, %v4652_v28, %v17129_v37  ;;  %v17371_v28 = vld [vmem:[#allocation14 + $0x40] ss:$8 sps:$4 sm:$0xff]  }
 0x64f   : > { %v4534_v26 = vpop.f32.mrf.mxu1 }
 0x650   : > { %v4661_v26 = vsel %vm4657_vm6, %v4656_v20, %v17139_v36  ;;  %v17377_v20 = vld [vmem:[#allocation14 + $0x20] ss:$8 sps:$4 sm:$0xff]  }
 0x651   : > { %v16092_v55 = vpop.f32.mrf.mxu1  ;;  %v4666_v47 = vsel %vm4662_vm7, %v4661_v26, %v17149_v8  ;;  %v17370_v8 = vld [vmem:[#allocation14 + $0x54] ss:$8 sps:$4 sm:$0xff]   ;;  %v17383_v26 = vld [vmem:[#allocation14] ss:$8 sps:$4 sm:$0xff]  }
 0x652   : > { %v4660_v55 = vsel %vm4657_vm6, %v4655_v34, %v17138_v40  ;;  %v17380_v34 = vld [vmem:[#allocation14 + $0x10] ss:$8 sps:$4 sm:$0xff]  }
 0x653   : > { %v4665_v43 = vsel %vm4662_vm7, %v4660_v55, %v17148_v18  ;;  %v17368_v18 = vld [vmem:[#allocation14 + $0x50] ss:$8 sps:$4 sm:$0xff]  }
 0x654   : > { %v17386_v55 = vld [vmem:[#allocation16 + $0x78] sm:$0xff]  }
 0x655   : > { %15301 = vmatprep.subr.bf16.mxu0 %v17386_v55 }
 0x677   : > { %v17152_v42 = vpop.permute.xlu0 %17151 }
 0x678   : > { %v17154_v6 = vunpack.i.h.bf16 %v17152_v42  ;;  %v17153_v57 = vunpack.i.l.bf16 %v17152_v42 }
 0x67a   : > { %v4669_v44 = vsel %vm4667_vm8, %v4664_v23, %v17154_v6  ;;  %v4668_v61 = vsel %vm4667_vm8, %v4663_v19, %v17153_v57  ;;  %v21775_v6 = vld [vmem:[#allocation27_spill] sm:$0xff] }
 0x67f   : > { %v17157_v39 = vpop.permute.xlu1 %17156 }
 0x680   : > { %v17159_v13 = vunpack.i.h.bf16 %v17157_v39  ;;  %v17158_v10 = vunpack.i.l.bf16 %v17157_v39 }
 0x682   : > { %v4671_v24 = vsel %vm4667_vm8, %v4666_v47, %v17159_v13  ;;  %v4670_v30 = vsel %vm4667_vm8, %v4665_v43, %v17158_v10  ;;  %v17374_v13 = vld [vmem:[#allocation14 + $0x30] ss:$8 sps:$4 sm:$0xff]   ;;  %v17379_v10 = vld [vmem:[#allocation14 + $0x24] ss:$8 sps:$4 sm:$0xff]  }
 0x683   : > { %v17387_v47 = vld [vmem:[#allocation16 + $0x38] sm:$0xff]   ;;  %v17388_v43 = vld [vmem:[#allocation16 + $0x70] sm:$0xff]  }
 0x687   : > { %v17162_v9 = vpop.permute.xlu0 %17161 }
 0x688   : > { %v17164_v62 = vunpack.i.h.bf16 %v17162_v9  ;;  %v17163_v45 = vunpack.i.l.bf16 %v17162_v9 }
 0x68a   : > { %v4673_v16 = vsel %vm4672_vm9, %v4668_v61, %v17163_v45  ;;  %v4674_v58 = vsel %vm4672_vm9, %v4669_v44, %v17164_v62  ;;  %v21777_v45 = vld [vmem:[#allocation24_spill] sm:$0xff] }
 0x68f   : > { %v17167_v15 = vpop.permute.xlu1 %17166 }
 0x690   : > { %v17169_v1 = vunpack.i.h.bf16 %v17167_v15  ;;  %v17168_v21 = vunpack.i.l.bf16 %v17167_v15 }
 0x692   : > { %v4676_v54 = vsel %vm4672_vm9, %v4671_v24, %v17169_v1  ;;  %v4675_v31 = vsel %vm4672_vm9, %v4670_v30, %v17168_v21  ;;  %v17382_v1 = vld [vmem:[#allocation14 + $0x14] ss:$8 sps:$4 sm:$0xff]   ;;  %v17385_v21 = vld [vmem:[#allocation14 + $0x4] ss:$8 sps:$4 sm:$0xff]  }
 0x693   : > { %v17390_v24 = vld [vmem:[#allocation16 + $0x68] sm:$0xff]  }
 0x694   : > { %v17391_v30 = vld [vmem:[#allocation16 + $0x28] sm:$0xff]  }
 0x6b8   : > { %v17172_v49 = vpop.permute.xlu0 %17171 }
 0x6b9   : > { %v17174_v17 = vunpack.i.h.bf16 %v17172_v49  ;;  %v17173_v53 = vunpack.i.l.bf16 %v17172_v49 }
 0x6bb   : > { %v4678_v32 = vsel %vm4677_vm10, %v4673_v16, %v17173_v53  ;;  %v4679_v14 = vsel %vm4677_vm10, %v4674_v58, %v17174_v17 }
 0x6bc   : > { %v4682_v52 = vpack.c.bf16 %v4679_v14, %v4678_v32  ;;  %v17367_v32 = vld [vmem:[#allocation14 + $0x64] ss:$8 sps:$4 sm:$0xff]   ;;  %v17365_v14 = vld [vmem:[#allocation14 + $0x60] ss:$8 sps:$4 sm:$0xff]  }
 0x6bd   : > { %4987 = vmatprep.subr.bf16.mxu1 %v17367_v32  ;;  %v4893_v32 = vld [vmem:[%s21665_s10] sm:$0x3] }
 0x6be   : > { %16109 = vmatprep.mubr.bf16.mxu0 %v4682_v52  ;;  %4988 = vmatpush1.bf16.msra.mxu1 %v17365_v14  ;;  %v17373_v52 = vld [vmem:[#allocation14 + $0x44] ss:$8 sps:$4 sm:$0xff]  }
 0x6bf   : > { %4989 = vmatprep.subr.bf16.mxu1 %v17370_v8  ;;  %v21778_v8 = vld [vmem:[#allocation29_spill] sm:$0xff] }
 0x6c0   : > { %v17177_v22 = vpop.permute.xlu1 %17176 }
 0x6c1   : > { %v17179_v46 = vunpack.i.h.bf16 %v17177_v22  ;;  %v17178_v27 = vunpack.i.l.bf16 %v17177_v22  ;;  %v17389_v22 = vld [vmem:[#allocation16 + $0x30] sm:$0xff]  }
 0x6c2   : > { %4990 = vmatpush1.bf16.msra.mxu1 %v17368_v18  ;;  %v4902_v18 = vrot.slane %v4893_v32, %v21778_v8 }
 0x6c3   : > { %v4681_v42 = vsel %vm4677_vm10, %v4676_v54, %v17179_v46  ;;  %v4680_v0 = vsel %vm4677_vm10, %v4675_v31, %v17178_v27  ;;  %4991 = vmatprep.subr.bf16.mxu1 %v17373_v52  ;;  %v17392_v46 = vld [vmem:[#allocation16 + $0x60] sm:$0xff]   ;;  %v17394_v54 = vld [vmem:[#allocation16 + $0x58] sm:$0xff]  }
 0x6c4   : > { %v4683_v60 = vpack.c.bf16 %v4681_v42, %v4680_v0  ;;  %v17393_v27 = vld [vmem:[#allocation16 + $0x20] sm:$0xff]   ;;  %v17395_v31 = vld [vmem:[#allocation16 + $0x18] sm:$0xff]  }
 0x6c5   : > { %v21779_v52 = vld [vmem:[#allocation28_spill] sm:$0xff] }
 0x6c6   : > { %16110 = vmatmul.mubr.bf16.vlgmr.msra.gmra.mxu0 %v4683_v60  ;;  %4992 = vmatpush1.bf16.msra.mxu1 %v17371_v28  ;;  %v4898_v28 = vrot.slane %v4893_v32, %v21779_v52 }
 0x6c7   : > { %4993 = vmatprep.subr.bf16.mxu1 %v17376_v51  ;;  %15302 = vmatpush3.bf16.msra.mxu0 %v17387_v47 }
 0x6c8   : > { %15303 = vmatprep.subr.bf16.mxu0 %v17388_v43 }
 0x6ca   : > { %4994 = vmatpush1.bf16.msra.mxu1 %v17374_v13 }
 0x6cb   : > { %4995 = vmatprep.subr.bf16.mxu1 %v17379_v10  ;;  %15304 = vmatpush3.bf16.msra.mxu0 %v17389_v22 }
 0x6cc   : > { %15305 = vmatprep.subr.bf16.mxu0 %v17390_v24 }
 0x6ce   : > { %4996 = vmatpush1.bf16.msra.mxu1 %v17377_v20 }
 0x6cf   : > { %4997 = vmatprep.subr.bf16.mxu1 %v17382_v1  ;;  %15306 = vmatpush3.bf16.msra.mxu0 %v17391_v30 }
 0x6d0   : > { %15307 = vmatprep.subr.bf16.mxu0 %v17392_v46 }
 0x6d2   : > { %4998 = vmatpush1.bf16.msra.mxu1 %v17380_v34 }
 0x6d3   : > { %4999 = vmatprep.subr.bf16.mxu1 %v17385_v21  ;;  %15308 = vmatpush3.bf16.msra.mxu0 %v17393_v27 }
 0x6d4   : > { %15309 = vmatprep.subr.bf16.mxu0 %v17394_v54 }
 0x6d6   : > { %5000 = vmatpush1.bf16.msra.mxu1 %v17383_v26 }
 0x6d7   : > { %15310 = vmatpush3.bf16.msra.mxu0 %v17395_v31 }
 0x786   : > { %v16111_v25 = vpop.f32.mrf.mxu0 }
 0x787   : > { %v4798_v9 = vadd.f32 %v16111_v25, %v14776_v3 }
 0x788   : > { %v4789_v38 = vpop.f32.mrf.mxu0 }
 0x789   : > { %v4790_v41 = vadd.f32 %v14776_v3, %v4789_v38  ;;  %v4806_v57 = vadd.f32 %v4798_v9, %v21775_v6 }
 0x78a   : > { %v16112_v59 = vpop.f32.mrf.mxu0 }
 0x78b   : > { %v4804_v63 = vadd.f32 %v4790_v41, %v21774_v7  ;;  %v4801_v2 = vadd.f32 %v16112_v59, %v14776_v3 }
 0x78c   : > { %v4792_v50 = vpop.f32.mrf.mxu0 }
 0x78d   : > { %v4793_v5 = vadd.f32 %v14776_v3, %v4792_v50  ;;  %4810 = vadd.xlane.f32.xlu0 %v4804_v63  ;;  %v4807_v48 = vadd.f32 %v4801_v2, %v21777_v45 }
 0x78f   : > { %v4805_v62 = vadd.f32 %v4793_v5, %v21776_v29 }
 0x791   : > { %4812 = vadd.xlane.f32.xlu1 %v4805_v62  ;;  %4814 = vadd.xlane.f32.xlu0 %v4806_v57 }
 0x795   : > { %4816 = vadd.xlane.f32.xlu0 %v4807_v48 }
 0x816   : > { %v4811_v39 = vpop.xlane.xlu0 %4810 }
 0x817   : > { %v4819_v11 = vmul.f32 0.0078125, %v4811_v39 }
 0x819   : > { %v19574_v23 = vsub.f32 %v4804_v63, %v4819_v11 }
 0x81a   : > { %v4813_v19 = vpop.xlane.xlu1 %4812  ;;  %v4815_v49 = vpop.xlane.xlu0 %4814 }
 0x81b   : > { %v4820_v44 = vmul.f32 0.0078125, %v4813_v19  ;;  %v4821_v61 = vmul.f32 0.0078125, %v4815_v49  ;;  %v4827_v17 = vmul.f32 %v19574_v23, %v19574_v23 }
 0x81d   : > { %v19578_v53 = vsub.f32 %v4805_v62, %v4820_v44  ;;  %v19580_v37 = vsub.f32 %v4806_v57, %v4821_v61  ;;  %4831 = vadd.xlane.f32.xlu1 %v4827_v17  ;;  %v14785_v57 = vld [vmem:[%s21662_s7] ss:$0 sm:$0xff] }
 0x81e   : > { %v4817_v4 = vpop.xlane.xlu0 %4816 }
 0x81f   : > { %v4822_v16 = vmul.f32 0.0078125, %v4817_v4  ;;  %v4828_v58 = vmul.f32 %v19578_v53, %v19578_v53  ;;  %v4829_v36 = vmul.f32 %v19580_v37, %v19580_v37 }
 0x821   : > { %v19586_v40 = vsub.f32 %v4807_v48, %v4822_v16  ;;  %4833 = vadd.xlane.f32.xlu0 %v4828_v58  ;;  %4835 = vadd.xlane.f32.xlu1 %v4829_v36  ;;  %v14786_v48 = vld [vmem:[#allocation13] ss:$0 sm:$0xff]  ;;  %v17396_v16 = vld [vmem:[#allocation16 + $0x50] sm:$0xff]   ;;  %v17398_v58 = vld [vmem:[#allocation16 + $0x48] sm:$0xff]  }
 0x822   : > { %15311 = vmatprep.subr.bf16.mxu0 %v17396_v16  ;;  %v17399_v36 = vld [vmem:[#allocation16 + $0x8] sm:$0xff]  }
 0x823   : > { %v4830_v15 = vmul.f32 %v19586_v40, %v19586_v40 }
 0x825   : > { %4837 = vadd.xlane.f32.xlu0 %v4830_v15  ;;  %v17401_v15 = vld [vmem:[#allocation16] sm:$0xff]  }
 0x8a6   : > { %v4832_v42 = vpop.xlane.xlu1 %4831 }
 0x8a7   : > { %v4839_v0 = vmul.f32 0.0078125, %v4832_v42 }
 0x8a9   : > { %v4843_v60 = vadd.f32 1e-05, %v4839_v0 }
 0x8aa   : > { %v4836_v25 = vpop.xlane.xlu1 %4835  ;;  %v4834_v3 = vpop.xlane.xlu0 %4833 }
 0x8ab   : > { %17690 = vrsqrt.f32 %v4843_v60  ;;  %v4841_v38 = vmul.f32 0.0078125, %v4836_v25  ;;  %v4840_v41 = vmul.f32 0.0078125, %v4834_v3 }
 0x8ad   : > { %v4844_v59 = vadd.f32 1e-05, %v4840_v41  ;;  %v4845_v9 = vadd.f32 1e-05, %v4841_v38 }
 0x8ae   : > { %v4838_v7 = vpop.xlane.xlu0 %4837 }
 0x8af   : > { %v4842_v63 = vmul.f32 0.0078125, %v4838_v7  ;;  %17692 = vrsqrt.f32 %v4844_v59 }
 0x8b0   : > { %17694 = vrsqrt.f32 %v4845_v9 }
 0x8b1   : > { %v4846_v50 = vadd.f32 1e-05, %v4842_v63  ;;  %v14803_v63 = vld [vmem:[%s21667_s12] ss:$0 sm:$0xff] }
 0x8b3   : > { %17696 = vrsqrt.f32 %v4846_v50 }
 0x8b8   : > { %v17691_v5 = vpop.eup %17690 }
 0x8b9   : > { %v4851_v6 = vmul.f32 %v17691_v5, %v19574_v23 }
 0x8bb   : > { %v4861_v62 = vmul.f32 %v14785_v57, %v4851_v6 }
 0x8bc   : > { %v17693_v2 = vpop.eup %17692 }
 0x8bd   : > { %v4852_v29 = vmul.f32 %v17693_v2, %v19578_v53  ;;  %v17695_v45 = vpop.eup %17694  ;;  %v19596_v11 = vadd.f32 %v14786_v48, %v4861_v62 }
 0x8be   : > { %v4853_v23 = vmul.f32 %v17695_v45, %v19580_v37  ;;  %v17397_v37 = vld [vmem:[#allocation16 + $0x10] sm:$0xff]  }
 0x8bf   : > { %v4862_v12 = vmul.f32 %v14785_v57, %v4852_v29  ;;  %15312 = vmatpush3.bf16.msra.mxu0 %v17397_v37 }
 0x8c0   : > { %v17697_v56 = vpop.eup %17696  ;;  %v4863_v61 = vmul.f32 %v14785_v57, %v4853_v23  ;;  %15313 = vmatprep.subr.bf16.mxu0 %v17398_v58  ;;  %v17404_v58 = vld [vmem:[#allocation8 + $0x16c] ss:$12 sps:$4 sm:$0xff]  }
 0x8c1   : > { %v4854_v39 = vmul.f32 %v17697_v56, %v19586_v40  ;;  %v19598_v19 = vadd.f32 %v14786_v48, %v4862_v12  ;;  %v17400_v40 = vld [vmem:[#allocation16 + $0x40] sm:$0xff]   ;;  %5485 = vmatprep.subr.bf16.mxu1 %v17404_v58 }
 0x8c2   : > { %v19606_v53 = vadd.f32 %v14786_v48, %v4863_v61 }
 0x8c3   : > { %v4875_v49 = vpack.c.bf16 %v19598_v19, %v19596_v11  ;;  %v4864_v44 = vmul.f32 %v14785_v57, %v4854_v39  ;;  %15314 = vmatpush3.bf16.msra.mxu0 %v17399_v36 }
 0x8c4   : > { %15315 = vmatprep.subr.bf16.mxu0 %v17400_v40 }
 0x8c5   : > { %5018 = vmatmul.mubr.bf16.vlgmr.msra.gmra.mxu1 %v4875_v49  ;;  %v19604_v17 = vadd.f32 %v14786_v48, %v4864_v44 }
 0x8c6   : > { %5027 = vmatprep.mubr.bf16.mxu1 %v21773_v35 }
 0x8c7   : > { %v4876_v4 = vpack.c.bf16 %v19604_v17, %v19606_v53  ;;  %15316 = vmatpush3.bf16.msra.mxu0 %v17401_v15 }
 0x8cd   : > { %5028 = vmatmul.mubr.bf16.gmra.mxu1 %v4876_v4 }
 0x8ce   : > { %5517 = vmatprep.mubr.bf16.mxu1 %v21773_v35 }
 0x985   : > { %v5019_v14 = vpop.f32.mrf.mxu1 }
 0x986   : > { %v5020_v34 = vadd.f32 %v5019_v14, %v4898_v28 }
 0x987   : > { %v5021_v51 = vpop.f32.mrf.mxu1 }
 0x988   : > { %v5022_v10 = vadd.f32 %v5021_v51, %v4902_v18  ;;  %v5038_v22 = vmax.f32 %v5020_v34, 0.0 }
 0x989   : > { %v5023_v13 = vpop.f32.mrf.mxu1 }
 0x98a   : > { %v5024_v20 = vadd.f32 %v5023_v13, %v4898_v28  ;;  %v5039_v47 = vmax.f32 %v5022_v10, 0.0 }
 0x98b   : > { %v5025_v1 = vpop.f32.mrf.mxu1 }
 0x98c   : > { %v5026_v21 = vadd.f32 %v5025_v1, %v4902_v18  ;;  %v5040_v26 = vmax.f32 %v5024_v20, 0.0 }
 0x98d   : > { %v5029_v55 = vpop.f32.mrf.mxu1 }
 0x98e   : > { %v5041_v43 = vmax.f32 %v5026_v21, 0.0  ;;  %v5046_v46 = vpack.c.bf16 %v5040_v26, %v5038_v22  ;;  %v5030_v42 = vadd.f32 %v5029_v55, %v4898_v28  ;;  %v17407_v21 = vld [vmem:[#allocation8 + $0x154] ss:$12 sps:$4 sm:$0xff]   ;;  %v17405_v26 = vld [vmem:[#allocation8 + $0x150] ss:$12 sps:$4 sm:$0xff]  }
 0x98f   : > { %v5031_v24 = vpop.f32.mrf.mxu1  ;;  %v17410_v55 = vld [vmem:[#allocation8 + $0x13c] ss:$12 sps:$4 sm:$0xff]   ;;  %v17414_v22 = vld [vmem:[#allocation8 + $0x124] ss:$12 sps:$4 sm:$0xff]  }
 0x990   : > { %v5047_v30 = vpack.c.bf16 %v5041_v43, %v5039_v47  ;;  %v5032_v54 = vadd.f32 %v5031_v24, %v4902_v18  ;;  %v5042_v41 = vmax.f32 %v5030_v42, 0.0  ;;  %v17411_v47 = vld [vmem:[#allocation8 + $0x170] ss:$12 sps:$4 sm:$0xff]   ;;  %v17408_v43 = vld [vmem:[#allocation8 + $0x138] ss:$12 sps:$4 sm:$0xff]  }
 0x991   : > { %v5033_v27 = vpop.f32.mrf.mxu1  ;;  %16113 = vmatprep.subr.bf16.mxu0 %v17411_v47  ;;  %v17415_v24 = vld [vmem:[#allocation8 + $0x158] ss:$12 sps:$4 sm:$0xff]   ;;  %v17423_v42 = vld [vmem:[#allocation8 + $0x128] ss:$12 sps:$4 sm:$0xff]  }
 0x992   : > { %v5034_v31 = vadd.f32 %v5033_v27, %v4898_v28  ;;  %5217 = vmatprep.mubr.bf16.mxu0 %v5047_v30  ;;  %v5043_v3 = vmax.f32 %v5032_v54, 0.0  ;;  %v17412_v30 = vld [vmem:[#allocation8 + $0x120] ss:$12 sps:$4 sm:$0xff]   ;;  %v17416_v54 = vld [vmem:[#allocation8 + $0x108] ss:$12 sps:$4 sm:$0xff]  }
 0x993   : > { %v5035_v0 = vpop.f32.mrf.mxu1  ;;  %5218 = vmatmul.mubr.bf16.vlgmr.msra.gmra.mxu0 %v5046_v46  ;;  %v17418_v46 = vld [vmem:[#allocation8 + $0x10c] ss:$12 sps:$4 sm:$0xff]  }
 0x994   : > { %v5036_v60 = vadd.f32 %v5035_v0, %v4902_v18  ;;  %v5044_v25 = vmax.f32 %v5034_v31, 0.0  ;;  %16114 = vmatpush3.bf16.msra.mxu0 %v17411_v47  ;;  %v17419_v27 = vld [vmem:[#allocation8 + $0x140] ss:$12 sps:$4 sm:$0xff]   ;;  %v17420_v0 = vld [vmem:[#allocation8 + $0xf0] ss:$12 sps:$4 sm:$0xff]  }
 0x995   : > { %16115 = vmatprep.subr.bf16.mxu0 %v17415_v24  ;;  %v17422_v31 = vld [vmem:[#allocation8 + $0xf4] ss:$12 sps:$4 sm:$0xff]  }
 0x996   : > { %v5045_v38 = vmax.f32 %v5036_v60, 0.0  ;;  %v5048_v9 = vpack.c.bf16 %v5044_v25, %v5042_v41  ;;  %v17426_v60 = vld [vmem:[#allocation8 + $0xdc] ss:$12 sps:$4 sm:$0xff]   ;;  %v17431_v41 = vld [vmem:[#allocation8 + $0xf8] ss:$12 sps:$4 sm:$0xff]  }
 0x997   : > { %v17427_v25 = vld [vmem:[#allocation8 + $0x110] ss:$12 sps:$4 sm:$0xff]  }
 0x998   : > { %v5049_v59 = vpack.c.bf16 %v5045_v38, %v5043_v3  ;;  %16116 = vmatpush3.bf16.msra.mxu0 %v17415_v24  ;;  %v17424_v3 = vld [vmem:[#allocation8 + $0xd8] ss:$12 sps:$4 sm:$0xff]  }
 0x999   : > { %16117 = vmatprep.subr.bf16.mxu0 %v17419_v27  ;;  %v17430_v38 = vld [vmem:[#allocation8 + $0xc4] ss:$12 sps:$4 sm:$0xff]  }
 0x99a   : > { %5225 = vmatprep.mubr.bf16.mxu0 %v5049_v59  ;;  %v17428_v59 = vld [vmem:[#allocation8 + $0xc0] ss:$12 sps:$4 sm:$0xff]  }
 0x99b   : > { %5226 = vmatmul.mubr.bf16.gmra.mxu0 %v5048_v9  ;;  %v17432_v9 = vld [vmem:[#allocation8 + $0xe0] ss:$12 sps:$4 sm:$0xff]  }
 0x99c   : > { %16118 = vmatpush3.bf16.msra.mxu0 %v17419_v27 }
 0x99d   : > { %16119 = vmatprep.subr.bf16.mxu0 %v17423_v42 }
 0x9a0   : > { %16120 = vmatpush3.bf16.msra.mxu0 %v17423_v42 }
 0x9a1   : > { %16121 = vmatprep.subr.bf16.mxu0 %v17427_v25 }
 0x9a4   : > { %16122 = vmatpush3.bf16.msra.mxu0 %v17427_v25 }
 0x9a5   : > { %16123 = vmatprep.subr.bf16.mxu0 %v17431_v41 }
 0x9a8   : > { %16124 = vmatpush3.bf16.msra.mxu0 %v17431_v41 }
 0x9a9   : > { %16125 = vmatprep.subr.bf16.mxu0 %v17432_v9 }
 0x9ac   : > { %16126 = vmatpush3.bf16.msra.mxu0 %v17432_v9 }
 0xa53   : > { %v15317_v7 = vpop.f32.mrf.mxu0 }
 0xa55   : > { %v15318_v50 = vpop.f32.mrf.mxu0 }
 0xa56   : > { %v15319_v5 = vadd.f32 %v15318_v50, %v15317_v7  ;;  %v17433_v7 = vld [vmem:[#allocation8 + $0xc8] ss:$12 sps:$4 sm:$0xff]  }
 0xa57   : > { %v15320_v6 = vpop.f32.mrf.mxu0  ;;  %16127 = vmatprep.subr.bf16.mxu0 %v17433_v7 }
 0xa58   : > { %v5220_v57 = vadd.f32 %v15319_v5, %v14803_v63  ;;  %16128 = vmatpush3.bf16.msra.mxu0 %v17433_v7 }
 0xa59   : > { %v15321_v2 = vpop.f32.mrf.mxu0  ;;  %16151 = vmatprep.subr.bf16.mxu0 %v21764_v33 }
 0xa5a   : > { %v15322_v29 = vadd.f32 %v15321_v2, %v15320_v6  ;;  %v5234_v62 = vadd.f32 %v5220_v57, %v19596_v11  ;;  %v17402_v11 = vld [vmem:[#allocation8 + $0x168] ss:$12 sps:$4 sm:$0xff]  }
 0xa5b   : > { %v15323_v45 = vpop.f32.mrf.mxu0  ;;  %5486 = vmatpush1.bf16.msra.mxu1 %v17402_v11 }
 0xa5c   : > { %v5223_v48 = vadd.f32 %v15322_v29, %v14803_v63  ;;  %5240 = vadd.xlane.f32.xlu1 %v5234_v62  ;;  %5487 = vmatprep.subr.bf16.mxu1 %v17407_v21 }
 0xa5d   : > { %v15324_v56 = vpop.f32.mrf.mxu0 }
 0xa5e   : > { %v15325_v12 = vadd.f32 %v15324_v56, %v15323_v45  ;;  %v5235_v39 = vadd.f32 %v5223_v48, %v19598_v19 }
 0xa5f   : > { %v15326_v23 = vpop.f32.mrf.mxu0  ;;  %5488 = vmatpush1.bf16.msra.mxu1 %v17405_v26 }
 0xa60   : > { %v5228_v49 = vadd.f32 %v15325_v12, %v14803_v63  ;;  %5242 = vadd.xlane.f32.xlu0 %v5235_v39  ;;  %5489 = vmatprep.subr.bf16.mxu1 %v17410_v55 }
 0xa61   : > { %v15327_v44 = vpop.f32.mrf.mxu0 }
 0xa62   : > { %v15328_v61 = vadd.f32 %v15327_v44, %v15326_v23  ;;  %v5236_v4 = vadd.f32 %v5228_v49, %v19606_v53  ;;  %v14820_v49 = vld [vmem:[%s21668_s13] ss:$0 sm:$0xff] }
 0xa63   : > { %5490 = vmatpush1.bf16.msra.mxu1 %v17408_v43 }
 0xa64   : > { %v5231_v16 = vadd.f32 %v15328_v61, %v14803_v63  ;;  %5244 = vadd.xlane.f32.xlu1 %v5236_v4  ;;  %5491 = vmatprep.subr.bf16.mxu1 %v17414_v22 }
 0xa66   : > { %v5237_v37 = vadd.f32 %v5231_v16, %v19604_v17  ;;  %v14821_v16 = vld [vmem:[%s21669_s14] ss:$0 sm:$0xff] }
 0xa67   : > { %5492 = vmatpush1.bf16.msra.mxu1 %v17412_v30 }
 0xa68   : > { %5246 = vadd.xlane.f32.xlu0 %v5237_v37  ;;  %5493 = vmatprep.subr.bf16.mxu1 %v17418_v46 }
 0xa6b   : > { %5494 = vmatpush1.bf16.msra.mxu1 %v17416_v54 }
 0xa6c   : > { %5495 = vmatprep.subr.bf16.mxu1 %v17422_v31 }
 0xa6f   : > { %5496 = vmatpush1.bf16.msra.mxu1 %v17420_v0 }
 0xa70   : > { %5497 = vmatprep.subr.bf16.mxu1 %v17426_v60 }
 0xa73   : > { %5498 = vmatpush1.bf16.msra.mxu1 %v17424_v3 }
 0xa74   : > { %5499 = vmatprep.subr.bf16.mxu1 %v17430_v38 }
 0xa77   : > { %5500 = vmatpush1.bf16.msra.mxu1 %v17428_v59 }
 0xa78   : > { %16133 = vmatprep.subr.bf16.mxu1 %v21764_v33 }
 0xae5   : > { %v5241_v36 = vpop.xlane.xlu1 %5240 }
 0xae6   : > { %v5248_v40 = vmul.f32 0.0078125, %v5241_v36 }
 0xae8   : > { %v19623_v15 = vsub.f32 %v5234_v62, %v5248_v40 }
 0xae9   : > { %v5243_v19 = vpop.xlane.xlu0 %5242 }
 0xaea   : > { %v5249_v32 = vmul.f32 0.0078125, %v5243_v19  ;;  %v5256_v14 = vmul.f32 %v19623_v15, %v19623_v15 }
 0xaec   : > { %v19627_v18 = vsub.f32 %v5235_v39, %v5249_v32  ;;  %5260 = vadd.xlane.f32.xlu1 %v5256_v14 }
 0xaed   : > { %v5245_v53 = vpop.xlane.xlu1 %5244 }
 0xaee   : > { %v5250_v28 = vmul.f32 0.0078125, %v5245_v53  ;;  %v5257_v17 = vmul.f32 %v19627_v18, %v19627_v18 }
 0xaf0   : > { %v19631_v51 = vsub.f32 %v5236_v4, %v5250_v28  ;;  %5262 = vadd.xlane.f32.xlu0 %v5257_v17 }
 0xaf1   : > { %v5247_v13 = vpop.xlane.xlu0 %5246 }
 0xaf2   : > { %v5251_v10 = vmul.f32 0.0078125, %v5247_v13  ;;  %v5258_v20 = vmul.f32 %v19631_v51, %v19631_v51 }
 0xaf4   : > { %v19635_v34 = vsub.f32 %v5237_v37, %v5251_v10  ;;  %5264 = vadd.xlane.f32.xlu1 %v5258_v20 }
 0xaf6   : > { %v5259_v1 = vmul.f32 %v19635_v34, %v19635_v34 }
 0xaf8   : > { %5266 = vadd.xlane.f32.xlu0 %v5259_v1 }
 0xb75   : > { %v5261_v63 = vpop.xlane.xlu1 %5260 }
 0xb76   : > { %v5268_v50 = vmul.f32 0.0078125, %v5261_v63 }
 0xb78   : > { %v5272_v5 = vadd.f32 1e-05, %v5268_v50 }
 0xb79   : > { %v5263_v6 = vpop.xlane.xlu0 %5262 }
 0xb7a   : > { %17698 = vrsqrt.f32 %v5272_v5  ;;  %v5269_v57 = vmul.f32 0.0078125, %v5263_v6 }
 0xb7c   : > { %v5273_v2 = vadd.f32 1e-05, %v5269_v57 }
 0xb7d   : > { %v5265_v29 = vpop.xlane.xlu1 %5264 }
 0xb7e   : > { %17700 = vrsqrt.f32 %v5273_v2  ;;  %v5270_v62 = vmul.f32 0.0078125, %v5265_v29  ;;  %v21784_v29 = vld [vmem:[#allocation30_spill] sm:$0xff] }
 0xb80   : > { %v5274_v45 = vadd.f32 1e-05, %v5270_v62 }
 0xb81   : > { %v5267_v48 = vpop.xlane.xlu0 %5266 }
 0xb82   : > { %17702 = vrsqrt.f32 %v5274_v45  ;;  %v5271_v56 = vmul.f32 0.0078125, %v5267_v48 }
 0xb84   : > { %v5275_v12 = vadd.f32 1e-05, %v5271_v56 }
 0xb86   : > { %17704 = vrsqrt.f32 %v5275_v12 }
 0xb87   : > { %v17699_v39 = vpop.eup %17698 }
 0xb88   : > { %v5280_v23 = vmul.f32 %v17699_v39, %v19623_v15 }
 0xb8a   : > { %v5290_v61 = vmul.f32 %v14820_v49, %v5280_v23 }
 0xb8b   : > { %v17701_v44 = vpop.eup %17700 }
 0xb8c   : > { %v5281_v4 = vmul.f32 %v17701_v44, %v19627_v18  ;;  %v19649_v58 = vadd.f32 %v14821_v16, %v5290_v61 }
 0xb8e   : > { %v5291_v37 = vmul.f32 %v14820_v49, %v5281_v4  ;;  %21780 = vst [vmem:[#allocation31_spill] sm:$0xff] %v19649_v58 }
 0xb8f   : > { %v17703_v11 = vpop.eup %17702 }
 0xb90   : > { %v19651_v36 = vadd.f32 %v14821_v16, %v5291_v37  ;;  %v5282_v40 = vmul.f32 %v17703_v11, %v19631_v51  ;;  %v19668_v51 = vld [vmem:[#allocation10 + $0x3] sm:$0x7] }
 0xb91   : > { %v5345_v13 = vrot.slane %v19668_v51, %v21779_v52  ;;  %v5349_v10 = vrot.slane %v19668_v51, %v21778_v8  ;;  %v5353_v62 = vrot.slane %v19668_v51, %v21784_v29 }
 0xb92   : > { %21781 = vst [vmem:[#allocation33_spill] sm:$0xff] %v19651_v36  ;;  %v5304_v15 = vpack.c.bf16 %v19651_v36, %v19649_v58  ;;  %v5292_v14 = vmul.f32 %v14820_v49, %v5282_v40 }
 0xb93   : > { %v17705_v19 = vpop.eup %17704 }
 0xb94   : > { %5518 = vmatmul.mubr.bf16.vlgmr.msra.gmra.mxu1 %v5304_v15  ;;  %16129 = vmatprep.mubr.bf16.mxu0 %v5304_v15  ;;  %v5283_v32 = vmul.f32 %v17705_v19, %v19635_v34  ;;  %v19658_v53 = vadd.f32 %v14821_v16, %v5292_v14 }
 0xb95   : > { %5527 = vmatprep.mubr.bf16.mxu1 %v21773_v35 }
 0xb96   : > { %v5293_v18 = vmul.f32 %v14820_v49, %v5283_v32  ;;  %21782 = vst [vmem:[#allocation32_spill] sm:$0xff] %v19658_v53 }
 0xb98   : > { %v19660_v28 = vadd.f32 %v14821_v16, %v5293_v18 }
 0xb9a   : > { %21783 = vst [vmem:[#allocation35_spill] sm:$0xff] %v19660_v28  ;;  %v5305_v17 = vpack.c.bf16 %v19660_v28, %v19658_v53 }
 0xb9c   : > { %5528 = vmatmul.mubr.bf16.gmra.mxu1 %v5305_v17  ;;  %16130 = vmatmul.mubr.bf16.vlgmr.msra.gmra.mxu0 %v5305_v17 }
 0xb9d   : > { %16135 = vmatprep.mubr.msk.bf16.mxu1 %vm18333_vm2, %v21764_v33  ;;  %16153 = vmatprep.mubr.msk.bf16.mxu0 %vm18333_vm2, %v21764_v33 }
 0xc54   : > { %v5519_v20 = vpop.f32.mrf.mxu1 }
 0xc55   : > { %v5520_v1 = vadd.f32 %v5519_v20, %v5345_v13 }
 0xc56   : > { %v5521_v34 = vpop.f32.mrf.mxu1 }
 0xc57   : > { %v5522_v21 = vadd.f32 %v5521_v34, %v5349_v10 }
 0xc58   : > { %v5523_v26 = vpop.f32.mrf.mxu1 }
 0xc59   : > { %v19674_v55 = vpack.c.bf16 %v5522_v21, %v5520_v1  ;;  %v5524_v43 = vadd.f32 %v5523_v26, %v5345_v13 }
 0xc5a   : > { %v5525_v47 = vpop.f32.mrf.mxu1 }
 0xc5b   : > { %v5526_v22 = vadd.f32 %v5525_v47, %v5349_v10  ;;  %5619 = vrot.lane.b32.xlu1 %v19674_v55, %s18334_s4  ;;  %v5675_v24 = vrot.slane %v19674_v55, 4 }
 0xc5c   : > { %v5529_v30 = vpop.f32.mrf.mxu1  ;;  %v16131_v6 = vpop.f32.mrf.mxu0 }
 0xc5d   : > { %v19679_v46 = vpack.c.bf16 %v5526_v22, %v5524_v43  ;;  %v5767_v27 = vsel %vm1174_vm3, %v5675_v24, 0  ;;  %v5530_v31 = vadd.f32 %v5529_v30, %v5345_v13  ;;  %v5581_v12 = vadd.f32 %v16131_v6, %v5353_v62 }
 0xc5e   : > { %v5531_v54 = vpop.f32.mrf.mxu1  ;;  %16134 = vmatpush3.bf16.xpose.msra.mxu1 %v5767_v27  ;;  %v5572_v57 = vpop.f32.mrf.mxu0 }
 0xc5f   : > { %v5532_v42 = vadd.f32 %v5531_v54, %v5349_v10  ;;  %5621 = vrot.lane.b32.xlu0 %v19679_v46, %s18334_s4  ;;  %16139 = vmatprep.subr.bf16.mxu1 %v21764_v33  ;;  %v5676_v25 = vrot.slane %v19679_v46, 4  ;;  %v5573_v56 = vadd.f32 %v5572_v57, %v5353_v62  ;;  %v19758_v23 = vpack.c.bf16 %v5581_v12, %v5581_v12 }
 0xc60   : > { %v5533_v0 = vpop.f32.mrf.mxu1  ;;  %v16132_v2 = vpop.f32.mrf.mxu0 }
 0xc61   : > { %v15136_v60 = vpack.c.bf16 %v5532_v42, %v5530_v31  ;;  %v5534_v38 = vadd.f32 %v5533_v0, %v5345_v13  ;;  %v5813_v9 = vsel %vm1174_vm3, %v5676_v25, 0  ;;  %v5584_v45 = vadd.f32 %v16132_v2, %v5353_v62 }
 0xc62   : > { %v5535_v3 = vpop.f32.mrf.mxu1  ;;  %v19752_v39 = vpack.c.bf16 %v5573_v56, %v5573_v56  ;;  %v5575_v49 = vpop.f32.mrf.mxu0 }
 0xc63   : > { %v5536_v41 = vadd.f32 %v5535_v3, %v5349_v10  ;;  %5627 = vrot.lane.b32.xlu0 %v19674_v55, %s18335_s25  ;;  %5623 = vrot.lane.b32.xlu1 %v15136_v60, %s18334_s4  ;;  %v5677_v50 = vrot.slane %v15136_v60, 4  ;;  %v19743_v48 = vpack.c.bf16 %v5584_v45, %v5584_v45  ;;  %v5576_v44 = vadd.f32 %v5575_v49, %v5353_v62 }
 0xc65   : > { %v15138_v59 = vpack.c.bf16 %v5536_v41, %v5534_v38  ;;  %16136 = vmatmul.mubr.msk.bf16.vlgmr.msra.gmra.mxu1 %vm1174_vm3, %v19674_v55  ;;  %v5859_v5 = vsel %vm1174_vm3, %v5677_v50, 0  ;;  %v19768_v61 = vpack.c.bf16 %v5576_v44, %v5576_v44 }
 0xc66   : > { %16140 = vmatpush3.bf16.xpose.msra.mxu1 %v5813_v9  ;;  %16141 = vmatprep.mubr.msk.bf16.mxu1 %vm18333_vm2, %v21764_v33 }
 0xc67   : > { %5631 = vrot.lane.b32.xlu0 %v15136_v60, %s18335_s25  ;;  %5625 = vrot.lane.b32.xlu1 %v15138_v59, %s18334_s4  ;;  %v5678_v7 = vrot.slane %v15138_v59, 4 }
 0xc68   : > { %16145 = vmatprep.subr.bf16.mxu1 %v21764_v33 }
 0xc69   : > { %v5905_v63 = vsel %vm1174_vm3, %v5678_v7, 0 }
 0xc6a   : > { %16152 = vmatpush3.bf16.xpose.msra.mxu0 %v5905_v63 }
 0xc6b   : > { %5635 = vrot.lane.b32.xlu0 %v19674_v55, %s18336_s30  ;;  %5629 = vrot.lane.b32.xlu1 %v19679_v46, %s18335_s25 }
 0xc6c   : > { %16163 = vmatprep.subr.bf16.mxu0 %v21764_v33 }
 0xc6d   : > { %16142 = vmatmul.mubr.msk.bf16.vlgmr.msra.gmra.mxu1 %vm1174_vm3, %v19679_v46 }
 0xc6e   : > { %16146 = vmatpush3.bf16.xpose.msra.mxu1 %v5859_v5  ;;  %16147 = vmatprep.mubr.msk.bf16.mxu1 %vm18333_vm2, %v21764_v33 }
 0xc6f   : > { %5639 = vrot.lane.b32.xlu0 %v15136_v60, %s18336_s30  ;;  %5633 = vrot.lane.b32.xlu1 %v15138_v59, %s18335_s25 }
 0xc70   : > { %16157 = vmatprep.subr.bf16.mxu1 %v21764_v33 }
 0xc71   : > { %16154 = vmatmul.mubr.msk.bf16.vlgmr.msra.gmra.mxu0 %vm1174_vm3, %v15138_v59 }
 0xc72   : > { %16165 = vmatprep.mubr.msk.bf16.mxu0 %vm18333_vm2, %v21764_v33 }
 0xc73   : > { %5643 = vrot.lane.b32.xlu0 %v19674_v55, %s18337_s9  ;;  %5637 = vrot.lane.b32.xlu1 %v19679_v46, %s18336_s30 }
 0xc75   : > { %16148 = vmatmul.mubr.msk.bf16.vlgmr.msra.gmra.mxu1 %vm1174_vm3, %v15136_v60 }
 0xc76   : > { %16159 = vmatprep.mubr.msk.bf16.mxu1 %vm18333_vm2, %v21764_v33 }
 0xc77   : > { %5647 = vrot.lane.b32.xlu0 %v15136_v60, %s18337_s9  ;;  %5641 = vrot.lane.b32.xlu1 %v15138_v59, %s18336_s30 }
 0xc7b   : > { %5651 = vrot.lane.b32.xlu0 %v19674_v55, %s18338_s17  ;;  %5645 = vrot.lane.b32.xlu1 %v19679_v46, %s18337_s9 }
 0xc7f   : > { %5655 = vrot.lane.b32.xlu0 %v15136_v60, %s18338_s17  ;;  %5649 = vrot.lane.b32.xlu1 %v15138_v59, %s18337_s9 }
 0xc83   : > { %5659 = vrot.lane.b32.xlu0 %v19674_v55, %s18339_s28  ;;  %5653 = vrot.lane.b32.xlu1 %v19679_v46, %s18338_s17 }
 0xc87   : > { %5663 = vrot.lane.b32.xlu0 %v15136_v60, %s18339_s28  ;;  %5657 = vrot.lane.b32.xlu1 %v15138_v59, %s18338_s17 }
 0xc8b   : > { %5667 = vrot.lane.b32.xlu0 %v19674_v55, %s18340_s29  ;;  %5661 = vrot.lane.b32.xlu1 %v19679_v46, %s18339_s28 }
 0xc8f   : > { %5671 = vrot.lane.b32.xlu0 %v15136_v60, %s18340_s29  ;;  %5665 = vrot.lane.b32.xlu1 %v15138_v59, %s18339_s28 }
 0xc93   : > { %5713 = vrot.lane.b32.xlu0 %v19743_v48, %s18334_s4  ;;  %5669 = vrot.lane.b32.xlu1 %v19679_v46, %s18340_s29 }
 0xc97   : > { %5721 = vrot.lane.b32.xlu0 %v19743_v48, %s18335_s25  ;;  %5673 = vrot.lane.b32.xlu1 %v15138_v59, %s18340_s29 }
 0xc9b   : > { %5729 = vrot.lane.b32.xlu0 %v19743_v48, %s18336_s30  ;;  %5707 = vrot.lane.b32.xlu1 %v19752_v39, %s18334_s4 }
 0xc9f   : > { %5737 = vrot.lane.b32.xlu0 %v19743_v48, %s18337_s9  ;;  %5711 = vrot.lane.b32.xlu1 %v19758_v23, %s18334_s4 }
 0xca3   : > { %5745 = vrot.lane.b32.xlu0 %v19743_v48, %s18338_s17  ;;  %5715 = vrot.lane.b32.xlu1 %v19752_v39, %s18335_s25 }
 0xca7   : > { %5709 = vrot.lane.b32.xlu0 %v19768_v61, %s18334_s4  ;;  %5719 = vrot.lane.b32.xlu1 %v19758_v23, %s18335_s25 }
 0xcab   : > { %5717 = vrot.lane.b32.xlu0 %v19768_v61, %s18335_s25  ;;  %5723 = vrot.lane.b32.xlu1 %v19752_v39, %s18336_s30 }
 0xcaf   : > { %5725 = vrot.lane.b32.xlu0 %v19768_v61, %s18336_s30  ;;  %5727 = vrot.lane.b32.xlu1 %v19758_v23, %s18336_s30 }
 0xcb3   : > { %5733 = vrot.lane.b32.xlu0 %v19768_v61, %s18337_s9  ;;  %5731 = vrot.lane.b32.xlu1 %v19752_v39, %s18337_s9 }
 0xcb7   : > { %5741 = vrot.lane.b32.xlu0 %v19768_v61, %s18338_s17  ;;  %5735 = vrot.lane.b32.xlu1 %v19758_v23, %s18337_s9 }
 0xcbb   : > { %5739 = vrot.lane.b32.xlu1 %v19752_v39, %s18338_s17 }
 0xcbf   : > { %5743 = vrot.lane.b32.xlu1 %v19758_v23, %s18338_s17 }
 0xcc3   : > { %5747 = vrot.lane.b32.xlu1 %v19752_v39, %s18339_s28 }
 0xccd   : > { %v5620_v4 = vpop.permute.xlu1 %5619 }
 0xcce   : > { %v5679_v16 = vrot.slane %v5620_v4, 4 }
 0xcd0   : > { %v5951_v37 = vsel %vm1174_vm3, %v5679_v16, 0 }
 0xcd1   : > { %v5622_v11 = vpop.permute.xlu0 %5621  ;;  %16158 = vmatpush3.bf16.xpose.msra.mxu1 %v5951_v37 }
 0xcd2   : > { %v5680_v40 = vrot.slane %v5622_v11, 4  ;;  %16169 = vmatprep.subr.bf16.mxu1 %v21764_v33 }
 0xcd4   : > { %v5997_v15 = vsel %vm1174_vm3, %v5680_v40, 0 }
 0xcd5   : > { %16164 = vmatpush3.bf16.xpose.msra.mxu0 %v5997_v15  ;;  %v5624_v19 = vpop.permute.xlu1 %5623  ;;  %v5628_v18 = vpop.permute.xlu0 %5627 }
 0xcd6   : > { %v5681_v32 = vrot.slane %v5624_v19, 4  ;;  %16175 = vmatprep.subr.bf16.mxu0 %v21764_v33  ;;  %v5683_v13 = vrot.slane %v5628_v18, 4 }
 0xcd8   : > { %16160 = vmatmul.mubr.msk.bf16.vlgmr.msra.gmra.mxu1 %vm1174_vm3, %v5620_v4  ;;  %v6043_v14 = vsel %vm1174_vm3, %v5681_v32, 0  ;;  %v6135_v1 = vsel %vm1174_vm3, %v5683_v13, 0 }
 0xcd9   : > { %16170 = vmatpush3.bf16.xpose.msra.mxu1 %v6043_v14  ;;  %v5626_v17 = vpop.permute.xlu1 %5625  ;;  %16171 = vmatprep.mubr.msk.bf16.mxu1 %vm18333_vm2, %v21764_v33  ;;  %v5632_v21 = vpop.permute.xlu0 %5631 }
 0xcda   : > { %v5682_v51 = vrot.slane %v5626_v17, 4  ;;  %16181 = vmatprep.subr.bf16.mxu1 %v21764_v33  ;;  %v5685_v26 = vrot.slane %v5632_v21, 4 }
 0xcdc   : > { %16166 = vmatmul.mubr.msk.bf16.vlgmr.msra.gmra.mxu0 %vm1174_vm3, %v5622_v11  ;;  %v6089_v10 = vsel %vm1174_vm3, %v5682_v51, 0  ;;  %v6227_v22 = vsel %vm1174_vm3, %v5685_v26, 0 }
 0xcdd   : > { %16176 = vmatpush3.bf16.xpose.msra.mxu0 %v6089_v10  ;;  %v5630_v20 = vpop.permute.xlu1 %5629  ;;  %16177 = vmatprep.mubr.msk.bf16.mxu0 %vm18333_vm2, %v21764_v33  ;;  %v5636_v24 = vpop.permute.xlu0 %5635 }
 0xcde   : > { %16187 = vmatprep.subr.bf16.mxu0 %v21764_v33  ;;  %v5684_v34 = vrot.slane %v5630_v20, 4  ;;  %v5687_v30 = vrot.slane %v5636_v24, 4 }
 0xce0   : > { %16172 = vmatmul.mubr.msk.bf16.vlgmr.msra.gmra.mxu1 %vm1174_vm3, %v5624_v19  ;;  %v6181_v55 = vsel %vm1174_vm3, %v5684_v34, 0  ;;  %v6319_v31 = vsel %vm1174_vm3, %v5687_v30, 0 }
 0xce1   : > { %16182 = vmatpush3.bf16.xpose.msra.mxu1 %v6135_v1  ;;  %16183 = vmatprep.mubr.msk.bf16.mxu1 %vm18333_vm2, %v21764_v33  ;;  %v5634_v47 = vpop.permute.xlu1 %5633  ;;  %v5640_v42 = vpop.permute.xlu0 %5639 }
 0xce2   : > { %16193 = vmatprep.subr.bf16.mxu1 %v21764_v33  ;;  %v5686_v43 = vrot.slane %v5634_v47, 4  ;;  %v5689_v0 = vrot.slane %v5640_v42, 4 }
 0xce4   : > { %16178 = vmatmul.mubr.msk.bf16.vlgmr.msra.gmra.mxu0 %vm1174_vm3, %v5626_v17  ;;  %v6273_v46 = vsel %vm1174_vm3, %v5686_v43, 0  ;;  %v6411_v38 = vsel %vm1174_vm3, %v5689_v0, 0 }
 0xce5   : > { %16188 = vmatpush3.bf16.xpose.msra.mxu0 %v6181_v55  ;;  %16189 = vmatprep.mubr.msk.bf16.mxu0 %vm18333_vm2, %v21764_v33  ;;  %v5638_v27 = vpop.permute.xlu1 %5637  ;;  %v5644_v41 = vpop.permute.xlu0 %5643 }
 0xce6   : > { %16199 = vmatprep.subr.bf16.mxu0 %v21764_v33  ;;  %v5688_v54 = vrot.slane %v5638_v27, 4  ;;  %v5691_v59 = vrot.slane %v5644_v41, 4 }
 0xce8   : > { %16184 = vmatmul.mubr.msk.bf16.vlgmr.msra.gmra.mxu1 %vm1174_vm3, %v5628_v18  ;;  %v6365_v60 = vsel %vm1174_vm3, %v5688_v54, 0  ;;  %v6503_v50 = vsel %vm1174_vm3, %v5691_v59, 0 }
 0xce9   : > { %16194 = vmatpush3.bf16.xpose.msra.mxu1 %v6227_v22  ;;  %16195 = vmatprep.mubr.msk.bf16.mxu1 %vm18333_vm2, %v21764_v33  ;;  %v5642_v25 = vpop.permute.xlu1 %5641  ;;  %v5648_v5 = vpop.permute.xlu0 %5647 }
 0xcea   : > { %16205 = vmatprep.subr.bf16.mxu1 %v21764_v33  ;;  %v5690_v3 = vrot.slane %v5642_v25, 4  ;;  %v5693_v6 = vrot.slane %v5648_v5, 4 }
 0xcec   : > { %16190 = vmatmul.mubr.msk.bf16.vlgmr.msra.gmra.mxu0 %vm1174_vm3, %v5630_v20  ;;  %v6457_v9 = vsel %vm1174_vm3, %v5690_v3, 0  ;;  %v6595_v45 = vsel %vm1174_vm3, %v5693_v6, 0 }
 0xced   : > { %16200 = vmatpush3.bf16.xpose.msra.mxu0 %v6273_v46  ;;  %16201 = vmatprep.mubr.msk.bf16.mxu0 %vm18333_vm2, %v21764_v33  ;;  %v5646_v7 = vpop.permute.xlu1 %5645  ;;  %v5652_v56 = vpop.permute.xlu0 %5651 }
 0xcee   : > { %16211 = vmatprep.subr.bf16.mxu0 %v21764_v33  ;;  %v5692_v63 = vrot.slane %v5646_v7, 4  ;;  %v5695_v12 = vrot.slane %v5652_v56, 4 }
 0xcf0   : > { %16196 = vmatmul.mubr.msk.bf16.vlgmr.msra.gmra.mxu1 %vm1174_vm3, %v5632_v21  ;;  %v6549_v57 = vsel %vm1174_vm3, %v5692_v63, 0  ;;  %v6687_v16 = vsel %vm1174_vm3, %v5695_v12, 0 }
 0xcf1   : > { %16206 = vmatpush3.bf16.xpose.msra.mxu1 %v6319_v31  ;;  %16207 = vmatprep.mubr.msk.bf16.mxu1 %vm18333_vm2, %v21764_v33  ;;  %v5650_v2 = vpop.permute.xlu1 %5649  ;;  %v5656_v37 = vpop.permute.xlu0 %5655 }
 0xcf2   : > { %16217 = vmatprep.subr.bf16.mxu1 %v21764_v33  ;;  %v5694_v62 = vrot.slane %v5650_v2, 4  ;;  %v5697_v11 = vrot.slane %v5656_v37, 4 }
 0xcf4   : > { %16202 = vmatmul.mubr.msk.bf16.vlgmr.msra.gmra.mxu0 %vm1174_vm3, %v5634_v47  ;;  %v6641_v49 = vsel %vm1174_vm3, %v5694_v62, 0  ;;  %v6779_v32 = vsel %vm1174_vm3, %v5697_v11, 0 }
 0xcf5   : > { %16212 = vmatpush3.bf16.xpose.msra.mxu0 %v6365_v60  ;;  %16213 = vmatprep.mubr.msk.bf16.mxu0 %vm18333_vm2, %v21764_v33  ;;  %v5654_v44 = vpop.permute.xlu1 %5653  ;;  %v5660_v14 = vpop.permute.xlu0 %5659 }
 0xcf6   : > { %16223 = vmatprep.subr.bf16.mxu0 %v21764_v33  ;;  %v5696_v4 = vrot.slane %v5654_v44, 4  ;;  %v5699_v18 = vrot.slane %v5660_v14, 4 }
 0xcf8   : > { %16208 = vmatmul.mubr.msk.bf16.vlgmr.msra.gmra.mxu1 %vm1174_vm3, %v5636_v24  ;;  %v6733_v40 = vsel %vm1174_vm3, %v5696_v4, 0  ;;  %v6871_v10 = vsel %vm1174_vm3, %v5699_v18, 0 }
 0xcf9   : > { %16218 = vmatpush3.bf16.xpose.msra.mxu1 %v6411_v38  ;;  %16219 = vmatprep.mubr.msk.bf16.mxu1 %vm18333_vm2, %v21764_v33  ;;  %v5658_v15 = vpop.permute.xlu1 %5657  ;;  %v5664_v20 = vpop.permute.xlu0 %5663 }
 0xcfa   : > { %16229 = vmatprep.subr.bf16.mxu1 %v21764_v33  ;;  %v5698_v19 = vrot.slane %v5658_v15, 4  ;;  %v5701_v34 = vrot.slane %v5664_v20, 4 }
 0xcfc   : > { %16214 = vmatmul.mubr.msk.bf16.vlgmr.msra.gmra.mxu0 %vm1174_vm3, %v5638_v27  ;;  %v6825_v17 = vsel %vm1174_vm3, %v5698_v19, 0  ;;  %v6963_v24 = vsel %vm1174_vm3, %v5701_v34, 0  ;;  %v7655_v19 = vsel %vm3067_vm5, %v19752_v39, 0 }
 0xcfd   : > { %16224 = vmatpush3.bf16.xpose.msra.mxu0 %v6457_v9  ;;  %16225 = vmatprep.mubr.msk.bf16.mxu0 %vm18333_vm2, %v21764_v33  ;;  %v5662_v51 = vpop.permute.xlu1 %5661  ;;  %v5668_v30 = vpop.permute.xlu0 %5667 }
 0xcfe   : > { %16235 = vmatprep.subr.bf16.mxu0 %v21764_v33  ;;  %v5700_v13 = vrot.slane %v5662_v51, 4  ;;  %v5703_v54 = vrot.slane %v5668_v30, 4 }
 0xd00   : > { %16220 = vmatmul.mubr.msk.bf16.vlgmr.msra.gmra.mxu1 %vm1174_vm3, %v5640_v42  ;;  %v6917_v1 = vsel %vm1174_vm3, %v5700_v13, 0  ;;  %v7055_v59 = vsel %vm1174_vm3, %v5703_v54, 0 }
 0xd01   : > { %16230 = vmatpush3.bf16.xpose.msra.mxu1 %v6503_v50  ;;  %16231 = vmatprep.mubr.msk.bf16.mxu1 %vm18333_vm2, %v21764_v33  ;;  %v5666_v21 = vpop.permute.xlu1 %5665  ;;  %v5672_v3 = vpop.permute.xlu0 %5671 }
 0xd02   : > { %16241 = vmatprep.subr.bf16.mxu1 %v21764_v33  ;;  %v5702_v43 = vrot.slane %v5666_v21, 4  ;;  %v5705_v6 = vrot.slane %v5672_v3, 4 }
 0xd04   : > { %16226 = vmatmul.mubr.msk.bf16.vlgmr.msra.gmra.mxu0 %vm1174_vm3, %v5642_v25  ;;  %v7009_v31 = vsel %vm1174_vm3, %v5702_v43, 0 }
 0xd05   : > { %16236 = vmatpush3.bf16.xpose.msra.mxu0 %v6549_v57  ;;  %16237 = vmatprep.mubr.msk.bf16.mxu0 %vm18333_vm2, %v21764_v33  ;;  %v5670_v42 = vpop.permute.xlu1 %5669 }
 0xd06   : > { %16247 = vmatprep.subr.bf16.mxu0 %v21764_v33  ;;  %v5704_v38 = vrot.slane %v5670_v42, 4 }
 0xd08   : > { %16232 = vmatmul.mubr.msk.bf16.vlgmr.msra.gmra.mxu1 %vm1174_vm3, %v5644_v41  ;;  %v7101_v62 = vsel %vm1174_vm3, %v5704_v38, 0 }
 0xd09   : > { %16242 = vmatpush3.bf16.xpose.msra.mxu1 %v6595_v45  ;;  %16243 = vmatprep.mubr.msk.bf16.mxu1 %vm18333_vm2, %v21764_v33  ;;  %v5674_v57 = vpop.permute.xlu1 %5673 }
 0xd0a   : > { %16253 = vmatprep.subr.bf16.mxu1 %v21764_v33  ;;  %v5706_v4 = vrot.slane %v5674_v57, 4 }
 0xd0c   : > { %16238 = vmatmul.mubr.msk.bf16.vlgmr.msra.gmra.mxu0 %vm1174_vm3, %v5646_v7 }
 0xd0d   : > { %16248 = vmatpush3.bf16.xpose.msra.mxu0 %v6641_v49  ;;  %16249 = vmatprep.mubr.msk.bf16.mxu0 %vm18333_vm2, %v21764_v33  ;;  %v19960_v18 = vpop.permute.xlu1 %5707 }
 0xd0e   : > { %16259 = vmatprep.subr.bf16.mxu0 %v21764_v33 }
 0xd10   : > { %16244 = vmatmul.mubr.msk.bf16.vlgmr.msra.gmra.mxu1 %vm1174_vm3, %v5648_v5 }
 0xd11   : > { %16254 = vmatpush3.bf16.xpose.msra.mxu1 %v6687_v16  ;;  %16255 = vmatprep.mubr.msk.bf16.mxu1 %vm18333_vm2, %v21764_v33 }
 0xd12   : > { %16265 = vmatprep.subr.bf16.mxu1 %v21764_v33 }
 0xd14   : > { %16250 = vmatmul.mubr.msk.bf16.vlgmr.msra.gmra.mxu0 %vm1174_vm3, %v5650_v2 }
 0xd15   : > { %16260 = vmatpush3.bf16.xpose.msra.mxu0 %v6733_v40  ;;  %16261 = vmatprep.mubr.msk.bf16.mxu0 %vm18333_vm2, %v21764_v33 }
 0xd16   : > { %16271 = vmatprep.subr.bf16.mxu0 %v21764_v33 }
 0xd18   : > { %16256 = vmatmul.mubr.msk.bf16.vlgmr.msra.gmra.mxu1 %vm1174_vm3, %v5652_v56 }
 0xd19   : > { %16266 = vmatpush3.bf16.xpose.msra.mxu1 %v6779_v32  ;;  %16267 = vmatprep.mubr.msk.bf16.mxu1 %vm18333_vm2, %v21764_v33  ;;  %v7701_v32 = vsel %vm3067_vm5, %v19768_v61, 0 }
 0xd1a   : > { %16277 = vmatprep.subr.bf16.mxu1 %v21764_v33 }
 0xd1c   : > { %16262 = vmatmul.mubr.msk.bf16.vlgmr.msra.gmra.mxu0 %vm1174_vm3, %v5654_v44 }
 0xd1d   : > { %16272 = vmatpush3.bf16.xpose.msra.mxu0 %v6825_v17  ;;  %16273 = vmatprep.mubr.msk.bf16.mxu0 %vm18333_vm2, %v21764_v33 }
 0xd1e   : > { %16283 = vmatprep.subr.bf16.mxu0 %v21764_v33 }
 0xd20   : > { %16268 = vmatmul.mubr.msk.bf16.vlgmr.msra.gmra.mxu1 %vm1174_vm3, %v5656_v37  ;;  %v7147_v37 = vsel %vm1174_vm3, %v5705_v6, 0 }
 0xd21   : > { %16278 = vmatpush3.bf16.xpose.msra.mxu1 %v6871_v10  ;;  %16279 = vmatprep.mubr.msk.bf16.mxu1 %vm18333_vm2, %v21764_v33 }
 0xd22   : > { %16289 = vmatprep.subr.bf16.mxu1 %v21764_v33 }
 0xd24   : > { %16274 = vmatmul.mubr.msk.bf16.vlgmr.msra.gmra.mxu0 %vm1174_vm3, %v5658_v15  ;;  %v7193_v15 = vsel %vm1174_vm3, %v5706_v4, 0 }
 0xd25   : > { %v5803_v26 = vpop.f32.mrf.mxu1  ;;  %16284 = vmatpush3.bf16.xpose.msra.mxu0 %v6917_v1  ;;  %16285 = vmatprep.mubr.msk.bf16.mxu0 %vm18333_vm2, %v21764_v33 }
 0xd26   : > { %v19899_v55 = vmul.f32 0.25, %v5803_v26  ;;  %16295 = vmatprep.subr.bf16.mxu0 %v21764_v33 }
 0xd27   : > { %v16137_v47 = vpop.f32.mrf.mxu1 }
 0xd28   : > { %16280 = vmatmul.mubr.msk.bf16.vlgmr.msra.gmra.mxu1 %vm1174_vm3, %v5660_v14  ;;  %v7267_v22 = vsel %vm2679_vm4, %v19899_v55, -inf  ;;  %v19958_v14 = vpop.permute.xlu0 %5713 }
 0xd29   : > { %v5806_v46 = vpop.f32.mrf.mxu1  ;;  %7268 = vmax.xlane.f32.xlu0 %v7267_v22  ;;  %16290 = vmatpush3.bf16.xpose.msra.mxu1 %v6963_v24 }
 0xd2a   : > { %16291 = vmatprep.mubr.msk.bf16.mxu1 %vm18333_vm2, %v21764_v33  ;;  %16301 = vmatprep.subr.bf16.mxu1 %v21764_v33 }
 0xd2b   : > { %v16138_v27 = vpop.f32.mrf.mxu1 }
 0xd2c   : > { %16286 = vmatmul.mubr.msk.bf16.vlgmr.msra.gmra.mxu0 %vm1174_vm3, %v5662_v51  ;;  %v19962_v17 = vpop.permute.xlu0 %5721  ;;  %v19964_v51 = vpop.permute.xlu1 %5711 }
 0xd2d   : > { %v5849_v0 = vpop.f32.mrf.mxu1  ;;  %16296 = vmatpush3.bf16.xpose.msra.mxu0 %v7009_v31  ;;  %16297 = vmatprep.mubr.msk.bf16.mxu0 %vm18333_vm2, %v21764_v33 }
 0xd2e   : > { %v19913_v60 = vmul.f32 0.25, %v5849_v0  ;;  %16307 = vmatprep.subr.bf16.mxu0 %v21764_v33 }
 0xd2f   : > { %v16143_v25 = vpop.f32.mrf.mxu1 }
 0xd30   : > { %16292 = vmatmul.mubr.msk.bf16.vlgmr.msra.gmra.mxu1 %vm1174_vm3, %v5664_v20  ;;  %v7270_v41 = vsel %vm2679_vm4, %v19913_v60, -inf  ;;  %v19966_v13 = vpop.permute.xlu0 %5729  ;;  %v19968_v10 = vpop.permute.xlu1 %5715 }
 0xd31   : > { %v5852_v9 = vpop.f32.mrf.mxu1  ;;  %v5941_v7 = vpop.f32.mrf.mxu0  ;;  %7271 = vmax.xlane.f32.xlu1 %v7270_v41  ;;  %16302 = vmatpush3.bf16.xpose.msra.mxu1 %v7055_v59  ;;  %21785 = vst [vmem:[#allocation34_spill] sm:$0xff] %v19966_v13 }
 0xd32   : > { %v19920_v63 = vmul.f32 0.25, %v5941_v7  ;;  %16303 = vmatprep.mubr.msk.bf16.mxu1 %vm18333_vm2, %v21764_v33  ;;  %16313 = vmatprep.subr.bf16.mxu1 %v21764_v33 }
 0xd33   : > { %v16144_v50 = vpop.f32.mrf.mxu1  ;;  %v16155_v5 = vpop.f32.mrf.mxu0 }
 0xd34   : > { %16298 = vmatmul.mubr.msk.bf16.vlgmr.msra.gmra.mxu0 %vm1174_vm3, %v5666_v21  ;;  %v7276_v2 = vsel %vm2679_vm4, %v19920_v63, -inf  ;;  %v19970_v20 = vpop.permute.xlu0 %5737  ;;  %v19972_v34 = vpop.permute.xlu1 %5719 }
 0xd35   : > { %v5944_v45 = vpop.f32.mrf.mxu0  ;;  %7277 = vmax.xlane.f32.xlu0 %v7276_v2  ;;  %v5895_v56 = vpop.f32.mrf.mxu1  ;;  %16308 = vmatpush3.bf16.xpose.msra.mxu0 %v7101_v62  ;;  %21786 = vst [vmem:[#allocation37_spill] sm:$0xff] %v19970_v20 }
 0xd36   : > { %v19929_v12 = vmul.f32 0.25, %v5895_v56  ;;  %16309 = vmatprep.mubr.msk.bf16.mxu0 %vm18333_vm2, %v21764_v33  ;;  %16319 = vmatprep.subr.bf16.mxu0 %v21764_v33 }
 0xd37   : > { %v16149_v49 = vpop.f32.mrf.mxu1  ;;  %v16156_v44 = vpop.f32.mrf.mxu0 }
 0xd38   : > { %16304 = vmatmul.mubr.msk.bf16.vlgmr.msra.gmra.mxu1 %vm1174_vm3, %v5668_v30  ;;  %v7273_v16 = vsel %vm2679_vm4, %v19929_v12, -inf  ;;  %v19974_v1 = vpop.permute.xlu0 %5745  ;;  %v19976_v21 = vpop.permute.xlu1 %5723 }
 0xd39   : > { %7274 = vmax.xlane.f32.xlu0 %v7273_v16  ;;  %v5898_v11 = vpop.f32.mrf.mxu1  ;;  %16314 = vmatpush3.bf16.xpose.msra.mxu1 %v7147_v37  ;;  %21787 = vst [vmem:[#allocation36_spill] sm:$0xff] %v19974_v1 }
 0xd3a   : > { %16315 = vmatprep.mubr.msk.bf16.mxu1 %vm18333_vm2, %v21764_v33  ;;  %16325 = vmatprep.subr.bf16.mxu1 %v21764_v33 }
 0xd3b   : > { %v16150_v40 = vpop.f32.mrf.mxu1 }
 0xd3c   : > { %16310 = vmatmul.mubr.msk.bf16.vlgmr.msra.gmra.mxu0 %vm1174_vm3, %v5670_v42  ;;  %v19978_v26 = vpop.permute.xlu0 %5709  ;;  %v19980_v47 = vpop.permute.xlu1 %5727 }
 0xd3d   : > { %16320 = vmatpush3.bf16.xpose.msra.mxu0 %v7193_v15  ;;  %16321 = vmatprep.mubr.msk.bf16.mxu0 %vm18333_vm2, %v21764_v33 }
 0xd3e   : > { %16331 = vmatprep.subr.bf16.mxu0 %v21764_v33 }
 0xd40   : > { %16316 = vmatmul.mubr.msk.bf16.vlgmr.msra.gmra.mxu1 %vm1174_vm3, %v5672_v3  ;;  %v19984_v30 = vpop.permute.xlu0 %5717  ;;  %v19988_v31 = vpop.permute.xlu1 %5731 }
 0xd41   : > { %16326 = vmatpush3.bf16.msra.mxu1 %v7655_v19  ;;  %16327 = vmatprep.mubr.msk.bf16.mxu1 %vm18333_vm2, %v21764_v33  ;;  %21788 = vst [vmem:[#allocation38_spill] sm:$0xff] %v19988_v31 }
 0xd42   : > { %16337 = vmatprep.subr.bf16.mxu1 %v21764_v33 }
 0xd44   : > { %16322 = vmatmul.mubr.msk.bf16.vlgmr.msra.gmra.mxu0 %vm1174_vm3, %v5674_v57  ;;  %v19994_v59 = vpop.permute.xlu0 %5725  ;;  %v19998_v5 = vpop.permute.xlu1 %5735 }
 0xd45   : > { %16332 = vmatpush3.bf16.msra.mxu0 %v7701_v32  ;;  %16333 = vmatprep.mubr.msk.bf16.mxu0 %vm18333_vm2, %v21764_v33  ;;  %21789 = vst [vmem:[#allocation25_spill] sm:$0xff] %v19998_v5 }
 0xd46   : > { %16343 = vmatprep.subr.bf16.mxu0 %v21764_v33 }
 0xd48   : > { %v20004_v49 = vpop.permute.xlu0 %5733  ;;  %v20008_v37 = vpop.permute.xlu1 %5739 }
 0xd49   : > { %21790 = vst [vmem:[#allocation27_spill] sm:$0xff] %v20004_v49  ;;  %21791 = vst [vmem:[#allocation26_spill] sm:$0xff] %v20008_v37 }
 0xd98   : > { %v5987_v43 = vpop.f32.mrf.mxu1 }
 0xd99   : > { %v19982_v22 = vmul.f32 0.25, %v5987_v43 }
 0xd9a   : > { %v16161_v24 = vpop.f32.mrf.mxu1 }
 0xd9b   : > { %v7279_v46 = vsel %vm2679_vm4, %v19982_v22, -inf  ;;  %v20014_v24 = vpop.permute.xlu0 %5741 }
 0xd9c   : > { %v6033_v27 = vpop.f32.mrf.mxu0  ;;  %7280 = vmax.xlane.f32.xlu1 %v7279_v46  ;;  %v5990_v54 = vpop.f32.mrf.mxu1  ;;  %21792 = vst [vmem:[#allocation24_spill] sm:$0xff] %v20014_v24 }
 0xd9d   : > { %v19990_v42 = vmul.f32 0.25, %v6033_v27 }
 0xd9e   : > { %v16162_v0 = vpop.f32.mrf.mxu1  ;;  %v16167_v25 = vpop.f32.mrf.mxu0 }
 0xd9f   : > { %v7282_v3 = vsel %vm2679_vm4, %v19990_v42, -inf  ;;  %v20018_v0 = vpop.permute.xlu1 %5743 }
 0xda0   : > { %v6036_v38 = vpop.f32.mrf.mxu0  ;;  %7283 = vmax.xlane.f32.xlu0 %v7282_v3  ;;  %v6079_v41 = vpop.f32.mrf.mxu1  ;;  %21793 = vst [vmem:[#allocation39_spill] sm:$0xff] %v20018_v0 }
 0xda1   : > { %v19996_v9 = vmul.f32 0.25, %v6079_v41 }
 0xda2   : > { %v16168_v7 = vpop.f32.mrf.mxu0  ;;  %v16173_v50 = vpop.f32.mrf.mxu1 }
 0xda3   : > { %v7285_v6 = vsel %vm2679_vm4, %v19996_v9, -inf }
 0xda4   : > { %7286 = vmax.xlane.f32.xlu1 %v7285_v6  ;;  %v6082_v57 = vpop.f32.mrf.mxu1  ;;  %v6125_v2 = vpop.f32.mrf.mxu0 }
 0xda5   : > { %v20002_v62 = vmul.f32 0.25, %v6125_v2 }
 0xda6   : > { %v16174_v45 = vpop.f32.mrf.mxu1  ;;  %v16179_v56 = vpop.f32.mrf.mxu0 }
 0xda7   : > { %v7288_v44 = vsel %vm2679_vm4, %v20002_v62, -inf }
 0xda8   : > { %v6171_v4 = vpop.f32.mrf.mxu1  ;;  %7289 = vmax.xlane.f32.xlu0 %v7288_v44  ;;  %v6128_v16 = vpop.f32.mrf.mxu0 }
 0xda9   : > { %v20010_v11 = vmul.f32 0.25, %v6171_v4  ;;  %v20029_v16 = vpop.permute.xlu1 %5747 }
 0xdaa   : > { %v16180_v40 = vpop.f32.mrf.mxu0  ;;  %v16185_v15 = vpop.f32.mrf.mxu1  ;;  %21794 = vst [vmem:[#allocation40_spill] sm:$0xff] %v20029_v16 }
 0xdab   : > { %v7291_v19 = vsel %vm2679_vm4, %v20010_v11, -inf }
 0xdac   : > { %7292 = vmax.xlane.f32.xlu1 %v7291_v19  ;;  %v6174_v32 = vpop.f32.mrf.mxu1  ;;  %v6217_v43 = vpop.f32.mrf.mxu0 }
 0xdad   : > { %v20016_v46 = vmul.f32 0.25, %v6217_v43 }
 0xdae   : > { %v16186_v27 = vpop.f32.mrf.mxu1  ;;  %v16191_v54 = vpop.f32.mrf.mxu0 }
 0xdaf   : > { %v7294_v25 = vsel %vm2679_vm4, %v20016_v46, -inf }
 0xdb0   : > { %v6263_v3 = vpop.f32.mrf.mxu1  ;;  %7295 = vmax.xlane.f32.xlu0 %v7294_v25  ;;  %v6220_v38 = vpop.f32.mrf.mxu0 }
 0xdb1   : > { %v20022_v41 = vmul.f32 0.25, %v6263_v3 }
 0xdb2   : > { %v7269_v7 = vpop.xlane.xlu0 %7268  ;;  %v16192_v50 = vpop.f32.mrf.mxu0 }
 0xdb3   : > { %v7363_v6 = vsub.f32 %v19899_v55, %v7269_v7  ;;  %v16197_v57 = vpop.f32.mrf.mxu1  ;;  %v7297_v2 = vsel %vm2679_vm4, %v20022_v41, -inf }
 0xdb4   : > { %7298 = vmax.xlane.f32.xlu1 %v7297_v2  ;;  %v6309_v45 = vpop.f32.mrf.mxu0 }
 0xdb5   : > { %v7395_v56 = vmul.f32 1.442695, %v7363_v6  ;;  %v6266_v44 = vpop.f32.mrf.mxu1  ;;  %v20027_v4 = vmul.f32 0.25, %v6309_v45 }
 0xdb6   : > { %v16203_v40 = vpop.f32.mrf.mxu0 }
 0xdb7   : > { %v16198_v15 = vpop.f32.mrf.mxu1  ;;  %v7300_v19 = vsel %vm2679_vm4, %v20027_v4, -inf  ;;  %17706 = vpow2.f32 %v7395_v56 }
 0xdb8   : > { %7301 = vmax.xlane.f32.xlu0 %v7300_v19  ;;  %v6312_v55 = vpop.f32.mrf.mxu0 }
 0xdb9   : > { %v6355_v32 = vpop.f32.mrf.mxu1 }
 0xdba   : > { %v20033_v43 = vmul.f32 0.25, %v6355_v32  ;;  %v16204_v27 = vpop.f32.mrf.mxu0  ;;  %v7272_v54 = vpop.xlane.xlu1 %7271 }
 0xdbb   : > { %v16209_v25 = vpop.f32.mrf.mxu1  ;;  %v7364_v3 = vsub.f32 %v19913_v60, %v7272_v54 }
 0xdbc   : > { %v7303_v38 = vsel %vm2679_vm4, %v20033_v43, -inf  ;;  %v6401_v7 = vpop.f32.mrf.mxu0 }
 0xdbd   : > { %v7397_v50 = vmul.f32 1.442695, %v7364_v3  ;;  %7304 = vmax.xlane.f32.xlu1 %v7303_v38  ;;  %v6358_v6 = vpop.f32.mrf.mxu1  ;;  %v20038_v57 = vmul.f32 0.25, %v6401_v7 }
 0xdbe   : > { %v7278_v2 = vpop.xlane.xlu0 %7277  ;;  %v16215_v45 = vpop.f32.mrf.mxu0 }
 0xdbf   : > { %17708 = vpow2.f32 %v7397_v50  ;;  %v7366_v56 = vsub.f32 %v19920_v63, %v7278_v2  ;;  %v16210_v44 = vpop.f32.mrf.mxu1  ;;  %v7306_v40 = vsel %vm2679_vm4, %v20038_v57, -inf }
 0xdc0   : > { %7307 = vmax.xlane.f32.xlu0 %v7306_v40  ;;  %v6404_v60 = vpop.f32.mrf.mxu0 }
 0xdc1   : > { %v7401_v15 = vmul.f32 1.442695, %v7366_v56  ;;  %v6447_v19 = vpop.f32.mrf.mxu1 }
 0xdc2   : > { %v20043_v55 = vmul.f32 0.25, %v6447_v19  ;;  %v7275_v32 = vpop.xlane.xlu0 %7274  ;;  %v16216_v27 = vpop.f32.mrf.mxu0 }
 0xdc3   : > { %v7365_v54 = vsub.f32 %v19929_v12, %v7275_v32  ;;  %v16221_v25 = vpop.f32.mrf.mxu1  ;;  %17710 = vpow2.f32 %v7401_v15 }
 0xdc4   : > { %v7309_v3 = vsel %vm2679_vm4, %v20043_v55, -inf  ;;  %v6493_v38 = vpop.f32.mrf.mxu0  ;;  %v20048_v63 = vpop.eup %17706 }
 0xdc5   : > { %v7399_v7 = vmul.f32 1.442695, %v7365_v54  ;;  %7310 = vmax.xlane.f32.xlu1 %v7309_v3  ;;  %v6450_v50 = vpop.f32.mrf.mxu1  ;;  %v20050_v6 = vmul.f32 0.25, %v6493_v38  ;;  %v7459_v12 = vsel %vm2679_vm4, %v20048_v63, 0.0 }
 0xdc6   : > { %v16227_v2 = vpop.f32.mrf.mxu0 }
 0xdc7   : > { %v16222_v45 = vpop.f32.mrf.mxu1  ;;  %v7312_v56 = vsel %vm2679_vm4, %v20050_v6, -inf  ;;  %17712 = vpow2.f32 %v7399_v7 }
 0xdc8   : > { %7313 = vmax.xlane.f32.xlu0 %v7312_v56  ;;  %v6496_v44 = vpop.f32.mrf.mxu0 }
 0xdc9   : > { %7460 = vadd.xlane.f32.xlu1 %v7459_v12  ;;  %v6539_v40 = vpop.f32.mrf.mxu1 }
 0xdca   : > { %v20056_v60 = vmul.f32 0.25, %v6539_v40  ;;  %v16228_v15 = vpop.f32.mrf.mxu0 }
 0xdcb   : > { %v16233_v19 = vpop.f32.mrf.mxu1 }
 0xdcc   : > { %v20058_v32 = vpop.eup %17708  ;;  %v7315_v27 = vsel %vm2679_vm4, %v20056_v60, -inf  ;;  %v6585_v54 = vpop.f32.mrf.mxu0 }
 0xdcd   : > { %7316 = vmax.xlane.f32.xlu1 %v7315_v27  ;;  %v6542_v25 = vpop.f32.mrf.mxu1  ;;  %v20062_v3 = vmul.f32 0.25, %v6585_v54  ;;  %v7462_v38 = vsel %vm2679_vm4, %v20058_v32, 0.0 }
 0xdce   : > { %v16239_v7 = vpop.f32.mrf.mxu0  ;;  %7463 = vadd.xlane.f32.xlu0 %v7462_v38 }
 0xdcf   : > { %v16234_v50 = vpop.f32.mrf.mxu1  ;;  %v7318_v56 = vsel %vm2679_vm4, %v20062_v3, -inf }
 0xdd0   : > { %v6588_v2 = vpop.f32.mrf.mxu0  ;;  %v20068_v12 = vpop.eup %17710 }
 0xdd1   : > { %v6631_v45 = vpop.f32.mrf.mxu1  ;;  %v7468_v7 = vsel %vm2679_vm4, %v20068_v12, 0.0 }
 0xdd2   : > { %v20070_v44 = vmul.f32 0.25, %v6631_v45  ;;  %v16240_v40 = vpop.f32.mrf.mxu0  ;;  %7319 = vmax.xlane.f32.xlu0 %v7318_v56 }
 0xdd3   : > { %v16245_v15 = vpop.f32.mrf.mxu1 }
 0xdd4   : > { %v7321_v19 = vsel %vm2679_vm4, %v20070_v44, -inf  ;;  %v6677_v27 = vpop.f32.mrf.mxu0  ;;  %v20074_v54 = vpop.eup %17712 }
 0xdd5   : > { %7322 = vmax.xlane.f32.xlu1 %v7321_v19  ;;  %v6634_v25 = vpop.f32.mrf.mxu1  ;;  %v20076_v38 = vmul.f32 0.25, %v6677_v27  ;;  %v7465_v45 = vsel %vm2679_vm4, %v20074_v54, 0.0 }
 0xdd6   : > { %v16251_v50 = vpop.f32.mrf.mxu0  ;;  %7469 = vadd.xlane.f32.xlu0 %v7468_v7 }
 0xdd7   : > { %v16246_v2 = vpop.f32.mrf.mxu1  ;;  %v7324_v15 = vsel %vm2679_vm4, %v20076_v38, -inf }
 0xdd8   : > { %v6680_v56 = vpop.f32.mrf.mxu0 }
 0xdd9   : > { %7466 = vadd.xlane.f32.xlu1 %v7465_v45  ;;  %v6723_v40 = vpop.f32.mrf.mxu1 }
 0xdda   : > { %v16252_v29 = vpop.f32.mrf.mxu0  ;;  %7325 = vmax.xlane.f32.xlu0 %v7324_v15 }
 0xddb   : > { %v16257_v19 = vpop.f32.mrf.mxu1 }
 0xddc   : > { %v6769_v27 = vpop.f32.mrf.mxu0 }
 0xddd   : > { %v6726_v25 = vpop.f32.mrf.mxu1 }
 0xdde   : > { %v16263_v52 = vpop.f32.mrf.mxu0 }
 0xddf   : > { %v16258_v8 = vpop.f32.mrf.mxu1 }
 0xde0   : > { %v6772_v28 = vpop.f32.mrf.mxu0 }
 0xde1   : > { %v6815_v50 = vpop.f32.mrf.mxu1 }
 0xde2   : > { %v16264_v7 = vpop.f32.mrf.mxu0 }
 0xde3   : > { %v16269_v2 = vpop.f32.mrf.mxu1 }
 0xde4   : > { %v6861_v36 = vpop.f32.mrf.mxu0 }
 0xde5   : > { %v6818_v53 = vpop.f32.mrf.mxu1 }
 0xde6   : > { %v16275_v58 = vpop.f32.mrf.mxu0 }
 0xde7   : > { %v16270_v56 = vpop.f32.mrf.mxu1 }
 0xde8   : > { %v6864_v45 = vpop.f32.mrf.mxu0 }
 0xde9   : > { %v6907_v35 = vpop.f32.mrf.mxu1 }
 0xdea   : > { %5751 = vrot.lane.b32.xlu1 %v19758_v23, %s18339_s28  ;;  %v16276_v29 = vpop.f32.mrf.mxu0 }
 0xdeb   : > { %v16281_v15 = vpop.f32.mrf.mxu1 }
 0xdec   : > { %v6953_v19 = vpop.f32.mrf.mxu0 }
 0xded   : > { %v6910_v16 = vpop.f32.mrf.mxu1 }
 0xdee   : > { %5753 = vrot.lane.b32.xlu1 %v19743_v48, %s18339_s28  ;;  %v16287_v8 = vpop.f32.mrf.mxu0 }
 0xdef   : > { %v16282_v52 = vpop.f32.mrf.mxu1 }
 0xdf0   : > { %v6956_v28 = vpop.f32.mrf.mxu0  ;;  %5749 = vrot.lane.b32.xlu0 %v19768_v61, %s18339_s28 }
 0xdf1   : > { %v6999_v58 = vpop.f32.mrf.mxu1 }
 0xdf2   : > { %v16288_v53 = vpop.f32.mrf.mxu0 }
 0xdf3   : > { %v16293_v25 = vpop.f32.mrf.mxu1 }
 0xdf4   : > { %v7045_v7 = vpop.f32.mrf.mxu0 }
 0xdf5   : > { %v7002_v2 = vpop.f32.mrf.mxu1 }
 0xdf6   : > { %v16299_v56 = vpop.f32.mrf.mxu0  ;;  %v20090_v2 = vmul.f32 0.25, %v6769_v27 }
 0xdf7   : > { %v16294_v45 = vpop.f32.mrf.mxu1 }
 0xdf8   : > { %v7048_v29 = vpop.f32.mrf.mxu0  ;;  %v20092_v45 = vmul.f32 0.25, %v6723_v40  ;;  %v20110_v40 = vmul.f32 0.25, %v7045_v7 }
 0xdf9   : > { %v7091_v15 = vpop.f32.mrf.mxu1 }
 0xdfa   : > { %v16300_v0 = vpop.f32.mrf.mxu0 }
 0xdfb   : > { %v16305_v16 = vpop.f32.mrf.mxu1  ;;  %v20094_v0 = vmul.f32 0.25, %v6861_v36 }
 0xdfc   : > { %v7137_v1 = vpop.f32.mrf.mxu0  ;;  %v20122_v16 = vmul.f32 0.25, %v7091_v15 }
 0xdfd   : > { %v7094_v24 = vpop.f32.mrf.mxu1  ;;  %v20118_v29 = vmul.f32 0.25, %v7137_v1 }
 0xdfe   : > { %v16311_v37 = vpop.f32.mrf.mxu0  ;;  %v20098_v24 = vmul.f32 0.25, %v6815_v50  ;;  %v20114_v50 = vmul.f32 0.25, %v6999_v58  ;;  %v7351_v1 = vsel %vm2679_vm4, %v20122_v16, -inf }
 0xdff   : > { %v16306_v8 = vpop.f32.mrf.mxu1  ;;  %v7330_v37 = vsel %vm2679_vm4, %v20090_v2, -inf  ;;  %v7354_v58 = vsel %vm2679_vm4, %v20118_v29, -inf }
 0xe00   : > { %v7140_v52 = vpop.f32.mrf.mxu0  ;;  %v7333_v36 = vsel %vm2679_vm4, %v20098_v24, -inf  ;;  %v7345_v7 = vsel %vm2679_vm4, %v20114_v50, -inf }
 0xe01   : > { %v7183_v28 = vpop.f32.mrf.mxu1 }
 0xe02   : > { %v16312_v20 = vpop.f32.mrf.mxu0  ;;  %v20130_v52 = vmul.f32 0.25, %v7183_v28 }
 0xe03   : > { %v16317_v5 = vpop.f32.mrf.mxu1  ;;  %v7327_v20 = vsel %vm2679_vm4, %v20092_v45, -inf }
 0xe04   : > { %v7229_v49 = vpop.f32.mrf.mxu0  ;;  %v20106_v5 = vmul.f32 0.25, %v6907_v35  ;;  %v7348_v35 = vsel %vm2679_vm4, %v20110_v40, -inf }
 0xe05   : > { %v7186_v31 = vpop.f32.mrf.mxu1  ;;  %v20126_v8 = vmul.f32 0.25, %v7229_v49 }
 0xe06   : > { %v16323_v53 = vpop.f32.mrf.mxu0  ;;  %v20102_v31 = vmul.f32 0.25, %v6953_v19  ;;  %v7339_v19 = vsel %vm2679_vm4, %v20106_v5, -inf }
 0xe07   : > { %v16318_v25 = vpop.f32.mrf.mxu1  ;;  %v7360_v15 = vsel %vm2679_vm4, %v20126_v8, -inf  ;;  %v7357_v53 = vsel %vm2679_vm4, %v20130_v52, -inf }
 0xe08   : > { %v7232_v13 = vpop.f32.mrf.mxu0  ;;  %v7342_v27 = vsel %vm2679_vm4, %v20102_v31, -inf }
 0xe09   : > { %v7336_v13 = vsel %vm2679_vm4, %v20094_v0, -inf }
 0xe0a   : > { %v16324_v56 = vpop.f32.mrf.mxu0 }
 0xe0f   : > { %7331 = vmax.xlane.f32.xlu0 %v7330_v37 }
 0xe12   : > { %7328 = vmax.xlane.f32.xlu1 %v7327_v20 }
 0xe13   : > { %7337 = vmax.xlane.f32.xlu0 %v7336_v13 }
 0xe16   : > { %7334 = vmax.xlane.f32.xlu1 %v7333_v36 }
 0xe17   : > { %7343 = vmax.xlane.f32.xlu0 %v7342_v27 }
 0xe1a   : > { %7340 = vmax.xlane.f32.xlu1 %v7339_v19 }
 0xe1b   : > { %7349 = vmax.xlane.f32.xlu0 %v7348_v35 }
 0xe1e   : > { %7346 = vmax.xlane.f32.xlu1 %v7345_v7 }
 0xe1f   : > { %7355 = vmax.xlane.f32.xlu0 %v7354_v58 }
 0xe22   : > { %7352 = vmax.xlane.f32.xlu1 %v7351_v1 }
 0xe23   : > { %7361 = vmax.xlane.f32.xlu0 %v7360_v15 }
 0xe25   : > { %v7281_v49 = vpop.xlane.xlu1 %7280 }
 0xe26   : > { %7358 = vmax.xlane.f32.xlu1 %v7357_v53  ;;  %v7367_v25 = vsub.f32 %v19982_v22, %v7281_v49 }
 0xe28   : > { %v7403_v56 = vmul.f32 1.442695, %v7367_v25 }
 0xe29   : > { %v7284_v37 = vpop.xlane.xlu0 %7283 }
 0xe2a   : > { %17714 = vpow2.f32 %v7403_v56  ;;  %v7368_v28 = vsub.f32 %v19990_v42, %v7284_v37 }
 0xe2c   : > { %v7405_v20 = vmul.f32 1.442695, %v7368_v28 }
 0xe2d   : > { %v7287_v13 = vpop.xlane.xlu1 %7286 }
 0xe2e   : > { %17716 = vpow2.f32 %v7405_v20  ;;  %v7369_v36 = vsub.f32 %v19996_v9, %v7287_v13 }
 0xe30   : > { %v7407_v27 = vmul.f32 1.442695, %v7369_v36 }
 0xe31   : > { %v7290_v19 = vpop.xlane.xlu0 %7289 }
 0xe32   : > { %17718 = vpow2.f32 %v7407_v27  ;;  %v7370_v35 = vsub.f32 %v20002_v62, %v7290_v19 }
 0xe34   : > { %v7409_v7 = vmul.f32 1.442695, %v7370_v35 }
 0xe35   : > { %v7293_v58 = vpop.xlane.xlu1 %7292 }
 0xe36   : > { %17720 = vpow2.f32 %v7409_v7  ;;  %v7371_v22 = vsub.f32 %v20010_v11, %v7293_v58 }
 0xe37   : > { %v20143_v1 = vpop.eup %17714 }
 0xe38   : > { %v7411_v15 = vmul.f32 1.442695, %v7371_v22  ;;  %v7471_v42 = vsel %vm2679_vm4, %v20143_v1, 0.0 }
 0xe39   : > { %v7296_v53 = vpop.xlane.xlu0 %7295  ;;  %7472 = vadd.xlane.f32.xlu1 %v7471_v42 }
 0xe3a   : > { %17722 = vpow2.f32 %v7411_v15  ;;  %v7372_v9 = vsub.f32 %v20016_v46, %v7296_v53 }
 0xe3b   : > { %v20148_v49 = vpop.eup %17716 }
 0xe3c   : > { %v7413_v25 = vmul.f32 1.442695, %v7372_v9  ;;  %v7474_v62 = vsel %vm2679_vm4, %v20148_v49, 0.0 }
 0xe3d   : > { %7475 = vadd.xlane.f32.xlu0 %v7474_v62  ;;  %v7299_v56 = vpop.xlane.xlu1 %7298 }
 0xe3e   : > { %17724 = vpow2.f32 %v7413_v25  ;;  %v7373_v11 = vsub.f32 %v20022_v41, %v7299_v56 }
 0xe3f   : > { %v20153_v37 = vpop.eup %17718 }
 0xe40   : > { %v7415_v28 = vmul.f32 1.442695, %v7373_v11  ;;  %v7477_v20 = vsel %vm2679_vm4, %v20153_v37, 0.0 }
 0xe41   : > { %v7302_v13 = vpop.xlane.xlu0 %7301  ;;  %7478 = vadd.xlane.f32.xlu1 %v7477_v20 }
 0xe42   : > { %17726 = vpow2.f32 %v7415_v28  ;;  %v7374_v46 = vsub.f32 %v20027_v4, %v7302_v13 }
 0xe43   : > { %v20158_v36 = vpop.eup %17720 }
 0xe44   : > { %v7417_v27 = vmul.f32 1.442695, %v7374_v46  ;;  %v7480_v19 = vsel %vm2679_vm4, %v20158_v36, 0.0 }
 0xe45   : > { %7481 = vadd.xlane.f32.xlu0 %v7480_v19 }
 0xe46   : > { %17728 = vpow2.f32 %v7417_v27  ;;  %v7305_v41 = vpop.xlane.xlu1 %7304 }
 0xe47   : > { %v20162_v35 = vpop.eup %17722  ;;  %v7375_v7 = vsub.f32 %v20033_v43, %v7305_v41 }
 0xe48   : > { %v7483_v58 = vsel %vm2679_vm4, %v20162_v35, 0.0 }
 0xe49   : > { %v7419_v22 = vmul.f32 1.442695, %v7375_v7  ;;  %v7308_v15 = vpop.xlane.xlu0 %7307  ;;  %7484 = vadd.xlane.f32.xlu1 %v7483_v58 }
 0xe4a   : > { %v7376_v4 = vsub.f32 %v20038_v57, %v7308_v15 }
 0xe4b   : > { %v20168_v42 = vpop.eup %17724  ;;  %17730 = vpow2.f32 %v7419_v22 }
 0xe4c   : > { %v7421_v53 = vmul.f32 1.442695, %v7376_v4  ;;  %v7486_v9 = vsel %vm2679_vm4, %v20168_v42, 0.0 }
 0xe4d   : > { %7487 = vadd.xlane.f32.xlu0 %v7486_v9 }
 0xe4e   : > { %17732 = vpow2.f32 %v7421_v53  ;;  %v7311_v25 = vpop.xlane.xlu1 %7310 }
 0xe4f   : > { %v20172_v62 = vpop.eup %17726  ;;  %v7377_v43 = vsub.f32 %v20043_v55, %v7311_v25 }
 0xe50   : > { %v7489_v56 = vsel %vm2679_vm4, %v20172_v62, 0.0 }
 0xe51   : > { %v7423_v11 = vmul.f32 1.442695, %v7377_v43  ;;  %v7314_v28 = vpop.xlane.xlu0 %7313  ;;  %7490 = vadd.xlane.f32.xlu1 %v7489_v56 }
 0xe52   : > { %v7378_v57 = vsub.f32 %v20050_v6, %v7314_v28  ;;  %v7461_v20 = vpop.xlane.xlu1 %7460 }
 0xe53   : > { %v20178_v13 = vpop.eup %17728  ;;  %17734 = vpow2.f32 %v7423_v11 }
 0xe54   : > { %v7425_v46 = vmul.f32 1.442695, %v7378_v57  ;;  %17736 = vrcp.f32 %v7461_v20  ;;  %v7492_v27 = vsel %vm2679_vm4, %v20178_v13, 0.0 }
 0xe55   : > { %7493 = vadd.xlane.f32.xlu0 %v7492_v27 }
 0xe56   : > { %17738 = vpow2.f32 %v7425_v46  ;;  %v7317_v55 = vpop.xlane.xlu1 %7316 }
 0xe57   : > { %v7379_v19 = vsub.f32 %v20056_v60, %v7317_v55  ;;  %v7464_v41 = vpop.xlane.xlu0 %7463 }
 0xe58   : > { %v20183_v7 = vpop.eup %17730  ;;  %17740 = vrcp.f32 %v7464_v41 }
 0xe59   : > { %v7427_v58 = vmul.f32 1.442695, %v7379_v19  ;;  %v7495_v6 = vsel %vm2679_vm4, %v20183_v7, 0.0 }
 0xe5a   : > { %7496 = vadd.xlane.f32.xlu1 %v7495_v6 }
 0xe5b   : > { %v20187_v22 = vpop.eup %17732  ;;  %17742 = vpow2.f32 %v7427_v58  ;;  %v7320_v15 = vpop.xlane.xlu0 %7319 }
 0xe5c   : > { %v7380_v4 = vsub.f32 %v20062_v3, %v7320_v15  ;;  %v7498_v53 = vsel %vm2679_vm4, %v20187_v22, 0.0 }
 0xe5d   : > { %7499 = vadd.xlane.f32.xlu0 %v7498_v53 }
 0xe5e   : > { %v7429_v60 = vmul.f32 1.442695, %v7380_v4  ;;  %v7323_v9 = vpop.xlane.xlu1 %7322 }
 0xe5f   : > { %v7381_v25 = vsub.f32 %v20070_v44, %v7323_v9  ;;  %v7470_v43 = vpop.xlane.xlu0 %7469 }
 0xe60   : > { %v20193_v56 = vpop.eup %17734  ;;  %17744 = vpow2.f32 %v7429_v60 }
 0xe61   : > { %v17737_v11 = vpop.eup %17736  ;;  %v7431_v28 = vmul.f32 1.442695, %v7381_v25  ;;  %17746 = vrcp.f32 %v7470_v43  ;;  %v7501_v57 = vsel %vm2679_vm4, %v20193_v56, 0.0 }
 0xe62   : > { %v7587_v3 = vmul.f32 %v17737_v11, %v20048_v63  ;;  %7502 = vadd.xlane.f32.xlu1 %v7501_v57  ;;  %v7467_v20 = vpop.xlane.xlu1 %7466  ;;  %v7747_v63 = vsel %vm3067_vm5, %v19758_v23, 0 }
 0xe63   : > { %v20198_v46 = vpop.eup %17738  ;;  %17748 = vpow2.f32 %v7431_v28  ;;  %v7326_v27 = vpop.xlane.xlu0 %7325 }
 0xe64   : > { %v7619_v55 = vpack.c.bf16 %v7587_v3, %v7587_v3  ;;  %17750 = vrcp.f32 %v7467_v20  ;;  %v7382_v44 = vsub.f32 %v20076_v38, %v7326_v27  ;;  %v7504_v19 = vsel %vm2679_vm4, %v20198_v46, 0.0 }
 0xe65   : > { %v17741_v41 = vpop.eup %17740  ;;  %7505 = vadd.xlane.f32.xlu0 %v7504_v19  ;;  %v7885_v20 = vsel %vm3067_vm5, %v19978_v26, 0 }
 0xe66   : > { %v7588_v58 = vmul.f32 %v17741_v41, %v20058_v32  ;;  %v7433_v6 = vmul.f32 1.442695, %v7382_v44  ;;  %16328 = vmatmul.mubr.msk.bf16.vlgmr.msra.gmra.mxu1 %vm2679_vm4, %v7619_v55  ;;  %v7793_v32 = vsel %vm3067_vm5, %v19743_v48, 0  ;;  %v7839_v55 = vsel %vm3067_vm5, %v19960_v18, 0  ;;  %v20246_v26 = vpop.permute.xlu1 %5751 }
 0xe67   : > { %16338 = vmatpush3.bf16.msra.mxu1 %v7747_v63  ;;  %16339 = vmatprep.mubr.msk.bf16.mxu1 %vm18333_vm2, %v21764_v33  ;;  %v20248_v44 = vpop.permute.xlu0 %5749 }
 0xe68   : > { %v20209_v15 = vpop.eup %17742  ;;  %v7620_v38 = vpack.c.bf16 %v7588_v58, %v7588_v58  ;;  %17752 = vpow2.f32 %v7433_v6  ;;  %16349 = vmatprep.subr.bf16.mxu1 %v21764_v33 }
 0xe69   : > { %v7507_v4 = vsel %vm2679_vm4, %v20209_v15, 0.0 }
 0xe6a   : > { %7508 = vadd.xlane.f32.xlu1 %v7507_v4  ;;  %16334 = vmatmul.mubr.msk.bf16.vlgmr.msra.gmra.mxu0 %vm2679_vm4, %v7620_v38  ;;  %v20250_v19 = vpop.permute.xlu1 %5753 }
 0xe6b   : > { %16344 = vmatpush3.bf16.msra.mxu0 %v7793_v32  ;;  %16345 = vmatprep.mubr.msk.bf16.mxu0 %vm18333_vm2, %v21764_v33 }
 0xe6c   : > { %16355 = vmatprep.subr.bf16.mxu0 %v21764_v33 }
 0xe6d   : > { %v20220_v53 = vpop.eup %17744 }
 0xe6e   : > { %v17747_v60 = vpop.eup %17746  ;;  %v7510_v9 = vsel %vm2679_vm4, %v20220_v53, 0.0 }
 0xe6f   : > { %v7590_v25 = vmul.f32 %v17747_v60, %v20068_v12  ;;  %7511 = vadd.xlane.f32.xlu0 %v7510_v9 }
 0xe70   : > { %v20225_v43 = vpop.eup %17748 }
 0xe71   : > { %v17751_v11 = vpop.eup %17750  ;;  %v7622_v28 = vpack.c.bf16 %v7590_v25, %v7590_v25  ;;  %v7513_v57 = vsel %vm2679_vm4, %v20225_v43, 0.0 }
 0xe72   : > { %v7589_v3 = vmul.f32 %v17751_v11, %v20074_v54  ;;  %7514 = vadd.xlane.f32.xlu1 %v7513_v57 }
 0xe73   : > { %16346 = vmatmul.mubr.msk.bf16.vlgmr.msra.gmra.mxu0 %vm2679_vm4, %v7622_v28 }
 0xe74   : > { %v7621_v27 = vpack.c.bf16 %v7589_v3, %v7589_v3  ;;  %16356 = vmatpush3.bf16.msra.mxu0 %v7885_v20  ;;  %16357 = vmatprep.mubr.msk.bf16.mxu0 %vm18333_vm2, %v21764_v33 }
 0xe75   : > { %v20235_v12 = vpop.eup %17752  ;;  %16367 = vmatprep.subr.bf16.mxu0 %v21764_v33 }
 0xe76   : > { %16340 = vmatmul.mubr.msk.bf16.vlgmr.msra.gmra.mxu1 %vm2679_vm4, %v7621_v27  ;;  %v7516_v54 = vsel %vm2679_vm4, %v20235_v12, 0.0 }
 0xe77   : > { %16350 = vmatpush3.bf16.msra.mxu1 %v7839_v55  ;;  %7517 = vadd.xlane.f32.xlu0 %v7516_v54 }
 0xe78   : > { %16351 = vmatprep.mubr.msk.bf16.mxu1 %vm18333_vm2, %v21764_v33  ;;  %16361 = vmatprep.subr.bf16.mxu1 %v21764_v33 }
 0xe98   : > { %v7332_v41 = vpop.xlane.xlu0 %7331 }
 0xe99   : > { %v7384_v18 = vsub.f32 %v20090_v2, %v7332_v41 }
 0xe9b   : > { %v7437_v58 = vmul.f32 1.442695, %v7384_v18  ;;  %v7329_v6 = vpop.xlane.xlu1 %7328 }
 0xe9c   : > { %v7383_v63 = vsub.f32 %v20092_v45, %v7329_v6  ;;  %v7338_v38 = vpop.xlane.xlu0 %7337 }
 0xe9d   : > { %17754 = vpow2.f32 %v7437_v58  ;;  %v7386_v4 = vsub.f32 %v20094_v0, %v7338_v38 }
 0xe9e   : > { %v7435_v32 = vmul.f32 1.442695, %v7383_v63 }
 0xe9f   : > { %v7441_v60 = vmul.f32 1.442695, %v7386_v4  ;;  %v7335_v9 = vpop.xlane.xlu1 %7334 }
 0xea0   : > { %17756 = vpow2.f32 %v7435_v32  ;;  %v7385_v25 = vsub.f32 %v20098_v24, %v7335_v9  ;;  %v7344_v11 = vpop.xlane.xlu0 %7343 }
 0xea1   : > { %17758 = vpow2.f32 %v7441_v60  ;;  %v7388_v28 = vsub.f32 %v20102_v31, %v7344_v11 }
 0xea2   : > { %v7439_v57 = vmul.f32 1.442695, %v7385_v25 }
 0xea3   : > { %v7445_v2 = vmul.f32 1.442695, %v7388_v28  ;;  %v7341_v3 = vpop.xlane.xlu1 %7340 }
 0xea4   : > { %17760 = vpow2.f32 %v7439_v57  ;;  %v7387_v45 = vsub.f32 %v20106_v5, %v7341_v3  ;;  %v7350_v20 = vpop.xlane.xlu0 %7349 }
 0xea5   : > { %17762 = vpow2.f32 %v7445_v2  ;;  %v7390_v0 = vsub.f32 %v20110_v40, %v7350_v20 }
 0xea6   : > { %v7443_v27 = vmul.f32 1.442695, %v7387_v45 }
 0xea7   : > { %v7449_v55 = vmul.f32 1.442695, %v7390_v0  ;;  %v7347_v54 = vpop.xlane.xlu1 %7346 }
 0xea8   : > { %17764 = vpow2.f32 %v7443_v27  ;;  %v7389_v24 = vsub.f32 %v20114_v50, %v7347_v54  ;;  %v7356_v2 = vpop.xlane.xlu0 %7355 }
 0xea9   : > { %17766 = vpow2.f32 %v7449_v55 }
 0xeaa   : > { %v20260_v41 = vpop.eup %17754  ;;  %v7447_v31 = vmul.f32 1.442695, %v7389_v24 }
 0xeab   : > { %v7522_v18 = vsel %vm2679_vm4, %v20260_v41, 0.0  ;;  %v7353_v11 = vpop.xlane.xlu1 %7352 }
 0xeac   : > { %17768 = vpow2.f32 %v7447_v31  ;;  %7523 = vadd.xlane.f32.xlu0 %v7522_v18  ;;  %v7362_v45 = vpop.xlane.xlu0 %7361 }
 0xead   : > { %v20264_v5 = vpop.eup %17756 }
 0xeae   : > { %v20266_v58 = vpop.eup %17758  ;;  %v7519_v40 = vsel %vm2679_vm4, %v20264_v5, 0.0 }
 0xeaf   : > { %7520 = vadd.xlane.f32.xlu1 %v7519_v40  ;;  %v7528_v50 = vsel %vm2679_vm4, %v20266_v58, 0.0  ;;  %v7359_v3 = vpop.xlane.xlu1 %7358 }
 0xeb0   : > { %7529 = vadd.xlane.f32.xlu0 %v7528_v50  ;;  %v7392_v50 = vsub.f32 %v20118_v29, %v7356_v2 }
 0xeb1   : > { %v20272_v6 = vpop.eup %17760 }
 0xeb2   : > { %v20274_v63 = vpop.eup %17762  ;;  %v7525_v38 = vsel %vm2679_vm4, %v20272_v6, 0.0  ;;  %v7453_v29 = vmul.f32 1.442695, %v7392_v50  ;;  %v8161_v50 = vsel %vm3067_vm5, %v19962_v17, 0 }
 0xeb3   : > { %7526 = vadd.xlane.f32.xlu1 %v7525_v38  ;;  %v7534_v4 = vsel %vm2679_vm4, %v20274_v63, 0.0  ;;  %v7931_v38 = vsel %vm3067_vm5, %v19964_v51, 0  ;;  %v7977_v51 = vsel %vm3067_vm5, %v19958_v14, 0  ;;  %v8023_v14 = vsel %vm3067_vm5, %v19968_v10, 0 }
 0xeb4   : > { %7535 = vadd.xlane.f32.xlu0 %v7534_v4  ;;  %v8069_v10 = vsel %vm3067_vm5, %v19984_v30, 0 }
 0xeb5   : > { %v20280_v32 = vpop.eup %17764 }
 0xeb6   : > { %v20282_v60 = vpop.eup %17766  ;;  %v7531_v9 = vsel %vm2679_vm4, %v20280_v32, 0.0 }
 0xeb7   : > { %7532 = vadd.xlane.f32.xlu1 %v7531_v9  ;;  %v7540_v25 = vsel %vm2679_vm4, %v20282_v60, 0.0 }
 0xeb8   : > { %7541 = vadd.xlane.f32.xlu0 %v7540_v25  ;;  %v7394_v25 = vsub.f32 %v20126_v8, %v7362_v45 }
 0xeb9   : > { %v20288_v28 = vpop.eup %17768 }
 0xeba   : > { %v7537_v57 = vsel %vm2679_vm4, %v20288_v28, 0.0  ;;  %v7457_v45 = vmul.f32 1.442695, %v7394_v25 }
 0xebb   : > { %7538 = vadd.xlane.f32.xlu1 %v7537_v57  ;;  %v7393_v57 = vsub.f32 %v20130_v52, %v7359_v3 }
 0xebd   : > { %v7455_v52 = vmul.f32 1.442695, %v7393_v57 }
 0xec2   : > { %v7473_v20 = vpop.xlane.xlu1 %7472 }
 0xec3   : > { %17770 = vrcp.f32 %v7473_v20 }
 0xec6   : > { %v7476_v0 = vpop.xlane.xlu0 %7475 }
 0xec7   : > { %17772 = vrcp.f32 %v7476_v0 }
 0xeca   : > { %v7479_v27 = vpop.xlane.xlu1 %7478 }
 0xecb   : > { %17774 = vrcp.f32 %v7479_v27 }
 0xecc   : > { %5757 = vrot.lane.b32.xlu1 %v19768_v61, %s18340_s29 }
 0xece   : > { %5755 = vrot.lane.b32.xlu0 %v19752_v39, %s18340_s29  ;;  %v7482_v55 = vpop.xlane.xlu0 %7481  ;;  %v7391_v39 = vsub.f32 %v20122_v16, %v7353_v11 }
 0xecf   : > { %17776 = vrcp.f32 %v7482_v55 }
 0xed0   : > { %v17771_v54 = vpop.eup %17770  ;;  %v7451_v16 = vmul.f32 1.442695, %v7391_v39 }
 0xed1   : > { %v7591_v24 = vmul.f32 %v17771_v54, %v20143_v1 }
 0xed2   : > { %v7485_v31 = vpop.xlane.xlu1 %7484 }
 0xed3   : > { %v7623_v18 = vpack.c.bf16 %v7591_v24, %v7591_v24  ;;  %17778 = vrcp.f32 %v7485_v31  ;;  %v8115_v24 = vsel %vm3067_vm5, %v19972_v34, 0 }
 0xed4   : > { %v17773_v40 = vpop.eup %17772 }
 0xed5   : > { %v7592_v4 = vmul.f32 %v17773_v40, %v20148_v49  ;;  %16352 = vmatmul.mubr.msk.bf16.vlgmr.msra.gmra.mxu1 %vm2679_vm4, %v7623_v18 }
 0xed6   : > { %16362 = vmatpush3.bf16.msra.mxu1 %v7931_v38  ;;  %v7488_v61 = vpop.xlane.xlu0 %7487  ;;  %16363 = vmatprep.mubr.msk.bf16.mxu1 %vm18333_vm2, %v21764_v33 }
 0xed7   : > { %v7624_v1 = vpack.c.bf16 %v7592_v4, %v7592_v4  ;;  %17780 = vrcp.f32 %v7488_v61  ;;  %16373 = vmatprep.subr.bf16.mxu1 %v21764_v33 }
 0xed8   : > { %v17775_v9 = vpop.eup %17774 }
 0xed9   : > { %v7593_v49 = vmul.f32 %v17775_v9, %v20153_v37  ;;  %16358 = vmatmul.mubr.msk.bf16.vlgmr.msra.gmra.mxu0 %vm2679_vm4, %v7624_v1 }
 0xeda   : > { %16368 = vmatpush3.bf16.msra.mxu0 %v7977_v51  ;;  %v7491_v11 = vpop.xlane.xlu1 %7490  ;;  %16369 = vmatprep.mubr.msk.bf16.mxu0 %vm18333_vm2, %v21764_v33 }
 0xedb   : > { %v7625_v2 = vpack.c.bf16 %v7593_v49, %v7593_v49  ;;  %17782 = vrcp.f32 %v7491_v11  ;;  %16379 = vmatprep.subr.bf16.mxu0 %v21764_v33  ;;  %v8253_v49 = vsel %vm3067_vm5, %v19994_v59, 0 }
 0xedc   : > { %v17777_v8 = vpop.eup %17776  ;;  %17784 = vpow2.f32 %v7453_v29 }
 0xedd   : > { %v7594_v37 = vmul.f32 %v17777_v8, %v20158_v36  ;;  %16364 = vmatmul.mubr.msk.bf16.vlgmr.msra.gmra.mxu1 %vm2679_vm4, %v7625_v2  ;;  %17786 = vpow2.f32 %v7451_v16 }
 0xede   : > { %16374 = vmatpush3.bf16.msra.mxu1 %v8023_v14  ;;  %v7494_v20 = vpop.xlane.xlu0 %7493  ;;  %16375 = vmatprep.mubr.msk.bf16.mxu1 %vm18333_vm2, %v21764_v33 }
 0xedf   : > { %v7626_v3 = vpack.c.bf16 %v7594_v37, %v7594_v37  ;;  %17788 = vrcp.f32 %v7494_v20  ;;  %16385 = vmatprep.subr.bf16.mxu1 %v21764_v33  ;;  %v21795_v20 = vld [vmem:[#allocation34_spill] sm:$0xff] }
 0xee0   : > { %v17779_v0 = vpop.eup %17778  ;;  %17790 = vpow2.f32 %v7457_v45  ;;  %v8299_v45 = vsel %vm3067_vm5, %v19980_v47, 0 }
 0xee1   : > { %v7595_v36 = vmul.f32 %v17779_v0, %v20162_v35  ;;  %16370 = vmatmul.mubr.msk.bf16.vlgmr.msra.gmra.mxu0 %vm2679_vm4, %v7626_v3  ;;  %17792 = vpow2.f32 %v7455_v52  ;;  %v8345_v52 = vsel %vm3067_vm5, %v21795_v20, 0 }
 0xee2   : > { %16380 = vmatpush3.bf16.msra.mxu0 %v8069_v10  ;;  %16381 = vmatprep.mubr.msk.bf16.mxu0 %vm18333_vm2, %v21764_v33 }
 0xee3   : > { %v7627_v27 = vpack.c.bf16 %v7595_v36, %v7595_v36  ;;  %v7497_v55 = vpop.xlane.xlu1 %7496  ;;  %16391 = vmatprep.subr.bf16.mxu0 %v21764_v33  ;;  %v21796_v36 = vld [vmem:[#allocation38_spill] sm:$0xff] }
 0xee4   : > { %v17781_v54 = vpop.eup %17780  ;;  %17794 = vrcp.f32 %v7497_v55 }
 0xee5   : > { %v7596_v30 = vmul.f32 %v17781_v54, %v20168_v42  ;;  %16376 = vmatmul.mubr.msk.bf16.vlgmr.msra.gmra.mxu1 %vm2679_vm4, %v7627_v27  ;;  %v8391_v27 = vsel %vm3067_vm5, %v21796_v36, 0 }
 0xee6   : > { %16386 = vmatpush3.bf16.msra.mxu1 %v8115_v24  ;;  %v7500_v35 = vpop.xlane.xlu0 %7499  ;;  %16387 = vmatprep.mubr.msk.bf16.mxu1 %vm18333_vm2, %v21764_v33  ;;  %v21797_v24 = vld [vmem:[#allocation27_spill] sm:$0xff] }
 0xee7   : > { %v7628_v31 = vpack.c.bf16 %v7596_v30, %v7596_v30  ;;  %17796 = vrcp.f32 %v7500_v35  ;;  %16397 = vmatprep.subr.bf16.mxu1 %v21764_v33  ;;  %v8437_v30 = vsel %vm3067_vm5, %v21797_v24, 0 }
 0xee8   : > { %v17783_v18 = vpop.eup %17782 }
 0xee9   : > { %v20336_v40 = vpop.eup %17784  ;;  %v7597_v34 = vmul.f32 %v17783_v18, %v20172_v62  ;;  %16382 = vmatmul.mubr.msk.bf16.vlgmr.msra.gmra.mxu0 %vm2679_vm4, %v7628_v31  ;;  %v8207_v62 = vsel %vm3067_vm5, %v19976_v21, 0  ;;  %v21798_v18 = vld [vmem:[#allocation25_spill] sm:$0xff] }
 0xeea   : > { %16392 = vmatpush3.bf16.msra.mxu0 %v8161_v50  ;;  %16393 = vmatprep.mubr.msk.bf16.mxu0 %vm18333_vm2, %v21764_v33  ;;  %v20344_v42 = vpop.eup %17786  ;;  %v7546_v61 = vsel %vm2679_vm4, %v20336_v40, 0.0  ;;  %v8483_v50 = vsel %vm3067_vm5, %v21798_v18, 0 }
 0xeeb   : > { %v7629_v38 = vpack.c.bf16 %v7597_v34, %v7597_v34  ;;  %v7503_v4 = vpop.xlane.xlu1 %7502  ;;  %16403 = vmatprep.subr.bf16.mxu0 %v21764_v33  ;;  %v7543_v25 = vsel %vm2679_vm4, %v20344_v42, 0.0 }
 0xeec   : > { %v17789_v39 = vpop.eup %17788  ;;  %17798 = vrcp.f32 %v7503_v4  ;;  %v21799_v4 = vld [vmem:[#allocation37_spill] sm:$0xff] }
 0xeed   : > { %v20349_v17 = vpop.eup %17790  ;;  %v7598_v1 = vmul.f32 %v17789_v39, %v20178_v13  ;;  %7547 = vadd.xlane.f32.xlu0 %v7546_v61  ;;  %16388 = vmatmul.mubr.msk.bf16.vlgmr.msra.gmra.mxu1 %vm2679_vm4, %v7629_v38  ;;  %v8529_v39 = vsel %vm3067_vm5, %v21799_v4, 0 }
 0xeee   : > { %16398 = vmatpush3.bf16.msra.mxu1 %v8207_v62  ;;  %v7506_v9 = vpop.xlane.xlu0 %7505  ;;  %16399 = vmatprep.mubr.msk.bf16.mxu1 %vm18333_vm2, %v21764_v33  ;;  %v20360_v51 = vpop.eup %17792  ;;  %v7552_v21 = vsel %vm2679_vm4, %v20349_v17, 0.0 }
 0xeef   : > { %v7630_v29 = vpack.c.bf16 %v7598_v1, %v7598_v1  ;;  %17800 = vrcp.f32 %v7506_v9  ;;  %16409 = vmatprep.subr.bf16.mxu1 %v21764_v33  ;;  %v7549_v57 = vsel %vm2679_vm4, %v20360_v51, 0.0  ;;  %v21801_v9 = vld [vmem:[#allocation24_spill] sm:$0xff] }
 0xef0   : > { %7544 = vadd.xlane.f32.xlu1 %v7543_v25 }
 0xef1   : > { %v17795_v13 = vpop.eup %17794  ;;  %7553 = vadd.xlane.f32.xlu0 %v7552_v21  ;;  %16394 = vmatmul.mubr.msk.bf16.vlgmr.msra.gmra.mxu0 %vm2679_vm4, %v7630_v29  ;;  %v8621_v29 = vsel %vm3067_vm5, %v21801_v9, 0 }
 0xef2   : > { %v7599_v16 = vmul.f32 %v17795_v13, %v20183_v7  ;;  %16404 = vmatpush3.bf16.msra.mxu0 %v8253_v49  ;;  %16405 = vmatprep.mubr.msk.bf16.mxu0 %vm18333_vm2, %v21764_v33 }
 0xef3   : > { %v7509_v11 = vpop.xlane.xlu1 %7508  ;;  %16415 = vmatprep.subr.bf16.mxu0 %v21764_v33 }
 0xef4   : > { %v17797_v2 = vpop.eup %17796  ;;  %v7631_v8 = vpack.c.bf16 %v7599_v16, %v7599_v16  ;;  %17802 = vrcp.f32 %v7509_v11  ;;  %7550 = vadd.xlane.f32.xlu1 %v7549_v57 }
 0xef5   : > { %v7600_v59 = vmul.f32 %v17797_v2, %v20187_v22 }
 0xef6   : > { %16400 = vmatmul.mubr.msk.bf16.vlgmr.msra.gmra.mxu1 %vm2679_vm4, %v7631_v8 }
 0xef7   : > { %v7632_v7 = vpack.c.bf16 %v7600_v59, %v7600_v59  ;;  %16410 = vmatpush3.bf16.msra.mxu1 %v8299_v45  ;;  %16411 = vmatprep.mubr.msk.bf16.mxu1 %vm18333_vm2, %v21764_v33 }
 0xef8   : > { %v7512_v14 = vpop.xlane.xlu0 %7511  ;;  %16421 = vmatprep.subr.bf16.mxu1 %v21764_v33 }
 0xef9   : > { %v17799_v37 = vpop.eup %17798  ;;  %17804 = vrcp.f32 %v7512_v14  ;;  %16406 = vmatmul.mubr.msk.bf16.vlgmr.msra.gmra.mxu0 %vm2679_vm4, %v7632_v7 }
 0xefa   : > { %v7601_v22 = vmul.f32 %v17799_v37, %v20193_v56  ;;  %16416 = vmatpush3.bf16.msra.mxu0 %v8345_v52  ;;  %16417 = vmatprep.mubr.msk.bf16.mxu0 %vm18333_vm2, %v21764_v33 }
 0xefb   : > { %v7515_v47 = vpop.xlane.xlu1 %7514  ;;  %16427 = vmatprep.subr.bf16.mxu0 %v21764_v33 }
 0xefc   : > { %v17801_v3 = vpop.eup %17800  ;;  %v7633_v0 = vpack.c.bf16 %v7601_v22, %v7601_v22  ;;  %17806 = vrcp.f32 %v7515_v47 }
 0xefd   : > { %v7602_v10 = vmul.f32 %v17801_v3, %v20198_v46 }
 0xefe   : > { %16412 = vmatmul.mubr.msk.bf16.vlgmr.msra.gmra.mxu1 %vm2679_vm4, %v7633_v0 }
 0xeff   : > { %v7634_v55 = vpack.c.bf16 %v7602_v10, %v7602_v10  ;;  %16422 = vmatpush3.bf16.msra.mxu1 %v8391_v27  ;;  %16423 = vmatprep.mubr.msk.bf16.mxu1 %vm18333_vm2, %v21764_v33 }
 0xf00   : > { %v7518_v56 = vpop.xlane.xlu0 %7517  ;;  %16433 = vmatprep.subr.bf16.mxu1 %v21764_v33 }
 0xf01   : > { %v17803_v54 = vpop.eup %17802  ;;  %17808 = vrcp.f32 %v7518_v56  ;;  %16418 = vmatmul.mubr.msk.bf16.vlgmr.msra.gmra.mxu0 %vm2679_vm4, %v7634_v55 }
 0xf02   : > { %v7603_v46 = vmul.f32 %v17803_v54, %v20209_v15  ;;  %16428 = vmatpush3.bf16.msra.mxu0 %v8437_v30  ;;  %16429 = vmatprep.mubr.msk.bf16.mxu0 %vm18333_vm2, %v21764_v33 }
 0xf03   : > { %16439 = vmatprep.subr.bf16.mxu0 %v21764_v33 }
 0xf04   : > { %v7635_v35 = vpack.c.bf16 %v7603_v46, %v7603_v46  ;;  %v21802_v46 = vld [vmem:[#allocation36_spill] sm:$0xff] }
 0xf05   : > { %5761 = vrot.lane.b32.xlu1 %v19743_v48, %s18340_s29 }
 0xf06   : > { %v17805_v31 = vpop.eup %17804  ;;  %16424 = vmatmul.mubr.msk.bf16.vlgmr.msra.gmra.mxu1 %vm2679_vm4, %v7635_v35  ;;  %v8713_v35 = vsel %vm3067_vm5, %v21802_v46, 0 }
 0xf07   : > { %v7604_v34 = vmul.f32 %v17805_v31, %v20220_v53  ;;  %16434 = vmatpush3.bf16.msra.mxu1 %v8483_v50  ;;  %5759 = vrot.lane.b32.xlu0 %v19758_v23, %s18340_s29  ;;  %v21800_v53 = vld [vmem:[#allocation26_spill] sm:$0xff] }
 0xf08   : > { %16435 = vmatprep.mubr.msk.bf16.mxu1 %vm18333_vm2, %v21764_v33  ;;  %16445 = vmatprep.subr.bf16.mxu1 %v21764_v33  ;;  %v8575_v62 = vsel %vm3067_vm5, %v21800_v53, 0 }
 0xf09   : > { %v17807_v15 = vpop.eup %17806  ;;  %v7636_v38 = vpack.c.bf16 %v7604_v34, %v7604_v34  ;;  %v21803_v34 = vld [vmem:[#allocation39_spill] sm:$0xff] }
 0xf0a   : > { %v7605_v48 = vmul.f32 %v17807_v15, %v20225_v43 }
 0xf0b   : > { %16430 = vmatmul.mubr.msk.bf16.vlgmr.msra.gmra.mxu0 %vm2679_vm4, %v7636_v38 }
 0xf0c   : > { %v7637_v61 = vpack.c.bf16 %v7605_v48, %v7605_v48  ;;  %16440 = vmatpush3.bf16.msra.mxu0 %v8529_v39  ;;  %16441 = vmatprep.mubr.msk.bf16.mxu0 %vm18333_vm2, %v21764_v33  ;;  %v8805_v48 = vsel %vm3067_vm5, %v20248_v44, 0 }
 0xf0d   : > { %16451 = vmatprep.subr.bf16.mxu0 %v21764_v33 }
 0xf0e   : > { %v17809_v23 = vpop.eup %17808  ;;  %16436 = vmatmul.mubr.msk.bf16.vlgmr.msra.gmra.mxu1 %vm2679_vm4, %v7637_v61 }
 0xf0f   : > { %v7606_v43 = vmul.f32 %v17809_v23, %v20235_v12  ;;  %16446 = vmatpush3.bf16.msra.mxu1 %v8575_v62  ;;  %16447 = vmatprep.mubr.msk.bf16.mxu1 %vm18333_vm2, %v21764_v33 }
 0xf10   : > { %16457 = vmatprep.subr.bf16.mxu1 %v21764_v33 }
 0xf11   : > { %v7638_v1 = vpack.c.bf16 %v7606_v43, %v7606_v43 }
 0xf13   : > { %16442 = vmatmul.mubr.msk.bf16.vlgmr.msra.gmra.mxu0 %vm2679_vm4, %v7638_v1 }
 0xf14   : > { %16452 = vmatpush3.bf16.msra.mxu0 %v8621_v29  ;;  %16453 = vmatprep.mubr.msk.bf16.mxu0 %vm18333_vm2, %v21764_v33 }
 0xf15   : > { %16463 = vmatprep.subr.bf16.mxu0 %v21764_v33 }
 0xf26   : > { %v20432_v25 = vpop.f32.mrf.mxu1 }
 0xf28   : > { %v16329_v12 = vpop.f32.mrf.mxu1 }
 0xf2a   : > { %v7694_v21 = vpop.f32.mrf.mxu1  ;;  %v20434_v13 = vpop.f32.mrf.mxu0 }
 0xf2c   : > { %v16330_v49 = vpop.f32.mrf.mxu1  ;;  %v16335_v16 = vpop.f32.mrf.mxu0 }
 0xf2e   : > { %v7740_v11 = vpop.f32.mrf.mxu0 }
 0xf30   : > { %v16336_v57 = vpop.f32.mrf.mxu0 }
 0xf33   : > { %v20436_v2 = vpop.f32.mrf.mxu0 }
 0xf35   : > { %v16347_v8 = vpop.f32.mrf.mxu0  ;;  %v7524_v59 = vpop.xlane.xlu0 %7523 }
 0xf36   : > { %v20438_v45 = vpop.f32.mrf.mxu1  ;;  %17810 = vrcp.f32 %v7524_v59 }
 0xf37   : > { %v7832_v7 = vpop.f32.mrf.mxu0 }
 0xf38   : > { %v16341_v14 = vpop.f32.mrf.mxu1  ;;  %v7521_v37 = vpop.xlane.xlu1 %7520 }
 0xf39   : > { %17812 = vrcp.f32 %v7521_v37  ;;  %v16348_v20 = vpop.f32.mrf.mxu0  ;;  %v7530_v52 = vpop.xlane.xlu0 %7529 }
 0xf3a   : > { %v7786_v22 = vpop.f32.mrf.mxu1  ;;  %17814 = vrcp.f32 %v7530_v52 }
 0xf3c   : > { %v16342_v47 = vpop.f32.mrf.mxu1  ;;  %v7527_v3 = vpop.xlane.xlu1 %7526 }
 0xf3d   : > { %17816 = vrcp.f32 %v7527_v3  ;;  %v7536_v0 = vpop.xlane.xlu0 %7535 }
 0xf3e   : > { %17818 = vrcp.f32 %v7536_v0 }
 0xf40   : > { %v7533_v10 = vpop.xlane.xlu1 %7532 }
 0xf41   : > { %17820 = vrcp.f32 %v7533_v10  ;;  %v7542_v30 = vpop.xlane.xlu0 %7541 }
 0xf42   : > { %17822 = vrcp.f32 %v7542_v30 }
 0xf43   : > { %v17811_v36 = vpop.eup %17810 }
 0xf44   : > { %v7608_v27 = vmul.f32 %v17811_v36, %v20260_v41  ;;  %v7539_v50 = vpop.xlane.xlu1 %7538 }
 0xf45   : > { %17824 = vrcp.f32 %v7539_v50  ;;  %v5756_v21 = vpop.permute.xlu0 %5755 }
 0xf46   : > { %v17813_v55 = vpop.eup %17812  ;;  %v7640_v56 = vpack.c.bf16 %v7608_v27, %v7608_v27 }
 0xf47   : > { %v17815_v54 = vpop.eup %17814  ;;  %v7607_v24 = vmul.f32 %v17813_v55, %v20264_v5  ;;  %v8667_v5 = vsel %vm3067_vm5, %v21803_v34, 0  ;;  %v21805_v55 = vmov 0  }
 0xf48   : > { %16454 = vmatmul.mubr.msk.bf16.vlgmr.msra.gmra.mxu0 %vm2679_vm4, %v7640_v56  ;;  %v7610_v41 = vmul.f32 %v17815_v54, %v20266_v58  ;;  %v5758_v29 = vpop.permute.xlu1 %5757 }
 0xf49   : > { %v7639_v31 = vpack.c.bf16 %v7607_v24, %v7607_v24  ;;  %16464 = vmatpush3.bf16.msra.mxu0 %v8713_v35  ;;  %16465 = vmatprep.mubr.msk.bf16.mxu0 %vm18333_vm2, %v21764_v33 }
 0xf4a   : > { %v17817_v18 = vpop.eup %17816  ;;  %16475 = vmatprep.subr.bf16.mxu0 %v21764_v33  ;;  %v7642_v38 = vpack.c.bf16 %v7610_v41, %v7610_v41 }
 0xf4b   : > { %16448 = vmatmul.mubr.msk.bf16.vlgmr.msra.gmra.mxu1 %vm2679_vm4, %v7639_v31  ;;  %v7609_v15 = vmul.f32 %v17817_v18, %v20272_v6  ;;  %v17819_v58 = vpop.eup %17818  ;;  %v21804_v6 = vld [vmem:[#allocation40_spill] sm:$0xff] }
 0xf4c   : > { %16458 = vmatpush3.bf16.msra.mxu1 %v8667_v5  ;;  %16459 = vmatprep.mubr.msk.bf16.mxu1 %vm18333_vm2, %v21764_v33  ;;  %v7612_v61 = vmul.f32 %v17819_v58, %v20274_v63  ;;  %v8759_v23 = vsel %vm3067_vm5, %v21804_v6, 0  ;;  %v8897_v63 = vsel %vm3067_vm5, %v20250_v19, 0 }
 0xf4d   : > { %16469 = vmatprep.subr.bf16.mxu1 %v21764_v33  ;;  %v7641_v4 = vpack.c.bf16 %v7609_v15, %v7609_v15 }
 0xf4e   : > { %v17821_v39 = vpop.eup %17820  ;;  %v7644_v53 = vpack.c.bf16 %v7612_v61, %v7612_v61 }
 0xf4f   : > { %v7611_v44 = vmul.f32 %v17821_v39, %v20280_v32  ;;  %v17823_v62 = vpop.eup %17822  ;;  %v8851_v32 = vsel %vm3067_vm5, %v20246_v26, 0  ;;  %v8943_v26 = vsel %vm3067_vm5, %v5756_v21, 0 }
 0xf50   : > { %16466 = vmatmul.mubr.msk.bf16.vlgmr.msra.gmra.mxu0 %vm2679_vm4, %v7642_v38  ;;  %v7614_v9 = vmul.f32 %v17823_v62, %v20282_v60  ;;  %v8989_v60 = vsel %vm3067_vm5, %v5758_v29, 0 }
 0xf51   : > { %16476 = vmatpush3.bf16.msra.mxu0 %v8805_v48  ;;  %16477 = vmatprep.mubr.msk.bf16.mxu0 %vm18333_vm2, %v21764_v33  ;;  %v7643_v43 = vpack.c.bf16 %v7611_v44, %v7611_v44 }
 0xf52   : > { %16487 = vmatprep.subr.bf16.mxu0 %v21764_v33  ;;  %v17825_v1 = vpop.eup %17824  ;;  %v7646_v12 = vpack.c.bf16 %v7614_v9, %v7614_v9 }
 0xf53   : > { %16460 = vmatmul.mubr.msk.bf16.vlgmr.msra.gmra.mxu1 %vm2679_vm4, %v7641_v4  ;;  %v7613_v19 = vmul.f32 %v17825_v1, %v20288_v28 }
 0xf54   : > { %16470 = vmatpush3.bf16.msra.mxu1 %v8759_v23  ;;  %16471 = vmatprep.mubr.msk.bf16.mxu1 %vm18333_vm2, %v21764_v33 }
 0xf55   : > { %16481 = vmatprep.subr.bf16.mxu1 %v21764_v33  ;;  %v7645_v49 = vpack.c.bf16 %v7613_v19, %v7613_v19 }
 0xf58   : > { %16478 = vmatmul.mubr.msk.bf16.vlgmr.msra.gmra.mxu0 %vm2679_vm4, %v7644_v53 }
 0xf59   : > { %16488 = vmatpush3.bf16.msra.mxu0 %v8897_v63  ;;  %16489 = vmatprep.mubr.msk.bf16.mxu0 %vm18333_vm2, %v21764_v33 }
 0xf5a   : > { %16499 = vmatprep.subr.bf16.mxu0 %v21764_v33 }
 0xf5b   : > { %16472 = vmatmul.mubr.msk.bf16.vlgmr.msra.gmra.mxu1 %vm2679_vm4, %v7643_v43 }
 0xf5c   : > { %16482 = vmatpush3.bf16.msra.mxu1 %v8851_v32  ;;  %16483 = vmatprep.mubr.msk.bf16.mxu1 %vm18333_vm2, %v21764_v33 }
 0xf5d   : > { %16493 = vmatprep.subr.bf16.mxu1 %v21764_v33 }
 0xf60   : > { %16490 = vmatmul.mubr.msk.bf16.vlgmr.msra.gmra.mxu0 %vm2679_vm4, %v7646_v12 }
 0xf61   : > { %16500 = vmatpush3.bf16.msra.mxu0 %v8989_v60  ;;  %16501 = vmatprep.mubr.msk.bf16.mxu0 %vm18333_vm2, %v21764_v33 }
 0xf62   : > { %16511 = vmatprep.subr.bf16.mxu0 %v21764_v33 }
 0xf63   : > { %16484 = vmatmul.mubr.msk.bf16.vlgmr.msra.gmra.mxu1 %vm2679_vm4, %v7645_v49 }
 0xf64   : > { %16494 = vmatpush3.bf16.msra.mxu1 %v8943_v26  ;;  %16495 = vmatprep.mubr.msk.bf16.mxu1 %vm18333_vm2, %v21764_v33 }
 0xf65   : > { %16505 = vmatprep.subr.bf16.mxu1 %v21764_v33 }
 0xf76   : > { %v7548_v28 = vpop.xlane.xlu0 %7547 }
 0xf77   : > { %17826 = vrcp.f32 %v7548_v28 }
 0xf79   : > { %v7545_v16 = vpop.xlane.xlu1 %7544 }
 0xf7a   : > { %17828 = vrcp.f32 %v7545_v16  ;;  %v7554_v11 = vpop.xlane.xlu0 %7553 }
 0xf7b   : > { %17830 = vrcp.f32 %v7554_v11 }
 0xf7d   : > { %v7551_v57 = vpop.xlane.xlu1 %7550 }
 0xf7e   : > { %17832 = vrcp.f32 %v7551_v57  ;;  %v5760_v22 = vpop.permute.xlu0 %5759 }
 0xf81   : > { %v5762_v7 = vpop.permute.xlu1 %5761 }
 0xf82   : > { %v9081_v47 = vsel %vm3067_vm5, %v5762_v7, 0 }
 0xf84   : > { %v17827_v8 = vpop.eup %17826 }
 0xf85   : > { %v7616_v59 = vmul.f32 %v17827_v8, %v20336_v40  ;;  %v9035_v40 = vsel %vm3067_vm5, %v5760_v22, 0 }
 0xf87   : > { %v17829_v14 = vpop.eup %17828  ;;  %v7648_v37 = vpack.c.bf16 %v7616_v59, %v7616_v59 }
 0xf88   : > { %v17831_v20 = vpop.eup %17830  ;;  %v7615_v52 = vmul.f32 %v17829_v14, %v20344_v42 }
 0xf89   : > { %16502 = vmatmul.mubr.msk.bf16.vlgmr.msra.gmra.mxu0 %vm2679_vm4, %v7648_v37  ;;  %v7618_v10 = vmul.f32 %v17831_v20, %v20349_v17 }
 0xf8a   : > { %v7647_v3 = vpack.c.bf16 %v7615_v52, %v7615_v52  ;;  %16512 = vmatpush3.bf16.msra.mxu0 %v9081_v47  ;;  %16513 = vmatprep.mubr.msk.bf16.mxu0 %vm18333_vm2, %v21764_v33 }
 0xf8b   : > { %v17833_v0 = vpop.eup %17832  ;;  %v7650_v36 = vpack.c.bf16 %v7618_v10, %v7618_v10 }
 0xf8c   : > { %16496 = vmatmul.mubr.msk.bf16.vlgmr.msra.gmra.mxu1 %vm2679_vm4, %v7647_v3  ;;  %v7617_v42 = vmul.f32 %v17833_v0, %v20360_v51 }
 0xf8d   : > { %16506 = vmatpush3.bf16.msra.mxu1 %v9035_v40  ;;  %16507 = vmatprep.mubr.msk.bf16.mxu1 %vm18333_vm2, %v21764_v33 }
 0xf8e   : > { %v7649_v27 = vpack.c.bf16 %v7617_v42, %v7617_v42 }
 0xf91   : > { %16514 = vmatmul.mubr.msk.bf16.vlgmr.msra.gmra.mxu0 %vm2679_vm4, %v7650_v36 }
 0xf92   : > { %9603 = vmatprep.mubr.bf16.mxu0 %v21805_v55 }
 0xf94   : > { %16508 = vmatmul.mubr.msk.bf16.vlgmr.msra.gmra.mxu1 %vm2679_vm4, %v7649_v27 }
 0xf95   : > { %v7875_v56 = vpop.f32.mrf.mxu1 }
 0xf97   : > { %v16353_v17 = vpop.f32.mrf.mxu1 }
 0xf99   : > { %v7878_v54 = vpop.f32.mrf.mxu1  ;;  %v7921_v24 = vpop.f32.mrf.mxu0 }
 0xf9a   : > { %v17180_v30 = vpack.i.bf16 %v7921_v24, %v7875_v56 }
 0xf9b   : > { %v16354_v46 = vpop.f32.mrf.mxu1  ;;  %v16359_v35 = vpop.f32.mrf.mxu0 }
 0xf9c   : > { %17181 = vrot.lane.b32.xlu0 %v17180_v30, %s18340_s29 }
 0xf9d   : > { %v7924_v31 = vpop.f32.mrf.mxu0  ;;  %v7967_v18 = vpop.f32.mrf.mxu1 }
 0xf9f   : > { %v16360_v51 = vpop.f32.mrf.mxu0  ;;  %v16365_v41 = vpop.f32.mrf.mxu1 }
 0xfa1   : > { %v7970_v50 = vpop.f32.mrf.mxu1  ;;  %v8013_v34 = vpop.f32.mrf.mxu0 }
 0xfa2   : > { %v17185_v5 = vpack.i.bf16 %v8013_v34, %v7967_v18 }
 0xfa3   : > { %v16366_v15 = vpop.f32.mrf.mxu1  ;;  %v16371_v38 = vpop.f32.mrf.mxu0 }
 0xfa4   : > { %17186 = vrot.lane.b32.xlu1 %v17185_v5, %s18340_s29 }
 0xfa5   : > { %v8016_v58 = vpop.f32.mrf.mxu0  ;;  %v8059_v48 = vpop.f32.mrf.mxu1 }
 0xfa7   : > { %v16372_v4 = vpop.f32.mrf.mxu0  ;;  %v16377_v39 = vpop.f32.mrf.mxu1 }
 0xfa9   : > { %v8062_v61 = vpop.f32.mrf.mxu1  ;;  %v8105_v6 = vpop.f32.mrf.mxu0 }
 0xfaa   : > { %v17190_v23 = vpack.i.bf16 %v8105_v6, %v8059_v48 }
 0xfab   : > { %v16378_v44 = vpop.f32.mrf.mxu1  ;;  %v16383_v53 = vpop.f32.mrf.mxu0 }
 0xfac   : > { %17191 = vrot.lane.b32.xlu0 %v17190_v23, %s18339_s28 }
 0xfad   : > { %v8108_v62 = vpop.f32.mrf.mxu0  ;;  %v8151_v63 = vpop.f32.mrf.mxu1 }
 0xfaf   : > { %v16384_v43 = vpop.f32.mrf.mxu0  ;;  %v16389_v1 = vpop.f32.mrf.mxu1 }
 0xfb1   : > { %v8154_v9 = vpop.f32.mrf.mxu1  ;;  %v8197_v32 = vpop.f32.mrf.mxu0 }
 0xfb2   : > { %v17195_v19 = vpack.i.bf16 %v8197_v32, %v8151_v63 }
 0xfb3   : > { %v16390_v29 = vpop.f32.mrf.mxu1  ;;  %v16395_v12 = vpop.f32.mrf.mxu0 }
 0xfb4   : > { %17196 = vrot.lane.b32.xlu1 %v17195_v19, %s18339_s28 }
 0xfb5   : > { %v8200_v21 = vpop.f32.mrf.mxu0 }
 0xfb6   : > { %v8243_v60 = vpop.f32.mrf.mxu1 }
 0xfb7   : > { %v16396_v49 = vpop.f32.mrf.mxu0 }
 0xfb8   : > { %v16401_v26 = vpop.f32.mrf.mxu1  ;;  %v17435_v49 = vld [vmem:[#allocation11 + $0x70] sm:$0xff]  }
 0xfb9   : > { %v8289_v28 = vpop.f32.mrf.mxu0 }
 0xfba   : > { %v8246_v16 = vpop.f32.mrf.mxu1  ;;  %v17200_v11 = vpack.i.bf16 %v8289_v28, %v8243_v60  ;;  %v17434_v60 = vld [vmem:[#allocation11 + $0x78] sm:$0xff]  }
 0xfbb   : > { %v16407_v57 = vpop.f32.mrf.mxu0  ;;  %16517 = vmatprep.subr.bf16.mxu1 %v17434_v60 }
 0xfbc   : > { %v16402_v8 = vpop.f32.mrf.mxu1  ;;  %17201 = vrot.lane.b32.xlu0 %v17200_v11, %s18338_s17  ;;  %16518 = vmatpush3.bf16.msra.mxu1 %v17434_v60 }
 0xfbd   : > { %v8292_v59 = vpop.f32.mrf.mxu0  ;;  %16519 = vmatprep.subr.bf16.mxu1 %v17435_v49  ;;  %v17436_v8 = vld [vmem:[#allocation11 + $0x68] sm:$0xff]  }
 0xfbe   : > { %v8335_v7 = vpop.f32.mrf.mxu1 }
 0xfbf   : > { %v16408_v14 = vpop.f32.mrf.mxu0 }
 0xfc0   : > { %v16413_v37 = vpop.f32.mrf.mxu1  ;;  %16520 = vmatpush3.bf16.msra.mxu1 %v17435_v49 }
 0xfc1   : > { %v8381_v20 = vpop.f32.mrf.mxu0  ;;  %16521 = vmatprep.subr.bf16.mxu1 %v17436_v8 }
 0xfc2   : > { %v8338_v52 = vpop.f32.mrf.mxu1  ;;  %v17205_v22 = vpack.i.bf16 %v8381_v20, %v8335_v7  ;;  %v17437_v20 = vld [vmem:[#allocation11 + $0x60] sm:$0xff]  }
 0xfc3   : > { %v16419_v47 = vpop.f32.mrf.mxu0 }
 0xfc4   : > { %v16414_v3 = vpop.f32.mrf.mxu1  ;;  %17206 = vrot.lane.b32.xlu1 %v17205_v22, %s18338_s17  ;;  %16522 = vmatpush3.bf16.msra.mxu1 %v17436_v8 }
 0xfc5   : > { %v8384_v0 = vpop.f32.mrf.mxu0  ;;  %16523 = vmatprep.subr.bf16.mxu1 %v17437_v20 }
 0xfc6   : > { %v8427_v10 = vpop.f32.mrf.mxu1 }
 0xfc7   : > { %v16420_v40 = vpop.f32.mrf.mxu0 }
 0xfc8   : > { %v16425_v42 = vpop.f32.mrf.mxu1  ;;  %16524 = vmatpush3.bf16.msra.mxu1 %v17437_v20 }
 0xfc9   : > { %v17439_v42 = vld [vmem:[#allocation11 + $0x50] sm:$0xff]  }
 0xfca   : > { %v8430_v36 = vpop.f32.mrf.mxu1 }
 0xfcb   : > { %v8473_v27 = vpop.f32.mrf.mxu0  ;;  %v17440_v36 = vld [vmem:[#allocation11 + $0x48] sm:$0xff]  }
 0xfcc   : > { %v16426_v56 = vpop.f32.mrf.mxu1  ;;  %v17210_v17 = vpack.i.bf16 %v8473_v27, %v8427_v10  ;;  %v17438_v10 = vld [vmem:[#allocation11 + $0x58] sm:$0xff]  }
 0xfcd   : > { %v16431_v54 = vpop.f32.mrf.mxu0  ;;  %16525 = vmatprep.subr.bf16.mxu1 %v17438_v10 }
 0xfce   : > { %v8519_v24 = vpop.f32.mrf.mxu1  ;;  %17211 = vrot.lane.b32.xlu0 %v17210_v17, %s18337_s9  ;;  %16526 = vmatpush3.bf16.msra.mxu1 %v17438_v10  ;;  %v17441_v17 = vld [vmem:[#allocation11 + $0x40] sm:$0xff]  }
 0xfcf   : > { %v8476_v30 = vpop.f32.mrf.mxu0  ;;  %16527 = vmatprep.subr.bf16.mxu1 %v17439_v42 }
 0xfd0   : > { %v16437_v46 = vpop.f32.mrf.mxu1 }
 0xfd1   : > { %v16432_v35 = vpop.f32.mrf.mxu0 }
 0xfd2   : > { %v8522_v31 = vpop.f32.mrf.mxu1  ;;  %16528 = vmatpush3.bf16.msra.mxu1 %v17439_v42 }
 0xfd3   : > { %v8565_v18 = vpop.f32.mrf.mxu0  ;;  %16529 = vmatprep.subr.bf16.mxu1 %v17440_v36 }
 0xfd4   : > { %v16438_v51 = vpop.f32.mrf.mxu1  ;;  %v17215_v41 = vpack.i.bf16 %v8565_v18, %v8519_v24 }
 0xfd5   : > { %v16443_v50 = vpop.f32.mrf.mxu0 }
 0xfd6   : > { %17216 = vrot.lane.b32.xlu1 %v17215_v41, %s18337_s9  ;;  %16530 = vmatpush3.bf16.msra.mxu1 %v17440_v36 }
 0xfd7   : > { %v8568_v34 = vpop.f32.mrf.mxu0  ;;  %16531 = vmatprep.subr.bf16.mxu1 %v17441_v17 }
 0xfd9   : > { %v16444_v5 = vpop.f32.mrf.mxu0 }
 0xfda   : > { %16532 = vmatpush3.bf16.msra.mxu1 %v17441_v17 }
0x1008   : > { %v8657_v15 = vpop.f32.mrf.mxu0 }
0x100a   : > { %v16455_v38 = vpop.f32.mrf.mxu0 }
0x100b   : > { %v8611_v58 = vpop.f32.mrf.mxu1 }
0x100c   : > { %v17220_v48 = vpack.i.bf16 %v8657_v15, %v8611_v58  ;;  %v8660_v4 = vpop.f32.mrf.mxu0 }
0x100d   : > { %v16449_v39 = vpop.f32.mrf.mxu1 }
0x100e   : > { %17221 = vrot.lane.b32.xlu0 %v17220_v48, %s18336_s30  ;;  %v16456_v61 = vpop.f32.mrf.mxu0  ;;  %v17182_v4 = vpop.permute.xlu0 %17181 }
0x100f   : > { %v8614_v6 = vpop.f32.mrf.mxu1 }
0x1010   : > { %v8749_v23 = vpop.f32.mrf.mxu0 }
0x1011   : > { %v16450_v44 = vpop.f32.mrf.mxu1 }
0x1012   : > { %v16467_v53 = vpop.f32.mrf.mxu0 }
0x1013   : > { %v8703_v62 = vpop.f32.mrf.mxu1 }
0x1014   : > { %v17225_v63 = vpack.i.bf16 %v8749_v23, %v8703_v62  ;;  %v8752_v43 = vpop.f32.mrf.mxu0 }
0x1015   : > { %v16461_v1 = vpop.f32.mrf.mxu1  ;;  %v17183_v43 = vunpack.i.l.bf16 %v17182_v4 }
0x1016   : > { %17226 = vrot.lane.b32.xlu1 %v17225_v63, %s18336_s30  ;;  %v16468_v9 = vpop.f32.mrf.mxu0  ;;  %v17187_v61 = vpop.permute.xlu1 %17186  ;;  %v17184_v63 = vunpack.i.h.bf16 %v17182_v4 }
0x1017   : > { %v8706_v32 = vpop.f32.mrf.mxu1  ;;  %v17189_v20 = vunpack.i.h.bf16 %v17187_v61 }
0x1018   : > { %v8841_v19 = vpop.f32.mrf.mxu0  ;;  %v9236_v49 = vsel %vm1174_vm3, %v20434_v13, %v17184_v63 }
0x1019   : > { %v16462_v29 = vpop.f32.mrf.mxu1 }
0x101a   : > { %v16479_v12 = vpop.f32.mrf.mxu0 }
0x101b   : > { %v8795_v21 = vpop.f32.mrf.mxu1 }
0x101c   : > { %v17230_v26 = vpack.i.bf16 %v8841_v19, %v8795_v21  ;;  %v8844_v28 = vpop.f32.mrf.mxu0 }
0x101d   : > { %v16473_v16 = vpop.f32.mrf.mxu1 }
0x101e   : > { %17231 = vrot.lane.b32.xlu0 %v17230_v26, %s18335_s25  ;;  %v16480_v11 = vpop.f32.mrf.mxu0  ;;  %v17192_v39 = vpop.permute.xlu0 %17191  ;;  %v9235_v26 = vsel %vm1174_vm3, %v20432_v25, %v17183_v43 }
0x101f   : > { %v8798_v57 = vpop.f32.mrf.mxu1  ;;  %v17194_v1 = vunpack.i.h.bf16 %v17192_v39  ;;  %v17193_v9 = vunpack.i.l.bf16 %v17192_v39 }
0x1020   : > { %v8933_v59 = vpop.f32.mrf.mxu0 }
0x1021   : > { %v16474_v7 = vpop.f32.mrf.mxu1  ;;  %v9240_v11 = vsel %vm658_vm1, %v9236_v49, %v17194_v1  ;;  %v9239_v57 = vsel %vm658_vm1, %v9235_v26, %v17193_v9  ;;  %v14919_v9 = vld [vmem:[%s21661_s6 + $0x1] ss:$0 sm:$0xff] }
0x1022   : > { %v16491_v14 = vpop.f32.mrf.mxu0 }
0x1023   : > { %v8887_v37 = vpop.f32.mrf.mxu1 }
0x1024   : > { %v17235_v52 = vpack.i.bf16 %v8933_v59, %v8887_v37  ;;  %v8936_v22 = vpop.f32.mrf.mxu0 }
0x1025   : > { %v16485_v47 = vpop.f32.mrf.mxu1 }
0x1026   : > { %17236 = vrot.lane.b32.xlu1 %v17235_v52, %s18335_s25  ;;  %v16492_v3 = vpop.f32.mrf.mxu0  ;;  %v17197_v23 = vpop.permute.xlu1 %17196  ;;  %v17188_v52 = vunpack.i.l.bf16 %v17187_v61 }
0x1027   : > { %v8890_v0 = vpop.f32.mrf.mxu1  ;;  %v17198_v42 = vunpack.i.l.bf16 %v17197_v23 }
0x1029   : > { %v16486_v40 = vpop.f32.mrf.mxu1 }
0x102a   : > { %v17199_v40 = vunpack.i.h.bf16 %v17197_v23 }
0x102e   : > { %v17202_v6 = vpop.permute.xlu0 %17201 }
0x102f   : > { %v17204_v32 = vunpack.i.h.bf16 %v17202_v6  ;;  %v17203_v19 = vunpack.i.l.bf16 %v17202_v6 }
0x1031   : > { %v9244_v7 = vsel %vm4657_vm6, %v9240_v11, %v17204_v32  ;;  %v9243_v14 = vsel %vm4657_vm6, %v9239_v57, %v17203_v19  ;;  %v21808_v57 = vld [vmem:[#allocation33_spill] sm:$0xff] }
0x1036   : > { %v17207_v53 = vpop.permute.xlu1 %17206 }
0x1037   : > { %v17208_v17 = vunpack.i.l.bf16 %v17207_v53 }
0x1040   : > { %v17212_v44 = vpop.permute.xlu0 %17211 }
0x1041   : > { %v17214_v21 = vunpack.i.h.bf16 %v17212_v44  ;;  %v17213_v60 = vunpack.i.l.bf16 %v17212_v44 }
0x1043   : > { %v9248_v13 = vsel %vm4662_vm7, %v9244_v7, %v17214_v21  ;;  %v9247_v22 = vsel %vm4662_vm7, %v9243_v14, %v17213_v60  ;;  %v21806_v21 = vld [vmem:[#allocation31_spill] sm:$0xff] }
0x1044   : > { %v17442_v14 = vld [vmem:[#allocation14 + $0xf0] ss:$8 sps:$4 sm:$0xff]  }
0x1048   : > { %v17217_v29 = vpop.permute.xlu1 %17216 }
0x1049   : > { %v9025_v27 = vpop.f32.mrf.mxu0 }
0x104b   : > { %v16503_v56 = vpop.f32.mrf.mxu0 }
0x104c   : > { %v8979_v54 = vpop.f32.mrf.mxu1  ;;  %v17209_v56 = vunpack.i.h.bf16 %v17207_v53 }
0x104d   : > { %v17240_v24 = vpack.i.bf16 %v9025_v27, %v8979_v54  ;;  %v9028_v30 = vpop.f32.mrf.mxu0 }
0x104e   : > { %v16497_v46 = vpop.f32.mrf.mxu1 }
0x104f   : > { %17241 = vrot.lane.b32.xlu0 %v17240_v24, %s18334_s4  ;;  %v16504_v35 = vpop.f32.mrf.mxu0  ;;  %v17219_v46 = vunpack.i.h.bf16 %v17217_v29 }
0x1050   : > { %v8982_v31 = vpop.f32.mrf.mxu1  ;;  %v17218_v35 = vunpack.i.l.bf16 %v17217_v29 }
0x1051   : > { %v9117_v18 = vpop.f32.mrf.mxu0 }
0x1052   : > { %v16498_v51 = vpop.f32.mrf.mxu1 }
0x1053   : > { %v16515_v41 = vpop.f32.mrf.mxu0  ;;  %v9237_v51 = vsel %vm1174_vm3, %v20438_v45, %v17188_v52 }
0x1054   : > { %v9071_v50 = vpop.f32.mrf.mxu1 }
0x1055   : > { %v17245_v34 = vpack.i.bf16 %v9117_v18, %v9071_v50  ;;  %v9120_v5 = vpop.f32.mrf.mxu0  ;;  %v9238_v18 = vsel %vm1174_vm3, %v20436_v2, %v17189_v20 }
0x1056   : > { %v16509_v15 = vpop.f32.mrf.mxu1  ;;  %v9242_v5 = vsel %vm658_vm1, %v9238_v18, %v17199_v40  ;;  %v17451_v18 = vld [vmem:[#allocation14 + $0xc0] ss:$8 sps:$4 sm:$0xff]  }
0x1057   : > { %17246 = vrot.lane.b32.xlu1 %v17245_v34, %s18334_s4  ;;  %v16516_v38 = vpop.f32.mrf.mxu0  ;;  %v9241_v34 = vsel %vm658_vm1, %v9237_v51, %v17198_v42  ;;  %v17456_v51 = vld [vmem:[#allocation14 + $0xb4] ss:$8 sps:$4 sm:$0xff]  }
0x1058   : > { %v9074_v58 = vpop.f32.mrf.mxu1 }
0x1059   : > { %v9245_v58 = vsel %vm4657_vm6, %v9241_v34, %v17208_v17  ;;  %v17457_v34 = vld [vmem:[#allocation14 + $0xa0] ss:$8 sps:$4 sm:$0xff]  }
0x105a   : > { %v16510_v48 = vpop.f32.mrf.mxu1  ;;  %v9249_v4 = vsel %vm4662_vm7, %v9245_v58, %v17218_v35  ;;  %v17448_v35 = vld [vmem:[#allocation14 + $0xd0] ss:$8 sps:$4 sm:$0xff]   ;;  %v17463_v58 = vld [vmem:[#allocation14 + $0x80] ss:$8 sps:$4 sm:$0xff]  }
0x105b   : > { %v9246_v48 = vsel %vm4657_vm6, %v9242_v5, %v17209_v56  ;;  %v17462_v5 = vld [vmem:[#allocation14 + $0x94] ss:$8 sps:$4 sm:$0xff]  }
0x105c   : > { %v9250_v2 = vsel %vm4662_vm7, %v9246_v48, %v17219_v46  ;;  %v17450_v46 = vld [vmem:[#allocation14 + $0xd4] ss:$8 sps:$4 sm:$0xff]  }
0x105d   : > { %v17466_v48 = vld [vmem:[#allocation16 + $0xf8] sm:$0xff]  }
0x105e   : > { %15477 = vmatprep.subr.bf16.mxu1 %v17466_v48 }
0x1080   : > { %v17222_v62 = vpop.permute.xlu0 %17221 }
0x1081   : > { %v17224_v28 = vunpack.i.h.bf16 %v17222_v62  ;;  %v17223_v16 = vunpack.i.l.bf16 %v17222_v62 }
0x1083   : > { %v9252_v47 = vsel %vm4667_vm8, %v9248_v13, %v17224_v28  ;;  %v9251_v3 = vsel %vm4667_vm8, %v9247_v22, %v17223_v16  ;;  %v21807_v28 = vld [vmem:[#allocation32_spill] sm:$0xff] }
0x1088   : > { %v17227_v37 = vpop.permute.xlu1 %17226 }
0x1089   : > { %v17229_v41 = vunpack.i.h.bf16 %v17227_v37  ;;  %v17228_v50 = vunpack.i.l.bf16 %v17227_v37  ;;  %v17444_v37 = vld [vmem:[#allocation14 + $0xf4] ss:$8 sps:$4 sm:$0xff]  }
0x108a   : > { %9571 = vmatprep.subr.bf16.mxu0 %v17444_v37 }
0x108b   : > { %v9253_v45 = vsel %vm4667_vm8, %v9249_v4, %v17228_v50  ;;  %v9254_v61 = vsel %vm4667_vm8, %v9250_v2, %v17229_v41  ;;  %9572 = vmatpush1.bf16.msra.mxu0 %v17442_v14  ;;  %v17454_v41 = vld [vmem:[#allocation14 + $0xb0] ss:$8 sps:$4 sm:$0xff]   ;;  %v17459_v50 = vld [vmem:[#allocation14 + $0xa4] ss:$8 sps:$4 sm:$0xff]  }
0x108c   : > { %v17467_v4 = vld [vmem:[#allocation16 + $0xb8] sm:$0xff]   ;;  %v17468_v2 = vld [vmem:[#allocation16 + $0xf0] sm:$0xff]  }
0x1090   : > { %v17232_v12 = vpop.permute.xlu0 %17231 }
0x1091   : > { %v17234_v8 = vunpack.i.h.bf16 %v17232_v12  ;;  %v17233_v59 = vunpack.i.l.bf16 %v17232_v12 }
0x1093   : > { %v9255_v36 = vsel %vm4672_vm9, %v9251_v3, %v17233_v59  ;;  %v9256_v27 = vsel %vm4672_vm9, %v9252_v47, %v17234_v8  ;;  %v21809_v59 = vld [vmem:[#allocation35_spill] sm:$0xff] }
0x1098   : > { %v17237_v54 = vpop.permute.xlu1 %17236 }
0x1099   : > { %v17239_v15 = vunpack.i.h.bf16 %v17237_v54  ;;  %v17238_v38 = vunpack.i.l.bf16 %v17237_v54 }
0x109b   : > { %v9257_v44 = vsel %vm4672_vm9, %v9253_v45, %v17238_v38  ;;  %v9258_v53 = vsel %vm4672_vm9, %v9254_v61, %v17239_v15  ;;  %v17460_v15 = vld [vmem:[#allocation14 + $0x90] ss:$8 sps:$4 sm:$0xff]   ;;  %v17465_v38 = vld [vmem:[#allocation14 + $0x84] ss:$8 sps:$4 sm:$0xff]  }
0x109c   : > { %v17470_v45 = vld [vmem:[#allocation16 + $0xe8] sm:$0xff]  }
0x109d   : > { %v17471_v61 = vld [vmem:[#allocation16 + $0xa8] sm:$0xff]  }
0x10c1   : > { %v17242_v25 = vpop.permute.xlu0 %17241 }
0x10c2   : > { %v17244_v0 = vunpack.i.h.bf16 %v17242_v25  ;;  %v17243_v10 = vunpack.i.l.bf16 %v17242_v25 }
0x10c4   : > { %v9259_v24 = vsel %vm4677_vm10, %v9255_v36, %v17243_v10  ;;  %v9260_v30 = vsel %vm4677_vm10, %v9256_v27, %v17244_v0 }
0x10c5   : > { %v9263_v31 = vpack.c.bf16 %v9260_v30, %v9259_v24  ;;  %v17447_v24 = vld [vmem:[#allocation14 + $0xe4] ss:$8 sps:$4 sm:$0xff]   ;;  %v17445_v30 = vld [vmem:[#allocation14 + $0xe0] ss:$8 sps:$4 sm:$0xff]  }
0x10c6   : > { %9573 = vmatprep.subr.bf16.mxu0 %v17447_v24  ;;  %v14931_v24 = vld [vmem:[%s21665_s10 + $0x2] sm:$0x3] }
0x10c7   : > { %16533 = vmatprep.mubr.bf16.mxu1 %v9263_v31  ;;  %9574 = vmatpush1.bf16.msra.mxu0 %v17445_v30  ;;  %v17453_v31 = vld [vmem:[#allocation14 + $0xc4] ss:$8 sps:$4 sm:$0xff]  }
0x10c8   : > { %9575 = vmatprep.subr.bf16.mxu0 %v17450_v46  ;;  %v21810_v46 = vld [vmem:[#allocation29_spill] sm:$0xff] }
0x10c9   : > { %v17247_v39 = vpop.permute.xlu1 %17246 }
0x10ca   : > { %v17249_v6 = vunpack.i.h.bf16 %v17247_v39  ;;  %v17248_v23 = vunpack.i.l.bf16 %v17247_v39  ;;  %v17469_v39 = vld [vmem:[#allocation16 + $0xb0] sm:$0xff]  }
0x10cb   : > { %9576 = vmatpush1.bf16.msra.mxu0 %v17448_v35  ;;  %v9488_v35 = vrot.slane %v14931_v24, %v21810_v46 }
0x10cc   : > { %v9261_v62 = vsel %vm4677_vm10, %v9257_v44, %v17248_v23  ;;  %v9262_v63 = vsel %vm4677_vm10, %v9258_v53, %v17249_v6  ;;  %9577 = vmatprep.subr.bf16.mxu0 %v17453_v31  ;;  %v17472_v6 = vld [vmem:[#allocation16 + $0xe0] sm:$0xff]   ;;  %v17474_v44 = vld [vmem:[#allocation16 + $0xd8] sm:$0xff]  }
0x10cd   : > { %v9264_v43 = vpack.c.bf16 %v9262_v63, %v9261_v62  ;;  %v17473_v23 = vld [vmem:[#allocation16 + $0xa0] sm:$0xff]   ;;  %v17475_v53 = vld [vmem:[#allocation16 + $0x98] sm:$0xff]  }
0x10ce   : > { %v21811_v31 = vld [vmem:[#allocation28_spill] sm:$0xff] }
0x10cf   : > { %16534 = vmatmul.mubr.bf16.vlgmr.msra.gmra.mxu1 %v9264_v43  ;;  %9578 = vmatpush1.bf16.msra.mxu0 %v17451_v18  ;;  %v9484_v18 = vrot.slane %v14931_v24, %v21811_v31 }
0x10d0   : > { %9579 = vmatprep.subr.bf16.mxu0 %v17456_v51  ;;  %15478 = vmatpush3.bf16.msra.mxu1 %v17467_v4 }
0x10d1   : > { %15479 = vmatprep.subr.bf16.mxu1 %v17468_v2 }
0x10d3   : > { %9580 = vmatpush1.bf16.msra.mxu0 %v17454_v41 }
0x10d4   : > { %9581 = vmatprep.subr.bf16.mxu0 %v17459_v50  ;;  %15480 = vmatpush3.bf16.msra.mxu1 %v17469_v39 }
0x10d5   : > { %15481 = vmatprep.subr.bf16.mxu1 %v17470_v45 }
0x10d7   : > { %9582 = vmatpush1.bf16.msra.mxu0 %v17457_v34 }
0x10d8   : > { %9583 = vmatprep.subr.bf16.mxu0 %v17462_v5  ;;  %15482 = vmatpush3.bf16.msra.mxu1 %v17471_v61 }
0x10d9   : > { %15483 = vmatprep.subr.bf16.mxu1 %v17472_v6 }
0x10db   : > { %9584 = vmatpush1.bf16.msra.mxu0 %v17460_v15 }
0x10dc   : > { %9585 = vmatprep.subr.bf16.mxu0 %v17465_v38  ;;  %15484 = vmatpush3.bf16.msra.mxu1 %v17473_v23 }
0x10dd   : > { %15485 = vmatprep.subr.bf16.mxu1 %v17474_v44 }
0x10df   : > { %9586 = vmatpush1.bf16.msra.mxu0 %v17463_v58 }
0x10e0   : > { %15486 = vmatpush3.bf16.msra.mxu1 %v17475_v53 }
0x118f   : > { %v16535_v1 = vpop.f32.mrf.mxu1 }
0x1190   : > { %v9381_v12 = vadd.f32 %v16535_v1, %v14919_v9 }
0x1191   : > { %v9372_v32 = vpop.f32.mrf.mxu1 }
0x1192   : > { %v9373_v19 = vadd.f32 %v14919_v9, %v9372_v32  ;;  %v9389_v16 = vadd.f32 %v9381_v12, %v21807_v28 }
0x1193   : > { %v16536_v29 = vpop.f32.mrf.mxu1 }
0x1194   : > { %v9387_v60 = vadd.f32 %v9373_v19, %v21806_v21  ;;  %v9384_v11 = vadd.f32 %v16536_v29, %v14919_v9 }
0x1195   : > { %v9375_v49 = vpop.f32.mrf.mxu1 }
0x1196   : > { %v9376_v26 = vadd.f32 %v14919_v9, %v9375_v49  ;;  %9395 = vadd.xlane.f32.xlu0 %v9387_v60  ;;  %v9390_v7 = vadd.f32 %v9384_v11, %v21809_v59 }
0x1198   : > { %v9388_v8 = vadd.f32 %v9376_v26, %v21808_v57 }
0x119a   : > { %9397 = vadd.xlane.f32.xlu1 %v9388_v8  ;;  %9399 = vadd.xlane.f32.xlu0 %v9389_v16 }
0x119e   : > { %9401 = vadd.xlane.f32.xlu0 %v9390_v7 }
0x121f   : > { %v9396_v20 = vpop.xlane.xlu0 %9395 }
0x1220   : > { %v9403_v52 = vmul.f32 0.0078125, %v9396_v20 }
0x1222   : > { %v20562_v13 = vsub.f32 %v9387_v60, %v9403_v52 }
0x1223   : > { %v9398_v22 = vpop.xlane.xlu1 %9397  ;;  %v9400_v25 = vpop.xlane.xlu0 %9399 }
0x1224   : > { %v9404_v47 = vmul.f32 0.0078125, %v9398_v22  ;;  %v9405_v3 = vmul.f32 0.0078125, %v9400_v25  ;;  %v9411_v0 = vmul.f32 %v20562_v13, %v20562_v13 }
0x1226   : > { %v20566_v10 = vsub.f32 %v9388_v8, %v9404_v47  ;;  %v20568_v40 = vsub.f32 %v9389_v16, %v9405_v3  ;;  %9415 = vadd.xlane.f32.xlu1 %v9411_v0  ;;  %v14929_v16 = vld [vmem:[%s21662_s7 + $0x1] ss:$0 sm:$0xff] }
0x1227   : > { %v9402_v42 = vpop.xlane.xlu0 %9401 }
0x1228   : > { %v9406_v36 = vmul.f32 0.0078125, %v9402_v42  ;;  %v9412_v27 = vmul.f32 %v20566_v10, %v20566_v10  ;;  %v9413_v56 = vmul.f32 %v20568_v40, %v20568_v40 }
0x122a   : > { %v20574_v17 = vsub.f32 %v9390_v7, %v9406_v36  ;;  %9417 = vadd.xlane.f32.xlu0 %v9412_v27  ;;  %9419 = vadd.xlane.f32.xlu1 %v9413_v56  ;;  %v14930_v7 = vld [vmem:[#allocation13 + $0x1] ss:$0 sm:$0xff]  ;;  %v17476_v36 = vld [vmem:[#allocation16 + $0xd0] sm:$0xff]   ;;  %v17478_v27 = vld [vmem:[#allocation16 + $0xc8] sm:$0xff]  }
0x122b   : > { %15487 = vmatprep.subr.bf16.mxu1 %v17476_v36  ;;  %v17479_v56 = vld [vmem:[#allocation16 + $0x88] sm:$0xff]  }
0x122c   : > { %v9414_v54 = vmul.f32 %v20574_v17, %v20574_v17 }
0x122e   : > { %9421 = vadd.xlane.f32.xlu0 %v9414_v54  ;;  %v17481_v54 = vld [vmem:[#allocation16 + $0x80] sm:$0xff]  }
0x12af   : > { %v9416_v62 = vpop.xlane.xlu1 %9415 }
0x12b0   : > { %v9423_v63 = vmul.f32 0.0078125, %v9416_v62 }
0x12b2   : > { %v9427_v43 = vadd.f32 1e-05, %v9423_v63 }
0x12b3   : > { %v9420_v1 = vpop.xlane.xlu1 %9419  ;;  %v9418_v9 = vpop.xlane.xlu0 %9417 }
0x12b4   : > { %17834 = vrsqrt.f32 %v9427_v43  ;;  %v9425_v32 = vmul.f32 0.0078125, %v9420_v1  ;;  %v9424_v19 = vmul.f32 0.0078125, %v9418_v9 }
0x12b6   : > { %v9428_v29 = vadd.f32 1e-05, %v9424_v19  ;;  %v9429_v12 = vadd.f32 1e-05, %v9425_v32 }
0x12b7   : > { %v9422_v21 = vpop.xlane.xlu0 %9421 }
0x12b8   : > { %v9426_v60 = vmul.f32 0.0078125, %v9422_v21  ;;  %17836 = vrsqrt.f32 %v9428_v29 }
0x12b9   : > { %17838 = vrsqrt.f32 %v9429_v12 }
0x12ba   : > { %v9430_v49 = vadd.f32 1e-05, %v9426_v60  ;;  %v14949_v60 = vld [vmem:[%s21667_s12 + $0x1] ss:$0 sm:$0xff] }
0x12bc   : > { %17840 = vrsqrt.f32 %v9430_v49 }
0x12c1   : > { %v17835_v26 = vpop.eup %17834 }
0x12c2   : > { %v9435_v28 = vmul.f32 %v17835_v26, %v20562_v13 }
0x12c4   : > { %v9445_v8 = vmul.f32 %v14929_v16, %v9435_v28 }
0x12c5   : > { %v17837_v11 = vpop.eup %17836 }
0x12c6   : > { %v9436_v57 = vmul.f32 %v17837_v11, %v20566_v10  ;;  %v17839_v59 = vpop.eup %17838  ;;  %v20584_v52 = vadd.f32 %v14930_v7, %v9445_v8 }
0x12c7   : > { %v9437_v13 = vmul.f32 %v17839_v59, %v20568_v40  ;;  %v17477_v40 = vld [vmem:[#allocation16 + $0x90] sm:$0xff]  }
0x12c8   : > { %v9446_v37 = vmul.f32 %v14929_v16, %v9436_v57  ;;  %15488 = vmatpush3.bf16.msra.mxu1 %v17477_v40 }
0x12c9   : > { %v17841_v14 = vpop.eup %17840  ;;  %v9447_v3 = vmul.f32 %v14929_v16, %v9437_v13  ;;  %15489 = vmatprep.subr.bf16.mxu1 %v17478_v27  ;;  %v17484_v27 = vld [vmem:[#allocation8 + $0x22c] ss:$12 sps:$4 sm:$0xff]  }
0x12ca   : > { %v9438_v20 = vmul.f32 %v17841_v14, %v20574_v17  ;;  %v20586_v22 = vadd.f32 %v14930_v7, %v9446_v37  ;;  %v17480_v17 = vld [vmem:[#allocation16 + $0xc0] sm:$0xff]   ;;  %10075 = vmatprep.subr.bf16.mxu0 %v17484_v27 }
0x12cb   : > { %v20594_v10 = vadd.f32 %v14930_v7, %v9447_v3 }
0x12cc   : > { %v9459_v25 = vpack.c.bf16 %v20586_v22, %v20584_v52  ;;  %v9448_v47 = vmul.f32 %v14929_v16, %v9438_v20  ;;  %15490 = vmatpush3.bf16.msra.mxu1 %v17479_v56 }
0x12cd   : > { %15491 = vmatprep.subr.bf16.mxu1 %v17480_v17 }
0x12ce   : > { %9604 = vmatmul.mubr.bf16.vlgmr.msra.gmra.mxu0 %v9459_v25  ;;  %v20592_v0 = vadd.f32 %v14930_v7, %v9448_v47 }
0x12cf   : > { %9613 = vmatprep.mubr.bf16.mxu0 %v21805_v55 }
0x12d0   : > { %v9460_v42 = vpack.c.bf16 %v20592_v0, %v20594_v10  ;;  %15492 = vmatpush3.bf16.msra.mxu1 %v17481_v54 }
0x12d6   : > { %9614 = vmatmul.mubr.bf16.gmra.mxu0 %v9460_v42 }
0x12d7   : > { %10107 = vmatprep.mubr.bf16.mxu0 %v21805_v55 }
0x138e   : > { %v9605_v30 = vpop.f32.mrf.mxu0 }
0x138f   : > { %v9606_v5 = vadd.f32 %v9605_v30, %v9484_v18 }
0x1390   : > { %v9607_v51 = vpop.f32.mrf.mxu0 }
0x1391   : > { %v9608_v50 = vadd.f32 %v9607_v51, %v9488_v35  ;;  %v9624_v39 = vmax.f32 %v9606_v5, 0.0 }
0x1392   : > { %v9609_v41 = vpop.f32.mrf.mxu0 }
0x1393   : > { %v9610_v34 = vadd.f32 %v9609_v41, %v9484_v18  ;;  %v9625_v4 = vmax.f32 %v9608_v50, 0.0 }
0x1394   : > { %v9611_v15 = vpop.f32.mrf.mxu0 }
0x1395   : > { %v9612_v38 = vadd.f32 %v9611_v15, %v9488_v35  ;;  %v9626_v58 = vmax.f32 %v9610_v34, 0.0 }
0x1396   : > { %v9615_v48 = vpop.f32.mrf.mxu0 }
0x1397   : > { %v9627_v2 = vmax.f32 %v9612_v38, 0.0  ;;  %v9632_v6 = vpack.c.bf16 %v9626_v58, %v9624_v39  ;;  %v9616_v62 = vadd.f32 %v9615_v48, %v9484_v18  ;;  %v17487_v38 = vld [vmem:[#allocation8 + $0x214] ss:$12 sps:$4 sm:$0xff]   ;;  %v17485_v58 = vld [vmem:[#allocation8 + $0x210] ss:$12 sps:$4 sm:$0xff]  }
0x1398   : > { %v9617_v45 = vpop.f32.mrf.mxu0  ;;  %v17490_v48 = vld [vmem:[#allocation8 + $0x1fc] ss:$12 sps:$4 sm:$0xff]   ;;  %v17494_v39 = vld [vmem:[#allocation8 + $0x1e4] ss:$12 sps:$4 sm:$0xff]  }
0x1399   : > { %v9633_v61 = vpack.c.bf16 %v9627_v2, %v9625_v4  ;;  %v9618_v44 = vadd.f32 %v9617_v45, %v9488_v35  ;;  %v9628_v19 = vmax.f32 %v9616_v62, 0.0  ;;  %v17491_v4 = vld [vmem:[#allocation8 + $0x230] ss:$12 sps:$4 sm:$0xff]   ;;  %v17488_v2 = vld [vmem:[#allocation8 + $0x1f8] ss:$12 sps:$4 sm:$0xff]  }
0x139a   : > { %v9619_v23 = vpop.f32.mrf.mxu0  ;;  %16537 = vmatprep.subr.bf16.mxu1 %v17491_v4  ;;  %v17495_v45 = vld [vmem:[#allocation8 + $0x218] ss:$12 sps:$4 sm:$0xff]   ;;  %v17503_v62 = vld [vmem:[#allocation8 + $0x1e8] ss:$12 sps:$4 sm:$0xff]  }
0x139b   : > { %v9620_v53 = vadd.f32 %v9619_v23, %v9484_v18  ;;  %9805 = vmatprep.mubr.bf16.mxu1 %v9633_v61  ;;  %v9629_v9 = vmax.f32 %v9618_v44, 0.0  ;;  %v17492_v61 = vld [vmem:[#allocation8 + $0x1e0] ss:$12 sps:$4 sm:$0xff]   ;;  %v17496_v44 = vld [vmem:[#allocation8 + $0x1c8] ss:$12 sps:$4 sm:$0xff]  }
0x139c   : > { %v9621_v63 = vpop.f32.mrf.mxu0  ;;  %9806 = vmatmul.mubr.bf16.vlgmr.msra.gmra.mxu1 %v9632_v6  ;;  %v17498_v6 = vld [vmem:[#allocation8 + $0x1cc] ss:$12 sps:$4 sm:$0xff]  }
0x139d   : > { %v9622_v43 = vadd.f32 %v9621_v63, %v9488_v35  ;;  %v9630_v1 = vmax.f32 %v9620_v53, 0.0  ;;  %16538 = vmatpush3.bf16.msra.mxu1 %v17491_v4  ;;  %v17499_v23 = vld [vmem:[#allocation8 + $0x200] ss:$12 sps:$4 sm:$0xff]   ;;  %v17500_v63 = vld [vmem:[#allocation8 + $0x1b0] ss:$12 sps:$4 sm:$0xff]  }
0x139e   : > { %16539 = vmatprep.subr.bf16.mxu1 %v17495_v45  ;;  %v17502_v53 = vld [vmem:[#allocation8 + $0x1b4] ss:$12 sps:$4 sm:$0xff]  }
0x139f   : > { %v9631_v32 = vmax.f32 %v9622_v43, 0.0  ;;  %v9634_v12 = vpack.c.bf16 %v9630_v1, %v9628_v19  ;;  %v17506_v43 = vld [vmem:[#allocation8 + $0x19c] ss:$12 sps:$4 sm:$0xff]   ;;  %v17510_v19 = vld [vmem:[#allocation8 + $0x184] ss:$12 sps:$4 sm:$0xff]  }
0x13a0   : > { %v17507_v1 = vld [vmem:[#allocation8 + $0x1d0] ss:$12 sps:$4 sm:$0xff]  }
0x13a1   : > { %v9635_v29 = vpack.c.bf16 %v9631_v32, %v9629_v9  ;;  %16540 = vmatpush3.bf16.msra.mxu1 %v17495_v45  ;;  %v17504_v9 = vld [vmem:[#allocation8 + $0x198] ss:$12 sps:$4 sm:$0xff]   ;;  %v17508_v32 = vld [vmem:[#allocation8 + $0x180] ss:$12 sps:$4 sm:$0xff]  }
0x13a2   : > { %16541 = vmatprep.subr.bf16.mxu1 %v17499_v23 }
0x13a3   : > { %9813 = vmatprep.mubr.bf16.mxu1 %v9635_v29  ;;  %v17511_v29 = vld [vmem:[#allocation8 + $0x1b8] ss:$12 sps:$4 sm:$0xff]  }
0x13a4   : > { %9814 = vmatmul.mubr.bf16.gmra.mxu1 %v9634_v12  ;;  %v17512_v12 = vld [vmem:[#allocation8 + $0x1a0] ss:$12 sps:$4 sm:$0xff]  }
0x13a5   : > { %16542 = vmatpush3.bf16.msra.mxu1 %v17499_v23 }
0x13a6   : > { %16543 = vmatprep.subr.bf16.mxu1 %v17503_v62 }
0x13a9   : > { %16544 = vmatpush3.bf16.msra.mxu1 %v17503_v62 }
0x13aa   : > { %16545 = vmatprep.subr.bf16.mxu1 %v17507_v1 }
0x13ad   : > { %16546 = vmatpush3.bf16.msra.mxu1 %v17507_v1 }
0x13ae   : > { %16547 = vmatprep.subr.bf16.mxu1 %v17511_v29 }
0x13b1   : > { %16548 = vmatpush3.bf16.msra.mxu1 %v17511_v29 }
0x13b2   : > { %16549 = vmatprep.subr.bf16.mxu1 %v17512_v12 }
0x13b5   : > { %16550 = vmatpush3.bf16.msra.mxu1 %v17512_v12 }
0x145c   : > { %v15493_v21 = vpop.f32.mrf.mxu1 }
0x145e   : > { %v15494_v49 = vpop.f32.mrf.mxu1 }
0x145f   : > { %v15495_v26 = vadd.f32 %v15494_v49, %v15493_v21  ;;  %v17513_v21 = vld [vmem:[#allocation8 + $0x188] ss:$12 sps:$4 sm:$0xff]  }
0x1460   : > { %v15496_v28 = vpop.f32.mrf.mxu1  ;;  %16551 = vmatprep.subr.bf16.mxu1 %v17513_v21 }
0x1461   : > { %v9808_v16 = vadd.f32 %v15495_v26, %v14949_v60  ;;  %16552 = vmatpush3.bf16.msra.mxu1 %v17513_v21 }
0x1462   : > { %v15497_v11 = vpop.f32.mrf.mxu1  ;;  %16575 = vmatprep.subr.bf16.mxu1 %v21764_v33 }
0x1463   : > { %v15498_v57 = vadd.f32 %v15497_v11, %v15496_v28  ;;  %v9822_v8 = vadd.f32 %v9808_v16, %v20584_v52  ;;  %v17482_v52 = vld [vmem:[#allocation8 + $0x228] ss:$12 sps:$4 sm:$0xff]  }
0x1464   : > { %v15499_v59 = vpop.f32.mrf.mxu1  ;;  %10076 = vmatpush1.bf16.msra.mxu0 %v17482_v52 }
0x1465   : > { %v9811_v7 = vadd.f32 %v15498_v57, %v14949_v60  ;;  %9830 = vadd.xlane.f32.xlu1 %v9822_v8  ;;  %10077 = vmatprep.subr.bf16.mxu0 %v17487_v38 }
0x1466   : > { %v15500_v14 = vpop.f32.mrf.mxu1 }
0x1467   : > { %v15501_v37 = vadd.f32 %v15500_v14, %v15499_v59  ;;  %v9823_v20 = vadd.f32 %v9811_v7, %v20586_v22 }
0x1468   : > { %v15502_v13 = vpop.f32.mrf.mxu1  ;;  %10078 = vmatpush1.bf16.msra.mxu0 %v17485_v58 }
0x1469   : > { %v9816_v25 = vadd.f32 %v15501_v37, %v14949_v60  ;;  %9832 = vadd.xlane.f32.xlu0 %v9823_v20  ;;  %10079 = vmatprep.subr.bf16.mxu0 %v17490_v48 }
0x146a   : > { %v15503_v47 = vpop.f32.mrf.mxu1 }
0x146b   : > { %v15504_v3 = vadd.f32 %v15503_v47, %v15502_v13  ;;  %v9824_v42 = vadd.f32 %v9816_v25, %v20594_v10  ;;  %v14968_v25 = vld [vmem:[%s21668_s13 + $0x1] ss:$0 sm:$0xff] }
0x146c   : > { %10080 = vmatpush1.bf16.msra.mxu0 %v17488_v2 }
0x146d   : > { %v9819_v36 = vadd.f32 %v15504_v3, %v14949_v60  ;;  %9834 = vadd.xlane.f32.xlu1 %v9824_v42  ;;  %10081 = vmatprep.subr.bf16.mxu0 %v17494_v39 }
0x146f   : > { %v9825_v40 = vadd.f32 %v9819_v36, %v20592_v0  ;;  %v14969_v36 = vld [vmem:[%s21669_s14 + $0x1] ss:$0 sm:$0xff] }
0x1470   : > { %10082 = vmatpush1.bf16.msra.mxu0 %v17492_v61 }
0x1471   : > { %9836 = vadd.xlane.f32.xlu0 %v9825_v40  ;;  %10083 = vmatprep.subr.bf16.mxu0 %v17498_v6 }
0x1474   : > { %10084 = vmatpush1.bf16.msra.mxu0 %v17496_v44 }
0x1475   : > { %10085 = vmatprep.subr.bf16.mxu0 %v17502_v53 }
0x1478   : > { %10086 = vmatpush1.bf16.msra.mxu0 %v17500_v63 }
0x1479   : > { %10087 = vmatprep.subr.bf16.mxu0 %v17506_v43 }
0x147c   : > { %10088 = vmatpush1.bf16.msra.mxu0 %v17504_v9 }
0x147d   : > { %10089 = vmatprep.subr.bf16.mxu0 %v17510_v19 }
0x1480   : > { %10090 = vmatpush1.bf16.msra.mxu0 %v17508_v32 }
0x1481   : > { %16557 = vmatprep.subr.bf16.mxu0 %v21764_v33 }
0x14ee   : > { %v9831_v56 = vpop.xlane.xlu1 %9830 }
0x14ef   : > { %v9838_v17 = vmul.f32 0.0078125, %v9831_v56 }
0x14f1   : > { %v20611_v54 = vsub.f32 %v9822_v8, %v9838_v17 }
0x14f2   : > { %v9833_v22 = vpop.xlane.xlu0 %9832 }
0x14f3   : > { %v9839_v24 = vmul.f32 0.0078125, %v9833_v22  ;;  %v9846_v30 = vmul.f32 %v20611_v54, %v20611_v54 }
0x14f5   : > { %v20615_v35 = vsub.f32 %v9823_v20, %v9839_v24  ;;  %9850 = vadd.xlane.f32.xlu1 %v9846_v30 }
0x14f6   : > { %v9835_v10 = vpop.xlane.xlu1 %9834 }
0x14f7   : > { %v9840_v18 = vmul.f32 0.0078125, %v9835_v10  ;;  %v9847_v0 = vmul.f32 %v20615_v35, %v20615_v35 }
0x14f9   : > { %v20619_v51 = vsub.f32 %v9824_v42, %v9840_v18  ;;  %9852 = vadd.xlane.f32.xlu0 %v9847_v0 }
0x14fa   : > { %v9837_v41 = vpop.xlane.xlu0 %9836 }
0x14fb   : > { %v9841_v50 = vmul.f32 0.0078125, %v9837_v41  ;;  %v9848_v34 = vmul.f32 %v20619_v51, %v20619_v51 }
0x14fd   : > { %v20623_v5 = vsub.f32 %v9825_v40, %v9841_v50  ;;  %9854 = vadd.xlane.f32.xlu1 %v9848_v34 }
0x14ff   : > { %v9849_v15 = vmul.f32 %v20623_v5, %v20623_v5 }
0x1501   : > { %9856 = vadd.xlane.f32.xlu0 %v9849_v15 }
0x157e   : > { %v9851_v60 = vpop.xlane.xlu1 %9850 }
0x157f   : > { %v9858_v49 = vmul.f32 0.0078125, %v9851_v60 }
0x1581   : > { %v9862_v26 = vadd.f32 1e-05, %v9858_v49 }
0x1582   : > { %v9853_v28 = vpop.xlane.xlu0 %9852 }
0x1583   : > { %17842 = vrsqrt.f32 %v9862_v26  ;;  %v9859_v16 = vmul.f32 0.0078125, %v9853_v28 }
0x1585   : > { %v9863_v11 = vadd.f32 1e-05, %v9859_v16 }
0x1586   : > { %v9855_v57 = vpop.xlane.xlu1 %9854 }
0x1587   : > { %17844 = vrsqrt.f32 %v9863_v11  ;;  %v9860_v8 = vmul.f32 0.0078125, %v9855_v57  ;;  %v21816_v57 = vld [vmem:[#allocation30_spill] sm:$0xff] }
0x1589   : > { %v9864_v59 = vadd.f32 1e-05, %v9860_v8 }
0x158a   : > { %v9857_v7 = vpop.xlane.xlu0 %9856 }
0x158b   : > { %17846 = vrsqrt.f32 %v9864_v59  ;;  %v9861_v14 = vmul.f32 0.0078125, %v9857_v7 }
0x158d   : > { %v9865_v37 = vadd.f32 1e-05, %v9861_v14 }
0x158f   : > { %17848 = vrsqrt.f32 %v9865_v37 }
0x1590   : > { %v17843_v20 = vpop.eup %17842 }
0x1591   : > { %v9870_v13 = vmul.f32 %v17843_v20, %v20611_v54 }
0x1593   : > { %v9880_v3 = vmul.f32 %v14968_v25, %v9870_v13 }
0x1594   : > { %v17845_v47 = vpop.eup %17844 }
0x1595   : > { %v9871_v42 = vmul.f32 %v17845_v47, %v20615_v35  ;;  %v20637_v27 = vadd.f32 %v14969_v36, %v9880_v3 }
0x1597   : > { %v9881_v40 = vmul.f32 %v14968_v25, %v9871_v42  ;;  %21812 = vst [vmem:[#allocation34_spill] sm:$0xff] %v20637_v27 }
0x1598   : > { %v17847_v52 = vpop.eup %17846 }
0x1599   : > { %v20639_v56 = vadd.f32 %v14969_v36, %v9881_v40  ;;  %v9872_v17 = vmul.f32 %v17847_v52, %v20619_v51  ;;  %v20656_v51 = vld [vmem:[#allocation10 + $0x6] sm:$0x7] }
0x159a   : > { %v9935_v41 = vrot.slane %v20656_v51, %v21811_v31  ;;  %v9939_v50 = vrot.slane %v20656_v51, %v21810_v46  ;;  %v9943_v8 = vrot.slane %v20656_v51, %v21816_v57 }
0x159b   : > { %21813 = vst [vmem:[#allocation38_spill] sm:$0xff] %v20639_v56  ;;  %v9894_v54 = vpack.c.bf16 %v20639_v56, %v20637_v27  ;;  %v9882_v30 = vmul.f32 %v14968_v25, %v9872_v17 }
0x159c   : > { %v17849_v22 = vpop.eup %17848 }
0x159d   : > { %10108 = vmatmul.mubr.bf16.vlgmr.msra.gmra.mxu0 %v9894_v54  ;;  %16553 = vmatprep.mubr.bf16.mxu1 %v9894_v54  ;;  %v9873_v24 = vmul.f32 %v17849_v22, %v20623_v5  ;;  %v20646_v10 = vadd.f32 %v14969_v36, %v9882_v30 }
0x159e   : > { %10117 = vmatprep.mubr.bf16.mxu0 %v21805_v55 }
0x159f   : > { %v9883_v35 = vmul.f32 %v14968_v25, %v9873_v24  ;;  %21814 = vst [vmem:[#allocation27_spill] sm:$0xff] %v20646_v10 }
0x15a1   : > { %v20648_v18 = vadd.f32 %v14969_v36, %v9883_v35 }
0x15a3   : > { %21815 = vst [vmem:[#allocation25_spill] sm:$0xff] %v20648_v18  ;;  %v9895_v0 = vpack.c.bf16 %v20648_v18, %v20646_v10 }
0x15a5   : > { %10118 = vmatmul.mubr.bf16.gmra.mxu0 %v9895_v0  ;;  %16554 = vmatmul.mubr.bf16.vlgmr.msra.gmra.mxu1 %v9895_v0 }
0x15a6   : > { %16559 = vmatprep.mubr.msk.bf16.mxu0 %vm18333_vm2, %v21764_v33  ;;  %16577 = vmatprep.mubr.msk.bf16.mxu1 %vm18333_vm2, %v21764_v33 }
0x165d   : > { %v10109_v34 = vpop.f32.mrf.mxu0 }
0x165e   : > { %v10110_v15 = vadd.f32 %v10109_v34, %v9935_v41 }
0x165f   : > { %v10111_v5 = vpop.f32.mrf.mxu0 }
0x1660   : > { %v10112_v38 = vadd.f32 %v10111_v5, %v9939_v50 }
0x1661   : > { %v10113_v58 = vpop.f32.mrf.mxu0 }
0x1662   : > { %v20662_v48 = vpack.c.bf16 %v10112_v38, %v10110_v15  ;;  %v10114_v2 = vadd.f32 %v10113_v58, %v9935_v41 }
0x1663   : > { %v10115_v4 = vpop.f32.mrf.mxu0 }
0x1664   : > { %v10116_v39 = vadd.f32 %v10115_v4, %v9939_v50  ;;  %10209 = vrot.lane.b32.xlu1 %v20662_v48, %s18334_s4  ;;  %v10265_v45 = vrot.slane %v20662_v48, 4 }
0x1665   : > { %v10119_v61 = vpop.f32.mrf.mxu0  ;;  %v16555_v28 = vpop.f32.mrf.mxu1 }
0x1666   : > { %v20667_v6 = vpack.c.bf16 %v10116_v39, %v10114_v2  ;;  %v10357_v23 = vsel %vm1174_vm3, %v10265_v45, 0  ;;  %v10120_v53 = vadd.f32 %v10119_v61, %v9935_v41  ;;  %v10171_v37 = vadd.f32 %v16555_v28, %v9943_v8 }
0x1667   : > { %v10121_v44 = vpop.f32.mrf.mxu0  ;;  %16558 = vmatpush3.bf16.xpose.msra.mxu0 %v10357_v23  ;;  %v10162_v16 = vpop.f32.mrf.mxu1 }
0x1668   : > { %v10122_v62 = vadd.f32 %v10121_v44, %v9939_v50  ;;  %10211 = vrot.lane.b32.xlu0 %v20667_v6, %s18334_s4  ;;  %16563 = vmatprep.subr.bf16.mxu0 %v21764_v33  ;;  %v10266_v1 = vrot.slane %v20667_v6, 4  ;;  %v10163_v14 = vadd.f32 %v10162_v16, %v9943_v8  ;;  %v20746_v13 = vpack.c.bf16 %v10171_v37, %v10171_v37 }
0x1669   : > { %v10123_v63 = vpop.f32.mrf.mxu0  ;;  %v16556_v11 = vpop.f32.mrf.mxu1 }
0x166a   : > { %v15144_v43 = vpack.c.bf16 %v10122_v62, %v10120_v53  ;;  %v10124_v32 = vadd.f32 %v10123_v63, %v9935_v41  ;;  %v10403_v12 = vsel %vm1174_vm3, %v10266_v1, 0  ;;  %v10174_v59 = vadd.f32 %v16556_v11, %v9943_v8 }
0x166b   : > { %v10125_v9 = vpop.f32.mrf.mxu0  ;;  %v20740_v20 = vpack.c.bf16 %v10163_v14, %v10163_v14  ;;  %v10165_v25 = vpop.f32.mrf.mxu1 }
0x166c   : > { %v10126_v19 = vadd.f32 %v10125_v9, %v9939_v50  ;;  %10217 = vrot.lane.b32.xlu0 %v20662_v48, %s18335_s25  ;;  %10213 = vrot.lane.b32.xlu1 %v15144_v43, %s18334_s4  ;;  %v10267_v49 = vrot.slane %v15144_v43, 4  ;;  %v20731_v7 = vpack.c.bf16 %v10174_v59, %v10174_v59  ;;  %v10166_v47 = vadd.f32 %v10165_v25, %v9943_v8 }
0x166e   : > { %v15146_v29 = vpack.c.bf16 %v10126_v19, %v10124_v32  ;;  %16560 = vmatmul.mubr.msk.bf16.vlgmr.msra.gmra.mxu0 %vm1174_vm3, %v20662_v48  ;;  %v10449_v26 = vsel %vm1174_vm3, %v10267_v49, 0  ;;  %v20756_v3 = vpack.c.bf16 %v10166_v47, %v10166_v47 }
0x166f   : > { %16564 = vmatpush3.bf16.xpose.msra.mxu0 %v10403_v12  ;;  %16565 = vmatprep.mubr.msk.bf16.mxu0 %vm18333_vm2, %v21764_v33 }
0x1670   : > { %10221 = vrot.lane.b32.xlu0 %v15144_v43, %s18335_s25  ;;  %10215 = vrot.lane.b32.xlu1 %v15146_v29, %s18334_s4  ;;  %v10268_v21 = vrot.slane %v15146_v29, 4 }
0x1671   : > { %16569 = vmatprep.subr.bf16.mxu0 %v21764_v33 }
0x1672   : > { %v10495_v60 = vsel %vm1174_vm3, %v10268_v21, 0 }
0x1673   : > { %16576 = vmatpush3.bf16.xpose.msra.mxu1 %v10495_v60 }
0x1674   : > { %10225 = vrot.lane.b32.xlu0 %v20662_v48, %s18336_s30  ;;  %10219 = vrot.lane.b32.xlu1 %v20667_v6, %s18335_s25 }
0x1675   : > { %16587 = vmatprep.subr.bf16.mxu1 %v21764_v33 }
0x1676   : > { %16566 = vmatmul.mubr.msk.bf16.vlgmr.msra.gmra.mxu0 %vm1174_vm3, %v20667_v6 }
0x1677   : > { %16570 = vmatpush3.bf16.xpose.msra.mxu0 %v10449_v26  ;;  %16571 = vmatprep.mubr.msk.bf16.mxu0 %vm18333_vm2, %v21764_v33 }
0x1678   : > { %10229 = vrot.lane.b32.xlu0 %v15144_v43, %s18336_s30  ;;  %10223 = vrot.lane.b32.xlu1 %v15146_v29, %s18335_s25 }
0x1679   : > { %16581 = vmatprep.subr.bf16.mxu0 %v21764_v33 }
0x167a   : > { %16578 = vmatmul.mubr.msk.bf16.vlgmr.msra.gmra.mxu1 %vm1174_vm3, %v15146_v29 }
0x167b   : > { %16589 = vmatprep.mubr.msk.bf16.mxu1 %vm18333_vm2, %v21764_v33 }
0x167c   : > { %10233 = vrot.lane.b32.xlu0 %v20662_v48, %s18337_s9  ;;  %10227 = vrot.lane.b32.xlu1 %v20667_v6, %s18336_s30 }
0x167e   : > { %16572 = vmatmul.mubr.msk.bf16.vlgmr.msra.gmra.mxu0 %vm1174_vm3, %v15144_v43 }
0x167f   : > { %16583 = vmatprep.mubr.msk.bf16.mxu0 %vm18333_vm2, %v21764_v33 }
0x1680   : > { %10237 = vrot.lane.b32.xlu0 %v15144_v43, %s18337_s9  ;;  %10231 = vrot.lane.b32.xlu1 %v15146_v29, %s18336_s30 }
0x1684   : > { %10241 = vrot.lane.b32.xlu0 %v20662_v48, %s18338_s17  ;;  %10235 = vrot.lane.b32.xlu1 %v20667_v6, %s18337_s9 }
0x1688   : > { %10245 = vrot.lane.b32.xlu0 %v15144_v43, %s18338_s17  ;;  %10239 = vrot.lane.b32.xlu1 %v15146_v29, %s18337_s9 }
0x168c   : > { %10249 = vrot.lane.b32.xlu0 %v20662_v48, %s18339_s28  ;;  %10243 = vrot.lane.b32.xlu1 %v20667_v6, %s18338_s17 }
0x1690   : > { %10253 = vrot.lane.b32.xlu0 %v15144_v43, %s18339_s28  ;;  %10247 = vrot.lane.b32.xlu1 %v15146_v29, %s18338_s17 }
0x1694   : > { %10257 = vrot.lane.b32.xlu0 %v20662_v48, %s18340_s29  ;;  %10251 = vrot.lane.b32.xlu1 %v20667_v6, %s18339_s28 }
0x1698   : > { %10261 = vrot.lane.b32.xlu0 %v15144_v43, %s18340_s29  ;;  %10255 = vrot.lane.b32.xlu1 %v15146_v29, %s18339_s28 }
0x169c   : > { %10303 = vrot.lane.b32.xlu0 %v20731_v7, %s18334_s4  ;;  %10259 = vrot.lane.b32.xlu1 %v20667_v6, %s18340_s29 }
0x16a0   : > { %10311 = vrot.lane.b32.xlu0 %v20731_v7, %s18335_s25  ;;  %10263 = vrot.lane.b32.xlu1 %v15146_v29, %s18340_s29 }
0x16a4   : > { %10319 = vrot.lane.b32.xlu0 %v20731_v7, %s18336_s30  ;;  %10297 = vrot.lane.b32.xlu1 %v20740_v20, %s18334_s4 }
0x16a8   : > { %10327 = vrot.lane.b32.xlu0 %v20731_v7, %s18337_s9  ;;  %10301 = vrot.lane.b32.xlu1 %v20746_v13, %s18334_s4 }
0x16ac   : > { %10335 = vrot.lane.b32.xlu0 %v20731_v7, %s18338_s17  ;;  %10305 = vrot.lane.b32.xlu1 %v20740_v20, %s18335_s25 }
0x16b0   : > { %10299 = vrot.lane.b32.xlu0 %v20756_v3, %s18334_s4  ;;  %10309 = vrot.lane.b32.xlu1 %v20746_v13, %s18335_s25 }
0x16b4   : > { %10307 = vrot.lane.b32.xlu0 %v20756_v3, %s18335_s25  ;;  %10313 = vrot.lane.b32.xlu1 %v20740_v20, %s18336_s30 }
0x16b8   : > { %10315 = vrot.lane.b32.xlu0 %v20756_v3, %s18336_s30  ;;  %10317 = vrot.lane.b32.xlu1 %v20746_v13, %s18336_s30 }
0x16bc   : > { %10323 = vrot.lane.b32.xlu0 %v20756_v3, %s18337_s9  ;;  %10321 = vrot.lane.b32.xlu1 %v20740_v20, %s18337_s9 }
0x16c0   : > { %10331 = vrot.lane.b32.xlu0 %v20756_v3, %s18338_s17  ;;  %10325 = vrot.lane.b32.xlu1 %v20746_v13, %s18337_s9 }
0x16c4   : > { %10329 = vrot.lane.b32.xlu1 %v20740_v20, %s18338_s17 }
0x16c8   : > { %10333 = vrot.lane.b32.xlu1 %v20746_v13, %s18338_s17 }
0x16cc   : > { %10337 = vrot.lane.b32.xlu1 %v20740_v20, %s18339_s28 }
0x16d6   : > { %v10210_v42 = vpop.permute.xlu1 %10209 }
0x16d7   : > { %v10269_v36 = vrot.slane %v10210_v42, 4 }
0x16d9   : > { %v10541_v40 = vsel %vm1174_vm3, %v10269_v36, 0 }
0x16da   : > { %16582 = vmatpush3.bf16.xpose.msra.mxu0 %v10541_v40  ;;  %v10212_v52 = vpop.permute.xlu0 %10211 }
0x16db   : > { %v10270_v17 = vrot.slane %v10212_v52, 4  ;;  %16593 = vmatprep.subr.bf16.mxu0 %v21764_v33 }
0x16dd   : > { %v10587_v54 = vsel %vm1174_vm3, %v10270_v17, 0 }
0x16de   : > { %v10214_v22 = vpop.permute.xlu1 %10213  ;;  %16588 = vmatpush3.bf16.xpose.msra.mxu1 %v10587_v54  ;;  %v10218_v35 = vpop.permute.xlu0 %10217 }
0x16df   : > { %v10271_v24 = vrot.slane %v10214_v22, 4  ;;  %16599 = vmatprep.subr.bf16.mxu1 %v21764_v33  ;;  %v10273_v41 = vrot.slane %v10218_v35, 4 }
0x16e1   : > { %16584 = vmatmul.mubr.msk.bf16.vlgmr.msra.gmra.mxu0 %vm1174_vm3, %v10210_v42  ;;  %v10633_v30 = vsel %vm1174_vm3, %v10271_v24, 0  ;;  %v10725_v15 = vsel %vm1174_vm3, %v10273_v41, 0 }
0x16e2   : > { %v10216_v0 = vpop.permute.xlu1 %10215  ;;  %16594 = vmatpush3.bf16.xpose.msra.mxu0 %v10633_v30  ;;  %16595 = vmatprep.mubr.msk.bf16.mxu0 %vm18333_vm2, %v21764_v33  ;;  %v10222_v38 = vpop.permute.xlu0 %10221 }
0x16e3   : > { %v10272_v51 = vrot.slane %v10216_v0, 4  ;;  %16605 = vmatprep.subr.bf16.mxu0 %v21764_v33  ;;  %v10275_v58 = vrot.slane %v10222_v38, 4 }
0x16e5   : > { %16590 = vmatmul.mubr.msk.bf16.vlgmr.msra.gmra.mxu1 %vm1174_vm3, %v10212_v52  ;;  %v10679_v50 = vsel %vm1174_vm3, %v10272_v51, 0  ;;  %v10817_v39 = vsel %vm1174_vm3, %v10275_v58, 0 }
0x16e6   : > { %v10220_v34 = vpop.permute.xlu1 %10219  ;;  %16600 = vmatpush3.bf16.xpose.msra.mxu1 %v10679_v50  ;;  %16601 = vmatprep.mubr.msk.bf16.mxu1 %vm18333_vm2, %v21764_v33  ;;  %v10226_v45 = vpop.permute.xlu0 %10225 }
0x16e7   : > { %16611 = vmatprep.subr.bf16.mxu1 %v21764_v33  ;;  %v10274_v5 = vrot.slane %v10220_v34, 4  ;;  %v10277_v61 = vrot.slane %v10226_v45, 4 }
0x16e9   : > { %16596 = vmatmul.mubr.msk.bf16.vlgmr.msra.gmra.mxu0 %vm1174_vm3, %v10214_v22  ;;  %v10771_v48 = vsel %vm1174_vm3, %v10274_v5, 0  ;;  %v10909_v53 = vsel %vm1174_vm3, %v10277_v61, 0 }
0x16ea   : > { %16606 = vmatpush3.bf16.xpose.msra.mxu0 %v10725_v15  ;;  %16607 = vmatprep.mubr.msk.bf16.mxu0 %vm18333_vm2, %v21764_v33  ;;  %v10224_v4 = vpop.permute.xlu1 %10223  ;;  %v10230_v62 = vpop.permute.xlu0 %10229 }
0x16eb   : > { %16617 = vmatprep.subr.bf16.mxu0 %v21764_v33  ;;  %v10276_v2 = vrot.slane %v10224_v4, 4  ;;  %v10279_v63 = vrot.slane %v10230_v62, 4 }
0x16ed   : > { %16602 = vmatmul.mubr.msk.bf16.vlgmr.msra.gmra.mxu1 %vm1174_vm3, %v10216_v0  ;;  %v10863_v6 = vsel %vm1174_vm3, %v10276_v2, 0  ;;  %v11001_v32 = vsel %vm1174_vm3, %v10279_v63, 0 }
0x16ee   : > { %16612 = vmatpush3.bf16.xpose.msra.mxu1 %v10771_v48  ;;  %16613 = vmatprep.mubr.msk.bf16.mxu1 %vm18333_vm2, %v21764_v33  ;;  %v10228_v23 = vpop.permute.xlu1 %10227  ;;  %v10234_v19 = vpop.permute.xlu0 %10233 }
0x16ef   : > { %16623 = vmatprep.subr.bf16.mxu1 %v21764_v33  ;;  %v10278_v44 = vrot.slane %v10228_v23, 4  ;;  %v10281_v29 = vrot.slane %v10234_v19, 4 }
0x16f1   : > { %16608 = vmatmul.mubr.msk.bf16.vlgmr.msra.gmra.mxu0 %vm1174_vm3, %v10218_v35  ;;  %v10955_v43 = vsel %vm1174_vm3, %v10278_v44, 0  ;;  %v11093_v49 = vsel %vm1174_vm3, %v10281_v29, 0 }
0x16f2   : > { %16618 = vmatpush3.bf16.xpose.msra.mxu0 %v10817_v39  ;;  %16619 = vmatprep.mubr.msk.bf16.mxu0 %vm18333_vm2, %v21764_v33  ;;  %v10232_v1 = vpop.permute.xlu1 %10231  ;;  %v10238_v26 = vpop.permute.xlu0 %10237 }
0x16f3   : > { %16629 = vmatprep.subr.bf16.mxu0 %v21764_v33  ;;  %v10280_v9 = vrot.slane %v10232_v1, 4  ;;  %v10283_v28 = vrot.slane %v10238_v26, 4 }
0x16f5   : > { %16614 = vmatmul.mubr.msk.bf16.vlgmr.msra.gmra.mxu1 %vm1174_vm3, %v10220_v34  ;;  %v11047_v12 = vsel %vm1174_vm3, %v10280_v9, 0  ;;  %v11185_v8 = vsel %vm1174_vm3, %v10283_v28, 0 }
0x16f6   : > { %16624 = vmatpush3.bf16.xpose.msra.mxu1 %v10863_v6  ;;  %16625 = vmatprep.mubr.msk.bf16.mxu1 %vm18333_vm2, %v21764_v33  ;;  %v10236_v21 = vpop.permute.xlu1 %10235  ;;  %v10242_v59 = vpop.permute.xlu0 %10241 }
0x16f7   : > { %16635 = vmatprep.subr.bf16.mxu1 %v21764_v33  ;;  %v10282_v60 = vrot.slane %v10236_v21, 4  ;;  %v10285_v14 = vrot.slane %v10242_v59, 4 }
0x16f9   : > { %16620 = vmatmul.mubr.msk.bf16.vlgmr.msra.gmra.mxu0 %vm1174_vm3, %v10222_v38  ;;  %v11139_v16 = vsel %vm1174_vm3, %v10282_v60, 0  ;;  %v11277_v42 = vsel %vm1174_vm3, %v10285_v14, 0 }
0x16fa   : > { %16630 = vmatpush3.bf16.xpose.msra.mxu0 %v10909_v53  ;;  %16631 = vmatprep.mubr.msk.bf16.mxu0 %vm18333_vm2, %v21764_v33  ;;  %v10240_v11 = vpop.permute.xlu1 %10239  ;;  %v10246_v36 = vpop.permute.xlu0 %10245 }
0x16fb   : > { %16641 = vmatprep.subr.bf16.mxu0 %v21764_v33  ;;  %v10284_v57 = vrot.slane %v10240_v11, 4  ;;  %v10287_v40 = vrot.slane %v10246_v36, 4 }
0x16fd   : > { %16626 = vmatmul.mubr.msk.bf16.vlgmr.msra.gmra.mxu1 %vm1174_vm3, %v10224_v4  ;;  %v11231_v37 = vsel %vm1174_vm3, %v10284_v57, 0  ;;  %v11369_v22 = vsel %vm1174_vm3, %v10287_v40, 0 }
0x16fe   : > { %16636 = vmatpush3.bf16.xpose.msra.mxu1 %v10955_v43  ;;  %16637 = vmatprep.mubr.msk.bf16.mxu1 %vm18333_vm2, %v21764_v33  ;;  %v10244_v25 = vpop.permute.xlu1 %10243  ;;  %v10250_v24 = vpop.permute.xlu0 %10249 }
0x16ff   : > { %16647 = vmatprep.subr.bf16.mxu1 %v21764_v33  ;;  %v10286_v47 = vrot.slane %v10244_v25, 4  ;;  %v10289_v30 = vrot.slane %v10250_v24, 4 }
0x1701   : > { %16632 = vmatmul.mubr.msk.bf16.vlgmr.msra.gmra.mxu0 %vm1174_vm3, %v10226_v45  ;;  %v11323_v52 = vsel %vm1174_vm3, %v10286_v47, 0  ;;  %v11461_v41 = vsel %vm1174_vm3, %v10289_v30, 0 }
0x1702   : > { %16642 = vmatpush3.bf16.xpose.msra.mxu0 %v11001_v32  ;;  %16643 = vmatprep.mubr.msk.bf16.mxu0 %vm18333_vm2, %v21764_v33  ;;  %v10248_v17 = vpop.permute.xlu1 %10247  ;;  %v10254_v50 = vpop.permute.xlu0 %10253 }
0x1703   : > { %16653 = vmatprep.subr.bf16.mxu0 %v21764_v33  ;;  %v10288_v54 = vrot.slane %v10248_v17, 4  ;;  %v10291_v34 = vrot.slane %v10254_v50, 4 }
0x1705   : > { %16638 = vmatmul.mubr.msk.bf16.vlgmr.msra.gmra.mxu1 %vm1174_vm3, %v10228_v23  ;;  %v11415_v35 = vsel %vm1174_vm3, %v10288_v54, 0  ;;  %v11553_v39 = vsel %vm1174_vm3, %v10291_v34, 0  ;;  %v12291_v54 = vsel %vm3067_vm5, %v20756_v3, 0 }
0x1706   : > { %16648 = vmatpush3.bf16.xpose.msra.mxu1 %v11047_v12  ;;  %16649 = vmatprep.mubr.msk.bf16.mxu1 %vm18333_vm2, %v21764_v33  ;;  %v10252_v0 = vpop.permute.xlu1 %10251  ;;  %v10258_v45 = vpop.permute.xlu0 %10257 }
0x1707   : > { %16659 = vmatprep.subr.bf16.mxu1 %v21764_v33  ;;  %v10290_v51 = vrot.slane %v10252_v0, 4  ;;  %v10293_v23 = vrot.slane %v10258_v45, 4 }
0x1709   : > { %16644 = vmatmul.mubr.msk.bf16.vlgmr.msra.gmra.mxu0 %vm1174_vm3, %v10230_v62  ;;  %v11507_v5 = vsel %vm1174_vm3, %v10290_v51, 0 }
0x170a   : > { %16654 = vmatpush3.bf16.xpose.msra.mxu0 %v11093_v49  ;;  %16655 = vmatprep.mubr.msk.bf16.mxu0 %vm18333_vm2, %v21764_v33  ;;  %v10256_v15 = vpop.permute.xlu1 %10255 }
0x170b   : > { %16665 = vmatprep.subr.bf16.mxu0 %v21764_v33  ;;  %v10292_v4 = vrot.slane %v10256_v15, 4 }
0x170d   : > { %16650 = vmatmul.mubr.msk.bf16.vlgmr.msra.gmra.mxu1 %vm1174_vm3, %v10232_v1  ;;  %v11599_v44 = vsel %vm1174_vm3, %v10292_v4, 0  ;;  %v10262_v1 = vpop.permute.xlu0 %10261 }
0x170e   : > { %16660 = vmatpush3.bf16.xpose.msra.mxu1 %v11139_v16  ;;  %16661 = vmatprep.mubr.msk.bf16.mxu1 %vm18333_vm2, %v21764_v33  ;;  %v10260_v53 = vpop.permute.xlu1 %10259 }
0x170f   : > { %16671 = vmatprep.subr.bf16.mxu1 %v21764_v33  ;;  %v10294_v9 = vrot.slane %v10260_v53, 4 }
0x1711   : > { %16656 = vmatmul.mubr.msk.bf16.vlgmr.msra.gmra.mxu0 %vm1174_vm3, %v10234_v19  ;;  %v11645_v19 = vsel %vm1174_vm3, %v10293_v23, 0 }
0x1712   : > { %16666 = vmatpush3.bf16.xpose.msra.mxu0 %v11185_v8  ;;  %16667 = vmatprep.mubr.msk.bf16.mxu0 %vm18333_vm2, %v21764_v33  ;;  %v10264_v28 = vpop.permute.xlu1 %10263 }
0x1713   : > { %16677 = vmatprep.subr.bf16.mxu0 %v21764_v33 }
0x1715   : > { %16662 = vmatmul.mubr.msk.bf16.vlgmr.msra.gmra.mxu1 %vm1174_vm3, %v10236_v21 }
0x1716   : > { %16672 = vmatpush3.bf16.xpose.msra.mxu1 %v11231_v37  ;;  %16673 = vmatprep.mubr.msk.bf16.mxu1 %vm18333_vm2, %v21764_v33 }
0x1717   : > { %16683 = vmatprep.subr.bf16.mxu1 %v21764_v33 }
0x1719   : > { %16668 = vmatmul.mubr.msk.bf16.vlgmr.msra.gmra.mxu0 %vm1174_vm3, %v10238_v26  ;;  %v10295_v26 = vrot.slane %v10262_v1, 4 }
0x171a   : > { %16678 = vmatpush3.bf16.xpose.msra.mxu0 %v11277_v42  ;;  %16679 = vmatprep.mubr.msk.bf16.mxu0 %vm18333_vm2, %v21764_v33 }
0x171b   : > { %16689 = vmatprep.subr.bf16.mxu0 %v21764_v33  ;;  %v11737_v42 = vsel %vm1174_vm3, %v10295_v26, 0 }
0x171d   : > { %16674 = vmatmul.mubr.msk.bf16.vlgmr.msra.gmra.mxu1 %vm1174_vm3, %v10240_v11  ;;  %v11691_v11 = vsel %vm1174_vm3, %v10294_v9, 0 }
0x171e   : > { %16684 = vmatpush3.bf16.xpose.msra.mxu1 %v11323_v52  ;;  %16685 = vmatprep.mubr.msk.bf16.mxu1 %vm18333_vm2, %v21764_v33 }
0x171f   : > { %16695 = vmatprep.subr.bf16.mxu1 %v21764_v33 }
0x1721   : > { %16680 = vmatmul.mubr.msk.bf16.vlgmr.msra.gmra.mxu0 %vm1174_vm3, %v10242_v59 }
0x1722   : > { %16690 = vmatpush3.bf16.xpose.msra.mxu0 %v11369_v22  ;;  %16691 = vmatprep.mubr.msk.bf16.mxu0 %vm18333_vm2, %v21764_v33  ;;  %v20946_v22 = vpop.permute.xlu0 %10303 }
0x1723   : > { %16701 = vmatprep.subr.bf16.mxu0 %v21764_v33 }
0x1725   : > { %16686 = vmatmul.mubr.msk.bf16.vlgmr.msra.gmra.mxu1 %vm1174_vm3, %v10244_v25  ;;  %v10296_v25 = vrot.slane %v10264_v28, 4 }
0x1726   : > { %16696 = vmatpush3.bf16.xpose.msra.mxu1 %v11415_v35  ;;  %16697 = vmatprep.mubr.msk.bf16.mxu1 %vm18333_vm2, %v21764_v33  ;;  %v20950_v30 = vpop.permute.xlu0 %10311 }
0x1727   : > { %16707 = vmatprep.subr.bf16.mxu1 %v21764_v33  ;;  %v11783_v52 = vsel %vm1174_vm3, %v10296_v25, 0 }
0x1729   : > { %16692 = vmatmul.mubr.msk.bf16.vlgmr.msra.gmra.mxu0 %vm1174_vm3, %v10246_v36 }
0x172a   : > { %16702 = vmatpush3.bf16.xpose.msra.mxu0 %v11461_v41  ;;  %16703 = vmatprep.mubr.msk.bf16.mxu0 %vm18333_vm2, %v21764_v33 }
0x172b   : > { %16713 = vmatprep.subr.bf16.mxu0 %v21764_v33 }
0x172d   : > { %16698 = vmatmul.mubr.msk.bf16.vlgmr.msra.gmra.mxu1 %vm1174_vm3, %v10248_v17  ;;  %v12245_v17 = vsel %vm3067_vm5, %v20740_v20, 0 }
0x172e   : > { %v10393_v38 = vpop.f32.mrf.mxu0  ;;  %16708 = vmatpush3.bf16.xpose.msra.mxu1 %v11507_v5  ;;  %16709 = vmatprep.mubr.msk.bf16.mxu1 %vm18333_vm2, %v21764_v33 }
0x172f   : > { %v20887_v58 = vmul.f32 0.25, %v10393_v38  ;;  %16719 = vmatprep.subr.bf16.mxu1 %v21764_v33 }
0x1730   : > { %v16561_v48 = vpop.f32.mrf.mxu0 }
0x1731   : > { %16704 = vmatmul.mubr.msk.bf16.vlgmr.msra.gmra.mxu0 %vm1174_vm3, %v10250_v24  ;;  %v11857_v2 = vsel %vm2679_vm4, %v20887_v58, -inf  ;;  %v20948_v24 = vpop.permute.xlu1 %10297 }
0x1732   : > { %v10396_v61 = vpop.f32.mrf.mxu0  ;;  %11858 = vmax.xlane.f32.xlu0 %v11857_v2  ;;  %16714 = vmatpush3.bf16.xpose.msra.mxu0 %v11553_v39 }
0x1733   : > { %16715 = vmatprep.mubr.msk.bf16.mxu0 %vm18333_vm2, %v21764_v33  ;;  %16725 = vmatprep.subr.bf16.mxu0 %v21764_v33 }
0x1734   : > { %v16562_v6 = vpop.f32.mrf.mxu0 }
0x1735   : > { %16710 = vmatmul.mubr.msk.bf16.vlgmr.msra.gmra.mxu1 %vm1174_vm3, %v10252_v0  ;;  %v20952_v35 = vpop.permute.xlu1 %10301  ;;  %v20954_v0 = vpop.permute.xlu0 %10319 }
0x1736   : > { %v10439_v62 = vpop.f32.mrf.mxu0  ;;  %16720 = vmatpush3.bf16.xpose.msra.mxu1 %v11599_v44  ;;  %16721 = vmatprep.mubr.msk.bf16.mxu1 %vm18333_vm2, %v21764_v33  ;;  %21817 = vst [vmem:[#allocation37_spill] sm:$0xff] %v20954_v0 }
0x1737   : > { %v20901_v63 = vmul.f32 0.25, %v10439_v62  ;;  %16731 = vmatprep.subr.bf16.mxu1 %v21764_v33 }
0x1738   : > { %v16567_v43 = vpop.f32.mrf.mxu0 }
0x1739   : > { %16716 = vmatmul.mubr.msk.bf16.vlgmr.msra.gmra.mxu0 %vm1174_vm3, %v10254_v50  ;;  %v11860_v32 = vsel %vm2679_vm4, %v20901_v63, -inf  ;;  %v20956_v51 = vpop.permute.xlu1 %10305  ;;  %v20958_v41 = vpop.permute.xlu0 %10327 }
0x173a   : > { %v10442_v29 = vpop.f32.mrf.mxu0  ;;  %v10531_v12 = vpop.f32.mrf.mxu1  ;;  %11861 = vmax.xlane.f32.xlu1 %v11860_v32  ;;  %16726 = vmatpush3.bf16.xpose.msra.mxu0 %v11645_v19  ;;  %21818 = vst [vmem:[#allocation26_spill] sm:$0xff] %v20958_v41 }
0x173b   : > { %v20908_v21 = vmul.f32 0.25, %v10531_v12  ;;  %16727 = vmatprep.mubr.msk.bf16.mxu0 %vm18333_vm2, %v21764_v33  ;;  %16737 = vmatprep.subr.bf16.mxu0 %v21764_v33 }
0x173c   : > { %v16568_v60 = vpop.f32.mrf.mxu0  ;;  %v16579_v49 = vpop.f32.mrf.mxu1 }
0x173d   : > { %16722 = vmatmul.mubr.msk.bf16.vlgmr.msra.gmra.mxu1 %vm1174_vm3, %v10256_v15  ;;  %v11866_v16 = vsel %vm2679_vm4, %v20908_v21, -inf  ;;  %v20960_v50 = vpop.permute.xlu1 %10309  ;;  %v20962_v34 = vpop.permute.xlu0 %10335 }
0x173e   : > { %v10534_v57 = vpop.f32.mrf.mxu1  ;;  %11867 = vmax.xlane.f32.xlu0 %v11866_v16  ;;  %v10485_v8 = vpop.f32.mrf.mxu0  ;;  %16732 = vmatpush3.bf16.xpose.msra.mxu1 %v11691_v11  ;;  %21819 = vst [vmem:[#allocation24_spill] sm:$0xff] %v20962_v34 }
0x173f   : > { %v20917_v59 = vmul.f32 0.25, %v10485_v8  ;;  %16733 = vmatprep.mubr.msk.bf16.mxu1 %vm18333_vm2, %v21764_v33  ;;  %16743 = vmatprep.subr.bf16.mxu1 %v21764_v33 }
0x1740   : > { %v16573_v14 = vpop.f32.mrf.mxu0  ;;  %v16580_v37 = vpop.f32.mrf.mxu1 }
0x1741   : > { %16728 = vmatmul.mubr.msk.bf16.vlgmr.msra.gmra.mxu0 %vm1174_vm3, %v10258_v45  ;;  %v11863_v47 = vsel %vm2679_vm4, %v20917_v59, -inf  ;;  %v20964_v5 = vpop.permute.xlu1 %10313  ;;  %v20966_v15 = vpop.permute.xlu0 %10299 }
0x1742   : > { %11864 = vmax.xlane.f32.xlu0 %v11863_v47  ;;  %v10488_v36 = vpop.f32.mrf.mxu0  ;;  %16738 = vmatpush3.bf16.xpose.msra.mxu0 %v11737_v42 }
0x1743   : > { %16739 = vmatprep.mubr.msk.bf16.mxu0 %vm18333_vm2, %v21764_v33  ;;  %16749 = vmatprep.subr.bf16.mxu0 %v21764_v33 }
0x1744   : > { %v16574_v40 = vpop.f32.mrf.mxu0 }
0x1745   : > { %16734 = vmatmul.mubr.msk.bf16.vlgmr.msra.gmra.mxu1 %vm1174_vm3, %v10260_v53  ;;  %v20968_v38 = vpop.permute.xlu1 %10317  ;;  %v20974_v6 = vpop.permute.xlu0 %10307 }
0x1746   : > { %16744 = vmatpush3.bf16.xpose.msra.mxu1 %v11783_v52  ;;  %16745 = vmatprep.mubr.msk.bf16.mxu1 %vm18333_vm2, %v21764_v33 }
0x1747   : > { %16755 = vmatprep.subr.bf16.mxu1 %v21764_v33 }
0x1749   : > { %16740 = vmatmul.mubr.msk.bf16.vlgmr.msra.gmra.mxu0 %vm1174_vm3, %v10262_v1  ;;  %v20976_v23 = vpop.permute.xlu1 %10321  ;;  %v20984_v12 = vpop.permute.xlu0 %10315 }
0x174a   : > { %16750 = vmatpush3.bf16.msra.mxu0 %v12245_v17  ;;  %16751 = vmatprep.mubr.msk.bf16.mxu0 %vm18333_vm2, %v21764_v33  ;;  %21820 = vst [vmem:[#allocation36_spill] sm:$0xff] %v20976_v23 }
0x174b   : > { %16761 = vmatprep.subr.bf16.mxu0 %v21764_v33 }
0x174d   : > { %16746 = vmatmul.mubr.msk.bf16.vlgmr.msra.gmra.mxu1 %vm1174_vm3, %v10264_v28  ;;  %v20986_v60 = vpop.permute.xlu1 %10325  ;;  %v20994_v25 = vpop.permute.xlu0 %10323 }
0x174e   : > { %16756 = vmatpush3.bf16.msra.mxu1 %v12291_v54  ;;  %16757 = vmatprep.mubr.msk.bf16.mxu1 %vm18333_vm2, %v21764_v33  ;;  %21821 = vst [vmem:[#allocation39_spill] sm:$0xff] %v20986_v60  ;;  %21822 = vst [vmem:[#allocation40_spill] sm:$0xff] %v20994_v25 }
0x174f   : > { %16767 = vmatprep.subr.bf16.mxu1 %v21764_v33 }
0x1751   : > { %v20996_v47 = vpop.permute.xlu1 %10329 }
0x1752   : > { %21823 = vst [vmem:[#allocation31_spill] sm:$0xff] %v20996_v47 }
0x17a1   : > { %v10577_v48 = vpop.f32.mrf.mxu0 }
0x17a2   : > { %v20970_v4 = vmul.f32 0.25, %v10577_v48 }
0x17a3   : > { %v16585_v2 = vpop.f32.mrf.mxu0 }
0x17a4   : > { %v11869_v39 = vsel %vm2679_vm4, %v20970_v4, -inf }
0x17a5   : > { %11870 = vmax.xlane.f32.xlu1 %v11869_v39  ;;  %v10580_v45 = vpop.f32.mrf.mxu0  ;;  %v10623_v61 = vpop.f32.mrf.mxu1 }
0x17a6   : > { %v20978_v44 = vmul.f32 0.25, %v10623_v61  ;;  %v21004_v45 = vpop.permute.xlu0 %10331  ;;  %v21006_v61 = vpop.permute.xlu1 %10333 }
0x17a7   : > { %v16586_v53 = vpop.f32.mrf.mxu0  ;;  %v16591_v62 = vpop.f32.mrf.mxu1  ;;  %21824 = vst [vmem:[#allocation32_spill] sm:$0xff] %v21004_v45  ;;  %21825 = vst [vmem:[#allocation33_spill] sm:$0xff] %v21006_v61 }
0x17a8   : > { %v11872_v43 = vsel %vm2679_vm4, %v20978_v44, -inf }
0x17a9   : > { %v10669_v1 = vpop.f32.mrf.mxu0  ;;  %11873 = vmax.xlane.f32.xlu0 %v11872_v43  ;;  %v10626_v9 = vpop.f32.mrf.mxu1 }
0x17aa   : > { %v20982_v32 = vmul.f32 0.25, %v10669_v1 }
0x17ab   : > { %v16592_v19 = vpop.f32.mrf.mxu1  ;;  %v16597_v29 = vpop.f32.mrf.mxu0 }
0x17ac   : > { %v11875_v49 = vsel %vm2679_vm4, %v20982_v32, -inf }
0x17ad   : > { %11876 = vmax.xlane.f32.xlu1 %v11875_v49  ;;  %v10672_v26 = vpop.f32.mrf.mxu0  ;;  %v10715_v28 = vpop.f32.mrf.mxu1 }
0x17ae   : > { %v20990_v16 = vmul.f32 0.25, %v10715_v28 }
0x17af   : > { %v16598_v11 = vpop.f32.mrf.mxu0  ;;  %v16603_v57 = vpop.f32.mrf.mxu1 }
0x17b0   : > { %v11878_v8 = vsel %vm2679_vm4, %v20990_v16, -inf  ;;  %v21015_v57 = vpop.permute.xlu1 %10337 }
0x17b1   : > { %11879 = vmax.xlane.f32.xlu0 %v11878_v8  ;;  %v10718_v14 = vpop.f32.mrf.mxu1  ;;  %v10761_v37 = vpop.f32.mrf.mxu0  ;;  %21826 = vst [vmem:[#allocation35_spill] sm:$0xff] %v21015_v57 }
0x17b2   : > { %v20998_v42 = vmul.f32 0.25, %v10761_v37 }
0x17b3   : > { %v16604_v36 = vpop.f32.mrf.mxu1  ;;  %v16609_v40 = vpop.f32.mrf.mxu0 }
0x17b4   : > { %v11881_v52 = vsel %vm2679_vm4, %v20998_v42, -inf }
0x17b5   : > { %v10807_v17 = vpop.f32.mrf.mxu1  ;;  %11882 = vmax.xlane.f32.xlu1 %v11881_v52  ;;  %v10764_v54 = vpop.f32.mrf.mxu0 }
0x17b6   : > { %v21002_v48 = vmul.f32 0.25, %v10807_v17 }
0x17b7   : > { %v16610_v2 = vpop.f32.mrf.mxu0  ;;  %v16615_v39 = vpop.f32.mrf.mxu1 }
0x17b8   : > { %v11884_v53 = vsel %vm2679_vm4, %v21002_v48, -inf }
0x17b9   : > { %11885 = vmax.xlane.f32.xlu0 %v11884_v53  ;;  %v10810_v62 = vpop.f32.mrf.mxu1  ;;  %v10853_v43 = vpop.f32.mrf.mxu0 }
0x17ba   : > { %v21010_v1 = vmul.f32 0.25, %v10853_v43 }
0x17bb   : > { %v16616_v9 = vpop.f32.mrf.mxu1  ;;  %v16621_v19 = vpop.f32.mrf.mxu0 }
0x17bc   : > { %v11859_v29 = vpop.xlane.xlu0 %11858  ;;  %v11887_v49 = vsel %vm2679_vm4, %v21010_v1, -inf }
0x17bd   : > { %v11953_v26 = vsub.f32 %v20887_v58, %v11859_v29  ;;  %v10899_v28 = vpop.f32.mrf.mxu1  ;;  %11888 = vmax.xlane.f32.xlu1 %v11887_v49  ;;  %v10856_v11 = vpop.f32.mrf.mxu0 }
0x17be   : > { %v21017_v8 = vmul.f32 0.25, %v10899_v28 }
0x17bf   : > { %v11985_v14 = vmul.f32 1.442695, %v11953_v26  ;;  %v16622_v37 = vpop.f32.mrf.mxu0  ;;  %v16627_v36 = vpop.f32.mrf.mxu1 }
0x17c0   : > { %v11890_v40 = vsel %vm2679_vm4, %v21017_v8, -inf }
0x17c1   : > { %17850 = vpow2.f32 %v11985_v14  ;;  %11891 = vmax.xlane.f32.xlu0 %v11890_v40  ;;  %v10902_v52 = vpop.f32.mrf.mxu1  ;;  %v10945_v17 = vpop.f32.mrf.mxu0 }
0x17c2   : > { %v21021_v54 = vmul.f32 0.25, %v10945_v17 }
0x17c3   : > { %v11862_v58 = vpop.xlane.xlu1 %11861  ;;  %v16628_v2 = vpop.f32.mrf.mxu1 }
0x17c4   : > { %v11954_v39 = vsub.f32 %v20901_v63, %v11862_v58  ;;  %v16633_v53 = vpop.f32.mrf.mxu0  ;;  %v11893_v62 = vsel %vm2679_vm4, %v21021_v54, -inf }
0x17c5   : > { %v10991_v43 = vpop.f32.mrf.mxu1  ;;  %11894 = vmax.xlane.f32.xlu1 %v11893_v62 }
0x17c6   : > { %v11987_v9 = vmul.f32 1.442695, %v11954_v39  ;;  %v21026_v19 = vmul.f32 0.25, %v10991_v43  ;;  %v10948_v29 = vpop.f32.mrf.mxu0 }
0x17c7   : > { %v16639_v49 = vpop.f32.mrf.mxu1  ;;  %v11868_v26 = vpop.xlane.xlu0 %11867 }
0x17c8   : > { %17852 = vpow2.f32 %v11987_v9  ;;  %v16634_v28 = vpop.f32.mrf.mxu0  ;;  %v11956_v11 = vsub.f32 %v20908_v21, %v11868_v26  ;;  %v11896_v14 = vsel %vm2679_vm4, %v21026_v19, -inf }
0x17c9   : > { %11897 = vmax.xlane.f32.xlu0 %v11896_v14  ;;  %v10994_v63 = vpop.f32.mrf.mxu1 }
0x17ca   : > { %v11991_v37 = vmul.f32 1.442695, %v11956_v11  ;;  %v11037_v36 = vpop.f32.mrf.mxu0 }
0x17cb   : > { %v21031_v40 = vmul.f32 0.25, %v11037_v36  ;;  %v16640_v52 = vpop.f32.mrf.mxu1  ;;  %v11865_v17 = vpop.xlane.xlu0 %11864 }
0x17cc   : > { %v16645_v58 = vpop.f32.mrf.mxu0  ;;  %v11955_v2 = vsub.f32 %v20917_v59, %v11865_v17  ;;  %17854 = vpow2.f32 %v11991_v37 }
0x17cd   : > { %v11083_v39 = vpop.f32.mrf.mxu1  ;;  %v11899_v53 = vsel %vm2679_vm4, %v21031_v40, -inf }
0x17ce   : > { %v21036_v62 = vpop.eup %17850  ;;  %v11989_v21 = vmul.f32 1.442695, %v11955_v2  ;;  %v21038_v43 = vmul.f32 0.25, %v11083_v39  ;;  %11900 = vmax.xlane.f32.xlu1 %v11899_v53  ;;  %v11040_v9 = vpop.f32.mrf.mxu0 }
0x17cf   : > { %v16651_v29 = vpop.f32.mrf.mxu1  ;;  %v12049_v28 = vsel %vm2679_vm4, %v21036_v62, 0.0 }
0x17d0   : > { %v16646_v49 = vpop.f32.mrf.mxu0  ;;  %v11902_v26 = vsel %vm2679_vm4, %v21038_v43, -inf  ;;  %17856 = vpow2.f32 %v11989_v21 }
0x17d1   : > { %11903 = vmax.xlane.f32.xlu0 %v11902_v26  ;;  %v11086_v59 = vpop.f32.mrf.mxu1 }
0x17d2   : > { %v11129_v11 = vpop.f32.mrf.mxu0  ;;  %12050 = vadd.xlane.f32.xlu1 %v12049_v28 }
0x17d3   : > { %v21044_v14 = vmul.f32 0.25, %v11129_v11  ;;  %v16652_v63 = vpop.f32.mrf.mxu1 }
0x17d4   : > { %v16657_v37 = vpop.f32.mrf.mxu0 }
0x17d5   : > { %v21046_v36 = vpop.eup %17852  ;;  %v11175_v52 = vpop.f32.mrf.mxu1  ;;  %v11905_v17 = vsel %vm2679_vm4, %v21044_v14, -inf }
0x17d6   : > { %v11132_v58 = vpop.f32.mrf.mxu0  ;;  %v21050_v2 = vmul.f32 0.25, %v11175_v52  ;;  %11906 = vmax.xlane.f32.xlu1 %v11905_v17  ;;  %v12052_v39 = vsel %vm2679_vm4, %v21046_v36, 0.0 }
0x17d7   : > { %12053 = vadd.xlane.f32.xlu0 %v12052_v39  ;;  %v16663_v53 = vpop.f32.mrf.mxu1 }
0x17d8   : > { %v16658_v21 = vpop.f32.mrf.mxu0  ;;  %v11908_v49 = vsel %vm2679_vm4, %v21050_v2, -inf }
0x17d9   : > { %v11178_v9 = vpop.f32.mrf.mxu1  ;;  %v21056_v26 = vpop.eup %17854 }
0x17da   : > { %v11221_v29 = vpop.f32.mrf.mxu0  ;;  %v12058_v39 = vsel %vm2679_vm4, %v21056_v26, 0.0 }
0x17db   : > { %v21058_v59 = vmul.f32 0.25, %v11221_v29  ;;  %11909 = vmax.xlane.f32.xlu0 %v11908_v49  ;;  %v16664_v28 = vpop.f32.mrf.mxu1 }
0x17dc   : > { %v16669_v11 = vpop.f32.mrf.mxu0 }
0x17dd   : > { %v11267_v63 = vpop.f32.mrf.mxu1  ;;  %v11911_v37 = vsel %vm2679_vm4, %v21058_v59, -inf  ;;  %v21062_v52 = vpop.eup %17856 }
0x17de   : > { %v11224_v17 = vpop.f32.mrf.mxu0  ;;  %v21064_v58 = vmul.f32 0.25, %v11267_v63  ;;  %11912 = vmax.xlane.f32.xlu1 %v11911_v37  ;;  %v12055_v29 = vsel %vm2679_vm4, %v21062_v52, 0.0 }
0x17df   : > { %v16675_v53 = vpop.f32.mrf.mxu1  ;;  %12059 = vadd.xlane.f32.xlu0 %v12058_v39 }
0x17e0   : > { %v16670_v21 = vpop.f32.mrf.mxu0  ;;  %v11914_v28 = vsel %vm2679_vm4, %v21064_v58, -inf }
0x17e1   : > { %v11270_v9 = vpop.f32.mrf.mxu1 }
0x17e2   : > { %v11313_v49 = vpop.f32.mrf.mxu0  ;;  %12056 = vadd.xlane.f32.xlu1 %v12055_v29 }
0x17e3   : > { %v16676_v11 = vpop.f32.mrf.mxu1  ;;  %11915 = vmax.xlane.f32.xlu0 %v11914_v28 }
0x17e4   : > { %v16681_v63 = vpop.f32.mrf.mxu0 }
0x17e5   : > { %v11359_v17 = vpop.f32.mrf.mxu1 }
0x17e6   : > { %v11316_v37 = vpop.f32.mrf.mxu0 }
0x17e7   : > { %v16687_v31 = vpop.f32.mrf.mxu1 }
0x17e8   : > { %v16682_v46 = vpop.f32.mrf.mxu0 }
0x17e9   : > { %v11362_v18 = vpop.f32.mrf.mxu1 }
0x17ea   : > { %v11405_v53 = vpop.f32.mrf.mxu0 }
0x17eb   : > { %v16688_v39 = vpop.f32.mrf.mxu1 }
0x17ec   : > { %v16693_v21 = vpop.f32.mrf.mxu0 }
0x17ed   : > { %v11451_v9 = vpop.f32.mrf.mxu1 }
0x17ee   : > { %v11408_v56 = vpop.f32.mrf.mxu0 }
0x17ef   : > { %v16699_v10 = vpop.f32.mrf.mxu1 }
0x17f0   : > { %v16694_v27 = vpop.f32.mrf.mxu0 }
0x17f1   : > { %v11454_v55 = vpop.f32.mrf.mxu1 }
0x17f2   : > { %v11497_v29 = vpop.f32.mrf.mxu0 }
0x17f3   : > { %10341 = vrot.lane.b32.xlu1 %v20746_v13, %s18339_s28  ;;  %v16700_v11 = vpop.f32.mrf.mxu1 }
0x17f4   : > { %v16705_v28 = vpop.f32.mrf.mxu0 }
0x17f5   : > { %v11543_v63 = vpop.f32.mrf.mxu1 }
0x17f6   : > { %v11500_v57 = vpop.f32.mrf.mxu0 }
0x17f7   : > { %10343 = vrot.lane.b32.xlu1 %v20731_v7, %s18339_s28  ;;  %v16711_v46 = vpop.f32.mrf.mxu1 }
0x17f8   : > { %v16706_v31 = vpop.f32.mrf.mxu0 }
0x17f9   : > { %v11546_v18 = vpop.f32.mrf.mxu1  ;;  %10339 = vrot.lane.b32.xlu0 %v20756_v3, %s18339_s28 }
0x17fa   : > { %v11589_v56 = vpop.f32.mrf.mxu0 }
0x17fb   : > { %v16712_v27 = vpop.f32.mrf.mxu1 }
0x17fc   : > { %v16717_v55 = vpop.f32.mrf.mxu0 }
0x17fd   : > { %v11635_v10 = vpop.f32.mrf.mxu1 }
0x17fe   : > { %v11592_v37 = vpop.f32.mrf.mxu0 }
0x17ff   : > { %v16723_v39 = vpop.f32.mrf.mxu1  ;;  %v21078_v37 = vmul.f32 0.25, %v11359_v17  ;;  %v21098_v17 = vmul.f32 0.25, %v11635_v10 }
0x1800   : > { %v16718_v21 = vpop.f32.mrf.mxu0 }
0x1801   : > { %v11638_v11 = vpop.f32.mrf.mxu1  ;;  %v21080_v21 = vmul.f32 0.25, %v11313_v49 }
0x1802   : > { %v11681_v28 = vpop.f32.mrf.mxu0 }
0x1803   : > { %v16724_v61 = vpop.f32.mrf.mxu1 }
0x1804   : > { %v16729_v57 = vpop.f32.mrf.mxu0  ;;  %v21082_v61 = vmul.f32 0.25, %v11451_v9  ;;  %v21102_v9 = vmul.f32 0.25, %v11589_v56 }
0x1805   : > { %v11727_v34 = vpop.f32.mrf.mxu1  ;;  %v21110_v57 = vmul.f32 0.25, %v11681_v28 }
0x1806   : > { %v11684_v45 = vpop.f32.mrf.mxu0  ;;  %v21106_v11 = vmul.f32 0.25, %v11727_v34  ;;  %v11935_v10 = vsel %vm2679_vm4, %v21102_v9, -inf }
0x1807   : > { %v16735_v47 = vpop.f32.mrf.mxu1  ;;  %v21086_v45 = vmul.f32 0.25, %v11405_v53  ;;  %v11941_v34 = vsel %vm2679_vm4, %v21110_v57, -inf }
0x1808   : > { %v16730_v46 = vpop.f32.mrf.mxu0  ;;  %v11920_v47 = vsel %vm2679_vm4, %v21078_v37, -inf  ;;  %v11944_v56 = vsel %vm2679_vm4, %v21106_v11, -inf }
0x1809   : > { %v11730_v31 = vpop.f32.mrf.mxu1  ;;  %v11923_v49 = vsel %vm2679_vm4, %v21086_v45, -inf }
0x180a   : > { %v11773_v18 = vpop.f32.mrf.mxu0 }
0x180b   : > { %v16736_v41 = vpop.f32.mrf.mxu1  ;;  %v21118_v31 = vmul.f32 0.25, %v11773_v18 }
0x180c   : > { %v16741_v60 = vpop.f32.mrf.mxu0  ;;  %v11917_v41 = vsel %vm2679_vm4, %v21080_v21, -inf }
0x180d   : > { %v11819_v25 = vpop.f32.mrf.mxu1  ;;  %v21094_v60 = vmul.f32 0.25, %v11497_v29  ;;  %v11938_v29 = vsel %vm2679_vm4, %v21098_v17, -inf }
0x180e   : > { %v11776_v23 = vpop.f32.mrf.mxu0  ;;  %v21114_v46 = vmul.f32 0.25, %v11819_v25  ;;  %v11947_v25 = vsel %vm2679_vm4, %v21118_v31, -inf }
0x180f   : > { %v16747_v27 = vpop.f32.mrf.mxu1  ;;  %v21090_v23 = vmul.f32 0.25, %v11543_v63  ;;  %v11929_v63 = vsel %vm2679_vm4, %v21094_v60, -inf }
0x1810   : > { %v16742_v55 = vpop.f32.mrf.mxu0  ;;  %v11950_v28 = vsel %vm2679_vm4, %v21114_v46, -inf }
0x1811   : > { %v11822_v0 = vpop.f32.mrf.mxu1  ;;  %v11932_v53 = vsel %vm2679_vm4, %v21090_v23, -inf }
0x1812   : > { %v11926_v0 = vsel %vm2679_vm4, %v21082_v61, -inf }
0x1813   : > { %v16748_v39 = vpop.f32.mrf.mxu1 }
0x1818   : > { %11921 = vmax.xlane.f32.xlu0 %v11920_v47 }
0x181b   : > { %11918 = vmax.xlane.f32.xlu1 %v11917_v41 }
0x181c   : > { %11927 = vmax.xlane.f32.xlu0 %v11926_v0 }
0x181f   : > { %11924 = vmax.xlane.f32.xlu1 %v11923_v49 }
0x1820   : > { %11933 = vmax.xlane.f32.xlu0 %v11932_v53 }
0x1823   : > { %11930 = vmax.xlane.f32.xlu1 %v11929_v63 }
0x1824   : > { %11939 = vmax.xlane.f32.xlu0 %v11938_v29 }
0x1827   : > { %11936 = vmax.xlane.f32.xlu1 %v11935_v10 }
0x1828   : > { %11945 = vmax.xlane.f32.xlu0 %v11944_v56 }
0x182b   : > { %11942 = vmax.xlane.f32.xlu1 %v11941_v34 }
0x182c   : > { %11951 = vmax.xlane.f32.xlu0 %v11950_v28 }
0x182e   : > { %v11871_v27 = vpop.xlane.xlu1 %11870 }
0x182f   : > { %v11957_v55 = vsub.f32 %v20970_v4, %v11871_v27  ;;  %11948 = vmax.xlane.f32.xlu1 %v11947_v25 }
0x1831   : > { %v11993_v39 = vmul.f32 1.442695, %v11957_v55 }
0x1832   : > { %v11874_v47 = vpop.xlane.xlu0 %11873 }
0x1833   : > { %17858 = vpow2.f32 %v11993_v39  ;;  %v11958_v18 = vsub.f32 %v20978_v44, %v11874_v47 }
0x1835   : > { %v11995_v41 = vmul.f32 1.442695, %v11958_v18 }
0x1836   : > { %v11877_v0 = vpop.xlane.xlu1 %11876 }
0x1837   : > { %17860 = vpow2.f32 %v11995_v41  ;;  %v11959_v49 = vsub.f32 %v20982_v32, %v11877_v0 }
0x1839   : > { %v11997_v53 = vmul.f32 1.442695, %v11959_v49 }
0x183a   : > { %v11880_v63 = vpop.xlane.xlu0 %11879 }
0x183b   : > { %17862 = vpow2.f32 %v11997_v53  ;;  %v11960_v29 = vsub.f32 %v20990_v16, %v11880_v63 }
0x183d   : > { %v11999_v10 = vmul.f32 1.442695, %v11960_v29 }
0x183e   : > { %v11883_v56 = vpop.xlane.xlu1 %11882 }
0x183f   : > { %17864 = vpow2.f32 %v11999_v10  ;;  %v11961_v4 = vsub.f32 %v20998_v42, %v11883_v56 }
0x1840   : > { %v21131_v34 = vpop.eup %17858 }
0x1841   : > { %v12001_v28 = vmul.f32 1.442695, %v11961_v4  ;;  %v12061_v44 = vsel %vm2679_vm4, %v21131_v34, 0.0 }
0x1842   : > { %12062 = vadd.xlane.f32.xlu1 %v12061_v44  ;;  %v11886_v27 = vpop.xlane.xlu0 %11885 }
0x1843   : > { %17866 = vpow2.f32 %v12001_v28  ;;  %v11962_v32 = vsub.f32 %v21002_v48, %v11886_v27 }
0x1844   : > { %v21136_v25 = vpop.eup %17860 }
0x1845   : > { %v12003_v55 = vmul.f32 1.442695, %v11962_v32  ;;  %v12064_v16 = vsel %vm2679_vm4, %v21136_v25, 0.0 }
0x1846   : > { %v11889_v39 = vpop.xlane.xlu1 %11888  ;;  %12065 = vadd.xlane.f32.xlu0 %v12064_v16 }
0x1847   : > { %17868 = vpow2.f32 %v12003_v55  ;;  %v11963_v42 = vsub.f32 %v21010_v1, %v11889_v39 }
0x1848   : > { %v21141_v47 = vpop.eup %17862 }
0x1849   : > { %v12005_v18 = vmul.f32 1.442695, %v11963_v42  ;;  %v12067_v41 = vsel %vm2679_vm4, %v21141_v47, 0.0 }
0x184a   : > { %12068 = vadd.xlane.f32.xlu1 %v12067_v41  ;;  %v11892_v0 = vpop.xlane.xlu0 %11891 }
0x184b   : > { %17870 = vpow2.f32 %v12005_v18  ;;  %v11964_v48 = vsub.f32 %v21017_v8, %v11892_v0 }
0x184c   : > { %v21146_v49 = vpop.eup %17864 }
0x184d   : > { %v12007_v53 = vmul.f32 1.442695, %v11964_v48  ;;  %v12070_v63 = vsel %vm2679_vm4, %v21146_v49, 0.0 }
0x184e   : > { %v11895_v29 = vpop.xlane.xlu1 %11894  ;;  %12071 = vadd.xlane.f32.xlu0 %v12070_v63 }
0x184f   : > { %17872 = vpow2.f32 %v12007_v53  ;;  %v11965_v1 = vsub.f32 %v21021_v54, %v11895_v29 }
0x1850   : > { %v21151_v10 = vpop.eup %17866 }
0x1851   : > { %v12009_v56 = vmul.f32 1.442695, %v11965_v1  ;;  %v12073_v4 = vsel %vm2679_vm4, %v21151_v10, 0.0 }
0x1852   : > { %12074 = vadd.xlane.f32.xlu1 %v12073_v4  ;;  %v11898_v28 = vpop.xlane.xlu0 %11897 }
0x1853   : > { %17874 = vpow2.f32 %v12009_v56  ;;  %v11966_v8 = vsub.f32 %v21026_v19, %v11898_v28 }
0x1854   : > { %v21156_v44 = vpop.eup %17868 }
0x1855   : > { %v12011_v27 = vmul.f32 1.442695, %v11966_v8  ;;  %v12076_v32 = vsel %vm2679_vm4, %v21156_v44, 0.0 }
0x1856   : > { %12077 = vadd.xlane.f32.xlu0 %v12076_v32 }
0x1857   : > { %17876 = vpow2.f32 %v12011_v27  ;;  %v11901_v54 = vpop.xlane.xlu1 %11900 }
0x1858   : > { %v21160_v55 = vpop.eup %17870  ;;  %v11967_v16 = vsub.f32 %v21031_v40, %v11901_v54 }
0x1859   : > { %v12079_v39 = vsel %vm2679_vm4, %v21160_v55, 0.0 }
0x185a   : > { %v12013_v42 = vmul.f32 1.442695, %v11967_v16  ;;  %12080 = vadd.xlane.f32.xlu1 %v12079_v39  ;;  %v11904_v18 = vpop.xlane.xlu0 %11903 }
0x185b   : > { %v12051_v19 = vpop.xlane.xlu1 %12050  ;;  %v11968_v41 = vsub.f32 %v21038_v43, %v11904_v18 }
0x185c   : > { %v21166_v0 = vpop.eup %17872  ;;  %17878 = vpow2.f32 %v12013_v42 }
0x185d   : > { %17880 = vrcp.f32 %v12051_v19  ;;  %v12015_v48 = vmul.f32 1.442695, %v11968_v41  ;;  %v12082_v53 = vsel %vm2679_vm4, %v21166_v0, 0.0 }
0x185e   : > { %12083 = vadd.xlane.f32.xlu0 %v12082_v53 }
0x185f   : > { %17882 = vpow2.f32 %v12015_v48  ;;  %v11907_v40 = vpop.xlane.xlu1 %11906 }
0x1860   : > { %v21170_v63 = vpop.eup %17874  ;;  %v11969_v29 = vsub.f32 %v21044_v14, %v11907_v40  ;;  %v12054_v1 = vpop.xlane.xlu0 %12053 }
0x1861   : > { %17884 = vrcp.f32 %v12054_v1  ;;  %v12085_v43 = vsel %vm2679_vm4, %v21170_v63, 0.0 }
0x1862   : > { %v12017_v56 = vmul.f32 1.442695, %v11969_v29  ;;  %12086 = vadd.xlane.f32.xlu1 %v12085_v43 }
0x1864   : > { %v21175_v4 = vpop.eup %17876  ;;  %17886 = vpow2.f32 %v12017_v56  ;;  %v11910_v28 = vpop.xlane.xlu0 %11909 }
0x1865   : > { %v11970_v8 = vsub.f32 %v21050_v2, %v11910_v28  ;;  %v12088_v27 = vsel %vm2679_vm4, %v21175_v4, 0.0 }
0x1866   : > { %12089 = vadd.xlane.f32.xlu0 %v12088_v27 }
0x1867   : > { %v12019_v32 = vmul.f32 1.442695, %v11970_v8  ;;  %v11913_v54 = vpop.xlane.xlu1 %11912 }
0x1868   : > { %v11971_v14 = vsub.f32 %v21058_v59, %v11913_v54  ;;  %v12060_v16 = vpop.xlane.xlu0 %12059 }
0x1869   : > { %v21181_v39 = vpop.eup %17878  ;;  %17888 = vpow2.f32 %v12019_v32 }
0x186a   : > { %v17881_v42 = vpop.eup %17880  ;;  %v12021_v18 = vmul.f32 1.442695, %v11971_v14  ;;  %17890 = vrcp.f32 %v12060_v16  ;;  %v12091_v19 = vsel %vm2679_vm4, %v21181_v39, 0.0 }
0x186b   : > { %v12177_v2 = vmul.f32 %v17881_v42, %v21036_v62  ;;  %12092 = vadd.xlane.f32.xlu1 %v12091_v19  ;;  %v12057_v41 = vpop.xlane.xlu1 %12056  ;;  %v12337_v62 = vsel %vm3067_vm5, %v20746_v13, 0 }
0x186c   : > { %v21186_v48 = vpop.eup %17882  ;;  %17892 = vpow2.f32 %v12021_v18  ;;  %v11916_v53 = vpop.xlane.xlu0 %11915 }
0x186d   : > { %v12209_v40 = vpack.c.bf16 %v12177_v2, %v12177_v2  ;;  %17894 = vrcp.f32 %v12057_v41  ;;  %v11972_v59 = vsub.f32 %v21064_v58, %v11916_v53  ;;  %v12094_v29 = vsel %vm2679_vm4, %v21186_v48, 0.0 }
0x186e   : > { %v17885_v1 = vpop.eup %17884  ;;  %12095 = vadd.xlane.f32.xlu0 %v12094_v29  ;;  %v12475_v41 = vsel %vm3067_vm5, %v20966_v15, 0 }
0x186f   : > { %v12178_v43 = vmul.f32 %v17885_v1, %v21046_v36  ;;  %v12023_v56 = vmul.f32 1.442695, %v11972_v59  ;;  %16752 = vmatmul.mubr.msk.bf16.vlgmr.msra.gmra.mxu0 %vm2679_vm4, %v12209_v40  ;;  %v12383_v36 = vsel %vm3067_vm5, %v20731_v7, 0  ;;  %v12429_v40 = vsel %vm3067_vm5, %v20948_v24, 0  ;;  %v21234_v15 = vpop.permute.xlu1 %10341 }
0x1870   : > { %16762 = vmatpush3.bf16.msra.mxu0 %v12337_v62  ;;  %16763 = vmatprep.mubr.msk.bf16.mxu0 %vm18333_vm2, %v21764_v33  ;;  %v21236_v59 = vpop.permute.xlu0 %10339 }
0x1871   : > { %v21197_v28 = vpop.eup %17886  ;;  %v12210_v58 = vpack.c.bf16 %v12178_v43, %v12178_v43  ;;  %17896 = vpow2.f32 %v12023_v56  ;;  %16773 = vmatprep.subr.bf16.mxu0 %v21764_v33 }
0x1872   : > { %v12097_v8 = vsel %vm2679_vm4, %v21197_v28, 0.0 }
0x1873   : > { %12098 = vadd.xlane.f32.xlu1 %v12097_v8  ;;  %16758 = vmatmul.mubr.msk.bf16.vlgmr.msra.gmra.mxu1 %vm2679_vm4, %v12210_v58  ;;  %v21238_v29 = vpop.permute.xlu1 %10343 }
0x1874   : > { %16768 = vmatpush3.bf16.msra.mxu1 %v12383_v36  ;;  %16769 = vmatprep.mubr.msk.bf16.mxu1 %vm18333_vm2, %v21764_v33 }
0x1875   : > { %16779 = vmatprep.subr.bf16.mxu1 %v21764_v33 }
0x1876   : > { %v21208_v27 = vpop.eup %17888 }
0x1877   : > { %v17891_v32 = vpop.eup %17890  ;;  %v12100_v54 = vsel %vm2679_vm4, %v21208_v27, 0.0 }
0x1878   : > { %v12180_v14 = vmul.f32 %v17891_v32, %v21056_v26  ;;  %12101 = vadd.xlane.f32.xlu0 %v12100_v54 }
0x1879   : > { %v21213_v16 = vpop.eup %17892 }
0x187a   : > { %v17895_v42 = vpop.eup %17894  ;;  %v12212_v18 = vpack.c.bf16 %v12180_v14, %v12180_v14  ;;  %v12103_v19 = vsel %vm2679_vm4, %v21213_v16, 0.0 }
0x187b   : > { %v12179_v2 = vmul.f32 %v17895_v42, %v21062_v52  ;;  %12104 = vadd.xlane.f32.xlu1 %v12103_v19 }
0x187c   : > { %16770 = vmatmul.mubr.msk.bf16.vlgmr.msra.gmra.mxu1 %vm2679_vm4, %v12212_v18 }
0x187d   : > { %v12211_v53 = vpack.c.bf16 %v12179_v2, %v12179_v2  ;;  %16780 = vmatpush3.bf16.msra.mxu1 %v12475_v41  ;;  %16781 = vmatprep.mubr.msk.bf16.mxu1 %vm18333_vm2, %v21764_v33 }
0x187e   : > { %v21223_v26 = vpop.eup %17896  ;;  %16791 = vmatprep.subr.bf16.mxu1 %v21764_v33 }
0x187f   : > { %16764 = vmatmul.mubr.msk.bf16.vlgmr.msra.gmra.mxu0 %vm2679_vm4, %v12211_v53  ;;  %v12106_v52 = vsel %vm2679_vm4, %v21223_v26, 0.0 }
0x1880   : > { %16774 = vmatpush3.bf16.msra.mxu0 %v12429_v40  ;;  %12107 = vadd.xlane.f32.xlu0 %v12106_v52 }
0x1881   : > { %16775 = vmatprep.mubr.msk.bf16.mxu0 %vm18333_vm2, %v21764_v33  ;;  %16785 = vmatprep.subr.bf16.mxu0 %v21764_v33 }
0x18a1   : > { %v11922_v1 = vpop.xlane.xlu0 %11921 }
0x18a2   : > { %v11974_v24 = vsub.f32 %v21078_v37, %v11922_v1 }
0x18a4   : > { %v12027_v43 = vmul.f32 1.442695, %v11974_v24  ;;  %v11919_v56 = vpop.xlane.xlu1 %11918 }
0x18a5   : > { %v11973_v62 = vsub.f32 %v21080_v21, %v11919_v56  ;;  %v11928_v58 = vpop.xlane.xlu0 %11927 }
0x18a6   : > { %17898 = vpow2.f32 %v12027_v43  ;;  %v11976_v8 = vsub.f32 %v21082_v61, %v11928_v58 }
0x18a7   : > { %v12025_v36 = vmul.f32 1.442695, %v11973_v62 }
0x18a8   : > { %v12031_v32 = vmul.f32 1.442695, %v11976_v8  ;;  %v11925_v54 = vpop.xlane.xlu1 %11924 }
0x18a9   : > { %17900 = vpow2.f32 %v12025_v36  ;;  %v11975_v14 = vsub.f32 %v21086_v45, %v11925_v54  ;;  %v11934_v42 = vpop.xlane.xlu0 %11933 }
0x18aa   : > { %17902 = vpow2.f32 %v12031_v32  ;;  %v11978_v18 = vsub.f32 %v21090_v23, %v11934_v42 }
0x18ab   : > { %v12029_v19 = vmul.f32 1.442695, %v11975_v14 }
0x18ac   : > { %v12035_v37 = vmul.f32 1.442695, %v11978_v18  ;;  %v11931_v2 = vpop.xlane.xlu1 %11930 }
0x18ad   : > { %17904 = vpow2.f32 %v12029_v19  ;;  %v11977_v21 = vsub.f32 %v21094_v60, %v11931_v2  ;;  %v11940_v41 = vpop.xlane.xlu0 %11939 }
0x18ae   : > { %17906 = vpow2.f32 %v12035_v37  ;;  %v11980_v61 = vsub.f32 %v21098_v17, %v11940_v41 }
0x18af   : > { %v12033_v53 = vmul.f32 1.442695, %v11977_v21 }
0x18b0   : > { %v12039_v40 = vmul.f32 1.442695, %v11980_v61  ;;  %v11937_v52 = vpop.xlane.xlu1 %11936 }
0x18b1   : > { %17908 = vpow2.f32 %v12033_v53  ;;  %v11979_v45 = vsub.f32 %v21102_v9, %v11937_v52  ;;  %v11946_v37 = vpop.xlane.xlu0 %11945 }
0x18b2   : > { %17910 = vpow2.f32 %v12039_v40 }
0x18b3   : > { %v21248_v1 = vpop.eup %17898  ;;  %v12037_v23 = vmul.f32 1.442695, %v11979_v45 }
0x18b4   : > { %v12112_v24 = vsel %vm2679_vm4, %v21248_v1, 0.0  ;;  %v11943_v42 = vpop.xlane.xlu1 %11942 }
0x18b5   : > { %17912 = vpow2.f32 %v12037_v23  ;;  %12113 = vadd.xlane.f32.xlu0 %v12112_v24  ;;  %v11952_v21 = vpop.xlane.xlu0 %11951 }
0x18b6   : > { %v21252_v60 = vpop.eup %17900 }
0x18b7   : > { %v21254_v43 = vpop.eup %17902  ;;  %v12109_v17 = vsel %vm2679_vm4, %v21252_v60, 0.0 }
0x18b8   : > { %12110 = vadd.xlane.f32.xlu1 %v12109_v17  ;;  %v12118_v9 = vsel %vm2679_vm4, %v21254_v43, 0.0  ;;  %v11949_v2 = vpop.xlane.xlu1 %11948 }
0x18b9   : > { %12119 = vadd.xlane.f32.xlu0 %v12118_v9  ;;  %v11982_v9 = vsub.f32 %v21106_v11, %v11946_v37 }
0x18ba   : > { %v21260_v56 = vpop.eup %17904 }
0x18bb   : > { %v21262_v62 = vpop.eup %17906  ;;  %v12115_v58 = vsel %vm2679_vm4, %v21260_v56, 0.0  ;;  %v12043_v11 = vmul.f32 1.442695, %v11982_v9  ;;  %v12751_v9 = vsel %vm3067_vm5, %v20950_v30, 0 }
0x18bc   : > { %12116 = vadd.xlane.f32.xlu1 %v12115_v58  ;;  %v12124_v8 = vsel %vm2679_vm4, %v21262_v62, 0.0  ;;  %v12521_v58 = vsel %vm3067_vm5, %v20952_v35, 0  ;;  %v12567_v35 = vsel %vm3067_vm5, %v20946_v22, 0  ;;  %v12613_v22 = vsel %vm3067_vm5, %v20956_v51, 0 }
0x18bd   : > { %12125 = vadd.xlane.f32.xlu0 %v12124_v8  ;;  %v12659_v51 = vsel %vm3067_vm5, %v20974_v6, 0 }
0x18be   : > { %v21268_v36 = vpop.eup %17908 }
0x18bf   : > { %v21270_v32 = vpop.eup %17910  ;;  %v12121_v54 = vsel %vm2679_vm4, %v21268_v36, 0.0 }
0x18c0   : > { %12122 = vadd.xlane.f32.xlu1 %v12121_v54  ;;  %v12130_v14 = vsel %vm2679_vm4, %v21270_v32, 0.0 }
0x18c1   : > { %12131 = vadd.xlane.f32.xlu0 %v12130_v14  ;;  %v11984_v14 = vsub.f32 %v21114_v46, %v11952_v21 }
0x18c2   : > { %v21276_v18 = vpop.eup %17912 }
0x18c3   : > { %v12127_v19 = vsel %vm2679_vm4, %v21276_v18, 0.0  ;;  %v12047_v21 = vmul.f32 1.442695, %v11984_v14 }
0x18c4   : > { %12128 = vadd.xlane.f32.xlu1 %v12127_v19 }
0x18cb   : > { %v12063_v41 = vpop.xlane.xlu1 %12062 }
0x18cc   : > { %17914 = vrcp.f32 %v12063_v41 }
0x18cf   : > { %v12066_v61 = vpop.xlane.xlu0 %12065 }
0x18d0   : > { %17916 = vrcp.f32 %v12066_v61 }
0x18d3   : > { %v12069_v53 = vpop.xlane.xlu1 %12068 }
0x18d4   : > { %17918 = vrcp.f32 %v12069_v53 }
0x18d5   : > { %10347 = vrot.lane.b32.xlu1 %v20756_v3, %s18340_s29 }
0x18d7   : > { %10345 = vrot.lane.b32.xlu0 %v20740_v20, %s18340_s29  ;;  %v12072_v40 = vpop.xlane.xlu0 %12071  ;;  %v11981_v20 = vsub.f32 %v21110_v57, %v11943_v42  ;;  %v11983_v42 = vsub.f32 %v21118_v31, %v11949_v2 }
0x18d8   : > { %17920 = vrcp.f32 %v12072_v40 }
0x18d9   : > { %v17915_v52 = vpop.eup %17914  ;;  %v12041_v57 = vmul.f32 1.442695, %v11981_v20  ;;  %v12045_v31 = vmul.f32 1.442695, %v11983_v42 }
0x18da   : > { %v12181_v45 = vmul.f32 %v17915_v52, %v21131_v34 }
0x18db   : > { %v12075_v23 = vpop.xlane.xlu1 %12074 }
0x18dc   : > { %v12213_v24 = vpack.c.bf16 %v12181_v45, %v12181_v45  ;;  %17922 = vrcp.f32 %v12075_v23  ;;  %v12705_v45 = vsel %vm3067_vm5, %v20960_v50, 0 }
0x18dd   : > { %v17917_v17 = vpop.eup %17916 }
0x18de   : > { %v12182_v8 = vmul.f32 %v17917_v17, %v21136_v25  ;;  %16776 = vmatmul.mubr.msk.bf16.vlgmr.msra.gmra.mxu0 %vm2679_vm4, %v12213_v24 }
0x18df   : > { %16786 = vmatpush3.bf16.msra.mxu0 %v12521_v58  ;;  %v12078_v3 = vpop.xlane.xlu0 %12077  ;;  %16787 = vmatprep.mubr.msk.bf16.mxu0 %vm18333_vm2, %v21764_v33 }
0x18e0   : > { %v12214_v34 = vpack.c.bf16 %v12182_v8, %v12182_v8  ;;  %17924 = vrcp.f32 %v12078_v3  ;;  %16797 = vmatprep.subr.bf16.mxu0 %v21764_v33 }
0x18e1   : > { %v17919_v54 = vpop.eup %17918 }
0x18e2   : > { %v12183_v25 = vmul.f32 %v17919_v54, %v21141_v47  ;;  %16782 = vmatmul.mubr.msk.bf16.vlgmr.msra.gmra.mxu1 %vm2679_vm4, %v12214_v34 }
0x18e3   : > { %16792 = vmatpush3.bf16.msra.mxu1 %v12567_v35  ;;  %v12081_v19 = vpop.xlane.xlu1 %12080  ;;  %16793 = vmatprep.mubr.msk.bf16.mxu1 %vm18333_vm2, %v21764_v33 }
0x18e4   : > { %v12215_v37 = vpack.c.bf16 %v12183_v25, %v12183_v25  ;;  %17926 = vrcp.f32 %v12081_v19  ;;  %16803 = vmatprep.subr.bf16.mxu1 %v21764_v33  ;;  %v12843_v25 = vsel %vm3067_vm5, %v20984_v12, 0  ;;  %v12889_v12 = vsel %vm3067_vm5, %v20968_v38, 0 }
0x18e5   : > { %v17921_v46 = vpop.eup %17920  ;;  %17928 = vpow2.f32 %v12043_v11 }
0x18e6   : > { %v12184_v47 = vmul.f32 %v17921_v46, %v21146_v49  ;;  %16788 = vmatmul.mubr.msk.bf16.vlgmr.msra.gmra.mxu0 %vm2679_vm4, %v12215_v37  ;;  %17930 = vpow2.f32 %v12041_v57 }
0x18e7   : > { %16798 = vmatpush3.bf16.msra.mxu0 %v12613_v22  ;;  %v12084_v2 = vpop.xlane.xlu0 %12083  ;;  %16799 = vmatprep.mubr.msk.bf16.mxu0 %vm18333_vm2, %v21764_v33 }
0x18e8   : > { %v12216_v41 = vpack.c.bf16 %v12184_v47, %v12184_v47  ;;  %17932 = vrcp.f32 %v12084_v2  ;;  %16809 = vmatprep.subr.bf16.mxu0 %v21764_v33 }
0x18e9   : > { %v17923_v61 = vpop.eup %17922  ;;  %17934 = vpow2.f32 %v12047_v21 }
0x18ea   : > { %v12185_v49 = vmul.f32 %v17923_v61, %v21151_v10  ;;  %16794 = vmatmul.mubr.msk.bf16.vlgmr.msra.gmra.mxu1 %vm2679_vm4, %v12216_v41  ;;  %17936 = vpow2.f32 %v12045_v31  ;;  %v21827_v31 = vld [vmem:[#allocation37_spill] sm:$0xff] }
0x18eb   : > { %16804 = vmatpush3.bf16.msra.mxu1 %v12659_v51  ;;  %v12087_v53 = vpop.xlane.xlu1 %12086  ;;  %16805 = vmatprep.mubr.msk.bf16.mxu1 %vm18333_vm2, %v21764_v33  ;;  %v12935_v2 = vsel %vm3067_vm5, %v21827_v31, 0 }
0x18ec   : > { %v12217_v40 = vpack.c.bf16 %v12185_v49, %v12185_v49  ;;  %17938 = vrcp.f32 %v12087_v53  ;;  %16815 = vmatprep.subr.bf16.mxu1 %v21764_v33  ;;  %v21828_v49 = vld [vmem:[#allocation36_spill] sm:$0xff] }
0x18ed   : > { %v17925_v52 = vpop.eup %17924  ;;  %v12981_v53 = vsel %vm3067_vm5, %v21828_v49, 0 }
0x18ee   : > { %v12186_v6 = vmul.f32 %v17925_v52, %v21156_v44  ;;  %16800 = vmatmul.mubr.msk.bf16.vlgmr.msra.gmra.mxu0 %vm2679_vm4, %v12217_v40 }
0x18ef   : > { %16810 = vmatpush3.bf16.msra.mxu0 %v12705_v45  ;;  %v12090_v10 = vpop.xlane.xlu0 %12089  ;;  %16811 = vmatprep.mubr.msk.bf16.mxu0 %vm18333_vm2, %v21764_v33  ;;  %v21829_v45 = vld [vmem:[#allocation40_spill] sm:$0xff] }
0x18f0   : > { %v12218_v23 = vpack.c.bf16 %v12186_v6, %v12186_v6  ;;  %17940 = vrcp.f32 %v12090_v10  ;;  %16821 = vmatprep.subr.bf16.mxu0 %v21764_v33  ;;  %v13027_v6 = vsel %vm3067_vm5, %v21829_v45, 0 }
0x18f1   : > { %v17927_v24 = vpop.eup %17926 }
0x18f2   : > { %v21324_v17 = vpop.eup %17928  ;;  %v12187_v50 = vmul.f32 %v17927_v24, %v21160_v55  ;;  %16806 = vmatmul.mubr.msk.bf16.vlgmr.msra.gmra.mxu1 %vm2679_vm4, %v12218_v23  ;;  %v12797_v55 = vsel %vm3067_vm5, %v20964_v5, 0  ;;  %v21830_v24 = vld [vmem:[#allocation39_spill] sm:$0xff] }
0x18f3   : > { %16816 = vmatpush3.bf16.msra.mxu1 %v12751_v9  ;;  %16817 = vmatprep.mubr.msk.bf16.mxu1 %vm18333_vm2, %v21764_v33  ;;  %v21332_v44 = vpop.eup %17930  ;;  %v12136_v3 = vsel %vm2679_vm4, %v21324_v17, 0.0  ;;  %v13073_v9 = vsel %vm3067_vm5, %v21830_v24, 0 }
0x18f4   : > { %v12219_v58 = vpack.c.bf16 %v12187_v50, %v12187_v50  ;;  %v12093_v8 = vpop.xlane.xlu1 %12092  ;;  %16827 = vmatprep.subr.bf16.mxu1 %v21764_v33  ;;  %v12133_v35 = vsel %vm2679_vm4, %v21332_v44, 0.0 }
0x18f5   : > { %v17933_v20 = vpop.eup %17932  ;;  %17942 = vrcp.f32 %v12093_v8  ;;  %v21831_v8 = vld [vmem:[#allocation26_spill] sm:$0xff] }
0x18f6   : > { %v21337_v30 = vpop.eup %17934  ;;  %v12188_v34 = vmul.f32 %v17933_v20, %v21166_v0  ;;  %16812 = vmatmul.mubr.msk.bf16.vlgmr.msra.gmra.mxu0 %vm2679_vm4, %v12219_v58  ;;  %12137 = vadd.xlane.f32.xlu0 %v12136_v3  ;;  %v13119_v20 = vsel %vm3067_vm5, %v21831_v8, 0 }
0x18f7   : > { %16822 = vmatpush3.bf16.msra.mxu0 %v12797_v55  ;;  %v12096_v54 = vpop.xlane.xlu0 %12095  ;;  %16823 = vmatprep.mubr.msk.bf16.mxu0 %vm18333_vm2, %v21764_v33  ;;  %v21345_v11 = vpop.eup %17936  ;;  %v12142_v0 = vsel %vm2679_vm4, %v21337_v30, 0.0 }
0x18f8   : > { %v12220_v14 = vpack.c.bf16 %v12188_v34, %v12188_v34  ;;  %17944 = vrcp.f32 %v12096_v54  ;;  %16833 = vmatprep.subr.bf16.mxu0 %v21764_v33  ;;  %v12139_v37 = vsel %vm2679_vm4, %v21345_v11, 0.0  ;;  %v21833_v54 = vld [vmem:[#allocation32_spill] sm:$0xff] }
0x18f9   : > { %v17939_v5 = vpop.eup %17938  ;;  %12134 = vadd.xlane.f32.xlu1 %v12133_v35 }
0x18fa   : > { %v12189_v57 = vmul.f32 %v17939_v5, %v21170_v63  ;;  %12143 = vadd.xlane.f32.xlu0 %v12142_v0  ;;  %16818 = vmatmul.mubr.msk.bf16.vlgmr.msra.gmra.mxu1 %vm2679_vm4, %v12220_v14  ;;  %v13211_v14 = vsel %vm3067_vm5, %v21833_v54, 0 }
0x18fb   : > { %16828 = vmatpush3.bf16.msra.mxu1 %v12843_v25  ;;  %16829 = vmatprep.mubr.msk.bf16.mxu1 %vm18333_vm2, %v21764_v33 }
0x18fc   : > { %v12221_v42 = vpack.c.bf16 %v12189_v57, %v12189_v57  ;;  %v12099_v19 = vpop.xlane.xlu1 %12098  ;;  %16839 = vmatprep.subr.bf16.mxu1 %v21764_v33 }
0x18fd   : > { %v17941_v46 = vpop.eup %17940  ;;  %17946 = vrcp.f32 %v12099_v19  ;;  %12140 = vadd.xlane.f32.xlu1 %v12139_v37 }
0x18fe   : > { %v12190_v63 = vmul.f32 %v17941_v46, %v21175_v4  ;;  %16824 = vmatmul.mubr.msk.bf16.vlgmr.msra.gmra.mxu0 %vm2679_vm4, %v12221_v42 }
0x18ff   : > { %16834 = vmatpush3.bf16.msra.mxu0 %v12889_v12  ;;  %16835 = vmatprep.mubr.msk.bf16.mxu0 %vm18333_vm2, %v21764_v33 }
0x1900   : > { %v12222_v21 = vpack.c.bf16 %v12190_v63, %v12190_v63  ;;  %16845 = vmatprep.subr.bf16.mxu0 %v21764_v33 }
0x1901   : > { %v12102_v22 = vpop.xlane.xlu0 %12101 }
0x1902   : > { %v17943_v47 = vpop.eup %17942  ;;  %17948 = vrcp.f32 %v12102_v22  ;;  %16830 = vmatmul.mubr.msk.bf16.vlgmr.msra.gmra.mxu1 %vm2679_vm4, %v12222_v21 }
0x1903   : > { %v12191_v38 = vmul.f32 %v17943_v47, %v21181_v39  ;;  %16840 = vmatpush3.bf16.msra.mxu1 %v12935_v2  ;;  %16841 = vmatprep.mubr.msk.bf16.mxu1 %vm18333_vm2, %v21764_v33 }
0x1904   : > { %v12105_v4 = vpop.xlane.xlu1 %12104  ;;  %16851 = vmatprep.subr.bf16.mxu1 %v21764_v33 }
0x1905   : > { %v17945_v41 = vpop.eup %17944  ;;  %v12223_v61 = vpack.c.bf16 %v12191_v38, %v12191_v38  ;;  %17950 = vrcp.f32 %v12105_v4 }
0x1906   : > { %v12192_v51 = vmul.f32 %v17945_v41, %v21186_v48 }
0x1907   : > { %16836 = vmatmul.mubr.msk.bf16.vlgmr.msra.gmra.mxu0 %vm2679_vm4, %v12223_v61 }
0x1908   : > { %v12224_v40 = vpack.c.bf16 %v12192_v51, %v12192_v51  ;;  %16846 = vmatpush3.bf16.msra.mxu0 %v12981_v53  ;;  %16847 = vmatprep.mubr.msk.bf16.mxu0 %vm18333_vm2, %v21764_v33 }
0x1909   : > { %v12108_v39 = vpop.xlane.xlu0 %12107  ;;  %16857 = vmatprep.subr.bf16.mxu0 %v21764_v33 }
0x190a   : > { %v17947_v52 = vpop.eup %17946  ;;  %17952 = vrcp.f32 %v12108_v39  ;;  %16842 = vmatmul.mubr.msk.bf16.vlgmr.msra.gmra.mxu1 %vm2679_vm4, %v12224_v40 }
0x190b   : > { %v12193_v48 = vmul.f32 %v17947_v52, %v21197_v28  ;;  %16852 = vmatpush3.bf16.msra.mxu1 %v13027_v6  ;;  %16853 = vmatprep.mubr.msk.bf16.mxu1 %vm18333_vm2, %v21764_v33 }
0x190c   : > { %16863 = vmatprep.subr.bf16.mxu1 %v21764_v33 }
0x190d   : > { %v12225_v10 = vpack.c.bf16 %v12193_v48, %v12193_v48  ;;  %v21834_v48 = vld [vmem:[#allocation24_spill] sm:$0xff] }
0x190e   : > { %10351 = vrot.lane.b32.xlu1 %v20731_v7, %s18340_s29 }
0x190f   : > { %v17949_v23 = vpop.eup %17948  ;;  %16848 = vmatmul.mubr.msk.bf16.vlgmr.msra.gmra.mxu0 %vm2679_vm4, %v12225_v10  ;;  %v13303_v10 = vsel %vm3067_vm5, %v21834_v48, 0 }
0x1910   : > { %v12194_v50 = vmul.f32 %v17949_v23, %v21208_v27  ;;  %16858 = vmatpush3.bf16.msra.mxu0 %v13073_v9  ;;  %10349 = vrot.lane.b32.xlu0 %v20746_v13, %s18340_s29  ;;  %v21832_v27 = vld [vmem:[#allocation31_spill] sm:$0xff] }
0x1911   : > { %16859 = vmatprep.mubr.msk.bf16.mxu0 %vm18333_vm2, %v21764_v33  ;;  %16869 = vmatprep.subr.bf16.mxu0 %v21764_v33  ;;  %v13165_v55 = vsel %vm3067_vm5, %v21832_v27, 0 }
0x1912   : > { %v17951_v28 = vpop.eup %17950  ;;  %v12226_v58 = vpack.c.bf16 %v12194_v50, %v12194_v50  ;;  %v21835_v50 = vld [vmem:[#allocation33_spill] sm:$0xff] }
0x1913   : > { %v12195_v7 = vmul.f32 %v17951_v28, %v21213_v16 }
0x1914   : > { %16854 = vmatmul.mubr.msk.bf16.vlgmr.msra.gmra.mxu1 %vm2679_vm4, %v12226_v58 }
0x1915   : > { %v12227_v3 = vpack.c.bf16 %v12195_v7, %v12195_v7  ;;  %16864 = vmatpush3.bf16.msra.mxu1 %v13119_v20  ;;  %16865 = vmatprep.mubr.msk.bf16.mxu1 %vm18333_vm2, %v21764_v33  ;;  %v13395_v7 = vsel %vm3067_vm5, %v21236_v59, 0 }
0x1916   : > { %16875 = vmatprep.subr.bf16.mxu1 %v21764_v33 }
0x1917   : > { %v17953_v13 = vpop.eup %17952  ;;  %16860 = vmatmul.mubr.msk.bf16.vlgmr.msra.gmra.mxu0 %vm2679_vm4, %v12227_v3 }
0x1918   : > { %v12196_v16 = vmul.f32 %v17953_v13, %v21223_v26  ;;  %16870 = vmatpush3.bf16.msra.mxu0 %v13165_v55  ;;  %16871 = vmatprep.mubr.msk.bf16.mxu0 %vm18333_vm2, %v21764_v33 }
0x1919   : > { %16881 = vmatprep.subr.bf16.mxu0 %v21764_v33 }
0x191a   : > { %v12228_v34 = vpack.c.bf16 %v12196_v16, %v12196_v16 }
0x191c   : > { %16866 = vmatmul.mubr.msk.bf16.vlgmr.msra.gmra.mxu1 %vm2679_vm4, %v12228_v34 }
0x191d   : > { %16876 = vmatpush3.bf16.msra.mxu1 %v13211_v14  ;;  %16877 = vmatprep.mubr.msk.bf16.mxu1 %vm18333_vm2, %v21764_v33 }
0x191e   : > { %16887 = vmatprep.subr.bf16.mxu1 %v21764_v33 }
0x192f   : > { %v21420_v35 = vpop.f32.mrf.mxu0 }
0x1931   : > { %v16753_v26 = vpop.f32.mrf.mxu0 }
0x1933   : > { %v12284_v5 = vpop.f32.mrf.mxu0  ;;  %v21422_v0 = vpop.f32.mrf.mxu1 }
0x1935   : > { %v16754_v25 = vpop.f32.mrf.mxu0  ;;  %v16759_v57 = vpop.f32.mrf.mxu1 }
0x1937   : > { %v12330_v42 = vpop.f32.mrf.mxu1 }
0x1939   : > { %v16760_v19 = vpop.f32.mrf.mxu1 }
0x193c   : > { %v21424_v37 = vpop.f32.mrf.mxu1 }
0x193e   : > { %v16771_v46 = vpop.f32.mrf.mxu1  ;;  %v12114_v12 = vpop.xlane.xlu0 %12113 }
0x193f   : > { %v21426_v63 = vpop.f32.mrf.mxu0  ;;  %17954 = vrcp.f32 %v12114_v12 }
0x1940   : > { %v12422_v21 = vpop.f32.mrf.mxu1 }
0x1941   : > { %v16765_v22 = vpop.f32.mrf.mxu0  ;;  %v12111_v47 = vpop.xlane.xlu1 %12110 }
0x1942   : > { %17956 = vrcp.f32 %v12111_v47  ;;  %v16772_v31 = vpop.f32.mrf.mxu1  ;;  %v12120_v2 = vpop.xlane.xlu0 %12119 }
0x1943   : > { %v12376_v38 = vpop.f32.mrf.mxu0  ;;  %17958 = vrcp.f32 %v12120_v2 }
0x1945   : > { %v16766_v4 = vpop.f32.mrf.mxu0  ;;  %v12117_v41 = vpop.xlane.xlu1 %12116 }
0x1946   : > { %17960 = vrcp.f32 %v12117_v41  ;;  %v12126_v61 = vpop.xlane.xlu0 %12125 }
0x1947   : > { %17962 = vrcp.f32 %v12126_v61 }
0x1949   : > { %v12123_v51 = vpop.xlane.xlu1 %12122 }
0x194a   : > { %17964 = vrcp.f32 %v12123_v51  ;;  %v12132_v6 = vpop.xlane.xlu0 %12131 }
0x194b   : > { %17966 = vrcp.f32 %v12132_v6 }
0x194c   : > { %v17955_v49 = vpop.eup %17954 }
0x194d   : > { %v12198_v53 = vmul.f32 %v17955_v49, %v21248_v1  ;;  %v12129_v9 = vpop.xlane.xlu1 %12128 }
0x194e   : > { %17968 = vrcp.f32 %v12129_v9  ;;  %v10346_v5 = vpop.permute.xlu0 %10345 }
0x194f   : > { %v17957_v40 = vpop.eup %17956  ;;  %v12230_v39 = vpack.c.bf16 %v12198_v53, %v12198_v53 }
0x1950   : > { %v17959_v52 = vpop.eup %17958  ;;  %v12197_v45 = vmul.f32 %v17957_v40, %v21252_v60  ;;  %v13257_v60 = vsel %vm3067_vm5, %v21835_v50, 0  ;;  %v21837_v40 = vmov 0  }
0x1951   : > { %16878 = vmatmul.mubr.msk.bf16.vlgmr.msra.gmra.mxu1 %vm2679_vm4, %v12230_v39  ;;  %v12200_v1 = vmul.f32 %v17959_v52, %v21254_v43  ;;  %v10348_v14 = vpop.permute.xlu1 %10347 }
0x1952   : > { %v12229_v23 = vpack.c.bf16 %v12197_v45, %v12197_v45  ;;  %16888 = vmatpush3.bf16.msra.mxu1 %v13303_v10  ;;  %16889 = vmatprep.mubr.msk.bf16.mxu1 %vm18333_vm2, %v21764_v33 }
0x1953   : > { %v17961_v24 = vpop.eup %17960  ;;  %16899 = vmatprep.subr.bf16.mxu1 %v21764_v33  ;;  %v12232_v58 = vpack.c.bf16 %v12200_v1, %v12200_v1 }
0x1954   : > { %16872 = vmatmul.mubr.msk.bf16.vlgmr.msra.gmra.mxu0 %vm2679_vm4, %v12229_v23  ;;  %v12199_v28 = vmul.f32 %v17961_v24, %v21260_v56  ;;  %v17963_v43 = vpop.eup %17962  ;;  %v21836_v56 = vld [vmem:[#allocation35_spill] sm:$0xff] }
0x1955   : > { %16882 = vmatpush3.bf16.msra.mxu0 %v13257_v60  ;;  %16883 = vmatprep.mubr.msk.bf16.mxu0 %vm18333_vm2, %v21764_v33  ;;  %v12202_v3 = vmul.f32 %v17963_v43, %v21262_v62  ;;  %v13349_v13 = vsel %vm3067_vm5, %v21836_v56, 0  ;;  %v13487_v62 = vsel %vm3067_vm5, %v21238_v29, 0 }
0x1956   : > { %16893 = vmatprep.subr.bf16.mxu0 %v21764_v33  ;;  %v12231_v8 = vpack.c.bf16 %v12199_v28, %v12199_v28 }
0x1957   : > { %v17965_v20 = vpop.eup %17964  ;;  %v12234_v27 = vpack.c.bf16 %v12202_v3, %v12202_v3 }
0x1958   : > { %v12201_v59 = vmul.f32 %v17965_v20, %v21268_v36  ;;  %v17967_v55 = vpop.eup %17966  ;;  %v13441_v36 = vsel %vm3067_vm5, %v21234_v15, 0  ;;  %v13533_v15 = vsel %vm3067_vm5, %v10346_v5, 0 }
0x1959   : > { %16890 = vmatmul.mubr.msk.bf16.vlgmr.msra.gmra.mxu1 %vm2679_vm4, %v12232_v58  ;;  %v12204_v54 = vmul.f32 %v17967_v55, %v21270_v32  ;;  %v13579_v32 = vsel %vm3067_vm5, %v10348_v14, 0 }
0x195a   : > { %16900 = vmatpush3.bf16.msra.mxu1 %v13395_v7  ;;  %16901 = vmatprep.mubr.msk.bf16.mxu1 %vm18333_vm2, %v21764_v33  ;;  %v12233_v16 = vpack.c.bf16 %v12201_v59, %v12201_v59 }
0x195b   : > { %16911 = vmatprep.subr.bf16.mxu1 %v21764_v33  ;;  %v17969_v34 = vpop.eup %17968  ;;  %v12236_v26 = vpack.c.bf16 %v12204_v54, %v12204_v54 }
0x195c   : > { %16884 = vmatmul.mubr.msk.bf16.vlgmr.msra.gmra.mxu0 %vm2679_vm4, %v12231_v8  ;;  %v12203_v29 = vmul.f32 %v17969_v34, %v21276_v18 }
0x195d   : > { %16894 = vmatpush3.bf16.msra.mxu0 %v13349_v13  ;;  %16895 = vmatprep.mubr.msk.bf16.mxu0 %vm18333_vm2, %v21764_v33 }
0x195e   : > { %16905 = vmatprep.subr.bf16.mxu0 %v21764_v33  ;;  %v12235_v25 = vpack.c.bf16 %v12203_v29, %v12203_v29 }
0x1961   : > { %16902 = vmatmul.mubr.msk.bf16.vlgmr.msra.gmra.mxu1 %vm2679_vm4, %v12234_v27 }
0x1962   : > { %16912 = vmatpush3.bf16.msra.mxu1 %v13487_v62  ;;  %16913 = vmatprep.mubr.msk.bf16.mxu1 %vm18333_vm2, %v21764_v33 }
0x1963   : > { %16923 = vmatprep.subr.bf16.mxu1 %v21764_v33 }
0x1964   : > { %16896 = vmatmul.mubr.msk.bf16.vlgmr.msra.gmra.mxu0 %vm2679_vm4, %v12233_v16 }
0x1965   : > { %16906 = vmatpush3.bf16.msra.mxu0 %v13441_v36  ;;  %16907 = vmatprep.mubr.msk.bf16.mxu0 %vm18333_vm2, %v21764_v33 }
0x1966   : > { %16917 = vmatprep.subr.bf16.mxu0 %v21764_v33 }
0x1969   : > { %16914 = vmatmul.mubr.msk.bf16.vlgmr.msra.gmra.mxu1 %vm2679_vm4, %v12236_v26 }
0x196a   : > { %16924 = vmatpush3.bf16.msra.mxu1 %v13579_v32  ;;  %16925 = vmatprep.mubr.msk.bf16.mxu1 %vm18333_vm2, %v21764_v33 }
0x196b   : > { %16935 = vmatprep.subr.bf16.mxu1 %v21764_v33 }
0x196c   : > { %16908 = vmatmul.mubr.msk.bf16.vlgmr.msra.gmra.mxu0 %vm2679_vm4, %v12235_v25 }
0x196d   : > { %16918 = vmatpush3.bf16.msra.mxu0 %v13533_v15  ;;  %16919 = vmatprep.mubr.msk.bf16.mxu0 %vm18333_vm2, %v21764_v33 }
0x196e   : > { %16929 = vmatprep.subr.bf16.mxu0 %v21764_v33 }
0x197f   : > { %v12138_v18 = vpop.xlane.xlu0 %12137 }
0x1980   : > { %17970 = vrcp.f32 %v12138_v18 }
0x1982   : > { %v12135_v57 = vpop.xlane.xlu1 %12134 }
0x1983   : > { %17972 = vrcp.f32 %v12135_v57  ;;  %v12144_v42 = vpop.xlane.xlu0 %12143 }
0x1984   : > { %17974 = vrcp.f32 %v12144_v42 }
0x1986   : > { %v12141_v19 = vpop.xlane.xlu1 %12140 }
0x1987   : > { %17976 = vrcp.f32 %v12141_v19  ;;  %v10350_v38 = vpop.permute.xlu0 %10349 }
0x198a   : > { %v10352_v21 = vpop.permute.xlu1 %10351 }
0x198b   : > { %v13671_v4 = vsel %vm3067_vm5, %v10352_v21, 0 }
0x198d   : > { %v17971_v46 = vpop.eup %17970 }
0x198e   : > { %v12206_v12 = vmul.f32 %v17971_v46, %v21324_v17  ;;  %v13625_v17 = vsel %vm3067_vm5, %v10350_v38, 0 }
0x1990   : > { %v17973_v22 = vpop.eup %17972  ;;  %v12238_v47 = vpack.c.bf16 %v12206_v12, %v12206_v12 }
0x1991   : > { %v17975_v31 = vpop.eup %17974  ;;  %v12205_v2 = vmul.f32 %v17973_v22, %v21332_v44 }
0x1992   : > { %16926 = vmatmul.mubr.msk.bf16.vlgmr.msra.gmra.mxu1 %vm2679_vm4, %v12238_v47  ;;  %v12208_v51 = vmul.f32 %v17975_v31, %v21337_v30 }
0x1993   : > { %v12237_v41 = vpack.c.bf16 %v12205_v2, %v12205_v2  ;;  %16936 = vmatpush3.bf16.msra.mxu1 %v13671_v4  ;;  %16937 = vmatprep.mubr.msk.bf16.mxu1 %vm18333_vm2, %v21764_v33 }
0x1994   : > { %v17977_v61 = vpop.eup %17976  ;;  %v12240_v49 = vpack.c.bf16 %v12208_v51, %v12208_v51 }
0x1995   : > { %16920 = vmatmul.mubr.msk.bf16.vlgmr.msra.gmra.mxu0 %vm2679_vm4, %v12237_v41  ;;  %v12207_v44 = vmul.f32 %v17977_v61, %v21345_v11 }
0x1996   : > { %16930 = vmatpush3.bf16.msra.mxu0 %v13625_v17  ;;  %16931 = vmatprep.mubr.msk.bf16.mxu0 %vm18333_vm2, %v21764_v33 }
0x1997   : > { %v12239_v53 = vpack.c.bf16 %v12207_v44, %v12207_v44 }
0x199a   : > { %16938 = vmatmul.mubr.msk.bf16.vlgmr.msra.gmra.mxu1 %vm2679_vm4, %v12240_v49 }
0x199b   : > { %14193 = vmatprep.mubr.bf16.mxu1 %v21837_v40 }
0x199d   : > { %16932 = vmatmul.mubr.msk.bf16.vlgmr.msra.gmra.mxu0 %vm2679_vm4, %v12239_v53 }
0x199e   : > { %v12465_v39 = vpop.f32.mrf.mxu0 }
0x19a0   : > { %v16777_v30 = vpop.f32.mrf.mxu0 }
0x19a2   : > { %v12468_v52 = vpop.f32.mrf.mxu0  ;;  %v12511_v45 = vpop.f32.mrf.mxu1 }
0x19a3   : > { %v17250_v6 = vpack.i.bf16 %v12511_v45, %v12465_v39 }
0x19a4   : > { %v16778_v48 = vpop.f32.mrf.mxu0  ;;  %v16783_v10 = vpop.f32.mrf.mxu1 }
0x19a5   : > { %17251 = vrot.lane.b32.xlu0 %v17250_v6, %s18340_s29 }
0x19a6   : > { %v12514_v33 = vpop.f32.mrf.mxu1  ;;  %v12557_v23 = vpop.f32.mrf.mxu0 }
0x19a8   : > { %v16784_v11 = vpop.f32.mrf.mxu1  ;;  %v16789_v24 = vpop.f32.mrf.mxu0 }
0x19aa   : > { %v12560_v1 = vpop.f32.mrf.mxu0  ;;  %v12603_v9 = vpop.f32.mrf.mxu1 }
0x19ab   : > { %v17255_v50 = vpack.i.bf16 %v12603_v9, %v12557_v23 }
0x19ac   : > { %v16790_v60 = vpop.f32.mrf.mxu0  ;;  %v16795_v28 = vpop.f32.mrf.mxu1 }
0x19ad   : > { %17256 = vrot.lane.b32.xlu1 %v17255_v50, %s18340_s29 }
0x19ae   : > { %v12606_v58 = vpop.f32.mrf.mxu1  ;;  %v12649_v43 = vpop.f32.mrf.mxu0 }
0x19b0   : > { %v16796_v7 = vpop.f32.mrf.mxu1  ;;  %v16801_v8 = vpop.f32.mrf.mxu0 }
0x19b2   : > { %v12652_v20 = vpop.f32.mrf.mxu0  ;;  %v12695_v3 = vpop.f32.mrf.mxu1 }
0x19b3   : > { %v17260_v56 = vpack.i.bf16 %v12695_v3, %v12649_v43 }
0x19b4   : > { %v16802_v13 = vpop.f32.mrf.mxu0  ;;  %v16807_v59 = vpop.f32.mrf.mxu1 }
0x19b5   : > { %17261 = vrot.lane.b32.xlu0 %v17260_v56, %s18339_s28 }
0x19b6   : > { %v12698_v27 = vpop.f32.mrf.mxu1  ;;  %v12741_v55 = vpop.f32.mrf.mxu0 }
0x19b8   : > { %v16808_v62 = vpop.f32.mrf.mxu1  ;;  %v16813_v16 = vpop.f32.mrf.mxu0 }
0x19ba   : > { %v12744_v34 = vpop.f32.mrf.mxu0  ;;  %v12787_v54 = vpop.f32.mrf.mxu1 }
0x19bb   : > { %v17265_v36 = vpack.i.bf16 %v12787_v54, %v12741_v55 }
0x19bc   : > { %v16814_v29 = vpop.f32.mrf.mxu0  ;;  %v16819_v14 = vpop.f32.mrf.mxu1 }
0x19bd   : > { %17266 = vrot.lane.b32.xlu1 %v17265_v36, %s18339_s28  ;;  %s14489_s28 = scalar_lea.sflag [#allocation4], %s18621_s5 }
0x19be   : > { %v12790_v26 = vpop.f32.mrf.mxu1  ;;  %v12833_v5 = vpop.f32.mrf.mxu0 }
0x19bf   : > { %v17514_v26 = vld [vmem:[#allocation11 + $0xb8] sm:$0xff]  }
0x19c0   : > { %v16820_v32 = vpop.f32.mrf.mxu1  ;;  %v16825_v25 = vpop.f32.mrf.mxu0  ;;  %16941 = vmatprep.subr.bf16.mxu0 %v17514_v26 }
0x19c1   : > { %16942 = vmatpush3.bf16.msra.mxu0 %v17514_v26 }
0x19c2   : > { %v12836_v15 = vpop.f32.mrf.mxu0  ;;  %v12879_v18 = vpop.f32.mrf.mxu1 }
0x19c3   : > { %v17270_v57 = vpack.i.bf16 %v12879_v18, %v12833_v5  ;;  %v17515_v5 = vld [vmem:[#allocation11 + $0xb0] sm:$0xff]  }
0x19c4   : > { %v16826_v42 = vpop.f32.mrf.mxu0  ;;  %v16831_v19 = vpop.f32.mrf.mxu1  ;;  %16943 = vmatprep.subr.bf16.mxu0 %v17515_v5 }
0x19c5   : > { %17271 = vrot.lane.b32.xlu0 %v17270_v57, %s18338_s17  ;;  %v17516_v42 = vld [vmem:[#allocation11 + $0xa8] sm:$0xff]   ;;  %16944 = vmatpush3.bf16.msra.mxu0 %v17515_v5 }
0x19c6   : > { %v12882_v46 = vpop.f32.mrf.mxu1  ;;  %16945 = vmatprep.subr.bf16.mxu0 %v17516_v42 }
0x19c7   : > { %v12925_v12 = vpop.f32.mrf.mxu0 }
0x19c8   : > { %v16832_v21 = vpop.f32.mrf.mxu1 }
0x19c9   : > { %v16837_v22 = vpop.f32.mrf.mxu0  ;;  %16946 = vmatpush3.bf16.msra.mxu0 %v17516_v42 }
0x19ca   : > { %v12971_v47 = vpop.f32.mrf.mxu1  ;;  %v17517_v22 = vld [vmem:[#allocation11 + $0xa0] sm:$0xff]  }
0x19cb   : > { %v12928_v31 = vpop.f32.mrf.mxu0  ;;  %v17275_v2 = vpack.i.bf16 %v12971_v47, %v12925_v12  ;;  %16947 = vmatprep.subr.bf16.mxu0 %v17517_v22 }
0x19cc   : > { %v16843_v38 = vpop.f32.mrf.mxu1 }
0x19cd   : > { %v16838_v4 = vpop.f32.mrf.mxu0  ;;  %17276 = vrot.lane.b32.xlu1 %v17275_v2, %s18338_s17  ;;  %16948 = vmatpush3.bf16.msra.mxu0 %v17517_v22  ;;  %s21844_s17 = sld [smem:[#allocation49_spill]] }
0x19ce   : > { %v12974_v41 = vpop.f32.mrf.mxu1 }
0x19cf   : > { %v13017_v61 = vpop.f32.mrf.mxu0  ;;  %v17518_v41 = vld [vmem:[#allocation11 + $0x98] sm:$0xff]  }
0x19d0   : > { %v16844_v51 = vpop.f32.mrf.mxu1  ;;  %16949 = vmatprep.subr.bf16.mxu0 %v17518_v41 }
0x19d1   : > { %v16849_v17 = vpop.f32.mrf.mxu0  ;;  %16950 = vmatpush3.bf16.msra.mxu0 %v17518_v41  ;;  %v17519_v51 = vld [vmem:[#allocation11 + $0x90] sm:$0xff]  }
0x19d2   : > { %v17520_v17 = vld [vmem:[#allocation11 + $0x88] sm:$0xff]   ;;  %16951 = vmatprep.subr.bf16.mxu0 %v17519_v51 }
0x19d3   : > { %v13020_v44 = vpop.f32.mrf.mxu0 }
0x19d4   : > { %v13063_v49 = vpop.f32.mrf.mxu1 }
0x19d5   : > { %v16850_v53 = vpop.f32.mrf.mxu0  ;;  %v17280_v39 = vpack.i.bf16 %v13063_v49, %v13017_v61  ;;  %16952 = vmatpush3.bf16.msra.mxu0 %v17519_v51 }
0x19d6   : > { %v16855_v30 = vpop.f32.mrf.mxu1  ;;  %16953 = vmatprep.subr.bf16.mxu0 %v17520_v17  ;;  %v17521_v53 = vld [vmem:[#allocation11 + $0x80] sm:$0xff]  }
0x19d7   : > { %v13109_v52 = vpop.f32.mrf.mxu0  ;;  %17281 = vrot.lane.b32.xlu0 %v17280_v39, %s18337_s9 }
0x19d8   : > { %v13066_v45 = vpop.f32.mrf.mxu1 }
0x19d9   : > { %v16861_v6 = vpop.f32.mrf.mxu0  ;;  %16954 = vmatpush3.bf16.msra.mxu0 %v17520_v17 }
0x19da   : > { %v16856_v48 = vpop.f32.mrf.mxu1  ;;  %16955 = vmatprep.subr.bf16.mxu0 %v17521_v53 }
0x19db   : > { %v13112_v10 = vpop.f32.mrf.mxu0 }
0x19dc   : > { %v13155_v33 = vpop.f32.mrf.mxu1 }
0x19dd   : > { %v16862_v23 = vpop.f32.mrf.mxu0  ;;  %v17285_v11 = vpack.i.bf16 %v13155_v33, %v13109_v52  ;;  %16956 = vmatpush3.bf16.msra.mxu0 %v17521_v53 }
0x19de   : > { %v16867_v24 = vpop.f32.mrf.mxu1 }
0x19df   : > { %17286 = vrot.lane.b32.xlu1 %v17285_v11, %s18337_s9 }
0x19e0   : > { %v13158_v1 = vpop.f32.mrf.mxu1 }
0x19e2   : > { %v16868_v9 = vpop.f32.mrf.mxu1 }
0x1a11   : > { %v13247_v50 = vpop.f32.mrf.mxu1 }
0x1a13   : > { %v16879_v60 = vpop.f32.mrf.mxu1 }
0x1a14   : > { %v13201_v28 = vpop.f32.mrf.mxu0 }
0x1a15   : > { %v17290_v58 = vpack.i.bf16 %v13247_v50, %v13201_v28  ;;  %v13250_v43 = vpop.f32.mrf.mxu1 }
0x1a16   : > { %v16873_v7 = vpop.f32.mrf.mxu0 }
0x1a17   : > { %17291 = vrot.lane.b32.xlu0 %v17290_v58, %s18336_s30  ;;  %v16880_v8 = vpop.f32.mrf.mxu1  ;;  %v17252_v58 = vpop.permute.xlu0 %17251 }
0x1a18   : > { %v13204_v20 = vpop.f32.mrf.mxu0 }
0x1a19   : > { %v13339_v3 = vpop.f32.mrf.mxu1 }
0x1a1a   : > { %v16874_v56 = vpop.f32.mrf.mxu0 }
0x1a1b   : > { %v16891_v13 = vpop.f32.mrf.mxu1 }
0x1a1c   : > { %v13293_v59 = vpop.f32.mrf.mxu0 }
0x1a1d   : > { %v17295_v27 = vpack.i.bf16 %v13339_v3, %v13293_v59  ;;  %v13342_v55 = vpop.f32.mrf.mxu1  ;;  %v17254_v59 = vunpack.i.h.bf16 %v17252_v58 }
0x1a1e   : > { %v16885_v62 = vpop.f32.mrf.mxu0 }
0x1a1f   : > { %17296 = vrot.lane.b32.xlu1 %v17295_v27, %s18336_s30  ;;  %v16892_v16 = vpop.f32.mrf.mxu1  ;;  %v17257_v7 = vpop.permute.xlu1 %17256  ;;  %v17253_v27 = vunpack.i.l.bf16 %v17252_v58  ;;  %v13826_v26 = vsel %vm1174_vm3, %v21422_v0, %v17254_v59 }
0x1a20   : > { %v13296_v34 = vpop.f32.mrf.mxu0  ;;  %v17258_v22 = vunpack.i.l.bf16 %v17257_v7 }
0x1a21   : > { %v13431_v54 = vpop.f32.mrf.mxu1  ;;  %v13825_v5 = vsel %vm1174_vm3, %v21420_v35, %v17253_v27 }
0x1a22   : > { %v16886_v36 = vpop.f32.mrf.mxu0 }
0x1a23   : > { %v16903_v29 = vpop.f32.mrf.mxu1 }
0x1a24   : > { %v13385_v14 = vpop.f32.mrf.mxu0 }
0x1a25   : > { %v17300_v32 = vpack.i.bf16 %v13431_v54, %v13385_v14  ;;  %v13434_v25 = vpop.f32.mrf.mxu1 }
0x1a26   : > { %v16897_v15 = vpop.f32.mrf.mxu0 }
0x1a27   : > { %17301 = vrot.lane.b32.xlu0 %v17300_v32, %s18335_s25  ;;  %v16904_v18 = vpop.f32.mrf.mxu1  ;;  %v17262_v43 = vpop.permute.xlu0 %17261 }
0x1a28   : > { %v13388_v57 = vpop.f32.mrf.mxu0  ;;  %v17264_v55 = vunpack.i.h.bf16 %v17262_v43  ;;  %v17263_v62 = vunpack.i.l.bf16 %v17262_v43 }
0x1a29   : > { %v13523_v19 = vpop.f32.mrf.mxu1 }
0x1a2a   : > { %v16898_v46 = vpop.f32.mrf.mxu0  ;;  %v13829_v15 = vsel %vm658_vm1, %v13825_v5, %v17263_v62  ;;  %v13830_v18 = vsel %vm658_vm1, %v13826_v26, %v17264_v55  ;;  %v15067_v55 = vld [vmem:[%s21661_s6 + $0x2] ss:$0 sm:$0xff] }
0x1a2b   : > { %v16915_v12 = vpop.f32.mrf.mxu1  ;;  %v21839_v5 = vld [vmem:[#allocation27_spill] sm:$0xff] }
0x1a2c   : > { %v13477_v21 = vpop.f32.mrf.mxu0 }
0x1a2d   : > { %v17305_v47 = vpack.i.bf16 %v13523_v19, %v13477_v21  ;;  %v13526_v31 = vpop.f32.mrf.mxu1  ;;  %v17259_v21 = vunpack.i.h.bf16 %v17257_v7 }
0x1a2e   : > { %v16909_v2 = vpop.f32.mrf.mxu0 }
0x1a2f   : > { %17306 = vrot.lane.b32.xlu1 %v17305_v47, %s18335_s25  ;;  %v16916_v38 = vpop.f32.mrf.mxu1  ;;  %v17267_v20 = vpop.permute.xlu1 %17266  ;;  %s14502_s25 = sshll.u32 %s626_s27, 4  ;;  %s21612_s25 = int_to_ptr.vmem [resolvable:$true] %s14502_s25 }
0x1a30   : > { %v13480_v4 = vpop.f32.mrf.mxu0  ;;  %v17269_v41 = vunpack.i.h.bf16 %v17267_v20  ;;  %s18230_s29 = scalar_lea.vmem %s21612_s25, 512 }
0x1a31   : > { %p18231_p2 = scmp.ne.s32.totalorder %s21612_s25, %s18230_s29 }
0x1a32   : > { %v16910_v61 = vpop.f32.mrf.mxu0 }
0x1a33   : > { %v17268_v61 = vunpack.i.l.bf16 %v17267_v20  ;;  %p18232_p11 = pnand %p18231_p2, %p21845_p5 }
0x1a35   : > { %p18233_p10 = pneg %p18232_p11 }
0x1a37   : > { %v17272_v8 = vpop.permute.xlu0 %17271 }
0x1a38   : > { %v17274_v16 = vunpack.i.h.bf16 %v17272_v8  ;;  %v17273_v34 = vunpack.i.l.bf16 %v17272_v8 }
0x1a3a   : > { %v13833_v19 = vsel %vm4657_vm6, %v13829_v15, %v17273_v34  ;;  %v13834_v46 = vsel %vm4657_vm6, %v13830_v18, %v17274_v16  ;;  %v21840_v15 = vld [vmem:[#allocation38_spill] sm:$0xff] }
0x1a3f   : > { %v17277_v56 = vpop.permute.xlu1 %17276 }
0x1a49   : > { %v17282_v3 = vpop.permute.xlu0 %17281 }
0x1a4a   : > { %v17284_v29 = vunpack.i.h.bf16 %v17282_v3  ;;  %v17283_v14 = vunpack.i.l.bf16 %v17282_v3 }
0x1a4c   : > { %v13837_v0 = vsel %vm4662_vm7, %v13833_v19, %v17283_v14  ;;  %v13838_v47 = vsel %vm4662_vm7, %v13834_v46, %v17284_v29  ;;  %v17522_v19 = vld [vmem:[#allocation14 + $0x170] ss:$8 sps:$4 sm:$0xff]   ;;  %v17524_v46 = vld [vmem:[#allocation14 + $0x174] ss:$8 sps:$4 sm:$0xff]  }
0x1a4d   : > { %14161 = vmatprep.subr.bf16.mxu1 %v17524_v46 }
0x1a4e   : > { %14162 = vmatpush1.bf16.msra.mxu1 %v17522_v19 }
0x1a51   : > { %v17287_v54 = vpop.permute.xlu1 %17286 }
0x1a52   : > { %v13615_v44 = vpop.f32.mrf.mxu1 }
0x1a54   : > { %v16927_v49 = vpop.f32.mrf.mxu1 }
0x1a55   : > { %v13569_v39 = vpop.f32.mrf.mxu0  ;;  %v17278_v49 = vunpack.i.l.bf16 %v17277_v56 }
0x1a56   : > { %v17310_v30 = vpack.i.bf16 %v13615_v44, %v13569_v39  ;;  %v13618_v52 = vpop.f32.mrf.mxu1  ;;  %v17279_v44 = vunpack.i.h.bf16 %v17277_v56 }
0x1a57   : > { %v16921_v45 = vpop.f32.mrf.mxu0  ;;  %v17289_v52 = vunpack.i.h.bf16 %v17287_v54 }
0x1a58   : > { %17311 = vrot.lane.b32.xlu0 %v17310_v30, %s18334_s4  ;;  %v16928_v6 = vpop.f32.mrf.mxu1  ;;  %v17288_v45 = vunpack.i.l.bf16 %v17287_v54 }
0x1a59   : > { %v13572_v48 = vpop.f32.mrf.mxu0 }
0x1a5a   : > { %v13707_v10 = vpop.f32.mrf.mxu1  ;;  %v13828_v48 = vsel %vm1174_vm3, %v21424_v37, %v17259_v21 }
0x1a5b   : > { %v16922_v33 = vpop.f32.mrf.mxu0 }
0x1a5c   : > { %v16939_v23 = vpop.f32.mrf.mxu1 }
0x1a5d   : > { %v13661_v11 = vpop.f32.mrf.mxu0 }
0x1a5e   : > { %v17315_v24 = vpack.i.bf16 %v13707_v10, %v13661_v11  ;;  %v13710_v1 = vpop.f32.mrf.mxu1  ;;  %v13827_v10 = vsel %vm1174_vm3, %v21426_v63, %v17258_v22  ;;  %v13832_v11 = vsel %vm658_vm1, %v13828_v48, %v17269_v41  ;;  %v17536_v48 = vld [vmem:[#allocation14 + $0x134] ss:$8 sps:$4 sm:$0xff]  }
0x1a5f   : > { %v16933_v9 = vpop.f32.mrf.mxu0 }
0x1a60   : > { %17316 = vrot.lane.b32.xlu1 %v17315_v24, %s18334_s4  ;;  %v16940_v50 = vpop.f32.mrf.mxu1  ;;  %v13831_v24 = vsel %vm658_vm1, %v13827_v10, %v17268_v61  ;;  %v17534_v10 = vld [vmem:[#allocation14 + $0x130] ss:$8 sps:$4 sm:$0xff]   ;;  %s15148_s4 = sshll.u32 %s18445_s24, 9  ;;  %s18341_s24 = smov [#allocation17]  }
0x1a61   : > { %v13664_v60 = vpop.f32.mrf.mxu0  ;;  %v13836_v50 = vsel %vm4657_vm6, %v13832_v11, %v17279_v44  ;;  %v17542_v11 = vld [vmem:[#allocation14 + $0x114] ss:$8 sps:$4 sm:$0xff]   ;;  %s21610_s11 = scalar_lea.hbm %s21844_s17, %s15148_s4  ;;  %s18234_s22 = sshll.u32 %s18341_s24, 4  ;;  %s18235_s22 = int_to_ptr.vmem [resolvable:$false] %s18234_s22 }
0x1a62   : > { %v13835_v60 = vsel %vm4657_vm6, %v13831_v24, %v17278_v49  ;;  %v17540_v24 = vld [vmem:[#allocation14 + $0x110] ss:$8 sps:$4 sm:$0xff]   ;;  %s18236_s26 = scalar_lea.vmem %s18235_s22, 1024  ;;  %p18237_p1 = scmp.lt.s32.totalorder %s21612_s25, %s18235_s22 }
0x1a63   : > { %v16934_v28 = vpop.f32.mrf.mxu0  ;;  %v13839_v37 = vsel %vm4662_vm7, %v13835_v60, %v17288_v45  ;;  %v17533_v45 = vld [vmem:[#allocation14 + $0x144] ss:$8 sps:$4 sm:$0xff]   ;;  %v17547_v60 = vld [vmem:[#allocation16 + $0x138] sm:$0xff]   ;;  %p18238_p3 = scmp.lt.s32.totalorder %s18236_s26, %s18230_s29 }
0x1a64   : > { %v13840_v28 = vsel %vm4662_vm7, %v13836_v50, %v17289_v52  ;;  %v17528_v52 = vld [vmem:[#allocation14 + $0x150] ss:$8 sps:$4 sm:$0xff]  }
0x1a65   : > { %v17546_v50 = vld [vmem:[#allocation16 + $0x178] sm:$0xff]   ;;  %p18239_p4 = por %p18238_p3, %p18237_p1 }
0x1a66   : > { %15653 = vmatprep.subr.bf16.mxu0 %v17546_v50 }
0x1a67   : > { %p18240_p6 = pnand %p18239_p4, %p18233_p10 }
0x1a89   : > { %v17292_v13 = vpop.permute.xlu0 %17291 }
0x1a8a   : > { %v17294_v32 = vunpack.i.h.bf16 %v17292_v13  ;;  %v17293_v25 = vunpack.i.l.bf16 %v17292_v13 }
0x1a8c   : > { %v13841_v31 = vsel %vm4667_vm8, %v13837_v0, %v17293_v25  ;;  %v13842_v2 = vsel %vm4667_vm8, %v13838_v47, %v17294_v32 }
0x1a91   : > { %v17297_v12 = vpop.permute.xlu1 %17296 }
0x1a92   : > { %v17299_v33 = vunpack.i.h.bf16 %v17297_v12  ;;  %v17298_v23 = vunpack.i.l.bf16 %v17297_v12 }
0x1a94   : > { %v13844_v63 = vsel %vm4667_vm8, %v13840_v28, %v17299_v33  ;;  %v13843_v43 = vsel %vm4667_vm8, %v13839_v37, %v17298_v23  ;;  %v17539_v33 = vld [vmem:[#allocation14 + $0x124] ss:$8 sps:$4 sm:$0xff]   ;;  %v17537_v23 = vld [vmem:[#allocation14 + $0x120] ss:$8 sps:$4 sm:$0xff]   ;;  %v17548_v28 = vld [vmem:[#allocation16 + $0x170] sm:$0xff]  }
0x1a95   : > { %v17549_v37 = vld [vmem:[#allocation16 + $0x130] sm:$0xff]  }
0x1a99   : > { %v17302_v36 = vpop.permute.xlu0 %17301 }
0x1a9a   : > { %v17304_v57 = vunpack.i.h.bf16 %v17302_v36  ;;  %v17303_v42 = vunpack.i.l.bf16 %v17302_v36  ;;  %v21838_v36 = vld [vmem:[#allocation34_spill] sm:$0xff] }
0x1a9c   : > { %v13845_v51 = vsel %vm4672_vm9, %v13841_v31, %v17303_v42  ;;  %v13846_v17 = vsel %vm4672_vm9, %v13842_v2, %v17304_v57  ;;  %v21841_v57 = vld [vmem:[#allocation25_spill] sm:$0xff] }
0x1aa1   : > { %v17307_v53 = vpop.permute.xlu1 %17306 }
0x1aa2   : > { %v17309_v1 = vunpack.i.h.bf16 %v17307_v53  ;;  %v17308_v9 = vunpack.i.l.bf16 %v17307_v53  ;;  %v17527_v53 = vld [vmem:[#allocation14 + $0x164] ss:$8 sps:$4 sm:$0xff]  }
0x1aa3   : > { %14163 = vmatprep.subr.bf16.mxu1 %v17527_v53  ;;  %v21842_v53 = vld [vmem:[#allocation29_spill] sm:$0xff] }
0x1aa4   : > { %v13848_v20 = vsel %vm4672_vm9, %v13844_v63, %v17309_v1  ;;  %v13847_v3 = vsel %vm4672_vm9, %v13843_v43, %v17308_v9  ;;  %v17545_v1 = vld [vmem:[#allocation14 + $0x104] ss:$8 sps:$4 sm:$0xff]   ;;  %v17543_v9 = vld [vmem:[#allocation14 + $0x100] ss:$8 sps:$4 sm:$0xff]  }
0x1aa5   : > { %v17551_v63 = vld [vmem:[#allocation16 + $0x128] sm:$0xff]   ;;  %v17552_v43 = vld [vmem:[#allocation16 + $0x160] sm:$0xff]  }
0x1aca   : > { %v17312_v35 = vpop.permute.xlu0 %17311 }
0x1acb   : > { %v17314_v38 = vunpack.i.h.bf16 %v17312_v35  ;;  %v17313_v4 = vunpack.i.l.bf16 %v17312_v35 }
0x1acd   : > { %v13849_v39 = vsel %vm4677_vm10, %v13845_v51, %v17313_v4  ;;  %v13850_v30 = vsel %vm4677_vm10, %v13846_v17, %v17314_v38 }
0x1ace   : > { %v13853_v6 = vpack.c.bf16 %v13850_v30, %v13849_v39  ;;  %v17525_v39 = vld [vmem:[#allocation14 + $0x160] ss:$8 sps:$4 sm:$0xff]   ;;  %v17530_v30 = vld [vmem:[#allocation14 + $0x154] ss:$8 sps:$4 sm:$0xff]  }
0x1acf   : > { %14164 = vmatpush1.bf16.msra.mxu1 %v17525_v39 }
0x1ad0   : > { %16957 = vmatprep.mubr.bf16.mxu0 %v13853_v6  ;;  %14165 = vmatprep.subr.bf16.mxu1 %v17530_v30  ;;  %v17531_v6 = vld [vmem:[#allocation14 + $0x140] ss:$8 sps:$4 sm:$0xff]  }
0x1ad1   : > { %v21843_v30 = vld [vmem:[#allocation28_spill] sm:$0xff] }
0x1ad2   : > { %v17317_v58 = vpop.permute.xlu1 %17316 }
0x1ad3   : > { %v17319_v7 = vunpack.i.h.bf16 %v17317_v58  ;;  %v17318_v8 = vunpack.i.l.bf16 %v17317_v58  ;;  %14166 = vmatpush1.bf16.msra.mxu1 %v17528_v52  ;;  %v17550_v58 = vld [vmem:[#allocation16 + $0x168] sm:$0xff]  }
0x1ad4   : > { %14167 = vmatprep.subr.bf16.mxu1 %v17533_v45 }
0x1ad5   : > { %v13852_v56 = vsel %vm4677_vm10, %v13848_v20, %v17319_v7  ;;  %v13851_v13 = vsel %vm4677_vm10, %v13847_v3, %v17318_v8  ;;  %v17553_v7 = vld [vmem:[#allocation16 + $0x120] sm:$0xff]   ;;  %v17554_v8 = vld [vmem:[#allocation16 + $0x158] sm:$0xff]  }
0x1ad6   : > { %v13854_v59 = vpack.c.bf16 %v13852_v56, %v13851_v13  ;;  %v17555_v20 = vld [vmem:[#allocation16 + $0x118] sm:$0xff]  }
0x1ad7   : > { %14168 = vmatpush1.bf16.msra.mxu1 %v17531_v6 }
0x1ad8   : > { %16958 = vmatmul.mubr.bf16.vlgmr.msra.gmra.mxu0 %v13854_v59  ;;  %14169 = vmatprep.subr.bf16.mxu1 %v17536_v48 }
0x1ad9   : > { %15654 = vmatpush3.bf16.msra.mxu0 %v17547_v60 }
0x1ada   : > { %15655 = vmatprep.subr.bf16.mxu0 %v17548_v28 }
0x1adb   : > { %14170 = vmatpush1.bf16.msra.mxu1 %v17534_v10 }
0x1adc   : > { %14171 = vmatprep.subr.bf16.mxu1 %v17539_v33 }
0x1add   : > { %15656 = vmatpush3.bf16.msra.mxu0 %v17549_v37 }
0x1ade   : > { %15657 = vmatprep.subr.bf16.mxu0 %v17550_v58 }
0x1adf   : > { %14172 = vmatpush1.bf16.msra.mxu1 %v17537_v23 }
0x1ae0   : > { %14173 = vmatprep.subr.bf16.mxu1 %v17542_v11 }
0x1ae1   : > { %15658 = vmatpush3.bf16.msra.mxu0 %v17551_v63 }
0x1ae2   : > { %15659 = vmatprep.subr.bf16.mxu0 %v17552_v43 }
0x1ae3   : > { %14174 = vmatpush1.bf16.msra.mxu1 %v17540_v24 }
0x1ae4   : > { %14175 = vmatprep.subr.bf16.mxu1 %v17545_v1 }
0x1ae5   : > { %15660 = vmatpush3.bf16.msra.mxu0 %v17553_v7 }
0x1ae6   : > { %15661 = vmatprep.subr.bf16.mxu0 %v17554_v8 }
0x1ae7   : > { %14176 = vmatpush1.bf16.msra.mxu1 %v17543_v9 }
0x1ae9   : > { %15662 = vmatpush3.bf16.msra.mxu0 %v17555_v20 }
0x1b98   : > { %v16959_v27 = vpop.f32.mrf.mxu0 }
0x1b99   : > { %v13971_v54 = vadd.f32 %v16959_v27, %v15067_v55 }
0x1b9a   : > { %v13962_v62 = vpop.f32.mrf.mxu0 }
0x1b9b   : > { %v13963_v16 = vadd.f32 %v15067_v55, %v13962_v62  ;;  %v13979_v32 = vadd.f32 %v13971_v54, %v21839_v5  ;;  %v15077_v5 = vld [vmem:[%s21662_s7 + $0x2] ss:$0 sm:$0xff] }
0x1b9c   : > { %v16960_v34 = vpop.f32.mrf.mxu0 }
0x1b9d   : > { %v13977_v29 = vadd.f32 %v13963_v16, %v21838_v36  ;;  %v13974_v25 = vadd.f32 %v16960_v34, %v15067_v55 }
0x1b9e   : > { %v13965_v14 = vpop.f32.mrf.mxu0 }
0x1b9f   : > { %v13966_v26 = vadd.f32 %v15067_v55, %v13965_v14  ;;  %13985 = vadd.xlane.f32.xlu0 %v13977_v29  ;;  %v13980_v42 = vadd.f32 %v13974_v25, %v21841_v57  ;;  %v15078_v57 = vld [vmem:[#allocation13 + $0x2] ss:$0 sm:$0xff] }
0x1ba1   : > { %v13978_v18 = vadd.f32 %v13966_v26, %v21840_v15 }
0x1ba3   : > { %13987 = vadd.xlane.f32.xlu1 %v13978_v18  ;;  %13989 = vadd.xlane.f32.xlu0 %v13979_v32 }
0x1ba7   : > { %13991 = vadd.xlane.f32.xlu0 %v13980_v42 }
0x1c28   : > { %v13986_v12 = vpop.xlane.xlu0 %13985 }
0x1c29   : > { %v13993_v21 = vmul.f32 0.0078125, %v13986_v12 }
0x1c2b   : > { %v21550_v22 = vsub.f32 %v13977_v29, %v13993_v21 }
0x1c2c   : > { %v13988_v0 = vpop.xlane.xlu1 %13987  ;;  %v13990_v47 = vpop.xlane.xlu0 %13989 }
0x1c2d   : > { %v13994_v35 = vmul.f32 0.0078125, %v13988_v0  ;;  %v13995_v31 = vmul.f32 0.0078125, %v13990_v47  ;;  %v14001_v2 = vmul.f32 %v21550_v22, %v21550_v22 }
0x1c2f   : > { %v21554_v38 = vsub.f32 %v13978_v18, %v13994_v35  ;;  %v21556_v4 = vsub.f32 %v13979_v32, %v13995_v31  ;;  %14005 = vadd.xlane.f32.xlu1 %v14001_v2 }
0x1c30   : > { %v13992_v41 = vpop.xlane.xlu0 %13991 }
0x1c31   : > { %v13996_v61 = vmul.f32 0.0078125, %v13992_v41  ;;  %v14002_v51 = vmul.f32 %v21554_v38, %v21554_v38  ;;  %v14003_v17 = vmul.f32 %v21556_v4, %v21556_v4  ;;  %v17556_v41 = vld [vmem:[#allocation16 + $0x150] sm:$0xff]  }
0x1c32   : > { %15663 = vmatprep.subr.bf16.mxu0 %v17556_v41 }
0x1c33   : > { %v21562_v44 = vsub.f32 %v13980_v42, %v13996_v61  ;;  %14007 = vadd.xlane.f32.xlu0 %v14002_v51  ;;  %14009 = vadd.xlane.f32.xlu1 %v14003_v17  ;;  %v17557_v61 = vld [vmem:[#allocation16 + $0x110] sm:$0xff]   ;;  %v17559_v51 = vld [vmem:[#allocation16 + $0x108] sm:$0xff]   ;;  %v17560_v17 = vld [vmem:[#allocation16 + $0x140] sm:$0xff]  }
0x1c34   : > { %15664 = vmatpush3.bf16.msra.mxu0 %v17557_v61 }
0x1c35   : > { %v14004_v49 = vmul.f32 %v21562_v44, %v21562_v44 }
0x1c37   : > { %14011 = vadd.xlane.f32.xlu0 %v14004_v49 }
0x1cb8   : > { %v14006_v3 = vpop.xlane.xlu1 %14005 }
0x1cb9   : > { %v14013_v56 = vmul.f32 0.0078125, %v14006_v3 }
0x1cbb   : > { %v14017_v13 = vadd.f32 1e-05, %v14013_v56 }
0x1cbc   : > { %v14010_v59 = vpop.xlane.xlu1 %14009  ;;  %v14008_v27 = vpop.xlane.xlu0 %14007 }
0x1cbd   : > { %17978 = vrsqrt.f32 %v14017_v13  ;;  %v14015_v55 = vmul.f32 0.0078125, %v14010_v59  ;;  %v14014_v62 = vmul.f32 0.0078125, %v14008_v27 }
0x1cbf   : > { %v14018_v16 = vadd.f32 1e-05, %v14014_v62  ;;  %v14019_v34 = vadd.f32 1e-05, %v14015_v55 }
0x1cc0   : > { %v14012_v54 = vpop.xlane.xlu0 %14011 }
0x1cc1   : > { %v14016_v36 = vmul.f32 0.0078125, %v14012_v54  ;;  %17980 = vrsqrt.f32 %v14018_v16 }
0x1cc2   : > { %17982 = vrsqrt.f32 %v14019_v34  ;;  %v15097_v34 = vld [vmem:[%s21667_s12 + $0x2] ss:$0 sm:$0xff] }
0x1cc3   : > { %v14020_v29 = vadd.f32 1e-05, %v14016_v36 }
0x1cc5   : > { %17984 = vrsqrt.f32 %v14020_v29 }
0x1cca   : > { %v17979_v14 = vpop.eup %17978 }
0x1ccb   : > { %v14025_v26 = vmul.f32 %v17979_v14, %v21550_v22 }
0x1ccd   : > { %v14035_v15 = vmul.f32 %v15077_v5, %v14025_v26 }
0x1cce   : > { %v17981_v32 = vpop.eup %17980 }
0x1ccf   : > { %v14026_v25 = vmul.f32 %v17981_v32, %v21554_v38  ;;  %v17983_v18 = vpop.eup %17982  ;;  %v21572_v12 = vadd.f32 %v15078_v57, %v14035_v15 }
0x1cd0   : > { %v14027_v22 = vmul.f32 %v17983_v18, %v21556_v4  ;;  %v17558_v4 = vld [vmem:[#allocation16 + $0x148] sm:$0xff]  }
0x1cd1   : > { %v14036_v19 = vmul.f32 %v15077_v5, %v14026_v25  ;;  %15665 = vmatprep.subr.bf16.mxu0 %v17558_v4 }
0x1cd2   : > { %v17985_v42 = vpop.eup %17984  ;;  %v14037_v35 = vmul.f32 %v15077_v5, %v14027_v22  ;;  %15666 = vmatpush3.bf16.msra.mxu0 %v17559_v51 }
0x1cd3   : > { %v14028_v46 = vmul.f32 %v17985_v42, %v21562_v44  ;;  %v21574_v21 = vadd.f32 %v15078_v57, %v14036_v19  ;;  %v17561_v44 = vld [vmem:[#allocation16 + $0x100] sm:$0xff]   ;;  %15667 = vmatprep.subr.bf16.mxu0 %v17560_v17 }
0x1cd4   : > { %v21582_v2 = vadd.f32 %v15078_v57, %v14037_v35 }
0x1cd5   : > { %v14049_v0 = vpack.c.bf16 %v21574_v21, %v21572_v12  ;;  %v14038_v47 = vmul.f32 %v15077_v5, %v14028_v46 }
0x1cd6   : > { %15668 = vmatpush3.bf16.msra.mxu0 %v17561_v44 }
0x1cd7   : > { %14194 = vmatmul.mubr.bf16.vlgmr.msra.gmra.mxu1 %v14049_v0  ;;  %v21580_v31 = vadd.f32 %v15078_v57, %v14038_v47 }
0x1cd8   : > { %14203 = vmatprep.mubr.bf16.mxu1 %v21837_v40  ;;  %v15079_v40 = vld [vmem:[%s21665_s10 + $0x4] sm:$0x3] }
0x1cd9   : > { %v14050_v38 = vpack.c.bf16 %v21580_v31, %v21582_v2  ;;  %v14078_v39 = vrot.slane %v15079_v40, %v21842_v53  ;;  %v14074_v52 = vrot.slane %v15079_v40, %v21843_v30 }
0x1cdf   : > { %14204 = vmatmul.mubr.bf16.gmra.mxu1 %v14050_v38 }
0x1d97   : > { %v14195_v49 = vpop.f32.mrf.mxu1 }
0x1d98   : > { %v14196_v33 = vadd.f32 %v14195_v49, %v14074_v52 }
0x1d99   : > { %v14197_v45 = vpop.f32.mrf.mxu1 }
0x1d9a   : > { %v14198_v48 = vadd.f32 %v14197_v45, %v14078_v39  ;;  %v14214_v60 = vmax.f32 %v14196_v33, 0.0 }
0x1d9b   : > { %v14199_v6 = vpop.f32.mrf.mxu1 }
0x1d9c   : > { %v14200_v10 = vadd.f32 %v14199_v6, %v14074_v52  ;;  %v14215_v9 = vmax.f32 %v14198_v48, 0.0 }
0x1d9d   : > { %v14201_v23 = vpop.f32.mrf.mxu1 }
0x1d9e   : > { %v14202_v11 = vadd.f32 %v14201_v23, %v14078_v39  ;;  %v14216_v24 = vmax.f32 %v14200_v10, 0.0 }
0x1d9f   : > { %v14205_v1 = vpop.f32.mrf.mxu1 }
0x1da0   : > { %v14217_v50 = vmax.f32 %v14202_v11, 0.0  ;;  %v14222_v58 = vpack.c.bf16 %v14216_v24, %v14214_v60  ;;  %v14206_v8 = vadd.f32 %v14205_v1, %v14074_v52 }
0x1da1   : > { %v14207_v28 = vpop.f32.mrf.mxu1 }
0x1da2   : > { %v14223_v37 = vpack.c.bf16 %v14217_v50, %v14215_v9  ;;  %v14208_v43 = vadd.f32 %v14207_v28, %v14078_v39  ;;  %v14218_v27 = vmax.f32 %v14206_v8, 0.0 }
0x1da3   : > { %v14209_v63 = vpop.f32.mrf.mxu1 }
0x1da4   : > { %v14210_v7 = vadd.f32 %v14209_v63, %v14074_v52  ;;  %14395 = vmatprep.mubr.bf16.mxu0 %v14223_v37  ;;  %v14219_v13 = vmax.f32 %v14208_v43, 0.0  ;;  %v15116_v37 = vld [vmem:[%s21668_s13 + $0x2] ss:$0 sm:$0xff] }
0x1da5   : > { %v14211_v20 = vpop.f32.mrf.mxu1  ;;  %14396 = vmatmul.mubr.bf16.vlgmr.msra.gmra.mxu0 %v14222_v58  ;;  %v15117_v63 = vld [vmem:[%s21669_s14 + $0x2] ss:$0 sm:$0xff] }
0x1da6   : > { %v14212_v3 = vadd.f32 %v14211_v20, %v14078_v39  ;;  %v14220_v56 = vmax.f32 %v14210_v7, 0.0 }
0x1da8   : > { %v14221_v59 = vmax.f32 %v14212_v3, 0.0  ;;  %v14224_v62 = vpack.c.bf16 %v14220_v56, %v14218_v27 }
0x1daa   : > { %v14225_v55 = vpack.c.bf16 %v14221_v59, %v14219_v13 }
0x1dac   : > { %14403 = vmatprep.mubr.bf16.mxu0 %v14225_v55 }
0x1dad   : > { %14404 = vmatmul.mubr.bf16.gmra.mxu0 %v14224_v62 }
0x1e65   : > { %v15669_v16 = vpop.f32.mrf.mxu0 }
0x1e67   : > { %v15670_v54 = vpop.f32.mrf.mxu0 }
0x1e68   : > { %v15671_v36 = vadd.f32 %v15670_v54, %v15669_v16 }
0x1e69   : > { %v15672_v29 = vpop.f32.mrf.mxu0 }
0x1e6a   : > { %v14398_v14 = vadd.f32 %v15671_v36, %v15097_v34 }
0x1e6b   : > { %v15673_v26 = vpop.f32.mrf.mxu0 }
0x1e6c   : > { %v15674_v5 = vadd.f32 %v15673_v26, %v15672_v29  ;;  %v14412_v32 = vadd.f32 %v14398_v14, %v21572_v12 }
0x1e6d   : > { %v15675_v25 = vpop.f32.mrf.mxu0 }
0x1e6e   : > { %v14401_v15 = vadd.f32 %v15674_v5, %v15097_v34  ;;  %14420 = vadd.xlane.f32.xlu1 %v14412_v32 }
0x1e6f   : > { %v15676_v18 = vpop.f32.mrf.mxu0 }
0x1e70   : > { %v15677_v57 = vadd.f32 %v15676_v18, %v15675_v25  ;;  %v14413_v42 = vadd.f32 %v14401_v15, %v21574_v21 }
0x1e71   : > { %v15678_v19 = vpop.f32.mrf.mxu0 }
0x1e72   : > { %v14406_v46 = vadd.f32 %v15677_v57, %v15097_v34  ;;  %14422 = vadd.xlane.f32.xlu0 %v14413_v42 }
0x1e73   : > { %v15679_v22 = vpop.f32.mrf.mxu0 }
0x1e74   : > { %v15680_v0 = vadd.f32 %v15679_v22, %v15678_v19  ;;  %v14414_v47 = vadd.f32 %v14406_v46, %v21582_v2 }
0x1e76   : > { %v14409_v35 = vadd.f32 %v15680_v0, %v15097_v34  ;;  %14424 = vadd.xlane.f32.xlu1 %v14414_v47 }
0x1e78   : > { %v14415_v38 = vadd.f32 %v14409_v35, %v21580_v31 }
0x1e7a   : > { %14426 = vadd.xlane.f32.xlu0 %v14415_v38 }
0x1ef7   : > { %v14421_v12 = vpop.xlane.xlu1 %14420 }
0x1ef8   : > { %v14428_v41 = vmul.f32 0.0078125, %v14421_v12 }
0x1efa   : > { %v14432_v61 = vsub.f32 %v14412_v32, %v14428_v41 }
0x1efb   : > { %v14423_v4 = vpop.xlane.xlu0 %14422 }
0x1efc   : > { %v14429_v51 = vmul.f32 0.0078125, %v14423_v4  ;;  %v14436_v17 = vmul.f32 %v14432_v61, %v14432_v61 }
0x1efe   : > { %v14433_v44 = vsub.f32 %v14413_v42, %v14429_v51  ;;  %14440 = vadd.xlane.f32.xlu1 %v14436_v17 }
0x1eff   : > { %v14425_v21 = vpop.xlane.xlu1 %14424 }
0x1f00   : > { %v14430_v40 = vmul.f32 0.0078125, %v14425_v21  ;;  %v14437_v49 = vmul.f32 %v14433_v44, %v14433_v44 }
0x1f02   : > { %v14434_v53 = vsub.f32 %v14414_v47, %v14430_v40  ;;  %14442 = vadd.xlane.f32.xlu0 %v14437_v49 }
0x1f03   : > { %v14427_v39 = vpop.xlane.xlu0 %14426 }
0x1f04   : > { %v14431_v2 = vmul.f32 0.0078125, %v14427_v39  ;;  %v14438_v30 = vmul.f32 %v14434_v53, %v14434_v53 }
0x1f06   : > { %v14435_v52 = vsub.f32 %v14415_v38, %v14431_v2  ;;  %14444 = vadd.xlane.f32.xlu1 %v14438_v30 }
0x1f08   : > { %v14439_v31 = vmul.f32 %v14435_v52, %v14435_v52 }
0x1f0a   : > { %14446 = vadd.xlane.f32.xlu0 %v14439_v31 }
0x1f87   : > { %v14441_v45 = vpop.xlane.xlu1 %14440 }
0x1f88   : > { %v14448_v6 = vmul.f32 0.0078125, %v14441_v45 }
0x1f8a   : > { %v14452_v48 = vadd.f32 1e-05, %v14448_v6 }
0x1f8b   : > { %v14443_v10 = vpop.xlane.xlu0 %14442 }
0x1f8c   : > { %17986 = vrsqrt.f32 %v14452_v48  ;;  %v14449_v33 = vmul.f32 0.0078125, %v14443_v10 }
0x1f8e   : > { %v14453_v23 = vadd.f32 1e-05, %v14449_v33 }
0x1f8f   : > { %v14445_v11 = vpop.xlane.xlu1 %14444 }
0x1f90   : > { %17988 = vrsqrt.f32 %v14453_v23  ;;  %v14450_v24 = vmul.f32 0.0078125, %v14445_v11 }
0x1f92   : > { %v14454_v1 = vadd.f32 1e-05, %v14450_v24 }
0x1f93   : > { %v14447_v9 = vpop.xlane.xlu0 %14446 }
0x1f94   : > { %17990 = vrsqrt.f32 %v14454_v1  ;;  %v14451_v50 = vmul.f32 0.0078125, %v14447_v9 }
0x1f96   : > { %v14455_v60 = vadd.f32 1e-05, %v14451_v50 }
0x1f98   : > { %17992 = vrsqrt.f32 %v14455_v60 }
0x1f99   : > { %v17987_v28 = vpop.eup %17986 }
0x1f9a   : > { %v14460_v58 = vmul.f32 %v17987_v28, %v14432_v61 }
0x1f9c   : > { %v14470_v43 = vmul.f32 %v15116_v37, %v14460_v58 }
0x1f9d   : > { %v17989_v7 = vpop.eup %17988 }
0x1f9e   : > { %v14480_v8 = vadd.f32 %v15117_v63, %v14470_v43  ;;  %v14461_v20 = vmul.f32 %v17989_v7, %v14433_v44 }
0x1fa0   : > { %14484 = vst [vmem:[%s626_s27] sm:$0xff] %v14480_v8  ;;  %v14471_v3 = vmul.f32 %v15116_v37, %v14461_v20 }
0x1fa1   : > { %v17991_v56 = vpop.eup %17990 }
0x1fa2   : > { %v14481_v13 = vadd.f32 %v15117_v63, %v14471_v3  ;;  %v14462_v59 = vmul.f32 %v17991_v56, %v14434_v53 }
0x1fa4   : > { %14485 = vst [vmem:[%s626_s27 + $0x8] sm:$0xff] %v14481_v13  ;;  %v14472_v27 = vmul.f32 %v15116_v37, %v14462_v59 }
0x1fa5   : > { %v17993_v55 = vpop.eup %17992 }
0x1fa6   : > { %v14482_v62 = vadd.f32 %v15117_v63, %v14472_v27  ;;  %v14463_v16 = vmul.f32 %v17993_v55, %v14435_v52 }
0x1fa8   : > { %14486 = vst [vmem:[%s626_s27 + $0x10] sm:$0xff] %v14482_v62  ;;  %v14473_v34 = vmul.f32 %v15116_v37, %v14463_v16 }
0x1faa   : > { %v14483_v54 = vadd.f32 %v15117_v63, %v14473_v34 }
0x1fac   : > { %14487 = vst [vmem:[%s626_s27 + $0x18] sm:$0xff] %v14483_v54 }
0x1fad   : > { %18243 = shalt.err (!%p18240_p6)
}
0x1fae   : > { %s18244_s8 = scalar_lea.hbm %s21610_s11, 512  ;;  %s18248_s27 = scalar_lea.hbm %s21844_s17, 1024 }
0x1faf   : > { %p18245_p9 = scmp.ne.s32.totalorder %s21610_s11, %s18244_s8  ;;  %p18249_p12 = scmp.lt.s32.totalorder %s21610_s11, %s21844_s17 }
0x1fb0   : > { %p18250_p0 = scmp.lt.s32.totalorder %s18248_s27, %s18244_s8 }
0x1fb1   : > { %p18246_p8 = pnand %p18245_p9, %p21845_p5 }
0x1fb2   : > { %p18251_p13 = por %p18250_p0, %p18249_p12 }
0x1fb3   : > { %p18247_p7 = pneg %p18246_p8 }
0x1fb5   : > { %p18252_p2 = pnand %p18251_p13, %p18247_p7 }
0x1fb7   : > { %18255 = shalt.err (!%p18252_p2)
}
0x1fb8   : > { %s18342_s9 = smov 128   ;;  %s18343_s29 = smov 8  }
0x1fb9   : > { %16995 = dma.vmem_to_hbm [thread:$0]  (%p21845_p5), %s21612_s25, 512, %s21610_s11, %s14489_s28, %s18342_s9, %s18342_s9, %s18343_s29  }
0x1fba PF: > { %s14517_s24 = sand.u32 1, %s18298_s18   ;;  %p21846_p11 = scmp.ne.s32.totalorder %s21735_s3, 0 }
0x1fbb   : > { %p21847_p10 = scmp.ge.s32.totalorder %s18310_s21, 2  ;;  %s14518_s22 = scalar_lea.sflag [#allocation4], %s14517_s24 }
0x1fbd   : > { %p17027_p1 = pnand %p21847_p10, %p21846_p11 }
0x1fbf   : > { %p17028_p3 = pneg %p17027_p1 }
0x1fc1   : > { %18293 = dma.done.wait (%p17028_p3), %s14518_s22, 512  }
0x1fc2   : > { %18295 = vsyncadd (%p17028_p3), %s14518_s22, 4294966784  ;;  %p32_p4 = scmp.ge.s32.totalorder %s18546_s16, 4   ;;  %s21848_s18 = smov %s18302_s19 }
0x1fc3   : > { %s21849_s19 = smov %s18306_s20  ;;  %s21850_s20 = smov %s18557_s23 }
0x1fc4   : > { %s21851_s21 = smov %s18546_s16  ;;  %34 = sbr.rel (!%p32_p4) target bundleno = 19 (0x13), region = 181 }
0x1fc9   :  { %14523 = vsyncpa [#allocation3], 1 }
0x1fca   :  { %14525 = vsyncpa [#allocation3 + $0x1], 1 }
0x1fcb   :  { %14526 = vsyncpa [#allocation6], 1 }
0x1fcc   :  { %14527 = vsyncpa [#allocation9], 1 }
0x1fcd   :  { %14528 = vsyncpa [#allocation12], 1 }
0x1fce   :  { %14529 = vsyncpa [#allocation15], 1 }
0x1fcf   :  { %14530 = vsyncpa [#allocation4], 1 }
0x1fd0   :  { %14532 = vsyncpa [#allocation4 + $0x1], 1 }

</bundles_post_ra>
